<compile_context>
chip_gen: v5e
topology: v5e:2x2
jax: 0.10.0
libtpu: 0.0.40
codegen_flags: <defaults>
</compile_context>

<pallas_src>
import functools

import jax
import jax.numpy as jnp
from jax.experimental import pallas as pl
from jax.experimental.pallas import tpu as pltpu

H_DIM = 400          # true hidden size of the PyTorch module
H_PAD = 512          # hidden size padded to a multiple of 128 for MXU/VPU tiles
_LANE = 128


def _round_up(n, m):
    return ((n + m - 1) // m) * m


def _cdiv(a, b):
    return (a + b - 1) // b


# --------------------------------------------------------------------------
# Kernel
# --------------------------------------------------------------------------
def _disc_kernel(x_ref, w1_ref, b1_ref, w2_ref, b2_ref,
                 w3_ref, b3_ref, w4_ref, b4_ref, o_ref):
    """Fused 4-layer MLP, feature-major: activations are (H_PAD, bm) so the
    batch sits on lanes and the output is a lane-dense (1, bm) row."""
    x = x_ref[...]                                              # (2, bm) f32

    # ---- Layer 1 (K=2): two broadcast FMAs on the VPU; fused bias+ReLU, ----
    # ---- single pack-to-bf16 store for the next MXU pass.               ----
    h = jnp.maximum(
        w1_ref[:, 0:1] * x[0:1, :] + w1_ref[:, 1:2] * x[1:2, :] + b1_ref[...],
        0.0).astype(jnp.bfloat16)                               # (H_PAD, bm)

    # ---- Layers 2 & 3: bf16 MXU matmul, f32 accumulation, fused epilogue ----
    h = jnp.maximum(
        jnp.dot(w2_ref[...], h, preferred_element_type=jnp.float32)
        + b2_ref[...], 0.0).astype(jnp.bfloat16)                # (H_PAD, bm)
    h = jnp.maximum(
        jnp.dot(w3_ref[...], h, preferred_element_type=jnp.float32)
        + b3_ref[...], 0.0)                                     # keep f32

    # ---- Layer 4 (N=1): multiply + sublane reduce -> (1, bm) lane-dense. ----
    logit = jnp.sum(h * w4_ref[...], axis=0, keepdims=True) + b4_ref[...]
    o_ref[...] = jax.nn.sigmoid(logit)                          # (1, bm) f32


# --------------------------------------------------------------------------
# Trace-time configuration helpers (plain Python, outside jit)
# --------------------------------------------------------------------------
@functools.lru_cache(maxsize=1)
def _target_config():
    """(bm_target, vmem_limit_bytes), generation-aware.

    v5e/v6e have 128 MiB VMEM per TensorCore, v7x only 64 MiB; keep ~16 MiB
    of headroom on v7x.  bm=2048 needs roughly 12-20 MiB of temporaries plus
    ~1-2 MiB of resident weights, so it fits everywhere with these limits.
    """
    vmem_bytes = 64 << 20                      # conservative default (v7x)
    try:
        vmem_bytes = int(getattr(pltpu.get_tpu_info(),
                                 "vmem_capacity_bytes", vmem_bytes))
    except Exception:
        pass
    if vmem_bytes >= (100 << 20):              # v5e / v6e
        return 2048, 64 << 20
    return 2048, 48 << 20                      # v7x


def _tiling(batch, bm_target):
    """Balanced tiles: n_tiles, bm_eff (multiple of 128), padded batch."""
    bm_target = max(_LANE, _round_up(bm_target, _LANE))
    b128 = _round_up(max(batch, 1), _LANE)
    n_tiles = _cdiv(b128, bm_target)
    if b128 > _LANE:
        n_tiles = max(n_tiles, 2)   # >=2 grid steps so both v7x TCs get work
    bm_eff = _round_up(_cdiv(b128, n_tiles), _LANE)
    b_pad = bm_eff * n_tiles
    return n_tiles, bm_eff, b_pad


def _probe_kernel(w_ref, o_ref):
    o_ref[...] = w_ref[...] * 2.0


@functools.lru_cache(maxsize=1)
def _single_buffer_supported():
    """Probe whether pipeline_mode=pl.Buffered(1) compiles + runs correctly
    for a grid-invariant input; fall back to default double-buffering if not."""
    try:
        w = jnp.ones((8, 128), jnp.float32)
        fn = pl.pallas_call(
            _probe_kernel,
            out_shape=jax.ShapeDtypeStruct((16, 128), jnp.float32),
            grid=(2,),
            in_specs=[pl.BlockSpec((8, 128), lambda i: (0, 0),
                                   pipeline_mode=pl.Buffered(1))],
            out_specs=pl.BlockSpec((8, 128), lambda i: (i, 0)),
        )
        out = jax.block_until_ready(fn(w))
        return bool(jnp.allclose(out, 2.0))
    except Exception:
        return False


# --------------------------------------------------------------------------
# Forward wrapper
# --------------------------------------------------------------------------
@functools.partial(jax.jit, static_argnames=("bm_eff", "n_tiles", "b_pad",
                                             "vmem_limit", "single_buf"))
def _forward_jit(x, packed_params, *, bm_eff, n_tiles, b_pad, vmem_limit,
                 single_buf):
    w1p, b1p, w2p, b2p, w3p, b3p, w4p, b4p = packed_params
    params = (w1p, b1p, w2p, b2p, w3p, b3p, w4p, b4p)
    B = x.shape[0]

    # Feature-major input, zero-padded tail (padded columns sliced off below).
    x_t = jnp.zeros((2, b_pad), jnp.float32).at[:, :B].set(
        x.T.astype(jnp.float32))

    def const_spec(arr):
        if single_buf:
            return pl.BlockSpec(arr.shape, lambda i: (0,) * arr.ndim,
                                pipeline_mode=pl.Buffered(1))
        return pl.BlockSpec(arr.shape, lambda i: (0,) * arr.ndim)

    weight_bytes = sum(int(a.size) * a.dtype.itemsize for a in params)
    cost = pl.CostEstimate(
        flops=2 * b_pad * (2 * H_DIM + 2 * H_DIM * H_DIM + H_DIM),
        transcendentals=b_pad,
        bytes_accessed=weight_bytes + int(x_t.size) * 4 + b_pad * 4,
    )

    out = pl.pallas_call(
        _disc_kernel,
        out_shape=jax.ShapeDtypeStruct((1, b_pad), jnp.float32),
        grid_spec=pl.GridSpec(
            grid=(n_tiles,),
            in_specs=[pl.BlockSpec((2, bm_eff), lambda i: (0, i))]  # x tile
                     + [const_spec(a) for a in params],             # weights
            out_specs=pl.BlockSpec((1, bm_eff), lambda i: (0, i)),
        ),
        compiler_params=pltpu.CompilerParams(
            dimension_semantics=("parallel",),   # batch axis shards across TCs
            vmem_limit_bytes=vmem_limit,
        ),
        cost_estimate=cost,
    )(x_t, *params)

    return out.reshape(-1)[:B]                   # output.view(-1)


def discriminator_forward(x, packed_params, *, bm=None):
    """x: (B, 2) float32 -> (B,) float32 (PyTorch forward + .view(-1))."""
    B = int(x.shape[0])
    bm_target, vmem_limit = _target_config()
    if bm is not None:
        bm_target = int(bm)
    n_tiles, bm_eff, b_pad = _tiling(B, bm_target)
    return _forward_jit(x, packed_params, bm_eff=bm_eff, n_tiles=n_tiles,
                        b_pad=b_pad, vmem_limit=vmem_limit,
                        single_buf=_single_buffer_supported())


# --------------------------------------------------------------------------
# Parameters
# --------------------------------------------------------------------------
def init_params(key):
    """PyTorch-layout params ((out, in) weights) with nn.Linear default init."""
    dims = [(H_DIM, 2), (H_DIM, H_DIM), (H_DIM, H_DIM), (1, H_DIM)]
    params = []
    for fan_out, fan_in in dims:
        key, kw, kb = jax.random.split(key, 3)
        bound = 1.0 / float(fan_in) ** 0.5
        w = jax.random.uniform(kw, (fan_out, fan_in), jnp.float32, -bound, bound)
        b = jax.random.uniform(kb, (fan_out,), jnp.float32, -bound, bound)
        params += [w, b]
    return tuple(params)


def pack_params(raw):
    """Zero-pad hidden 400->512, keep PyTorch (out, in) layout, cast the two
    square weights to bf16 (f32 accumulation in-kernel).  Padded rows/cols and
    padded bias entries are zero, so ReLU(0)=0 contributes nothing downstream
    and the math matches the unpadded network."""
    # TODO(synk): optional fp8 (e4m3) W2/W3 with per-row scales on v7x if the
    # accuracy budget allows; kept bf16 to preserve the 5e-3 tolerance.
    W1, b1, W2, b2, W3, b3, W4, b4 = raw
    w1p = jnp.zeros((H_PAD, 2), jnp.float32).at[:H_DIM, :].set(W1)
    b1p = jnp.zeros((H_PAD, 1), jnp.float32).at[:H_DIM, 0].set(b1)
    w2p = (jnp.zeros((H_PAD, H_PAD), jnp.float32)
           .at[:H_DIM, :H_DIM].set(W2).astype(jnp.bfloat16))
    b2p = jnp.zeros((H_PAD, 1), jnp.float32).at[:H_DIM, 0].set(b2)
    w3p = (jnp.zeros((H_PAD, H_PAD), jnp.float32)
           .at[:H_DIM, :H_DIM].set(W3).astype(jnp.bfloat16))
    b3p = jnp.zeros((H_PAD, 1), jnp.float32).at[:H_DIM, 0].set(b3)
    w4p = jnp.zeros((H_PAD, 1), jnp.float32).at[:H_DIM, 0].set(W4[0])
    b4p = b4.reshape(1, 1).astype(jnp.float32)
    return (w1p, b1p, w2p, b2p, w3p, b3p, w4p, b4p)


def _reference(x, raw):
    """Pure-JAX reference with the same quantization as the kernel
    (bf16 inputs / f32 accumulation on the two square layers)."""
    W1, b1, W2, b2, W3, b3, W4, b4 = raw
    h = jnp.maximum(x[:, 0:1] * W1[:, 0] + x[:, 1:2] * W1[:, 1] + b1, 0.0)
    h = jnp.maximum(
        jnp.dot(h.astype(jnp.bfloat16), W2.T.astype(jnp.bfloat16),
                preferred_element_type=jnp.float32) + b2, 0.0)
    h = jnp.maximum(
        jnp.dot(h.astype(jnp.bfloat16), W3.T.astype(jnp.bfloat16),
                preferred_element_type=jnp.float32) + b3, 0.0)
    logit = jnp.sum(h * W4[0], axis=-1) + b4[0]
    return jax.nn.sigmoid(logit)


if __name__ == "__main__":
    key = jax.random.PRNGKey(0)
    kp, kx1, kx2, kx3 = jax.random.split(key, 4)

    raw_params = init_params(kp)
    packed = pack_params(raw_params)

    # Single-tile batch, ragged two-tile batch, and a larger balanced-tile batch.
    for B, kx in ((8, kx1), (300, kx2), (3000, kx3)):
        x = jax.random.normal(kx, (B, 2), jnp.float32)
        out = jax.block_until_ready(discriminator_forward(x, packed))
        ref = _reference(x, raw_params)
        assert out.shape == (B,)
        assert jnp.allclose(out, ref, atol=5e-3, rtol=5e-3), (B, out, ref)

    print("KERNEL_OK")
</pallas_src>

<mosaic_0001>
module attributes {stable_mosaic.version = 11 : i64} {
  func.func @_probe_kernel(%arg0: i32, %arg1: memref<8x128xf32, #tpu.memory_space<vmem>>, %arg2: memref<8x128xf32, #tpu.memory_space<vmem>>) attributes {dimension_semantics = [#tpu.dimension_semantics<arbitrary>], iteration_bounds = array<i64: 2>, scalar_prefetch = 0 : i64, scratch_operands = 0 : i64, tpu.core_type = #tpu.core_type<tc>, window_params = [{pipeline_mode = #tpu.pipeline_mode<synchronous>, transform_indices = @transform_0, window_bounds = array<i64: 8, 128>}, {transform_indices = @transform_1, window_bounds = array<i64: 8, 128>}]} {
    %c0 = arith.constant 0 : index
    %c0_0 = arith.constant 0 : index
    %0 = vector.load %arg1[%c0, %c0_0] : memref<8x128xf32, #tpu.memory_space<vmem>>, vector<8x128xf32>
    %cst = arith.constant 2.000000e+00 : f32
    %1 = vector.broadcast %cst : f32 to vector<8x128xf32>
    %2 = arith.mulf %0, %1 : vector<8x128xf32>
    %c0_1 = arith.constant 0 : index
    %c0_2 = arith.constant 0 : index
    %3 = vector.load %arg2[%c0_1, %c0_2] : memref<8x128xf32, #tpu.memory_space<vmem>>, vector<8x128xf32>
    tpu.vector_store %arg2[%c0_1, %c0_2], %2 {strides = array<i32>} : memref<8x128xf32, #tpu.memory_space<vmem>>, vector<8x128xf32>,
    return
  }
  func.func @transform_0(%arg0: i32) -> (i32, i32) {
    %c0_i32 = arith.constant 0 : i32
    %c0_i32_0 = arith.constant 0 : i32
    %c0_i32_1 = arith.constant 0 : i32
    return %c0_i32, %c0_i32_0 : i32, i32
  }
  func.func @transform_1(%arg0: i32) -> (i32, i32) {
    %c0_i32 = arith.constant 0 : i32
    %c0_i32_0 = arith.constant 0 : i32
    return %arg0, %c0_i32 : i32, i32
  }
}

module attributes {stable_mosaic.version = 11 : i64} {
  func.func @_disc_kernel(%arg0: i32, %arg1: memref<2x128xf32, #tpu.memory_space<vmem>>, %arg2: memref<512x2xf32, #tpu.memory_space<vmem>>, %arg3: memref<512x1xf32, #tpu.memory_space<vmem>>, %arg4: memref<512x512xbf16, #tpu.memory_space<vmem>>, %arg5: memref<512x1xf32, #tpu.memory_space<vmem>>, %arg6: memref<512x512xbf16, #tpu.memory_space<vmem>>, %arg7: memref<512x1xf32, #tpu.memory_space<vmem>>, %arg8: memref<512x1xf32, #tpu.memory_space<vmem>>, %arg9: memref<1x1xf32, #tpu.memory_space<vmem>>, %arg10: memref<1x128xf32, #tpu.memory_space<vmem>>) attributes {dimension_semantics = [#tpu.dimension_semantics<parallel>], iteration_bounds = array<i64: 1>, scalar_prefetch = 0 : i64, scratch_operands = 0 : i64, tpu.core_type = #tpu.core_type<tc>, window_params = [{transform_indices = @transform_0, window_bounds = array<i64: 2, 128>}, {pipeline_mode = #tpu.pipeline_mode<synchronous>, transform_indices = @transform_1, window_bounds = array<i64: 512, 2>}, {pipeline_mode = #tpu.pipeline_mode<synchronous>, transform_indices = @transform_2, window_bounds = array<i64: 512, 1>}, {pipeline_mode = #tpu.pipeline_mode<synchronous>, transform_indices = @transform_3, window_bounds = array<i64: 512, 512>}, {pipeline_mode = #tpu.pipeline_mode<synchronous>, transform_indices = @transform_4, window_bounds = array<i64: 512, 1>}, {pipeline_mode = #tpu.pipeline_mode<synchronous>, transform_indices = @transform_5, window_bounds = array<i64: 512, 512>}, {pipeline_mode = #tpu.pipeline_mode<synchronous>, transform_indices = @transform_6, window_bounds = array<i64: 512, 1>}, {pipeline_mode = #tpu.pipeline_mode<synchronous>, transform_indices = @transform_7, window_bounds = array<i64: 512, 1>}, {pipeline_mode = #tpu.pipeline_mode<synchronous>, transform_indices = @transform_8, window_bounds = array<i64: 1, 1>}, {transform_indices = @transform_9, window_bounds = array<i64: 1, 128>}]} {
    %c0 = arith.constant 0 : index
    %c0_0 = arith.constant 0 : index
    %0 = vector.load %arg1[%c0, %c0_0] : memref<2x128xf32, #tpu.memory_space<vmem>>, vector<2x128xf32>
    %c0_1 = arith.constant 0 : index
    %c0_2 = arith.constant 0 : index
    %1 = vector.load %arg2[%c0_1, %c0_2] : memref<512x2xf32, #tpu.memory_space<vmem>>, vector<512x1xf32>
    %2 = vector.extract_strided_slice %0 {offsets = [0, 0], sizes = [1, 128], strides = [1, 1]} : vector<2x128xf32> to vector<1x128xf32>
    %3 = vector.broadcast %1 : vector<512x1xf32> to vector<512x128xf32>
    %4 = vector.broadcast %2 : vector<1x128xf32> to vector<512x128xf32>
    %5 = arith.mulf %3, %4 : vector<512x128xf32>
    %c0_3 = arith.constant 0 : index
    %c1 = arith.constant 1 : index
    %6 = vector.load %arg2[%c0_3, %c1] : memref<512x2xf32, #tpu.memory_space<vmem>>, vector<512x1xf32>
    %7 = vector.extract_strided_slice %0 {offsets = [1, 0], sizes = [1, 128], strides = [1, 1]} : vector<2x128xf32> to vector<1x128xf32>
    %8 = vector.broadcast %6 : vector<512x1xf32> to vector<512x128xf32>
    %9 = vector.broadcast %7 : vector<1x128xf32> to vector<512x128xf32>
    %10 = arith.mulf %8, %9 : vector<512x128xf32>
    %11 = arith.addf %5, %10 : vector<512x128xf32>
    %c0_4 = arith.constant 0 : index
    %c0_5 = arith.constant 0 : index
    %12 = vector.load %arg3[%c0_4, %c0_5] : memref<512x1xf32, #tpu.memory_space<vmem>>, vector<512x1xf32>
    %13 = vector.broadcast %12 : vector<512x1xf32> to vector<512x128xf32>
    %14 = arith.addf %11, %13 : vector<512x128xf32>
    %cst = arith.constant 0.000000e+00 : f32
    %15 = vector.broadcast %cst : f32 to vector<512x128xf32>
    %16 = arith.maximumf %14, %15 : vector<512x128xf32>
    %17 = arith.truncf %16 : vector<512x128xf32> to vector<512x128xbf16>
    %c0_6 = arith.constant 0 : index
    %c0_7 = arith.constant 0 : index
    %18 = vector.load %arg4[%c0_6, %c0_7] : memref<512x512xbf16, #tpu.memory_space<vmem>>, vector<512x512xbf16>
    %cst_8 = arith.constant dense<0.000000e+00> : vector<512x128xf32>
    %19 = tpu.matmul %18, %17, %cst_8 {dimension_numbers = #tpu.dot_dimension_numbers<[1], [0], [0], [1], [0, 0, 1, 1], [], []>} : vector<512x512xbf16>, vector<512x128xbf16>, vector<512x128xf32> -> vector<512x128xf32>
    %c0_9 = arith.constant 0 : index
    %c0_10 = arith.constant 0 : index
    %20 = vector.load %arg5[%c0_9, %c0_10] : memref<512x1xf32, #tpu.memory_space<vmem>>, vector<512x1xf32>
    %21 = vector.broadcast %20 : vector<512x1xf32> to vector<512x128xf32>
    %22 = arith.addf %19, %21 : vector<512x128xf32>
    %cst_11 = arith.constant 0.000000e+00 : f32
    %23 = vector.broadcast %cst_11 : f32 to vector<512x128xf32>
    %24 = arith.maximumf %22, %23 : vector<512x128xf32>
    %25 = arith.truncf %24 : vector<512x128xf32> to vector<512x128xbf16>
    %c0_12 = arith.constant 0 : index
    %c0_13 = arith.constant 0 : index
    %26 = vector.load %arg6[%c0_12, %c0_13] : memref<512x512xbf16, #tpu.memory_space<vmem>>, vector<512x512xbf16>
    %cst_14 = arith.constant dense<0.000000e+00> : vector<512x128xf32>
    %27 = tpu.matmul %26, %25, %cst_14 {dimension_numbers = #tpu.dot_dimension_numbers<[1], [0], [0], [1], [0, 0, 1, 1], [], []>} : vector<512x512xbf16>, vector<512x128xbf16>, vector<512x128xf32> -> vector<512x128xf32>
    %c0_15 = arith.constant 0 : index
    %c0_16 = arith.constant 0 : index
    %28 = vector.load %arg7[%c0_15, %c0_16] : memref<512x1xf32, #tpu.memory_space<vmem>>, vector<512x1xf32>
    %29 = vector.broadcast %28 : vector<512x1xf32> to vector<512x128xf32>
    %30 = arith.addf %27, %29 : vector<512x128xf32>
    %cst_17 = arith.constant 0.000000e+00 : f32
    %31 = vector.broadcast %cst_17 : f32 to vector<512x128xf32>
    %32 = arith.maximumf %30, %31 : vector<512x128xf32>
    %c0_18 = arith.constant 0 : index
    %c0_19 = arith.constant 0 : index
    %33 = vector.load %arg8[%c0_18, %c0_19] : memref<512x1xf32, #tpu.memory_space<vmem>>, vector<512x1xf32>
    %34 = vector.broadcast %33 : vector<512x1xf32> to vector<512x128xf32>
    %35 = arith.mulf %32, %34 : vector<512x128xf32>
    %cst_20 = arith.constant dense<0.000000e+00> : vector<128xf32>
    %36 = vector.multi_reduction <add>, %35, %cst_20 [0] : vector<512x128xf32> to vector<128xf32>
    %37 = vector.shape_cast %36 : vector<128xf32> to vector<1x128xf32>
    %c0_21 = arith.constant 0 : index
    %c0_22 = arith.constant 0 : index
    %38 = vector.load %arg9[%c0_21, %c0_22] : memref<1x1xf32, #tpu.memory_space<vmem>>, vector<1x1xf32>
    %39 = vector.broadcast %38 : vector<1x1xf32> to vector<1x128xf32>
    %40 = arith.addf %37, %39 : vector<1x128xf32>
    %41 = arith.negf %40 : vector<1x128xf32>
    %42 = math.exp %41 : vector<1x128xf32>
    %cst_23 = arith.constant 1.000000e+00 : f32
    %43 = vector.broadcast %cst_23 : f32 to vector<1x128xf32>
    %44 = arith.addf %43, %42 : vector<1x128xf32>
    %45 = arith.divf %43, %44 : vector<1x128xf32>
    %c0_24 = arith.constant 0 : index
    %c0_25 = arith.constant 0 : index
    %46 = vector.load %arg10[%c0_24, %c0_25] : memref<1x128xf32, #tpu.memory_space<vmem>>, vector<1x128xf32>
    tpu.vector_store %arg10[%c0_24, %c0_25], %45 {strides = array<i32>} : memref<1x128xf32, #tpu.memory_space<vmem>>, vector<1x128xf32>,
    return
  }
  func.func @transform_0(%arg0: i32) -> (i32, i32) {
    %c0_i32 = arith.constant 0 : i32
    %c0_i32_0 = arith.constant 0 : i32
    return %c0_i32, %arg0 : i32, i32
  }
  func.func @transform_1(%arg0: i32) -> (i32, i32) {
    %c0_i32 = arith.constant 0 : i32
    %c0_i32_0 = arith.constant 0 : i32
    %c0_i32_1 = arith.constant 0 : i32
    return %c0_i32, %c0_i32_0 : i32, i32
  }
  func.func @transform_2(%arg0: i32) -> (i32, i32) {
    %c0_i32 = arith.constant 0 : i32
    %c0_i32_0 = arith.constant 0 : i32
    %c0_i32_1 = arith.constant 0 : i32
    return %c0_i32, %c0_i32_0 : i32, i32
  }
  func.func @transform_3(%arg0: i32) -> (i32, i32) {
    %c0_i32 = arith.constant 0 : i32
    %c0_i32_0 = arith.constant 0 : i32
    %c0_i32_1 = arith.constant 0 : i32
    return %c0_i32, %c0_i32_0 : i32, i32
  }
  func.func @transform_4(%arg0: i32) -> (i32, i32) {
    %c0_i32 = arith.constant 0 : i32
    %c0_i32_0 = arith.constant 0 : i32
    %c0_i32_1 = arith.constant 0 : i32
    return %c0_i32, %c0_i32_0 : i32, i32
  }
  func.func @transform_5(%arg0: i32) -> (i32, i32) {
    %c0_i32 = arith.constant 0 : i32
    %c0_i32_0 = arith.constant 0 : i32
    %c0_i32_1 = arith.constant 0 : i32
    return %c0_i32, %c0_i32_0 : i32, i32
  }
  func.func @transform_6(%arg0: i32) -> (i32, i32) {
    %c0_i32 = arith.constant 0 : i32
    %c0_i32_0 = arith.constant 0 : i32
    %c0_i32_1 = arith.constant 0 : i32
    return %c0_i32, %c0_i32_0 : i32, i32
  }
  func.func @transform_7(%arg0: i32) -> (i32, i32) {
    %c0_i32 = arith.constant 0 : i32
    %c0_i32_0 = arith.constant 0 : i32
    %c0_i32_1 = arith.constant 0 : i32
    return %c0_i32, %c0_i32_0 : i32, i32
  }
  func.func @transform_8(%arg0: i32) -> (i32, i32) {
    %c0_i32 = arith.constant 0 : i32
    %c0_i32_0 = arith.constant 0 : i32
    %c0_i32_1 = arith.constant 0 : i32
    return %c0_i32, %c0_i32_0 : i32, i32
  }
  func.func @transform_9(%arg0: i32) -> (i32, i32) {
    %c0_i32 = arith.constant 0 : i32
    %c0_i32_0 = arith.constant 0 : i32
    return %c0_i32, %arg0 : i32, i32
  }
}

</mosaic_0001>

<bundles_post_ra>
// kernel: tpu_custom_call.1
= control target key start
LH: loop header
LB: loop body
LE: loop exit
PB: predicated region body
PF: predicated region fallthrough
CT: control target
= control target key end

     0   :  { %6 = vsyncpa [#allocation3], 0  ;;  %s441_s0 = inlined_call_operand.hbm [shape: f32[8,128], index: 0, kind: input, shape index: {}]   ;;  %s442_s1 = inlined_call_operand.hbm [shape: f32[16,128], index: 1, kind: output, shape index: {}]  }
   0x1   :  { %7 = vsyncpa [#allocation4], 0 }
   0x2   :  { %9 = vsyncpa [#allocation4 + $0x1], 0  ;;  %s357_s6 = smov 0   ;;  %s359_s7 = smov 0  }
   0x3   :  { %s361_s8 = smov 0   ;;  %s363_s9 = smov 0  }
   0x4 LB: > { %s378_s10 = sadd.s32 4294967295, %s344_s9   ;;  %s188_s11 = sadd.s32 4294967294, %s344_s9   ;;  %s344_s9 = sphi %s363_s9, %s448_s9   ;;  %s340_s8 = sphi %s361_s8, %s447_s8   ;;  %s336_s7 = sphi %s359_s7, %s446_s7   ;;  %s332_s6 = sphi %s357_s6, %s445_s6  }
   0x5   : > { %s382_s12 = sadd.s32 1, %s344_s9   ;;  %s43_s13 = sadd.s32 1, %s340_s8 }
   0x6   : > { %s40_s14 = ssub.s32 %s344_s9, %s382_s12  ;;  %p53_p0 = scmp.ne.s32.totalorder %s340_s8, %s336_s7 }
   0x7   : > { %p41_p1 = scmp.eq.s32.totalorder %s40_s14, 0  ;;  %p54_p2 = scmp.eq.s32.totalorder %s378_s10, 1 }
   0x8   : > { %p59_p3 = scmp.ne.s32.totalorder %s336_s7, %s332_s6  ;;  %p60_p4 = scmp.eq.s32.totalorder %s188_s11, 1 }
   0x9   : > { %s393_s15 = scalar_select %p41_p1, %s340_s8, %s43_s13  }
   0xa   : > { %p395_p5 = por %p54_p2, %p53_p0  ;;  %p399_p6 = por %p60_p4, %p59_p3 }
   0xb   : > { %p189_p7 = scmp.ge.s32.totalorder %s344_s9, 1  ;;  %p67_p8 = scmp.lt.s32.totalorder %s344_s9, 3 }
   0xc   : > { %p212_p9 = scmp.eq.s32.totalorder %s378_s10, 0  ;;  %s79_s20 = sshll.u32 %s441_s0, 4  ;;  %s80_s20 = int_to_ptr.hbm [resolvable:$true] %s79_s20 }
   0xd   : > { %p68_p10 = pnand %p189_p7, %p67_p8  ;;  %s346_s21 = smov [#allocation2]  }
   0xe   : > { %s81_s22 = sshll.u32 %s346_s21, 4  ;;  %s82_s22 = int_to_ptr.vmem [resolvable:$true] %s81_s22 }
   0xf   : > { %p204_p11 = pneg %p68_p10  ;;  %94 = sbr.rel (%p68_p10) target bundleno = 37 (0x25), region = 24 }
  0x11   : > { %p205_p12 = pnand %p212_p9, %p204_p11 }
  0x13   : > { %207 = dma.hbm_to_vmem [thread:$0]  (!%p205_p12), %s80_s20, 128, %s82_s22, [#allocation3]  }
  0x14   : > { %323 = dma.done.wait (%p212_p9), [#allocation3], 128  }
  0x15   : > { %325 = vsyncadd (%p212_p9), [#allocation3], 4294967168  ;;  %s107_s23 = sand.u32 1, %s336_s7   ;;  %s195_s24 = sshll.u32 %s378_s10, 3  ;;  %v110_v0 = vld [vmem:[#allocation2] sm:$0xff] }
  0x16   : > { %s193_s25 = sshll.u32 %s107_s23, 3  ;;  %s124_s28 = scalar_lea.hbm %s442_s1, %s195_s24  ;;  %v111_v1 = vmul.f32 2.0, %v110_v0 }
  0x17   : > { %s109_s29 = scalar_lea.vmem [#allocation5], %s193_s25  ;;  %s128_s2 = sshll.u32 %s124_s28, 4  ;;  %s129_s2 = int_to_ptr.hbm [resolvable:$true] %s128_s2 }
  0x18   : > { %s126_s30 = sshll.u32 %s109_s29, 4  ;;  %112 = vst [vmem:[%s109_s29] sm:$0xff] %v111_v1  ;;  %s114_s3 = scalar_lea.sflag [#allocation4], %s107_s23  ;;  %s127_s30 = int_to_ptr.vmem [resolvable:$true] %s126_s30 }
  0x19   : > { %s292_s4 = sshra.s32 %s129_s2, 4  ;;  %s298_s13 = scalar_lea.hbm %s442_s1, 16  ;;  %s293_s4 = int_to_ptr.hbm [resolvable:$true] %s292_s4 }
  0x1a   : > { %s294_s5 = scalar_lea.hbm %s293_s4, 8  ;;  %p299_p2 = scmp.lt.s32.totalorder %s293_s4, %s442_s1 }
  0x1b   : > { %p295_p13 = scmp.ne.s32.totalorder %s293_s4, %s294_s5  ;;  %p300_p3 = scmp.lt.s32.totalorder %s298_s13, %s294_s5 }
  0x1d   : > { %p296_p0 = pnand %p295_p13, %p395_p5  ;;  %p301_p4 = por %p300_p3, %p299_p2 }
  0x1f   : > { %p297_p1 = pneg %p296_p0 }
  0x21   : > { %p302_p7 = pnand %p301_p4, %p297_p1 }
  0x23   : > { %305 = shalt.err (!%p302_p7)
}
  0x24   : > { %202 = dma.vmem_to_hbm [thread:$0]  (%p395_p5), %s127_s30, 128, %s129_s2, %s114_s3  }
  0x25 PF: > { %p214_p8 = scmp.ge.s32.totalorder %s344_s9, 2  ;;  %s140_s19 = sand.u32 1, %s332_s6  }
  0x26   : > { %s141_s20 = scalar_lea.sflag [#allocation4], %s140_s19 }
  0x27   : > { %p209_p9 = pnand %p214_p8, %p399_p6 }
  0x29   : > { %p210_p10 = pneg %p209_p9 }
  0x2b   : > { %327 = dma.done.wait (%p210_p10), %s141_s20, 128  }
  0x2c   : > { %329 = vsyncadd (%p210_p10), %s141_s20, 4294967168  ;;  %p12_p11 = scmp.ge.s32.totalorder %s382_s12, 4   ;;  %s445_s6 = smov %s336_s7 }
  0x2d   : > { %s446_s7 = smov %s340_s8  ;;  %s447_s8 = smov %s393_s15 }
  0x2e   : > { %s448_s9 = smov %s382_s12  ;;  %14 = sbr.rel (!%p12_p11) target bundleno = 4 (0x4), region = 61 }
  0x33   :  { %147 = vsyncpa [#allocation3], 1 }
  0x34   :  { %149 = vsyncpa [#allocation3 + $0x1], 1 }
  0x35   :  { %150 = vsyncpa [#allocation4], 1 }
  0x36   :  { %152 = vsyncpa [#allocation4 + $0x1], 1 }

// kernel: _forward_jit.1
= control target key start
LH: loop header
LB: loop body
LE: loop exit
PB: predicated region body
PF: predicated region fallthrough
CT: control target
= control target key end

     0   :  { %v7073_v0 = vmov 1   ;;  %v11410_v1 = vmov 0   ;;  %s11400_s1 = inlined_call_operand.vmem [shape: f32[512,2], index: 1, kind: input, shape index: {}]   ;;  %s11401_s2 = inlined_call_operand.vmem [shape: f32[512,1], index: 2, kind: input, shape index: {}]   ;;  %s11402_s0 = inlined_call_operand.vmem [shape: f32[2,128], index: 0, kind: input, shape index: {}]   ;;  %s11403_s4 = inlined_call_operand.vmem [shape: f32[512,1], index: 4, kind: input, shape index: {}]   ;;  %s11404_s3 = inlined_call_operand.vmem [shape: bf16[512,512], index: 3, kind: input, shape index: {}]   ;;  %s11405_s6 = inlined_call_operand.vmem [shape: f32[512,1], index: 6, kind: input, shape index: {}]   ;;  %s11406_s7 = inlined_call_operand.vmem [shape: f32[512,1], index: 7, kind: input, shape index: {}]   ;;  %s11407_s8 = inlined_call_operand.<no memory space> [shape: f32[1,1], index: 8, kind: input, shape index: {}]   ;;  %s11408_s5 = inlined_call_operand.vmem [shape: bf16[512,512], index: 5, kind: input, shape index: {}]   ;;  %s11409_s9 = inlined_call_operand.vmem [shape: f32[1,128], index: 9, kind: output, shape index: {}]  }
   0x1   :  { %7065 = vset.pattern.permute.xlu0 %v7073_v0  ;;  %7062 = vset.pattern.permute.xlu2 %v11410_v1  ;;  %v7130_v2 = vld [vmem:[%s11400_s1 + $0x20] sm:$0xff]  ;;  %v37_v3 = vld [vmem:[%s11400_s1 + $0x10] sm:$0xff]  ;;  %v7140_v4 = vld [vmem:[%s11400_s1 + $0x28] sm:$0xff] }
   0x2   :  { %7061 = vset.pattern.permute.xlu1 %v11410_v1  ;;  %121 = vperm.xlu2 %7062, %v7130_v2   ;;  %v42_v5 = vld [vmem:[%s11400_s1 + $0x38] sm:$0xff]  ;;  %v7155_v7 = vld [vmem:[%s11400_s1 + $0x40] sm:$0xff]  ;;  %v45_v8 = vld [vmem:[%s11400_s1 + $0x50] sm:$0xff] }
   0x3   :  { %493 = vperm.xlu0 %7065, %v37_v3   ;;  %111 = vperm.xlu1 %7061, %v37_v3   ;;  %v7148_v6 = vld [vmem:[%s11400_s1 + $0x18] sm:$0xff]  ;;  %v48_v10 = vld [vmem:[%s11400_s1 + $0x68] sm:$0xff]  ;;  %v7173_v11 = vld [vmem:[%s11400_s1 + $0x70] sm:$0xff] }
   0x4   :  { %v7164_v9 = vld [vmem:[%s11400_s1 + $0x58] sm:$0xff]  ;;  %v51_v12 = vld [vmem:[%s11400_s1 + $0x80] sm:$0xff]  ;;  %v7182_v13 = vld [vmem:[%s11400_s1 + $0x88] sm:$0xff] }
   0x5   :  { %v54_v14 = vld [vmem:[%s11400_s1 + $0x98] sm:$0xff]  ;;  %v7191_v15 = vld [vmem:[%s11400_s1 + $0xa0] sm:$0xff]  ;;  %v57_v16 = vld [vmem:[%s11400_s1 + $0xb0] sm:$0xff] }
   0x6   :  { %v7200_v17 = vld [vmem:[%s11400_s1 + $0xb8] sm:$0xff]  ;;  %v60_v18 = vld [vmem:[%s11400_s1 + $0xc8] sm:$0xff]  ;;  %v7209_v19 = vld [vmem:[%s11400_s1 + $0xd0] sm:$0xff] }
   0x7   :  { %v63_v20 = vld [vmem:[%s11400_s1 + $0xe0] sm:$0xff]  ;;  %v7218_v21 = vld [vmem:[%s11400_s1 + $0xe8] sm:$0xff]  ;;  %v66_v22 = vld [vmem:[%s11400_s1 + $0xf8] sm:$0xff] }
   0x8   :  { %v7227_v23 = vld [vmem:[%s11400_s1 + $0x100] sm:$0xff]  ;;  %v69_v24 = vld [vmem:[%s11400_s1 + $0x110] sm:$0xff]  ;;  %v7236_v25 = vld [vmem:[%s11400_s1 + $0x118] sm:$0xff] }
   0x9   :  { %v72_v26 = vld [vmem:[%s11400_s1 + $0x128] sm:$0xff]  ;;  %v7247_v28 = vld [vmem:[%s11400_s1 + $0x130] sm:$0xff]  ;;  %v75_v29 = vld [vmem:[%s11400_s1 + $0x140] sm:$0xff] }
   0xa   :  { %126 = vperm.xlu2 %7062, %v7140_v4   ;;  %v7258_v31 = vld [vmem:[%s11400_s1 + $0x148] sm:$0xff]  ;;  %v78_v32 = vld [vmem:[%s11400_s1 + $0x158] sm:$0xff]  ;;  %v7269_v34 = vld [vmem:[%s11400_s1 + $0x160] sm:$0xff] }
   0xb   :  { %513 = vperm.xlu0 %7065, %v42_v5   ;;  %116 = vperm.xlu1 %7061, %v7148_v6   ;;  %v81_v35 = vld [vmem:[%s11400_s1 + $0x170] sm:$0xff]  ;;  %v7284_v39 = vld [vmem:[%s11400_s1 + $0x178] sm:$0xff]  ;;  %v84_v40 = vld [vmem:[%s11400_s1 + $0x188] sm:$0xff] }
   0xc   :  { %v7299_v44 = vld [vmem:[%s11400_s1 + $0x190] sm:$0xff]  ;;  %v87_v45 = vld [vmem:[%s11400_s1 + $0x1a0] sm:$0xff]  ;;  %v7314_v49 = vld [vmem:[%s11400_s1 + $0x1a8] sm:$0xff] }
   0xd   :  { %v90_v50 = vld [vmem:[%s11400_s1 + $0x1b8] sm:$0xff]  ;;  %v7329_v54 = vld [vmem:[%s11400_s1 + $0x1c0] sm:$0xff]  ;;  %v93_v55 = vld [vmem:[%s11400_s1 + $0x1d0] sm:$0xff] }
   0xe   :  { %v7344_v59 = vld [vmem:[%s11400_s1 + $0x1d8] sm:$0xff]  ;;  %v96_v60 = vld [vmem:[%s11400_s1 + $0x1e8] sm:$0xff]  ;;  %v7359_v3 = vld [vmem:[%s11400_s1 + $0x1f0] sm:$0xff] }
  0x12   :  { %141 = vperm.xlu2 %7062, %v7155_v7  }
  0x13   :  { %525 = vperm.xlu0 %7065, %v45_v8   ;;  %136 = vperm.xlu1 %7061, %v42_v5   ;;  %v35_v5 = vld [vmem:[%s11400_s1] sm:$0xff] }
  0x1a   :  { %156 = vperm.xlu2 %7062, %v7164_v9  }
  0x1b   :  { %537 = vperm.xlu0 %7065, %v48_v10   ;;  %151 = vperm.xlu1 %7061, %v45_v8  }
  0x22   :  { %171 = vperm.xlu2 %7062, %v7173_v11  }
  0x23   :  { %549 = vperm.xlu0 %7065, %v51_v12   ;;  %166 = vperm.xlu1 %7061, %v48_v10  }
  0x2a   :  { %186 = vperm.xlu2 %7062, %v7182_v13  }
  0x2b   :  { %561 = vperm.xlu0 %7065, %v54_v14   ;;  %181 = vperm.xlu1 %7061, %v51_v12  }
  0x32   :  { %201 = vperm.xlu2 %7062, %v7191_v15  }
  0x33   :  { %573 = vperm.xlu0 %7065, %v57_v16   ;;  %196 = vperm.xlu1 %7061, %v54_v14   ;;  %v36_v14 = vld [vmem:[%s11400_s1 + $0x8] sm:$0xff] }
  0x3a   :  { %216 = vperm.xlu2 %7062, %v7200_v17  }
  0x3b   :  { %585 = vperm.xlu0 %7065, %v60_v18   ;;  %211 = vperm.xlu1 %7061, %v57_v16  }
  0x42   :  { %231 = vperm.xlu2 %7062, %v7209_v19  }
  0x43   :  { %597 = vperm.xlu0 %7065, %v63_v20   ;;  %226 = vperm.xlu1 %7061, %v60_v18  }
  0x4a   :  { %246 = vperm.xlu2 %7062, %v7218_v21  }
  0x4b   :  { %609 = vperm.xlu0 %7065, %v66_v22   ;;  %241 = vperm.xlu1 %7061, %v63_v20  }
  0x52   :  { %261 = vperm.xlu2 %7062, %v7227_v23  }
  0x53   :  { %621 = vperm.xlu0 %7065, %v69_v24   ;;  %256 = vperm.xlu1 %7061, %v66_v22   ;;  %v41_v22 = vld [vmem:[%s11400_s1 + $0x30] sm:$0xff] }
  0x5a   :  { %276 = vperm.xlu2 %7062, %v7236_v25  }
  0x5b   :  { %633 = vperm.xlu0 %7065, %v72_v26   ;;  %271 = vperm.xlu1 %7061, %v69_v24  }
  0x5c   :  { %v7242_v27 = vpop.permute.xlu2 %121 }
  0x62   :  { %291 = vperm.xlu2 %7062, %v7247_v28  }
  0x63   :  { %645 = vperm.xlu0 %7065, %v75_v29   ;;  %286 = vperm.xlu1 %7061, %v72_v26  }
  0x64   :  { %v7253_v30 = vpop.permute.xlu2 %126 }
  0x6a   :  { %306 = vperm.xlu2 %7062, %v7258_v31  }
  0x6b   :  { %657 = vperm.xlu0 %7065, %v78_v32   ;;  %301 = vperm.xlu1 %7061, %v75_v29   ;;  %v44_v29 = vld [vmem:[%s11400_s1 + $0x48] sm:$0xff] }
  0x6c   :  { %v7264_v33 = vpop.permute.xlu2 %141 }
  0x72   :  { %321 = vperm.xlu2 %7062, %v7269_v34  }
  0x73   :  { %669 = vperm.xlu0 %7065, %v81_v35   ;;  %316 = vperm.xlu1 %7061, %v78_v32  }
  0x74   :  { %v7275_v36 = vpop.permute.xlu2 %156 }
  0x75   :  { %v7277_v37 = vpop.permute.xlu0 %493  ;;  %v7279_v38 = vpop.permute.xlu1 %111 }
  0x7a   :  { %336 = vperm.xlu2 %7062, %v7284_v39  }
  0x7b   :  { %681 = vperm.xlu0 %7065, %v84_v40   ;;  %331 = vperm.xlu1 %7061, %v81_v35  }
  0x7c   :  { %v7290_v41 = vpop.permute.xlu2 %171 }
  0x7d   :  { %v7292_v42 = vpop.permute.xlu0 %513  ;;  %v7294_v43 = vpop.permute.xlu1 %116 }
  0x82   :  { %351 = vperm.xlu2 %7062, %v7299_v44  }
  0x83   :  { %693 = vperm.xlu0 %7065, %v87_v45   ;;  %346 = vperm.xlu1 %7061, %v84_v40  }
  0x84   :  { %v7305_v46 = vpop.permute.xlu2 %186 }
  0x85   :  { %11412 = vst [vmem:[#allocation3_spill] sm:$0xff] %v7305_v46  ;;  %v7307_v47 = vpop.permute.xlu0 %525  ;;  %v7309_v48 = vpop.permute.xlu1 %136 }
  0x8a   :  { %366 = vperm.xlu2 %7062, %v7314_v49  }
  0x8b   :  { %705 = vperm.xlu0 %7065, %v90_v50   ;;  %361 = vperm.xlu1 %7061, %v87_v45  }
  0x8c   :  { %v7320_v51 = vpop.permute.xlu2 %201 }
  0x8d   :  { %11413 = vst [vmem:[#allocation4_spill] sm:$0xff] %v7320_v51  ;;  %v7322_v52 = vpop.permute.xlu0 %537  ;;  %v7324_v53 = vpop.permute.xlu1 %151 }
  0x92   :  { %381 = vperm.xlu2 %7062, %v7329_v54  }
  0x93   :  { %717 = vperm.xlu0 %7065, %v93_v55   ;;  %376 = vperm.xlu1 %7061, %v90_v50  }
  0x94   :  { %v7335_v56 = vpop.permute.xlu2 %216 }
  0x95   :  { %11414 = vst [vmem:[#allocation5_spill] sm:$0xff] %v7335_v56  ;;  %v7337_v57 = vpop.permute.xlu0 %549  ;;  %v7339_v58 = vpop.permute.xlu1 %166 }
  0x96   :  { %11415 = vst [vmem:[#allocation6_spill] sm:$0xff] %v7337_v57 }
  0x9a   :  { %396 = vperm.xlu2 %7062, %v7344_v59  }
  0x9b   :  { %729 = vperm.xlu0 %7065, %v96_v60   ;;  %391 = vperm.xlu1 %7061, %v93_v55  }
  0x9c   :  { %v7350_v61 = vpop.permute.xlu2 %231 }
  0x9d   :  { %11416 = vst [vmem:[#allocation7_spill] sm:$0xff] %v7350_v61  ;;  %v7352_v62 = vpop.permute.xlu0 %561  ;;  %v7354_v63 = vpop.permute.xlu1 %181  ;;  %v923_v61 = vld [vmem:[%s11401_s2 + $0x1b0] sm:$0xff] }
  0x9e   :  { %11417 = vst [vmem:[#allocation8_spill] sm:$0xff] %v7352_v62 }
  0x9f   :  { %11418 = vst [vmem:[#allocation9_spill] sm:$0xff] %v7354_v63 }
  0xa2   :  { %411 = vperm.xlu2 %7062, %v7359_v3  }
  0xa3   :  { %7066 = vset.pattern.permute.xlu0 %v11410_v1  ;;  %406 = vperm.xlu1 %7061, %v96_v60  }
  0xa4   :  { %101 = vperm.xlu0 %7066, %v35_v5   ;;  %v7366_v8 = vpop.permute.xlu2 %246 }
  0xa5   :  { %v7368_v10 = vpop.permute.xlu0 %573  ;;  %v7370_v12 = vpop.permute.xlu1 %196 }
  0xa6   :  { %11419 = vst [vmem:[#allocation10_spill] sm:$0xff] %v7368_v10 }
  0xa7   :  { %11420 = vst [vmem:[#allocation11_spill] sm:$0xff] %v7370_v12 }
  0xaa   :  { %7064 = vset.pattern.permute.xlu2 %v7073_v0 }
  0xab   :  { %7063 = vset.pattern.permute.xlu1 %v7073_v0  ;;  %489 = vperm.xlu2 %7064, %v36_v14  }
  0xac   :  { %106 = vperm.xlu0 %7066, %v36_v14   ;;  %485 = vperm.xlu1 %7063, %v35_v5   ;;  %v7377_v16 = vpop.permute.xlu2 %261 }
  0xad   :  { %11421 = vst [vmem:[#allocation12_spill] sm:$0xff] %v7377_v16  ;;  %v7379_v18 = vpop.permute.xlu0 %585  ;;  %v7381_v20 = vpop.permute.xlu1 %211 }
  0xae   :  { %11422 = vst [vmem:[#allocation13_spill] sm:$0xff] %v7379_v18 }
  0xaf   :  { %11423 = vst [vmem:[#allocation14_spill] sm:$0xff] %v7381_v20 }
  0xb3   :  { %501 = vperm.xlu2 %7064, %v7130_v2  }
  0xb4   :  { %131 = vperm.xlu0 %7066, %v41_v22   ;;  %497 = vperm.xlu1 %7063, %v7148_v6   ;;  %v7388_v24 = vpop.permute.xlu2 %276  ;;  %v47_v6 = vld [vmem:[%s11400_s1 + $0x60] sm:$0xff] }
  0xb5   :  { %11424 = vst [vmem:[#allocation15_spill] sm:$0xff] %v7388_v24  ;;  %v7390_v0 = vpop.permute.xlu0 %597  ;;  %v7392_v26 = vpop.permute.xlu1 %226 }
  0xb6   :  { %11425 = vst [vmem:[#allocation16_spill] sm:$0xff] %v7392_v26  ;;  %v879_v26 = vld [vmem:[%s11401_s2 + $0x50] sm:$0xff] }
  0xbb   :  { %509 = vperm.xlu2 %7064, %v41_v22  }
  0xbc   :  { %146 = vperm.xlu0 %7066, %v44_v29   ;;  %505 = vperm.xlu1 %7063, %v7140_v4   ;;  %v7398_v32 = vpop.permute.xlu2 %291  ;;  %v50_v4 = vld [vmem:[%s11400_s1 + $0x78] sm:$0xff] }
  0xbd   :  { %11426 = vst [vmem:[#allocation17_spill] sm:$0xff] %v7398_v32  ;;  %v7400_v2 = vpop.permute.xlu0 %609  ;;  %v7402_v35 = vpop.permute.xlu1 %241 }
  0xc3   :  { %521 = vperm.xlu2 %7064, %v44_v29  }
  0xc4   :  { %161 = vperm.xlu0 %7066, %v47_v6   ;;  %517 = vperm.xlu1 %7063, %v7155_v7   ;;  %v7408_v40 = vpop.permute.xlu2 %306  ;;  %v53_v7 = vld [vmem:[%s11400_s1 + $0x90] sm:$0xff] }
  0xc5   :  { %11427 = vst [vmem:[#allocation18_spill] sm:$0xff] %v7408_v40  ;;  %v7410_v45 = vpop.permute.xlu0 %621  ;;  %v7412_v50 = vpop.permute.xlu1 %256  ;;  %v883_v40 = vld [vmem:[%s11401_s2 + $0x70] sm:$0xff] }
  0xc6   :  { %11428 = vst [vmem:[#allocation19_spill] sm:$0xff] %v7410_v45 }
  0xcb   :  { %533 = vperm.xlu2 %7064, %v47_v6  }
  0xcc   :  { %176 = vperm.xlu0 %7066, %v50_v4   ;;  %529 = vperm.xlu1 %7063, %v7164_v9   ;;  %v7418_v55 = vpop.permute.xlu2 %321  ;;  %v56_v9 = vld [vmem:[%s11400_s1 + $0xa8] sm:$0xff] }
  0xcd   :  { %11429 = vst [vmem:[#allocation20_spill] sm:$0xff] %v7418_v55  ;;  %v7420_v60 = vpop.permute.xlu0 %633  ;;  %v7422_v5 = vpop.permute.xlu1 %271 }
  0xce   :  { %11430 = vst [vmem:[#allocation21_spill] sm:$0xff] %v7420_v60 }
  0xcf   :  { %11431 = vst [vmem:[#allocation22_spill] sm:$0xff] %v7422_v5 }
  0xd3   :  { %545 = vperm.xlu2 %7064, %v50_v4  }
  0xd4   :  { %191 = vperm.xlu0 %7066, %v53_v7   ;;  %541 = vperm.xlu1 %7063, %v7173_v11   ;;  %v7428_v14 = vpop.permute.xlu2 %336  ;;  %v59_v11 = vld [vmem:[%s11400_s1 + $0xc0] sm:$0xff] }
  0xd5   :  { %v7430_v22 = vpop.permute.xlu0 %645  ;;  %v7432_v29 = vpop.permute.xlu1 %286 }
  0xd6   :  { %11432 = vst [vmem:[#allocation23_spill] sm:$0xff] %v7430_v22 }
  0xd7   :  { %11433 = vst [vmem:[#allocation24_spill] sm:$0xff] %v7432_v29 }
  0xdb   :  { %557 = vperm.xlu2 %7064, %v53_v7  }
  0xdc   :  { %206 = vperm.xlu0 %7066, %v56_v9   ;;  %553 = vperm.xlu1 %7063, %v7182_v13   ;;  %v7438_v6 = vpop.permute.xlu2 %351  ;;  %v62_v13 = vld [vmem:[%s11400_s1 + $0xd8] sm:$0xff] }
  0xdd   :  { %11434 = vst [vmem:[#allocation25_spill] sm:$0xff] %v7438_v6  ;;  %v7440_v4 = vpop.permute.xlu0 %657  ;;  %v7442_v1 = vpop.permute.xlu1 %301 }
  0xde   :  { %11435 = vst [vmem:[#allocation26_spill] sm:$0xff] %v7440_v4  ;;  %v910_v4 = vld [vmem:[%s11401_s2 + $0x148] sm:$0xff] }
  0xdf   :  { %11436 = vst [vmem:[#allocation27_spill] sm:$0xff] %v7442_v1  ;;  %v877_v1 = vld [vmem:[%s11401_s2 + $0x40] sm:$0xff] }
  0xe3   :  { %569 = vperm.xlu2 %7064, %v56_v9  }
  0xe4   :  { %221 = vperm.xlu0 %7066, %v59_v11   ;;  %565 = vperm.xlu1 %7063, %v7191_v15   ;;  %v7448_v16 = vpop.permute.xlu2 %366  ;;  %v65_v15 = vld [vmem:[%s11400_s1 + $0xf0] sm:$0xff] }
  0xe5   :  { %11437 = vst [vmem:[#allocation28_spill] sm:$0xff] %v7448_v16  ;;  %v7450_v7 = vpop.permute.xlu0 %669  ;;  %v7452_v57 = vpop.permute.xlu1 %316 }
  0xe6   :  { %11438 = vst [vmem:[#allocation29_spill] sm:$0xff] %v7452_v57  ;;  %v893_v57 = vld [vmem:[%s11401_s2 + $0xc0] sm:$0xff] }
  0xeb   :  { %581 = vperm.xlu2 %7064, %v59_v11  }
  0xec   :  { %236 = vperm.xlu0 %7066, %v62_v13   ;;  %577 = vperm.xlu1 %7063, %v7200_v17   ;;  %v7458_v6 = vpop.permute.xlu2 %381  ;;  %v68_v17 = vld [vmem:[%s11400_s1 + $0x108] sm:$0xff] }
  0xed   :  { %11439 = vst [vmem:[#allocation30_spill] sm:$0xff] %v7458_v6  ;;  %v7460_v9 = vpop.permute.xlu0 %681  ;;  %v7462_v45 = vpop.permute.xlu1 %331 }
  0xee   :  { %11440 = vst [vmem:[#allocation31_spill] sm:$0xff] %v7460_v9 }
  0xf3   :  { %593 = vperm.xlu2 %7064, %v62_v13  }
  0xf4   :  { %251 = vperm.xlu0 %7066, %v65_v15   ;;  %589 = vperm.xlu1 %7063, %v7209_v19   ;;  %v7468_v63 = vpop.permute.xlu2 %396  ;;  %v71_v19 = vld [vmem:[%s11400_s1 + $0x120] sm:$0xff] }
  0xf5   :  { %11441 = vst [vmem:[#allocation32_spill] sm:$0xff] %v7468_v63  ;;  %v7470_v11 = vpop.permute.xlu0 %693  ;;  %v7472_v62 = vpop.permute.xlu1 %346  ;;  %v885_v63 = vld [vmem:[%s11401_s2 + $0x80] sm:$0xff] }
  0xf6   :  { %11442 = vst [vmem:[#allocation33_spill] sm:$0xff] %v7470_v11 }
  0xf7   :  { %11443 = vst [vmem:[#allocation34_spill] sm:$0xff] %v7472_v62 }
  0xfb   :  { %605 = vperm.xlu2 %7064, %v65_v15  }
  0xfc   :  { %266 = vperm.xlu0 %7066, %v68_v17   ;;  %601 = vperm.xlu1 %7063, %v7218_v21   ;;  %v7478_v9 = vpop.permute.xlu2 %411  ;;  %v74_v21 = vld [vmem:[%s11400_s1 + $0x138] sm:$0xff] }
  0xfd   :  { %v7480_v13 = vpop.permute.xlu0 %705  ;;  %v7482_v46 = vpop.permute.xlu1 %361 }
  0xfe   :  { %11444 = vst [vmem:[#allocation35_spill] sm:$0xff] %v7480_v13 }
  0xff   :  { %11445 = vst [vmem:[#allocation36_spill] sm:$0xff] %v7482_v46 }
 0x103   :  { %617 = vperm.xlu2 %7064, %v68_v17  }
 0x104   :  { %281 = vperm.xlu0 %7066, %v71_v19   ;;  %613 = vperm.xlu1 %7063, %v7227_v23   ;;  %v77_v23 = vld [vmem:[%s11400_s1 + $0x150] sm:$0xff] }
 0x105   :  { %v7488_v62 = vpop.permute.xlu0 %717  ;;  %v7490_v15 = vpop.permute.xlu1 %376 }
 0x106   :  { %11446 = vst [vmem:[#allocation37_spill] sm:$0xff] %v7488_v62  ;;  %v7492_v5 = vpop.permute.xlu2 %489  ;;  %v916_v62 = vld [vmem:[%s11401_s2 + $0x178] sm:$0xff] }
 0x107   :  { %11447 = vst [vmem:[#allocation38_spill] sm:$0xff] %v7490_v15 }
 0x108   :  { %11448 = vst [vmem:[#allocation39_spill] sm:$0xff] %v7492_v5 }
 0x10b   :  { %629 = vperm.xlu2 %7064, %v71_v19  }
 0x10c   :  { %296 = vperm.xlu0 %7066, %v74_v21   ;;  %625 = vperm.xlu1 %7063, %v7236_v25   ;;  %v80_v25 = vld [vmem:[%s11400_s1 + $0x168] sm:$0xff] }
 0x10d   :  { %v7498_v24 = vpop.permute.xlu0 %729  ;;  %v7500_v17 = vpop.permute.xlu1 %391 }
 0x10e   :  { %11449 = vst [vmem:[#allocation40_spill] sm:$0xff] %v7498_v24  ;;  %v7502_v12 = vpop.permute.xlu2 %501  ;;  %v908_v24 = vld [vmem:[%s11401_s2 + $0x138] sm:$0xff] }
 0x10f   :  { %11450 = vst [vmem:[#allocation41_spill] sm:$0xff] %v7500_v17  ;;  %v899_v17 = vld [vmem:[%s11401_s2 + $0xf0] sm:$0xff] }
 0x113   :  { %641 = vperm.xlu2 %7064, %v74_v21  }
 0x114   :  { %311 = vperm.xlu0 %7066, %v77_v23   ;;  %637 = vperm.xlu1 %7063, %v7247_v28   ;;  %v83_v28 = vld [vmem:[%s11400_s1 + $0x180] sm:$0xff] }
 0x115   :  { %v7508_v16 = vpop.permute.xlu1 %406 }
 0x116   :  { %11451 = vst [vmem:[#allocation42_spill] sm:$0xff] %v7508_v16  ;;  %v7510_v19 = vpop.permute.xlu2 %509  ;;  %v7512_v11 = vpop.permute.xlu0 %101  ;;  %v891_v16 = vld [vmem:[%s11401_s2 + $0xb0] sm:$0xff] }
 0x117   :  { %11452 = vst [vmem:[#allocation43_spill] sm:$0xff] %v7512_v11  ;;  %v889_v11 = vld [vmem:[%s11401_s2 + $0xa0] sm:$0xff] }
 0x11b   :  { %653 = vperm.xlu2 %7064, %v77_v23  }
 0x11c   :  { %326 = vperm.xlu0 %7066, %v80_v25   ;;  %649 = vperm.xlu1 %7063, %v7258_v31   ;;  %v86_v31 = vld [vmem:[%s11400_s1 + $0x198] sm:$0xff] }
 0x11e   :  { %v7518_v46 = vpop.permute.xlu2 %521  ;;  %v7520_v21 = vpop.permute.xlu0 %106 }
 0x11f   :  { %11453 = vst [vmem:[#allocation44_spill] sm:$0xff] %v7520_v21  ;;  %v7522_v60 = vpop.permute.xlu1 %485 }
 0x120   :  { %11454 = vst [vmem:[#allocation45_spill] sm:$0xff] %v7522_v60  ;;  %v919_v60 = vld [vmem:[%s11401_s2 + $0x190] sm:$0xff] }
 0x123   :  { %665 = vperm.xlu2 %7064, %v80_v25  }
 0x124   :  { %341 = vperm.xlu0 %7066, %v83_v28   ;;  %661 = vperm.xlu1 %7063, %v7269_v34   ;;  %v89_v34 = vld [vmem:[%s11400_s1 + $0x1b0] sm:$0xff] }
 0x126   :  { %v7528_v51 = vpop.permute.xlu2 %533  ;;  %v7530_v23 = vpop.permute.xlu0 %131 }
 0x127   :  { %v7532_v29 = vpop.permute.xlu1 %497 }
 0x12b   :  { %677 = vperm.xlu2 %7064, %v83_v28  }
 0x12c   :  { %356 = vperm.xlu0 %7066, %v86_v31   ;;  %673 = vperm.xlu1 %7063, %v7284_v39   ;;  %v92_v39 = vld [vmem:[%s11400_s1 + $0x1c8] sm:$0xff] }
 0x12e   :  { %v7538_v13 = vpop.permute.xlu2 %545  ;;  %v7540_v25 = vpop.permute.xlu0 %146 }
 0x12f   :  { %v7542_v15 = vpop.permute.xlu1 %505 }
 0x133   :  { %689 = vperm.xlu2 %7064, %v86_v31  }
 0x134   :  { %371 = vperm.xlu0 %7066, %v89_v34   ;;  %685 = vperm.xlu1 %7063, %v7299_v44   ;;  %v95_v44 = vld [vmem:[%s11400_s1 + $0x1e0] sm:$0xff] }
 0x136   :  { %v7548_v32 = vpop.permute.xlu2 %557  ;;  %v7550_v28 = vpop.permute.xlu0 %161 }
 0x137   :  { %11455 = vst [vmem:[#allocation46_spill] sm:$0xff] %v7548_v32  ;;  %v7552_v56 = vpop.permute.xlu1 %517 }
 0x13b   :  { %701 = vperm.xlu2 %7064, %v89_v34  }
 0x13c   :  { %386 = vperm.xlu0 %7066, %v92_v39   ;;  %697 = vperm.xlu1 %7063, %v7314_v49   ;;  %v98_v49 = vld [vmem:[%s11400_s1 + $0x1f8] sm:$0xff] }
 0x13e   :  { %v7558_v10 = vpop.permute.xlu2 %569  ;;  %v7560_v31 = vpop.permute.xlu0 %176 }
 0x13f   :  { %11456 = vst [vmem:[#allocation47_spill] sm:$0xff] %v7558_v10  ;;  %v7562_v20 = vpop.permute.xlu1 %529 }
 0x143   :  { %713 = vperm.xlu2 %7064, %v92_v39  }
 0x144   :  { %401 = vperm.xlu0 %7066, %v95_v44   ;;  %709 = vperm.xlu1 %7063, %v7329_v54   ;;  %v869_v54 = vld [vmem:[%s11401_s2] sm:$0xff] }
 0x146   :  { %v7568_v32 = vpop.permute.xlu2 %581  ;;  %v7570_v34 = vpop.permute.xlu0 %191 }
 0x147   :  { %11457 = vst [vmem:[#allocation48_spill] sm:$0xff] %v7568_v32  ;;  %v7572_v6 = vpop.permute.xlu1 %541  ;;  %v873_v32 = vld [vmem:[%s11401_s2 + $0x20] sm:$0xff] }
 0x148   :  { %11458 = vst [vmem:[#allocation49_spill] sm:$0xff] %v7570_v34 }
 0x14b   :  { %725 = vperm.xlu2 %7064, %v95_v44  }
 0x14c   :  { %416 = vperm.xlu0 %7066, %v98_v49   ;;  %721 = vperm.xlu1 %7063, %v7344_v59   ;;  %v874_v59 = vld [vmem:[%s11401_s2 + $0x28] sm:$0xff] }
 0x14e   :  { %v7578_v10 = vpop.permute.xlu2 %593  ;;  %v7580_v39 = vpop.permute.xlu0 %206 }
 0x14f   :  { %11459 = vst [vmem:[#allocation50_spill] sm:$0xff] %v7578_v10  ;;  %v7582_v22 = vpop.permute.xlu1 %553  ;;  %v897_v10 = vld [vmem:[%s11401_s2 + $0xe0] sm:$0xff] }
 0x150   :  { %11460 = vst [vmem:[#allocation51_spill] sm:$0xff] %v7580_v39 }
 0x151   :  { %11461 = vst [vmem:[#allocation52_spill] sm:$0xff] %v7582_v22  ;;  %v871_v22 = vld [vmem:[%s11401_s2 + $0x10] sm:$0xff] }
 0x153   :  { %737 = vperm.xlu2 %7064, %v98_v49   ;;  %v870_v49 = vld [vmem:[%s11401_s2 + $0x8] sm:$0xff] }
 0x154   :  { %935 = vperm.xlu0 %7066, %v869_v54   ;;  %733 = vperm.xlu1 %7063, %v7359_v3   ;;  %v11464_v54 = vmov 0  }
 0x156   :  { %v7588_v34 = vpop.permute.xlu2 %605  ;;  %v7590_v44 = vpop.permute.xlu0 %221 }
 0x157   :  { %11462 = vst [vmem:[#allocation53_spill] sm:$0xff] %v7590_v44  ;;  %v7592_v18 = vpop.permute.xlu1 %565  ;;  %v882_v44 = vld [vmem:[%s11401_s2 + $0x68] sm:$0xff] }
 0x158   :  { %11463 = vst [vmem:[#allocation54_spill] sm:$0xff] %v7592_v18 }
 0x15b   :  { %7068 = vset.pattern.permute.xlu2 %v11464_v54 }
 0x15c   :  { %960 = vperm.xlu0 %7066, %v874_v59   ;;  %7067 = vset.pattern.permute.xlu1 %v11464_v54  ;;  %v872_v59 = vld [vmem:[%s11401_s2 + $0x18] sm:$0xff] }
 0x15d   :  { %945 = vperm.xlu2 %7068, %v871_v22   ;;  %940 = vperm.xlu1 %7067, %v870_v49  }
 0x15e   :  { %v7605_v3 = vpop.permute.xlu2 %617  ;;  %v7607_v39 = vpop.permute.xlu0 %236 }
 0x15f   :  { %11465 = vst [vmem:[#allocation55_spill] sm:$0xff] %v7605_v3  ;;  %v7609_v18 = vpop.permute.xlu1 %577  ;;  %v880_v3 = vld [vmem:[%s11401_s2 + $0x58] sm:$0xff] }
 0x160   :  { %11466 = vst [vmem:[#allocation56_spill] sm:$0xff] %v7607_v39  ;;  %v895_v39 = vld [vmem:[%s11401_s2 + $0xd0] sm:$0xff] }
 0x161   :  { %11467 = vst [vmem:[#allocation57_spill] sm:$0xff] %v7609_v18  ;;  %v876_v18 = vld [vmem:[%s11401_s2 + $0x38] sm:$0xff] }
 0x164   :  { %975 = vperm.xlu0 %7066, %v877_v1   ;;  %v875_v1 = vld [vmem:[%s11401_s2 + $0x30] sm:$0xff] }
 0x165   :  { %955 = vperm.xlu2 %7068, %v873_v32   ;;  %950 = vperm.xlu1 %7067, %v872_v59  }
 0x166   :  { %v7620_v22 = vpop.permute.xlu2 %629  ;;  %v7622_v49 = vpop.permute.xlu0 %251 }
 0x167   :  { %11468 = vst [vmem:[#allocation58_spill] sm:$0xff] %v7620_v22  ;;  %v7624_v54 = vpop.permute.xlu1 %589 }
 0x168   :  { %11469 = vst [vmem:[#allocation59_spill] sm:$0xff] %v7624_v54  ;;  %v892_v54 = vld [vmem:[%s11401_s2 + $0xb8] sm:$0xff] }
 0x16c   :  { %990 = vperm.xlu0 %7066, %v880_v3   ;;  %v878_v3 = vld [vmem:[%s11401_s2 + $0x48] sm:$0xff] }
 0x16d   :  { %970 = vperm.xlu2 %7068, %v876_v18   ;;  %965 = vperm.xlu1 %7067, %v875_v1  }
 0x16e   :  { %v7635_v32 = vpop.permute.xlu2 %641  ;;  %v7637_v59 = vpop.permute.xlu0 %266 }
 0x16f   :  { %11470 = vst [vmem:[#allocation60_spill] sm:$0xff] %v7635_v32  ;;  %v7639_v22 = vpop.permute.xlu1 %601  ;;  %v886_v32 = vld [vmem:[%s11401_s2 + $0x88] sm:$0xff] }
 0x170   :  { %11471 = vst [vmem:[#allocation61_spill] sm:$0xff] %v7637_v59 }
 0x171   :  { %11472 = vst [vmem:[#allocation62_spill] sm:$0xff] %v7639_v22 }
 0x174   :  { %1005 = vperm.xlu0 %7066, %v883_v40   ;;  %v881_v40 = vld [vmem:[%s11401_s2 + $0x60] sm:$0xff] }
 0x175   :  { %985 = vperm.xlu2 %7068, %v879_v26   ;;  %980 = vperm.xlu1 %7067, %v878_v3  }
 0x176   :  { %v7650_v18 = vpop.permute.xlu2 %653  ;;  %v7652_v1 = vpop.permute.xlu0 %281 }
 0x177   :  { %11473 = vst [vmem:[#allocation63_spill] sm:$0xff] %v7650_v18  ;;  %v7654_v59 = vpop.permute.xlu1 %613  ;;  %v914_v18 = vld [vmem:[%s11401_s2 + $0x168] sm:$0xff] }
 0x178   :  { %11474 = vst [vmem:[#allocation64_spill] sm:$0xff] %v7652_v1  ;;  %v931_v1 = vld [vmem:[%s11401_s2 + $0x1f0] sm:$0xff] }
 0x179   :  { %11475 = vst [vmem:[#allocation65_spill] sm:$0xff] %v7654_v59 }
 0x17c   :  { %1020 = vperm.xlu0 %7066, %v886_v32   ;;  %v884_v32 = vld [vmem:[%s11401_s2 + $0x78] sm:$0xff] }
 0x17d   :  { %1000 = vperm.xlu2 %7068, %v882_v44   ;;  %995 = vperm.xlu1 %7067, %v881_v40  }
 0x17e   :  { %v7665_v26 = vpop.permute.xlu2 %665  ;;  %v7667_v3 = vpop.permute.xlu0 %296 }
 0x17f   :  { %11476 = vst [vmem:[#allocation66_spill] sm:$0xff] %v7665_v26  ;;  %v7669_v59 = vpop.permute.xlu1 %625 }
 0x180   :  { %11477 = vst [vmem:[#allocation67_spill] sm:$0xff] %v7667_v3  ;;  %v900_v3 = vld [vmem:[%s11401_s2 + $0xf8] sm:$0xff] }
 0x181   :  { %11478 = vst [vmem:[#allocation68_spill] sm:$0xff] %v7669_v59 }
 0x184   :  { %1245 = vperm.xlu0 %7066, %v931_v1   ;;  %v915_v1 = vld [vmem:[%s11401_s2 + $0x170] sm:$0xff] }
 0x185   :  { %1015 = vperm.xlu2 %7068, %v885_v63   ;;  %1010 = vperm.xlu1 %7067, %v884_v32  }
 0x186   :  { %v7680_v44 = vpop.permute.xlu2 %677  ;;  %v7682_v40 = vpop.permute.xlu0 %311 }
 0x187   :  { %11479 = vst [vmem:[#allocation69_spill] sm:$0xff] %v7680_v44  ;;  %v7684_v59 = vpop.permute.xlu1 %637 }
 0x188   :  { %11480 = vst [vmem:[#allocation70_spill] sm:$0xff] %v7682_v40  ;;  %v912_v40 = vld [vmem:[%s11401_s2 + $0x158] sm:$0xff] }
 0x189   :  { %11481 = vst [vmem:[#allocation71_spill] sm:$0xff] %v7684_v59  ;;  %v929_v59 = vld [vmem:[%s11401_s2 + $0x1e0] sm:$0xff] }
 0x18c   :  { %1090 = vperm.xlu0 %7066, %v900_v3   ;;  %v932_v3 = vld [vmem:[%s11401_s2 + $0x1f8] sm:$0xff] }
 0x18d   :  { %1170 = vperm.xlu2 %7068, %v916_v62   ;;  %1165 = vperm.xlu1 %7067, %v915_v1  }
 0x18e   :  { %v7695_v63 = vpop.permute.xlu2 %689  ;;  %v7697_v32 = vpop.permute.xlu0 %326 }
 0x18f   :  { %11482 = vst [vmem:[#allocation72_spill] sm:$0xff] %v7695_v63  ;;  %v7699_v44 = vpop.permute.xlu1 %649 }
 0x190   :  { %11483 = vst [vmem:[#allocation73_spill] sm:$0xff] %v7697_v32 }
 0x191   :  { %11484 = vst [vmem:[#allocation74_spill] sm:$0xff] %v7699_v44  ;;  %v898_v44 = vld [vmem:[%s11401_s2 + $0xe8] sm:$0xff] }
 0x194   :  { %1235 = vperm.xlu0 %7066, %v929_v59   ;;  %v913_v59 = vld [vmem:[%s11401_s2 + $0x160] sm:$0xff] }
 0x195   :  { %1085 = vperm.xlu2 %7068, %v899_v17   ;;  %1250 = vperm.xlu1 %7067, %v932_v3  }
 0x196   :  { %v7710_v62 = vpop.permute.xlu2 %701  ;;  %v7712_v1 = vpop.permute.xlu0 %341 }
 0x197   :  { %11485 = vst [vmem:[#allocation75_spill] sm:$0xff] %v7710_v62  ;;  %v7714_v63 = vpop.permute.xlu1 %661  ;;  %v927_v62 = vld [vmem:[%s11401_s2 + $0x1d0] sm:$0xff] }
 0x198   :  { %11486 = vst [vmem:[#allocation76_spill] sm:$0xff] %v7712_v1 }
 0x199   :  { %11487 = vst [vmem:[#allocation77_spill] sm:$0xff] %v7714_v63 }
 0x19c   :  { %1080 = vperm.xlu0 %7066, %v898_v44   ;;  %v930_v44 = vld [vmem:[%s11401_s2 + $0x1e8] sm:$0xff] }
 0x19d   :  { %1160 = vperm.xlu2 %7068, %v914_v18   ;;  %1155 = vperm.xlu1 %7067, %v913_v59  }
 0x19e   :  { %v7725_v17 = vpop.permute.xlu2 %713  ;;  %v7727_v3 = vpop.permute.xlu0 %356 }
 0x19f   :  { %11488 = vst [vmem:[#allocation78_spill] sm:$0xff] %v7725_v17  ;;  %v7729_v1 = vpop.permute.xlu1 %673  ;;  %v896_v17 = vld [vmem:[%s11401_s2 + $0xd8] sm:$0xff] }
 0x1a0   :  { %11489 = vst [vmem:[#allocation79_spill] sm:$0xff] %v7727_v3 }
 0x1a4   :  { %1225 = vperm.xlu0 %7066, %v927_v62   ;;  %v911_v62 = vld [vmem:[%s11401_s2 + $0x150] sm:$0xff] }
 0x1a5   :  { %1075 = vperm.xlu2 %7068, %v897_v10   ;;  %1240 = vperm.xlu1 %7067, %v930_v44  }
 0x1a6   :  { %v7740_v18 = vpop.permute.xlu2 %725  ;;  %v7742_v59 = vpop.permute.xlu0 %371 }
 0x1a7   :  { %11490 = vst [vmem:[#allocation80_spill] sm:$0xff] %v7740_v18  ;;  %v7744_v3 = vpop.permute.xlu1 %685  ;;  %v921_v18 = vld [vmem:[%s11401_s2 + $0x1a0] sm:$0xff] }
 0x1a8   :  { %11491 = vst [vmem:[#allocation81_spill] sm:$0xff] %v7742_v59  ;;  %v925_v59 = vld [vmem:[%s11401_s2 + $0x1c0] sm:$0xff] }
 0x1a9   :  { %11492 = vst [vmem:[#allocation82_spill] sm:$0xff] %v7744_v3 }
 0x1ac   :  { %1070 = vperm.xlu0 %7066, %v896_v17   ;;  %v928_v17 = vld [vmem:[%s11401_s2 + $0x1d8] sm:$0xff] }
 0x1ad   :  { %1150 = vperm.xlu2 %7068, %v912_v40   ;;  %1145 = vperm.xlu1 %7067, %v911_v62  }
 0x1ae   :  { %v7755_v10 = vpop.permute.xlu2 %737  ;;  %v7757_v44 = vpop.permute.xlu0 %386 }
 0x1af   :  { %11493 = vst [vmem:[#allocation83_spill] sm:$0xff] %v7757_v44  ;;  %v7759_v3 = vpop.permute.xlu1 %697  ;;  %v894_v44 = vld [vmem:[%s11401_s2 + $0xc8] sm:$0xff] }
 0x1b0   :  { %11494 = vst [vmem:[#allocation84_spill] sm:$0xff] %v7759_v3 }
 0x1b4   :  { %1215 = vperm.xlu0 %7066, %v925_v59   ;;  %v909_v59 = vld [vmem:[%s11401_s2 + $0x140] sm:$0xff] }
 0x1b5   :  { %1065 = vperm.xlu2 %7068, %v895_v39   ;;  %1230 = vperm.xlu1 %7067, %v928_v17  }
 0x1b6   :  { %v7770_v40 = vpop.permute.xlu0 %401 }
 0x1b7   :  { %11495 = vst [vmem:[#allocation85_spill] sm:$0xff] %v7770_v40  ;;  %v7772_v62 = vpop.permute.xlu1 %709  ;;  %v7774_v3 = vpop.permute.xlu2 %945  ;;  %v890_v40 = vld [vmem:[%s11401_s2 + $0xa8] sm:$0xff] }
 0x1b8   :  { %11496 = vst [vmem:[#allocation86_spill] sm:$0xff] %v7772_v62 }
 0x1b9   :  { %11497 = vst [vmem:[#allocation87_spill] sm:$0xff] %v7774_v3  ;;  %v906_v3 = vld [vmem:[%s11401_s2 + $0x128] sm:$0xff] }
 0x1bc   :  { %1060 = vperm.xlu0 %7066, %v894_v44   ;;  %v926_v44 = vld [vmem:[%s11401_s2 + $0x1c8] sm:$0xff] }
 0x1bd   :  { %1140 = vperm.xlu2 %7068, %v910_v4   ;;  %1135 = vperm.xlu1 %7067, %v909_v59  }
 0x1be   :  { %v7785_v39 = vpop.permute.xlu0 %416 }
 0x1bf   :  { %v7787_v17 = vpop.permute.xlu1 %721  ;;  %v7789_v62 = vpop.permute.xlu2 %955 }
 0x1c0   :  { %11498 = vst [vmem:[#allocation88_spill] sm:$0xff] %v7787_v17 }
 0x1c1   :  { %11499 = vst [vmem:[#allocation89_spill] sm:$0xff] %v7789_v62  ;;  %v888_v62 = vld [vmem:[%s11401_s2 + $0x98] sm:$0xff] }
 0x1c4   :  { %1205 = vperm.xlu0 %7066, %v923_v61   ;;  %v907_v61 = vld [vmem:[%s11401_s2 + $0x130] sm:$0xff] }
 0x1c5   :  { %1055 = vperm.xlu2 %7068, %v893_v57   ;;  %1220 = vperm.xlu1 %7067, %v926_v44  }
 0x1c6   :  { %v7800_v4 = vpop.permute.xlu0 %935 }
 0x1c7   :  { %11500 = vst [vmem:[#allocation90_spill] sm:$0xff] %v7800_v4  ;;  %v7802_v59 = vpop.permute.xlu1 %733  ;;  %v7804_v17 = vpop.permute.xlu2 %970 }
 0x1c8   :  { %11501 = vst [vmem:[#allocation91_spill] sm:$0xff] %v7804_v17 }
 0x1cc   :  { %1050 = vperm.xlu0 %7066, %v892_v54   ;;  %v924_v54 = vld [vmem:[%s11401_s2 + $0x1b8] sm:$0xff] }
 0x1cd   :  { %1130 = vperm.xlu2 %7068, %v908_v24   ;;  %1125 = vperm.xlu1 %7067, %v907_v61  }
 0x1ce   :  { %v7815_v57 = vpop.permute.xlu0 %960 }
 0x1cf   :  { %11502 = vst [vmem:[#allocation92_spill] sm:$0xff] %v7815_v57  ;;  %v7817_v44 = vpop.permute.xlu2 %985  ;;  %v7819_v4 = vpop.permute.xlu1 %940 }
 0x1d0   :  { %11503 = vst [vmem:[#allocation93_spill] sm:$0xff] %v7819_v4 }
 0x1d4   :  { %1195 = vperm.xlu0 %7066, %v921_v18   ;;  %v905_v18 = vld [vmem:[%s11401_s2 + $0x120] sm:$0xff] }
 0x1d5   :  { %1045 = vperm.xlu2 %7068, %v891_v16   ;;  %1210 = vperm.xlu1 %7067, %v924_v54  }
 0x1d6   :  { %v7830_v24 = vpop.permute.xlu0 %975 }
 0x1d7   :  { %v7832_v61 = vpop.permute.xlu2 %1000  ;;  %v7834_v4 = vpop.permute.xlu1 %950 }
 0x1d8   :  { %11504 = vst [vmem:[#allocation94_spill] sm:$0xff] %v7834_v4 }
 0x1dc   :  { %1040 = vperm.xlu0 %7066, %v890_v40   ;;  %v922_v40 = vld [vmem:[%s11401_s2 + $0x1a8] sm:$0xff] }
 0x1dd   :  { %1120 = vperm.xlu2 %7068, %v906_v3   ;;  %1115 = vperm.xlu1 %7067, %v905_v18   ;;  %v34_v18 = vld [vmem:[%s11402_s0] sm:$0x3] }
 0x1de   :  { %v7845_v16 = vpop.permute.xlu0 %990  ;;  %v7870_v63 = vperm.slane %v34_v18, 0  ;;  %v7872_v26 = vperm.slane %v34_v18, 1 }
 0x1df   :  { %v7847_v54 = vpop.permute.xlu2 %1015  ;;  %v7849_v4 = vpop.permute.xlu1 %965 }
 0x1e0   :  { %11505 = vst [vmem:[#allocation95_spill] sm:$0xff] %v7847_v54  ;;  %v422_v22 = vmul.f32 %v7870_v63, %v7279_v38  ;;  %v748_v18 = vmul.f32 %v7872_v26, %v7292_v42  ;;  %v427_v32 = vmul.f32 %v7870_v63, %v7309_v48  ;;  %v430_v21 = vmul.f32 %v7870_v63, %v7324_v53 }
 0x1e1   :  { %v7898_v38 = vmul.f32 %v7870_v63, %v7242_v27  ;;  %v755_v42 = vmul.f32 %v7872_v26, %v7572_v6  ;;  %v7908_v48 = vmul.f32 %v7870_v63, %v7264_v33  ;;  %v431_v53 = vmul.f32 %v7870_v63, %v7275_v36 }
 0x1e2   :  { %v754_v27 = vmul.f32 %v7872_v26, %v7322_v52  ;;  %v434_v6 = vmul.f32 %v7870_v63, %v7290_v41  ;;  %v432_v33 = vmul.f32 %v7870_v63, %v7550_v28  ;;  %v920_v52 = vld [vmem:[%s11401_s2 + $0x198] sm:$0xff]  ;;  %v7937_v41 = vadd.f32 %v748_v18, %v427_v32 }
 0x1e3   :  { %11507 = vst [vmem:[#allocation97_spill] sm:$0xff] %v7898_v38  ;;  %v7935_v38 = vmul.f32 %v7870_v63, %v7294_v43  ;;  %v7947_v17 = vmul.f32 %v7870_v63, %v7366_v8  ;;  %v772_v43 = vmul.f32 %v7872_v26, %v7400_v2  ;;  %v7959_v8 = vmul.f32 %v7872_v26, %v7390_v0 }
 0x1e4   :  { %1185 = vperm.xlu0 %7066, %v919_v60   ;;  %v904_v60 = vld [vmem:[%s11401_s2 + $0x118] sm:$0xff]  ;;  %v7963_v2 = vmul.f32 %v7870_v63, %v7402_v35  ;;  %v429_v35 = vmul.f32 %v7870_v63, %v7540_v25 }
 0x1e5   :  { %1035 = vperm.xlu2 %7068, %v889_v11   ;;  %1200 = vperm.xlu1 %7067, %v922_v40   ;;  %v903_v11 = vld [vmem:[%s11401_s2 + $0x110] sm:$0xff]  ;;  %v743_v40 = vmul.f32 %v7872_v26, %v7277_v37 }
 0x1e6   :  { %v1006_v3 = vpop.permute.xlu0 %1005 }
 0x1e7   :  { %v7863_v54 = vpop.permute.xlu2 %1170  ;;  %v7865_v55 = vpop.permute.xlu1 %980  ;;  %v7925_v36 = vadd.f32 %v743_v40, %v422_v22  ;;  %v753_v22 = vmul.f32 %v7872_v26, %v7528_v51  ;;  %v756_v40 = vmul.f32 %v7872_v26, %v7538_v13  ;;  %v752_v51 = vmul.f32 %v7872_v26, %v7562_v20 }
 0x1e9   :  { %11508 = vst [vmem:[#allocation98_spill] sm:$0xff] %v7925_v36  ;;  %v819_v36 = vadd.f32 %v755_v42, %v434_v6  ;;  %v817_v32 = vadd.f32 %v753_v22, %v432_v33  ;;  %v482_v22 = vmul.f32 %v7870_v63, %v7478_v9 }
 0x1ec   :  { %1030 = vperm.xlu0 %7066, %v888_v62   ;;  %v433_v62 = vmul.f32 %v7870_v63, %v7339_v58  ;;  %v751_v58 = vmul.f32 %v7872_v26, %v7307_v47  ;;  %v887_v47 = vld [vmem:[%s11401_s2 + $0x90] sm:$0xff] }
 0x1ed   :  { %1110 = vperm.xlu2 %7068, %v904_v60   ;;  %1105 = vperm.xlu1 %7067, %v903_v11   ;;  %v7902_v11 = vmul.f32 %v7870_v63, %v7253_v30  ;;  %v917_v30 = vld [vmem:[%s11401_s2 + $0x180] sm:$0xff] }
 0x1ee   :  { %v7884_v57 = vpop.permute.xlu0 %1020  ;;  %v815_v28 = vadd.f32 %v751_v58, %v430_v21  ;;  %v818_v5 = vadd.f32 %v754_v27, %v433_v62  ;;  %v466_v21 = vmul.f32 %v7870_v63, %v7462_v45  ;;  %v787_v45 = vmul.f32 %v7872_v26, %v7450_v7 }
 0x1ef   :  { %11506 = vst [vmem:[#allocation96_spill] sm:$0xff] %v7884_v57  ;;  %v7894_v60 = vpop.permute.xlu2 %1085  ;;  %v996_v37 = vpop.permute.xlu1 %995  ;;  %v435_v57 = vmul.f32 %v7870_v63, %v7560_v31  ;;  %v451_v31 = vmul.f32 %v7870_v63, %v7412_v50  ;;  %v1267_v50 = vadd.f32 %v1006_v3, %v819_v36  ;;  %v450_v62 = vmul.f32 %v7870_v63, %v7622_v49  ;;  %v1542_v49 = vld [vmem:[%s11403_s4 + $0x8] sm:$0xff] }
 0x1f0   :  { %v1265_v42 = vadd.f32 %v996_v37, %v817_v32  ;;  %v467_v27 = vmul.f32 %v7870_v63, %v7428_v14  ;;  %v771_v7 = vmul.f32 %v7872_v26, %v7588_v34  ;;  %v1266_v6 = vadd.f32 %v7832_v61, %v818_v5  ;;  %v902_v37 = vld [vmem:[%s11401_s2 + $0x108] sm:$0xff]  ;;  %v901_v14 = vld [vmem:[%s11401_s2 + $0x100] sm:$0xff] }
 0x1f1   :  { %v820_v18 = vadd.f32 %v756_v40, %v435_v57  ;;  %v788_v57 = vmul.f32 %v7872_v26, %v7729_v1  ;;  %v836_v0 = vadd.f32 %v772_v43, %v451_v31  ;;  %v816_v1 = vadd.f32 %v752_v51, %v431_v53 }
 0x1f2   :  { %v1331_v25 = vmax.f32 %v1267_v50, 0.0  ;;  %v750_v34 = vmul.f32 %v7872_v26, %v7518_v46  ;;  %v426_v36 = vmul.f32 %v7870_v63, %v7530_v23  ;;  %v749_v5 = vmul.f32 %v7872_v26, %v7552_v56 }
 0x1f3   :  { %v835_v61 = vadd.f32 %v771_v7, %v450_v62  ;;  %v1264_v53 = vadd.f32 %v7845_v16, %v816_v1  ;;  %v747_v40 = vmul.f32 %v7872_v26, %v7510_v19  ;;  %v1263_v23 = vadd.f32 %v7817_v44, %v815_v28 }
 0x1f4   :  { %1175 = vperm.xlu0 %7066, %v917_v30   ;;  %v851_v30 = vadd.f32 %v787_v45, %v466_v21  ;;  %v1330_v56 = vmax.f32 %v1266_v6, 0.0  ;;  %v814_v16 = vadd.f32 %v750_v34, %v429_v35  ;;  %v803_v51 = vmul.f32 %v7872_v26, %v7802_v59  ;;  %v1545_v59 = vld [vmem:[%s11403_s4 + $0x20] sm:$0xff] }
 0x1f5   :  { %1025 = vperm.xlu2 %7068, %v887_v47   ;;  %1190 = vperm.xlu1 %7067, %v920_v52   ;;  %v852_v47 = vadd.f32 %v788_v57, %v467_v27  ;;  %v1329_v52 = vmax.f32 %v1265_v42, 0.0  ;;  %v1283_v46 = vadd.f32 %v7894_v60, %v835_v61  ;;  %v813_v9 = vadd.f32 %v749_v5, %v7908_v48  ;;  %v11513_v61 = vld [vmem:[#allocation97_spill] sm:$0xff] }
 0x1f6   :  { %v7955_v13 = vpop.permute.xlu0 %1245  ;;  %v811_v50 = vadd.f32 %v747_v40, %v426_v36  ;;  %v1262_v45 = vadd.f32 %v7865_v55, %v814_v16  ;;  %v483_v62 = vmul.f32 %v7870_v63, %v7785_v39  ;;  %v1327_v57 = vmax.f32 %v1263_v23, 0.0  ;;  %v1541_v55 = vld [vmem:[%s11403_s4] sm:$0xff]  ;;  %v11517_v16 = vld [vmem:[#allocation77_spill] sm:$0xff] }
 0x1f7   :  { %v7969_v20 = vpop.permute.xlu2 %1160  ;;  %v1011_v3 = vpop.permute.xlu1 %1010  ;;  %v1300_v43 = vadd.f32 %v7863_v54, %v852_v47  ;;  %v1387_v28 = vpack.c.bf16 %v1330_v56, %v1329_v52  ;;  %v746_v54 = vmul.f32 %v7872_v26, %v7542_v15  ;;  %v1347_v48 = vmax.f32 %v1283_v46, 0.0  ;;  %v918_v15 = vld [vmem:[%s11401_s2 + $0x188] sm:$0xff]  ;;  %v11515_v46 = vld [vmem:[#allocation62_spill] sm:$0xff] }
 0x1f8   :  { %v1268_v58 = vadd.f32 %v1011_v3, %v820_v18  ;;  %v1328_v18 = vmax.f32 %v1264_v53, 0.0  ;;  %v1261_v42 = vadd.f32 %v7830_v24, %v813_v9  ;;  %v804_v27 = vmul.f32 %v7872_v26, %v7755_v10  ;;  %v11510_v36 = vld [vmem:[#allocation39_spill] sm:$0xff]  ;;  %v11514_v47 = vld [vmem:[#allocation92_spill] sm:$0xff]  ;;  %v11516_v56 = vld [vmem:[#allocation66_spill] sm:$0xff] }
 0x1f9   :  { %v1364_v39 = vmax.f32 %v1300_v43, 0.0  ;;  %v867_v35 = vadd.f32 %v803_v51, %v482_v22  ;;  %v1259_v24 = vadd.f32 %v7849_v4, %v811_v50  ;;  %v744_v1 = vmul.f32 %v7872_v26, %v7532_v29  ;;  %v1548_v9 = vld [vmem:[%s11403_s4 + $0x38] sm:$0xff] }
 0x1fa   :  { %v1332_v33 = vmax.f32 %v1268_v58, 0.0  ;;  %v868_v34 = vadd.f32 %v804_v27, %v483_v62  ;;  %v742_v29 = vmul.f32 %v7872_v26, %v11510_v36  ;;  %v770_v23 = vmul.f32 %v7872_v26, %v11515_v46  ;;  %v11518_v50 = vld [vmem:[#allocation89_spill] sm:$0xff]  ;;  %v11520_v62 = vld [vmem:[#allocation43_spill] sm:$0xff] }
 0x1fb   :  { %v1315_v4 = vadd.f32 %v7955_v13, %v867_v35  ;;  %v786_v43 = vmul.f32 %v7872_v26, %v11516_v56  ;;  %v808_v51 = vadd.f32 %v744_v1, %v7935_v38  ;;  %v1547_v46 = vld [vmem:[%s11403_s4 + $0x30] sm:$0xff] }
 0x1fc   :  { %1612 = vperm.xlu0 %7066, %v1542_v49   ;;  %v1388_v31 = vpack.c.bf16 %v1332_v33, %v1331_v25  ;;  %v1326_v49 = vmax.f32 %v1262_v45, 0.0  ;;  %v1325_v25 = vmax.f32 %v1261_v42, 0.0  ;;  %v1543_v45 = vld [vmem:[%s11403_s4 + $0x10] sm:$0xff]  ;;  %v834_v35 = vadd.f32 %v770_v23, %v7947_v17  ;;  %v1546_v23 = vld [vmem:[%s11403_s4 + $0x28] sm:$0xff] }
 0x1fd   :  { %1100 = vperm.xlu2 %7068, %v902_v37   ;;  %1095 = vperm.xlu1 %7067, %v901_v14   ;;  %v810_v37 = vadd.f32 %v746_v54, %v7902_v11  ;;  %v833_v14 = vadd.f32 %v7959_v8, %v7963_v2  ;;  %v11511_v11 = vld [vmem:[#allocation44_spill] sm:$0xff]  ;;  %v11512_v8 = vld [vmem:[#allocation73_spill] sm:$0xff] }
 0x1fe   :  { %v1091_v21 = vpop.permute.xlu0 %1090  ;;  %2565 = vmatpush.bf16.msra.mxu0 %v1388_v31  ;;  %v421_v5 = vmul.f32 %v7870_v63, %v11511_v11  ;;  %v465_v2 = vmul.f32 %v7870_v63, %v11512_v8  ;;  %v1323_v31 = vmax.f32 %v1259_v24, 0.0  ;;  %v1385_v40 = vpack.c.bf16 %v1326_v49, %v1325_v25  ;;  %v11519_v54 = vld [vmem:[#allocation20_spill] sm:$0xff]  ;;  %v11524_v24 = vld [vmem:[#allocation87_spill] sm:$0xff] }
 0x1ff   :  { %v1284_v32 = vadd.f32 %v1091_v21, %v836_v0  ;;  %v8006_v19 = vpop.permute.xlu2 %1075  ;;  %v1166_v60 = vpop.permute.xlu1 %1165  ;;  %v745_v0 = vmul.f32 %v7872_v26, %v7502_v12  ;;  %v11509_v12 = vld [vmem:[#allocation91_spill] sm:$0xff]  ;;  %v1258_v52 = vadd.f32 %v11514_v47, %v810_v37  ;;  %v785_v21 = vmul.f32 %v7872_v26, %v11517_v16  ;;  %v11530_v56 = vld [vmem:[#allocation40_spill] sm:$0xff] }
 0x200   :  { %v1299_v44 = vadd.f32 %v1166_v60, %v851_v30  ;;  %v1386_v30 = vpack.c.bf16 %v1328_v18, %v1327_v57  ;;  %v1260_v10 = vadd.f32 %v11509_v12, %v7937_v41  ;;  %v1544_v18 = vld [vmem:[%s11403_s4 + $0x18] sm:$0xff]  ;;  %v464_v38 = vmul.f32 %v7870_v63, %v11519_v54 }
 0x201   :  { %v1348_v3 = vmax.f32 %v1284_v32, 0.0  ;;  %v809_v53 = vadd.f32 %v745_v0, %v11513_v61  ;;  %v850_v57 = vadd.f32 %v786_v43, %v465_v2  ;;  %v1322_v42 = vmax.f32 %v1258_v52, 0.0  ;;  %v11525_v12 = vld [vmem:[#allocation85_spill] sm:$0xff]  ;;  %v11529_v52 = vld [vmem:[#allocation90_spill] sm:$0xff] }
 0x202   :  { %2566 = vmatpush.bf16.msra.mxu0 %v1387_v28  ;;  %v1363_v58 = vmax.f32 %v1299_v44, 0.0  ;;  %v1324_v60 = vmax.f32 %v1260_v10, 0.0  ;;  %v1379_v44 = vmax.f32 %v1315_v4, 0.0  ;;  %v806_v0 = vadd.f32 %v742_v29, %v421_v5  ;;  %v11527_v5 = vld [vmem:[#allocation42_spill] sm:$0xff] }
 0x203   :  { %v1396_v7 = vpack.c.bf16 %v1348_v3, %v1347_v48  ;;  %v1257_v32 = vadd.f32 %v11518_v50, %v809_v53  ;;  %v11521_v48 = vld [vmem:[#allocation45_spill] sm:$0xff]  ;;  %v1281_v27 = vadd.f32 %v8006_v19, %v833_v14  ;;  %v849_v37 = vadd.f32 %v785_v21, %v464_v38 }
 0x204   :  { %1627 = vperm.xlu0 %7066, %v1545_v59   ;;  %v1404_v6 = vpack.c.bf16 %v1364_v39, %v1363_v58  ;;  %v420_v59 = vmul.f32 %v7870_v63, %v11520_v62  ;;  %v741_v3 = vmul.f32 %v7872_v26, %v11521_v48  ;;  %v1384_v58 = vpack.c.bf16 %v1324_v60, %v1323_v31  ;;  %v5780_v62 = vld [vmem:[%s11404_s3] sm:$0xf] }
 0x205   :  { %1607 = vperm.xlu2 %7068, %v1541_v55   ;;  %1180 = vperm.xlu1 %7067, %v918_v15   ;;  %v11522_v55 = vld [vmem:[#allocation94_spill] sm:$0xff]  ;;  %v480_v10 = vmul.f32 %v7870_v63, %v11525_v12  ;;  %v481_v8 = vmul.f32 %v7870_v63, %v11527_v5  ;;  %v1345_v61 = vmax.f32 %v1281_v27, 0.0  ;;  %v802_v43 = vmul.f32 %v7872_v26, %v11530_v56  ;;  %v1554_v27 = vld [vmem:[%s11403_s4 + $0x68] sm:$0xff] }
 0x206   :  { %2734 = vmatpush.bf16.msra.mxu1 %v1396_v7  ;;  %v8036_v33 = vpop.permute.xlu0 %1235  ;;  %2567 = vmatpush.bf16.msra.mxu0 %v1386_v30  ;;  %v1256_v15 = vadd.f32 %v11522_v55, %v808_v51  ;;  %v11523_v7 = vld [vmem:[#allocation98_spill] sm:$0xff]  ;;  %v1321_v30 = vmax.f32 %v1257_v32, 0.0  ;;  %v805_v25 = vadd.f32 %v741_v3, %v420_v59  ;;  %v6805_v59 = vld [vmem:[%s11404_s3 + $0xc] sm:$0xf0] }
 0x207   :  { %2903 = vmatpush.bf16.msra.mxu2 %v1404_v6  ;;  %v8045_v41 = vpop.permute.xlu2 %1150  ;;  %v1251_v13 = vpop.permute.xlu1 %1250  ;;  %v1255_v49 = vadd.f32 %v11524_v24, %v11523_v7  ;;  %v1298_v6 = vadd.f32 %v7969_v20, %v850_v57  ;;  %v11528_v20 = vld [vmem:[#allocation80_spill] sm:$0xff]  ;;  %v1553_v56 = vld [vmem:[%s11403_s4 + $0x60] sm:$0xff] }
 0x208   :  { %v1316_v22 = vadd.f32 %v1251_v13, %v868_v34  ;;  %v11526_v34 = vld [vmem:[#allocation93_spill] sm:$0xff]  ;;  %v1320_v17 = vmax.f32 %v1256_v15, 0.0  ;;  %v1383_v11 = vpack.c.bf16 %v1322_v42, %v1321_v30  ;;  %v801_v2 = vmul.f32 %v7872_v26, %v11528_v20  ;;  %v11533_v42 = vld [vmem:[#allocation7_spill] sm:$0xff]  ;;  %v11534_v15 = vld [vmem:[#allocation26_spill] sm:$0xff] }
 0x209   :  { %v1254_v36 = vadd.f32 %v11526_v34, %v806_v0  ;;  %v1551_v13 = vld [vmem:[%s11403_s4 + $0x50] sm:$0xff]  ;;  %v1319_v47 = vmax.f32 %v1255_v49, 0.0  ;;  %v1253_v31 = vadd.f32 %v11529_v52, %v805_v25  ;;  %v446_v55 = vmul.f32 %v7870_v63, %v11533_v42  ;;  %v1550_v30 = vld [vmem:[%s11403_s4 + $0x48] sm:$0xff] }
 0x20a   :  { %2568 = vmatpush.bf16.msra.mxu0 %v1385_v40  ;;  %v1380_v28 = vmax.f32 %v1316_v22, 0.0  ;;  %v1362_v22 = vmax.f32 %v1298_v6, 0.0  ;;  %v865_v51 = vadd.f32 %v801_v2, %v480_v10  ;;  %v1549_v6 = vld [vmem:[%s11403_s4 + $0x40] sm:$0xff] }
 0x20b   :  { %v1318_v21 = vmax.f32 %v1254_v36, 0.0  ;;  %v1317_v32 = vmax.f32 %v1253_v31, 0.0  ;;  %v11538_v25 = vld [vmem:[#allocation63_spill] sm:$0xff]  ;;  %v11540_v31 = vld [vmem:[#allocation37_spill] sm:$0xff] }
 0x20c   :  { %1642 = vperm.xlu0 %7066, %v1548_v9   ;;  %v1412_v39 = vpack.c.bf16 %v1380_v28, %v1379_v44  ;;  %v1382_v9 = vpack.c.bf16 %v1320_v17, %v1319_v47  ;;  %v1313_v60 = vadd.f32 %v8036_v33, %v865_v51  ;;  %v11531_v44 = vld [vmem:[#allocation59_spill] sm:$0xff]  ;;  %v11532_v33 = vld [vmem:[#allocation29_spill] sm:$0xff] }
 0x20d   :  { %1622 = vperm.xlu2 %7068, %v1544_v18   ;;  %1617 = vperm.xlu1 %7067, %v1543_v45   ;;  %v866_v45 = vadd.f32 %v802_v43, %v481_v8  ;;  %v767_v28 = vmul.f32 %v7872_v26, %v11531_v44  ;;  %v463_v48 = vmul.f32 %v7870_v63, %v11532_v33  ;;  %v1552_v43 = vld [vmem:[%s11403_s4 + $0x58] sm:$0xff] }
 0x20e   :  { %v1081_v1 = vpop.permute.xlu0 %1080  ;;  %2569 = vmatpush.bf16.msra.mxu0 %v1384_v58  ;;  %3072 = vmatpush.bf16.msra.mxu3 %v1412_v39  ;;  %v1381_v57 = vpack.c.bf16 %v1318_v21, %v1317_v32  ;;  %v784_v58 = vmul.f32 %v7872_v26, %v11534_v15  ;;  %v11535_v39 = vld [vmem:[#allocation56_spill] sm:$0xff]  ;;  %v1377_v24 = vmax.f32 %v1313_v60, 0.0  ;;  %v11543_v44 = vld [vmem:[#allocation53_spill] sm:$0xff]  ;;  %v11544_v33 = vld [vmem:[#allocation74_spill] sm:$0xff] }
 0x20f   :  { %v1282_v4 = vadd.f32 %v1081_v1, %v834_v35  ;;  %v1066_v19 = vpop.permute.xlu2 %1065  ;;  %v1156_v14 = vpop.permute.xlu1 %1155  ;;  %v447_v0 = vmul.f32 %v7870_v63, %v11535_v39  ;;  %v11536_v35 = vld [vmem:[#allocation70_spill] sm:$0xff]  ;;  %v5781_v1 = vor.u32 %v6805_v59, %v5780_v62  ;;  %v831_v10 = vadd.f32 %v767_v28, %v446_v55  ;;  %v11542_v21 = vld [vmem:[#allocation32_spill] sm:$0xff] }
 0x210   :  { %v1297_v29 = vadd.f32 %v1156_v14, %v849_v37  ;;  %v462_v7 = vmul.f32 %v7870_v63, %v11536_v35  ;;  %v11537_v37 = vld [vmem:[#allocation50_spill] sm:$0xff]  ;;  %v848_v14 = vadd.f32 %v784_v58, %v463_v48  ;;  %v479_v51 = vmul.f32 %v7870_v63, %v11542_v21  ;;  %v6809_v59 = vld [vmem:[%s11404_s3 + $0x2c] sm:$0xf0] }
 0x211   :  { %v1346_v53 = vmax.f32 %v1282_v4, 0.0  ;;  %v768_v12 = vmul.f32 %v7872_v26, %v11537_v37  ;;  %v783_v4 = vmul.f32 %v7872_v26, %v11538_v25  ;;  %v1279_v36 = vadd.f32 %v1066_v19, %v831_v10  ;;  %v1557_v19 = vld [vmem:[%s11403_s4 + $0x80] sm:$0xff]  ;;  %v11547_v58 = vld [vmem:[#allocation48_spill] sm:$0xff] }
 0x212   :  { %v1361_v40 = vmax.f32 %v1297_v29, 0.0  ;;  %2570 = vmatpush.bf16.msra.mxu0 %v1383_v11  ;;  %v1296_v29 = vadd.f32 %v8045_v41, %v848_v14  ;;  %v799_v41 = vmul.f32 %v7872_v26, %v11540_v31  ;;  %v444_v28 = vmul.f32 %v7870_v63, %v11543_v44  ;;  %v5796_v62 = vld [vmem:[%s11404_s3 + $0x20] sm:$0xf] }
 0x213   :  { %v1395_v16 = vpack.c.bf16 %v1346_v53, %v1345_v61  ;;  %v832_v17 = vadd.f32 %v768_v12, %v447_v0  ;;  %v847_v5 = vadd.f32 %v783_v4, %v462_v7  ;;  %v11539_v61 = vld [vmem:[#allocation41_spill] sm:$0xff]  ;;  %v1343_v47 = vmax.f32 %v1279_v36, 0.0  ;;  %v11546_v55 = vld [vmem:[#allocation18_spill] sm:$0xff]  ;;  %v11550_v10 = vld [vmem:[#allocation23_spill] sm:$0xff] }
 0x214   :  { %1657 = vperm.xlu0 %7066, %v1551_v13   ;;  %v1403_v50 = vpack.c.bf16 %v1362_v22, %v1361_v40  ;;  %v478_v53 = vmul.f32 %v7870_v63, %v11539_v61  ;;  %v11541_v22 = vld [vmem:[#allocation88_spill] sm:$0xff]  ;;  %v782_v48 = vmul.f32 %v7872_v26, %v11544_v33  ;;  %v461_v15 = vmul.f32 %v7870_v63, %v11546_v55  ;;  %v1560_v0 = vld [vmem:[%s11403_s4 + $0x98] sm:$0xff] }
 0x215   :  { %1637 = vperm.xlu2 %7068, %v1547_v46   ;;  %1632 = vperm.xlu1 %7067, %v1546_v23   ;;  %v800_v40 = vmul.f32 %v7872_v26, %v11541_v22  ;;  %v1360_v46 = vmax.f32 %v1296_v29, 0.0  ;;  %v765_v39 = vmul.f32 %v7872_v26, %v11547_v58  ;;  %v781_v25 = vmul.f32 %v7872_v26, %v11550_v10  ;;  %v11559_v55 = vld [vmem:[#allocation60_spill] sm:$0xff] }
 0x216   :  { %2735 = vmatpush.bf16.msra.mxu1 %v1395_v16  ;;  %v1226_v18 = vpop.permute.xlu0 %1225  ;;  %2571 = vmatpush.bf16.msra.mxu0 %v1382_v9  ;;  %v863_v9 = vadd.f32 %v799_v41, %v478_v53  ;;  %v846_v4 = vadd.f32 %v782_v48, %v461_v15  ;;  %v11557_v48 = vld [vmem:[#allocation10_spill] sm:$0xff]  ;;  %v780_v15 = vmul.f32 %v7872_v26, %v11559_v55  ;;  %v1566_v58 = vld [vmem:[%s11403_s4 + $0xc8] sm:$0xff] }
 0x217   :  { %2904 = vmatpush.bf16.msra.mxu2 %v1403_v50  ;;  %v8099_v54 = vpop.permute.xlu2 %1140  ;;  %v1241_v38 = vpop.permute.xlu1 %1240  ;;  %v829_v12 = vadd.f32 %v765_v39, %v444_v28  ;;  %v11560_v39 = vld [vmem:[#allocation71_spill] sm:$0xff]  ;;  %v1572_v55 = vld [vmem:[%s11403_s4 + $0xf8] sm:$0xff] }
 0x218   :  { %v1314_v3 = vadd.f32 %v1241_v38, %v866_v45  ;;  %v1311_v32 = vadd.f32 %v1226_v18, %v863_v9  ;;  %v864_v45 = vadd.f32 %v800_v40, %v479_v51 }
 0x21a   :  { %v1378_v49 = vmax.f32 %v1314_v3, 0.0  ;;  %2572 = vmatpush.bf16.msra.mxu0 %v1381_v57  ;;  %v11545_v57 = vld [vmem:[#allocation16_spill] sm:$0xff]  ;;  %v1375_v7 = vmax.f32 %v1311_v32, 0.0 }
 0x21b   :  { %v445_v42 = vmul.f32 %v7870_v63, %v11545_v57  ;;  %v11558_v57 = vld [vmem:[#allocation57_spill] sm:$0xff] }
 0x21c   :  { %1672 = vperm.xlu0 %7066, %v1554_v27   ;;  %v1411_v34 = vpack.c.bf16 %v1378_v49, %v1377_v24  ;;  %v11548_v27 = vld [vmem:[#allocation27_spill] sm:$0xff]  ;;  %v1556_v49 = vld [vmem:[%s11403_s4 + $0x78] sm:$0xff] }
 0x21d   :  { %1652 = vperm.xlu2 %7068, %v1550_v30   ;;  %1647 = vperm.xlu1 %7067, %v1549_v6   ;;  %v460_v35 = vmul.f32 %v7870_v63, %v11548_v27  ;;  %v1555_v30 = vld [vmem:[%s11403_s4 + $0x70] sm:$0xff]  ;;  %v5797_v6 = vor.u32 %v6809_v59, %v5796_v62  ;;  %v11556_v59 = vld [vmem:[#allocation67_spill] sm:$0xff] }
 0x21e   :  { %2573 = vmatmul.bf16.vlgmr.msra.gmra.mxu0 %v5781_v1  ;;  %v1071_v11 = vpop.permute.xlu0 %1070  ;;  %3073 = vmatpush.bf16.msra.mxu3 %v1411_v34  ;;  %v11549_v1 = vld [vmem:[#allocation13_spill] sm:$0xff]  ;;  %v459_v33 = vmul.f32 %v7870_v63, %v11556_v59 }
 0x21f   :  { %v1280_v8 = vadd.f32 %v1071_v11, %v832_v17  ;;  %v1056_v20 = vpop.permute.xlu2 %1055  ;;  %v1146_v2 = vpop.permute.xlu1 %1145  ;;  %v766_v37 = vmul.f32 %v7872_v26, %v11549_v1  ;;  %v1294_v17 = vadd.f32 %v8099_v54, %v846_v4  ;;  %v845_v11 = vadd.f32 %v781_v25, %v460_v35  ;;  %v11553_v54 = vld [vmem:[#allocation83_spill] sm:$0xff]  ;;  %v6813_v62 = vld [vmem:[%s11404_s3 + $0x4c] sm:$0xf0] }
 0x220   :  { %v1295_v13 = vadd.f32 %v1146_v2, %v847_v5  ;;  %v1277_v34 = vadd.f32 %v1056_v20, %v829_v12  ;;  %v11551_v2 = vld [vmem:[#allocation86_spill] sm:$0xff]  ;;  %v1563_v20 = vld [vmem:[%s11403_s4 + $0xb0] sm:$0xff]  ;;  %v477_v31 = vmul.f32 %v7870_v63, %v11553_v54  ;;  %v844_v10 = vadd.f32 %v780_v15, %v459_v33 }
 0x221   :  { %v1344_v52 = vmax.f32 %v1280_v8, 0.0  ;;  %v830_v36 = vadd.f32 %v766_v37, %v445_v42  ;;  %v797_v61 = vmul.f32 %v7872_v26, %v11551_v2  ;;  %v1358_v41 = vmax.f32 %v1294_v17, 0.0  ;;  %v11562_v37 = vld [vmem:[#allocation17_spill] sm:$0xff]  ;;  %v11569_v33 = vld [vmem:[#allocation4_spill] sm:$0xff] }
 0x222   :  { %v1359_v23 = vmax.f32 %v1295_v13, 0.0  ;;  %v1341_v13 = vmax.f32 %v1277_v34, 0.0  ;;  %v764_v42 = vmul.f32 %v7872_v26, %v11558_v57  ;;  %v458_v12 = vmul.f32 %v7870_v63, %v11562_v37  ;;  %v11571_v57 = vld [vmem:[#allocation51_spill] sm:$0xff]  ;;  %v11572_v15 = vld [vmem:[#allocation64_spill] sm:$0xff] }
 0x223   :  { %v1394_v16 = vpack.c.bf16 %v1344_v52, %v1343_v47  ;;  %v11552_v52 = vld [vmem:[#allocation30_spill] sm:$0xff] }
 0x224   :  { %1687 = vperm.xlu0 %7066, %v1557_v19   ;;  %v1402_v50 = vpack.c.bf16 %v1360_v46, %v1359_v23  ;;  %v476_v19 = vmul.f32 %v7870_v63, %v11552_v52  ;;  %v1559_v46 = vld [vmem:[%s11403_s4 + $0x90] sm:$0xff]  ;;  %v1558_v23 = vld [vmem:[%s11403_s4 + $0x88] sm:$0xff] }
 0x225   :  { %1667 = vperm.xlu2 %7068, %v1553_v56   ;;  %1662 = vperm.xlu1 %7067, %v1552_v43   ;;  %v11554_v43 = vld [vmem:[#allocation78_spill] sm:$0xff] }
 0x226   :  { %2736 = vmatpush.bf16.msra.mxu1 %v1394_v16  ;;  %v1216_v60 = vpop.permute.xlu0 %1215  ;;  %2905 = vmatpush.bf16.msra.mxu2 %v1402_v50  ;;  %v798_v16 = vmul.f32 %v7872_v26, %v11554_v43  ;;  %v861_v21 = vadd.f32 %v797_v61, %v476_v19 }
 0x227   :  { %v1231_v38 = vpop.permute.xlu1 %1230  ;;  %v8158_v18 = vpop.permute.xlu2 %1130 }
 0x228   :  { %v1312_v3 = vadd.f32 %v1231_v38, %v864_v45  ;;  %v1309_v9 = vadd.f32 %v1216_v60, %v861_v21  ;;  %v862_v32 = vadd.f32 %v798_v16, %v477_v31  ;;  %v11555_v45 = vld [vmem:[#allocation14_spill] sm:$0xff] }
 0x229   :  { %v442_v44 = vmul.f32 %v7870_v63, %v11555_v45  ;;  %v5812_v38 = vld [vmem:[%s11404_s3 + $0x40] sm:$0xf] }
 0x22a   :  { %v1376_v24 = vmax.f32 %v1312_v3, 0.0  ;;  %v763_v3 = vmul.f32 %v7872_v26, %v11557_v48  ;;  %v1373_v27 = vmax.f32 %v1309_v9, 0.0  ;;  %v11570_v48 = vld [vmem:[#allocation21_spill] sm:$0xff] }
 0x22c   :  { %1702 = vperm.xlu0 %7066, %v1560_v0   ;;  %v1410_v14 = vpack.c.bf16 %v1376_v24, %v1375_v7  ;;  %v779_v0 = vmul.f32 %v7872_v26, %v11560_v39  ;;  %v1562_v7 = vld [vmem:[%s11403_s4 + $0xa8] sm:$0xff]  ;;  %v1561_v24 = vld [vmem:[%s11403_s4 + $0xa0] sm:$0xff]  ;;  %v827_v1 = vadd.f32 %v763_v3, %v442_v44  ;;  %v778_v3 = vmul.f32 %v7872_v26, %v11570_v48 }
 0x22d   :  { %1682 = vperm.xlu2 %7068, %v1556_v49   ;;  %1677 = vperm.xlu1 %7067, %v1555_v30   ;;  %v5813_v49 = vor.u32 %v6813_v62, %v5812_v38  ;;  %v11561_v30 = vld [vmem:[#allocation5_spill] sm:$0xff]  ;;  %v11568_v62 = vld [vmem:[#allocation24_spill] sm:$0xff] }
 0x22e   :  { %2578 = vmatmul.bf16.gmra.mxu0 %v5797_v6  ;;  %v1061_v29 = vpop.permute.xlu0 %1060  ;;  %3074 = vmatpush.bf16.msra.mxu3 %v1410_v14  ;;  %v443_v6 = vmul.f32 %v7870_v63, %v11561_v30  ;;  %v6817_v38 = vld [vmem:[%s11404_s3 + $0x6c] sm:$0xf0] }
 0x22f   :  { %v1278_v5 = vadd.f32 %v1061_v29, %v830_v36  ;;  %v1136_v8 = vpop.permute.xlu1 %1135  ;;  %v1046_v22 = vpop.permute.xlu2 %1045  ;;  %v1292_v36 = vadd.f32 %v8158_v18, %v844_v10  ;;  %v843_v29 = vadd.f32 %v779_v0, %v458_v12  ;;  %v11565_v18 = vld [vmem:[#allocation75_spill] sm:$0xff] }
 0x230   :  { %v1293_v53 = vadd.f32 %v1136_v8, %v845_v11  ;;  %v1275_v14 = vadd.f32 %v1046_v22, %v827_v1  ;;  %v828_v34 = vadd.f32 %v764_v42, %v443_v6  ;;  %v11563_v8 = vld [vmem:[#allocation81_spill] sm:$0xff]  ;;  %v795_v19 = vmul.f32 %v7872_v26, %v11565_v18  ;;  %v11574_v6 = vld [vmem:[#allocation58_spill] sm:$0xff] }
 0x231   :  { %v1342_v47 = vmax.f32 %v1278_v5, 0.0  ;;  %v474_v2 = vmul.f32 %v7870_v63, %v11563_v8  ;;  %v1356_v54 = vmax.f32 %v1292_v36, 0.0  ;;  %v1564_v22 = vld [vmem:[%s11403_s4 + $0xb8] sm:$0xff]  ;;  %v441_v42 = vmul.f32 %v7870_v63, %v11571_v57 }
 0x232   :  { %v1357_v40 = vmax.f32 %v1293_v53, 0.0  ;;  %v1339_v53 = vmax.f32 %v1275_v14, 0.0  ;;  %v777_v1 = vmul.f32 %v7872_v26, %v11574_v6 }
 0x233   :  { %v1393_v56 = vpack.c.bf16 %v1342_v47, %v1341_v13  ;;  %v1569_v47 = vld [vmem:[%s11403_s4 + $0xe0] sm:$0xff] }
 0x234   :  { %1717 = vperm.xlu0 %7066, %v1563_v20   ;;  %v1401_v51 = vpack.c.bf16 %v1358_v41, %v1357_v40  ;;  %v11564_v20 = vld [vmem:[#allocation38_spill] sm:$0xff] }
 0x235   :  { %1697 = vperm.xlu2 %7068, %v1559_v46   ;;  %1692 = vperm.xlu1 %7067, %v1558_v23   ;;  %v475_v52 = vmul.f32 %v7870_v63, %v11564_v20  ;;  %v1565_v41 = vld [vmem:[%s11403_s4 + $0xc0] sm:$0xff]  ;;  %v11577_v20 = vld [vmem:[#allocation84_spill] sm:$0xff] }
 0x236   :  { %2737 = vmatpush.bf16.msra.mxu1 %v1393_v56  ;;  %v1206_v50 = vpop.permute.xlu0 %1205  ;;  %2906 = vmatpush.bf16.msra.mxu2 %v1401_v51  ;;  %v11566_v46 = vld [vmem:[#allocation35_spill] sm:$0xff]  ;;  %v859_v56 = vadd.f32 %v795_v19, %v474_v2 }
 0x237   :  { %v1221_v28 = vpop.permute.xlu1 %1220  ;;  %v8230_v25 = vpop.permute.xlu2 %1120  ;;  %v796_v23 = vmul.f32 %v7872_v26, %v11566_v46 }
 0x238   :  { %v1310_v60 = vadd.f32 %v1221_v28, %v862_v32  ;;  %v1307_v16 = vadd.f32 %v1206_v50, %v859_v56  ;;  %v11567_v32 = vld [vmem:[#allocation54_spill] sm:$0xff]  ;;  %v457_v50 = vmul.f32 %v7870_v63, %v11568_v62  ;;  %v11581_v62 = vld [vmem:[#allocation11_spill] sm:$0xff] }
 0x239   :  { %v860_v9 = vadd.f32 %v796_v23, %v475_v52  ;;  %v761_v45 = vmul.f32 %v7872_v26, %v11567_v32  ;;  %v5828_v28 = vld [vmem:[%s11404_s3 + $0x60] sm:$0xf]  ;;  %v794_v52 = vmul.f32 %v7872_v26, %v11577_v20 }
 0x23a   :  { %v1374_v35 = vmax.f32 %v1310_v60, 0.0  ;;  %v440_v60 = vmul.f32 %v7870_v63, %v11569_v33  ;;  %v1371_v39 = vmax.f32 %v1307_v16, 0.0  ;;  %v842_v37 = vadd.f32 %v778_v3, %v457_v50  ;;  %v11584_v3 = vld [vmem:[#allocation46_spill] sm:$0xff] }
 0x23b   :  { %v439_v50 = vmul.f32 %v7870_v63, %v11581_v62  ;;  %v759_v57 = vmul.f32 %v7872_v26, %v11584_v3  ;;  %v5782_v3 = vld [vmem:[%s11404_s3 + $0x10] sm:$0xf0] }
 0x23c   :  { %1732 = vperm.xlu0 %7066, %v1566_v58   ;;  %v1409_v4 = vpack.c.bf16 %v1374_v35, %v1373_v27  ;;  %v456_v58 = vmul.f32 %v7870_v63, %v11572_v15  ;;  %v1568_v27 = vld [vmem:[%s11403_s4 + $0xd8] sm:$0xff]  ;;  %v1567_v35 = vld [vmem:[%s11403_s4 + $0xd0] sm:$0xff]  ;;  %v825_v30 = vadd.f32 %v761_v45, %v440_v60  ;;  %v1290_v14 = vadd.f32 %v8230_v25, %v842_v37  ;;  %v5844_v45 = vld [vmem:[%s11404_s3 + $0x80] sm:$0xf] }
 0x23d   :  { %1712 = vperm.xlu2 %7068, %v1562_v7   ;;  %1707 = vperm.xlu1 %7067, %v1561_v24   ;;  %v5829_v7 = vor.u32 %v6817_v38, %v5828_v28  ;;  %v11573_v24 = vld [vmem:[#allocation47_spill] sm:$0xff]  ;;  %v11580_v28 = vld [vmem:[#allocation68_spill] sm:$0xff]  ;;  %v11583_v60 = vld [vmem:[#allocation22_spill] sm:$0xff] }
 0x23e   :  { %2583 = vmatmul.bf16.gmra.mxu0 %v5813_v49  ;;  %v1051_v17 = vpop.permute.xlu0 %1050  ;;  %3075 = vmatpush.bf16.msra.mxu3 %v1409_v4  ;;  %v762_v49 = vmul.f32 %v7872_v26, %v11573_v24  ;;  %v841_v36 = vadd.f32 %v777_v1, %v456_v58  ;;  %v1354_v18 = vmax.f32 %v1290_v14, 0.0  ;;  %v454_v48 = vmul.f32 %v7870_v63, %v11583_v60  ;;  %v11586_v24 = vld [vmem:[#allocation3_spill] sm:$0xff]  ;;  %v11588_v37 = vld [vmem:[#allocation9_spill] sm:$0xff] }
 0x23f   :  { %v1276_v11 = vadd.f32 %v1051_v17, %v828_v34  ;;  %v1126_v5 = vpop.permute.xlu1 %1125  ;;  %v1036_v21 = vpop.permute.xlu2 %1035 }
 0x240   :  { %v1291_v61 = vadd.f32 %v1126_v5, %v843_v29  ;;  %v1273_v10 = vadd.f32 %v1036_v21, %v825_v30  ;;  %v826_v4 = vadd.f32 %v762_v49, %v441_v42  ;;  %v11579_v21 = vld [vmem:[#allocation49_spill] sm:$0xff]  ;;  %v1578_v42 = vld [vmem:[%s11403_s4 + $0x128] sm:$0xff]  ;;  %v437_v49 = vmul.f32 %v7870_v63, %v11586_v24 }
 0x241   :  { %v1340_v13 = vmax.f32 %v1276_v11, 0.0  ;;  %v11575_v11 = vld [vmem:[#allocation36_spill] sm:$0xff]  ;;  %v11599_v24 = vld [vmem:[#allocation65_spill] sm:$0xff] }
 0x242   :  { %v1355_v31 = vmax.f32 %v1291_v61, 0.0  ;;  %v472_v5 = vmul.f32 %v7870_v63, %v11575_v11  ;;  %v1337_v61 = vmax.f32 %v1273_v10, 0.0  ;;  %v11587_v30 = vld [vmem:[#allocation8_spill] sm:$0xff]  ;;  %v11589_v10 = vld [vmem:[#allocation19_spill] sm:$0xff] }
 0x243   :  { %v1392_v40 = vpack.c.bf16 %v1340_v13, %v1339_v53  ;;  %v1575_v13 = vld [vmem:[%s11403_s4 + $0x110] sm:$0xff]  ;;  %v760_v6 = vmul.f32 %v7872_v26, %v11587_v30 }
 0x244   :  { %1747 = vperm.xlu0 %7066, %v1569_v47   ;;  %v1400_v43 = vpack.c.bf16 %v1356_v54, %v1355_v31  ;;  %v11576_v47 = vld [vmem:[#allocation33_spill] sm:$0xff]  ;;  %v1570_v31 = vld [vmem:[%s11403_s4 + $0xe8] sm:$0xff] }
 0x245   :  { %1727 = vperm.xlu2 %7068, %v1565_v41   ;;  %1722 = vperm.xlu1 %7067, %v1564_v22   ;;  %v793_v25 = vmul.f32 %v7872_v26, %v11576_v47  ;;  %v1571_v54 = vld [vmem:[%s11403_s4 + $0xf0] sm:$0xff]  ;;  %v824_v11 = vadd.f32 %v760_v6, %v439_v50 }
 0x246   :  { %2738 = vmatpush.bf16.msra.mxu1 %v1392_v40  ;;  %v1196_v51 = vpop.permute.xlu0 %1195  ;;  %2907 = vmatpush.bf16.msra.mxu2 %v1400_v43  ;;  %v11578_v22 = vld [vmem:[#allocation28_spill] sm:$0xff] }
 0x247   :  { %v1211_v44 = vpop.permute.xlu1 %1210  ;;  %v1111_v8 = vpop.permute.xlu2 %1110  ;;  %v473_v40 = vmul.f32 %v7870_v63, %v11578_v22  ;;  %v857_v46 = vadd.f32 %v793_v25, %v472_v5  ;;  %v11591_v25 = vld [vmem:[#allocation82_spill] sm:$0xff] }
 0x248   :  { %v1308_v59 = vadd.f32 %v1211_v44, %v860_v9  ;;  %v438_v9 = vmul.f32 %v7870_v63, %v11579_v21  ;;  %v6821_v44 = vld [vmem:[%s11404_s3 + $0x8c] sm:$0xf0]  ;;  %v791_v20 = vmul.f32 %v7872_v26, %v11591_v25 }
 0x249   :  { %v1305_v56 = vadd.f32 %v1196_v51, %v857_v46  ;;  %v858_v16 = vadd.f32 %v794_v52, %v473_v40  ;;  %v776_v51 = vmul.f32 %v7872_v26, %v11580_v28  ;;  %v11594_v46 = vld [vmem:[#allocation79_spill] sm:$0xff]  ;;  %v11596_v28 = vld [vmem:[#allocation72_spill] sm:$0xff] }
 0x24a   :  { %v1372_v0 = vmax.f32 %v1308_v59, 0.0  ;;  %v11582_v59 = vld [vmem:[#allocation15_spill] sm:$0xff]  ;;  %v823_v1 = vadd.f32 %v759_v57, %v438_v9 }
 0x24b   :  { %v455_v33 = vmul.f32 %v7870_v63, %v11582_v59  ;;  %v1369_v58 = vmax.f32 %v1305_v56, 0.0  ;;  %v11595_v56 = vld [vmem:[#allocation95_spill] sm:$0xff] }
 0x24c   :  { %1762 = vperm.xlu0 %7066, %v1572_v55   ;;  %v1408_v12 = vpack.c.bf16 %v1372_v0, %v1371_v39  ;;  %v11585_v55 = vld [vmem:[#allocation52_spill] sm:$0xff] }
 0x24d   :  { %1742 = vperm.xlu2 %7068, %v1568_v27   ;;  %1737 = vperm.xlu1 %7067, %v1567_v35   ;;  %v758_v15 = vmul.f32 %v7872_v26, %v11585_v55  ;;  %v1574_v27 = vld [vmem:[%s11403_s4 + $0x108] sm:$0xff]  ;;  %v1573_v35 = vld [vmem:[%s11403_s4 + $0x100] sm:$0xff]  ;;  %v840_v14 = vadd.f32 %v776_v51, %v455_v33  ;;  %v792_v51 = vmul.f32 %v7872_v26, %v11596_v28  ;;  %v11597_v55 = vld [vmem:[#allocation61_spill] sm:$0xff] }
 0x24e   :  { %2588 = vmatmul.bf16.gmra.mxu0 %v5829_v7  ;;  %v1041_v34 = vpop.permute.xlu0 %1040  ;;  %3076 = vmatpush.bf16.msra.mxu3 %v1408_v12  ;;  %v5845_v7 = vor.u32 %v6821_v44, %v5844_v45  ;;  %v436_v12 = vmul.f32 %v7870_v63, %v11588_v37  ;;  %v1576_v45 = vld [vmem:[%s11403_s4 + $0x118] sm:$0xff]  ;;  %v1590_v28 = vld [vmem:[%s11403_s4 + $0x188] sm:$0xff] }
 0x24f   :  { %v1274_v17 = vadd.f32 %v1041_v34, %v826_v4  ;;  %v1116_v29 = vpop.permute.xlu1 %1115  ;;  %v1026_v39 = vpop.permute.xlu2 %1025  ;;  %v775_v4 = vmul.f32 %v7872_v26, %v11589_v10  ;;  %v822_v5 = vadd.f32 %v758_v15, %v437_v49  ;;  %v453_v15 = vmul.f32 %v7870_v63, %v11597_v55  ;;  %v1579_v10 = vld [vmem:[%s11403_s4 + $0x130] sm:$0xff]  ;;  %v5804_v55 = vld [vmem:[%s11404_s3 + $0x28] sm:$0xf] }
 0x250   :  { %v1289_v2 = vadd.f32 %v1116_v29, %v841_v36  ;;  %v11590_v36 = vld [vmem:[#allocation6_spill] sm:$0xff]  ;;  %v1271_v29 = vadd.f32 %v1026_v39, %v823_v1  ;;  %v773_v49 = vmul.f32 %v7872_v26, %v11599_v24 }
 0x251   :  { %v1338_v53 = vmax.f32 %v1274_v17, 0.0  ;;  %v757_v17 = vmul.f32 %v7872_v26, %v11590_v36  ;;  %v1580_v1 = vld [vmem:[%s11403_s4 + $0x138] sm:$0xff] }
 0x252   :  { %v1353_v19 = vmax.f32 %v1289_v2, 0.0  ;;  %v1288_v2 = vadd.f32 %v1111_v8, %v840_v14  ;;  %v1335_v22 = vmax.f32 %v1271_v29, 0.0  ;;  %v1581_v8 = vld [vmem:[%s11403_s4 + $0x140] sm:$0xff]  ;;  %v1596_v24 = vld [vmem:[%s11403_s4 + $0x1b8] sm:$0xff] }
 0x253   :  { %v1391_v41 = vpack.c.bf16 %v1338_v53, %v1337_v61  ;;  %v839_v53 = vadd.f32 %v775_v4, %v454_v48  ;;  %v821_v52 = vadd.f32 %v757_v17, %v436_v12  ;;  %v6803_v48 = vld [vmem:[%s11404_s3 + $0x4] sm:$0xf]  ;;  %v11600_v4 = vld [vmem:[#allocation12_spill] sm:$0xff] }
 0x254   :  { %1777 = vperm.xlu0 %7066, %v1575_v13   ;;  %v1399_v23 = vpack.c.bf16 %v1354_v18, %v1353_v19  ;;  %v11592_v18 = vld [vmem:[#allocation96_spill] sm:$0xff]  ;;  %v1352_v21 = vmax.f32 %v1288_v2, 0.0  ;;  %v452_v14 = vmul.f32 %v7870_v63, %v11600_v4 }
 0x255   :  { %1757 = vperm.xlu2 %7068, %v1571_v54   ;;  %1752 = vperm.xlu1 %7067, %v1570_v31   ;;  %v1270_v19 = vadd.f32 %v11592_v18, %v822_v5  ;;  %v11593_v31 = vld [vmem:[#allocation25_spill] sm:$0xff]  ;;  %v11601_v5 = vld [vmem:[#allocation76_spill] sm:$0xff] }
 0x256   :  { %2739 = vmatpush.bf16.msra.mxu1 %v1391_v41  ;;  %v8299_v43 = vpop.permute.xlu0 %1185  ;;  %2908 = vmatpush.bf16.msra.mxu2 %v1399_v23  ;;  %v470_v41 = vmul.f32 %v7870_v63, %v11593_v31  ;;  %v471_v23 = vmul.f32 %v7870_v63, %v11594_v46  ;;  %v837_v29 = vadd.f32 %v773_v49, %v452_v14  ;;  %v6806_v31 = vld [vmem:[%s11404_s3 + $0x14] sm:$0xf0]  ;;  %v1599_v4 = vld [vmem:[%s11403_s4 + $0x1d0] sm:$0xff] }
 0x257   :  { %v1201_v32 = vpop.permute.xlu1 %1200  ;;  %v1101_v12 = vpop.permute.xlu2 %1100  ;;  %v468_v2 = vmul.f32 %v7870_v63, %v11601_v5  ;;  %v1595_v14 = vld [vmem:[%s11403_s4 + $0x1b0] sm:$0xff] }
 0x258   :  { %v1306_v38 = vadd.f32 %v1201_v32, %v858_v16  ;;  %v1269_v16 = vadd.f32 %v11595_v56, %v821_v52  ;;  %v1577_v32 = vld [vmem:[%s11403_s4 + $0x120] sm:$0xff]  ;;  %v855_v62 = vadd.f32 %v791_v20, %v470_v41  ;;  %v856_v60 = vadd.f32 %v792_v51, %v471_v23  ;;  %v11603_v20 = vld [vmem:[#allocation69_spill] sm:$0xff] }
 0x259   :  { %v789_v52 = vmul.f32 %v7872_v26, %v11603_v20  ;;  %v5830_v5 = vld [vmem:[%s11404_s3 + $0x70] sm:$0xf0] }
 0x25a   :  { %v1370_v0 = vmax.f32 %v1306_v38, 0.0  ;;  %v1334_v38 = vmax.f32 %v1270_v19, 0.0  ;;  %v1333_v59 = vmax.f32 %v1269_v16, 0.0  ;;  %v1303_v33 = vadd.f32 %v8299_v43, %v855_v62  ;;  %v6825_v43 = vld [vmem:[%s11404_s3 + $0xac] sm:$0xf0] }
 0x25c   :  { %1792 = vperm.xlu0 %7066, %v1578_v42   ;;  %v1407_v34 = vpack.c.bf16 %v1370_v0, %v1369_v58  ;;  %v5860_v42 = vld [vmem:[%s11404_s3 + $0xa0] sm:$0xf]  ;;  %v1389_v39 = vpack.c.bf16 %v1334_v38, %v1333_v59  ;;  %v1367_v30 = vmax.f32 %v1303_v33, 0.0 }
 0x25d   :  { %1772 = vperm.xlu2 %7068, %v1574_v27   ;;  %1767 = vperm.xlu1 %7067, %v1573_v35   ;;  %v11598_v0 = vld [vmem:[#allocation55_spill] sm:$0xff]  ;;  %v1584_v35 = vld [vmem:[%s11403_s4 + $0x158] sm:$0xff]  ;;  %v5861_v37 = vor.u32 %v6825_v43, %v5860_v42 }
 0x25e   :  { %2593 = vmatmul.bf16.gmra.mxu0 %v5845_v7  ;;  %v1031_v61 = vpop.permute.xlu0 %1030  ;;  %3077 = vmatpush.bf16.msra.mxu3 %v1407_v34  ;;  %v774_v27 = vmul.f32 %v7872_v26, %v11598_v0  ;;  %v5785_v7 = vor.u32 %v6803_v48, %v5782_v3  ;;  %v1585_v33 = vld [vmem:[%s11403_s4 + $0x160] sm:$0xff]  ;;  %v5790_v48 = vld [vmem:[%s11404_s3 + $0x18] sm:$0xf0] }
 0x25f   :  { %v1272_v13 = vadd.f32 %v1031_v61, %v824_v11  ;;  %v1106_v47 = vpop.permute.xlu1 %1105  ;;  %v1593_v42 = vld [vmem:[%s11403_s4 + $0x1a0] sm:$0xff]  ;;  %v1608_v20 = vpop.permute.xlu2 %1607 }
 0x260   :  { %v1287_v54 = vadd.f32 %v1106_v47, %v839_v53  ;;  %v838_v34 = vadd.f32 %v774_v27, %v453_v15  ;;  %v1587_v53 = vld [vmem:[%s11403_s4 + $0x170] sm:$0xff]  ;;  %v11602_v47 = vld [vmem:[#allocation34_spill] sm:$0xff]  ;;  %v6811_v0 = vld [vmem:[%s11404_s3 + $0x44] sm:$0xf] }
 0x261   :  { %v1336_v40 = vmax.f32 %v1272_v13, 0.0  ;;  %v1583_v13 = vld [vmem:[%s11403_s4 + $0x150] sm:$0xff]  ;;  %v469_v25 = vmul.f32 %v7870_v63, %v11602_v47  ;;  %v1589_v43 = vld [vmem:[%s11403_s4 + $0x180] sm:$0xff]  ;;  %v6810_v15 = vld [vmem:[%s11404_s3 + $0x34] sm:$0xf0] }
 0x262   :  { %v1351_v9 = vmax.f32 %v1287_v54, 0.0  ;;  %v1286_v17 = vadd.f32 %v1101_v12, %v838_v34  ;;  %v5788_v54 = vld [vmem:[%s11404_s3 + $0x8] sm:$0xf]  ;;  %v5814_v27 = vld [vmem:[%s11404_s3 + $0x50] sm:$0xf0] }
 0x263   :  { %v1390_v44 = vpack.c.bf16 %v1336_v40, %v1335_v22  ;;  %v1582_v22 = vld [vmem:[%s11403_s4 + $0x148] sm:$0xff]  ;;  %v5789_v23 = vor.u32 %v6806_v31, %v5788_v54  ;;  %v5817_v49 = vor.u32 %v6811_v0, %v5814_v27  ;;  %v5806_v12 = vld [vmem:[%s11404_s3 + $0x38] sm:$0xf0] }
 0x264   :  { %1807 = vperm.xlu0 %7066, %v1581_v8   ;;  %v1398_v50 = vpack.c.bf16 %v1352_v21, %v1351_v9  ;;  %v1350_v18 = vmax.f32 %v1286_v17, 0.0  ;;  %v11604_v40 = vld [vmem:[#allocation31_spill] sm:$0xff]  ;;  %v853_v8 = vadd.f32 %v789_v52, %v468_v2  ;;  %v5798_v9 = vld [vmem:[%s11404_s3 + $0x30] sm:$0xf0]  ;;  %v5822_v54 = vld [vmem:[%s11404_s3 + $0x58] sm:$0xf0] }
 0x265   :  { %1787 = vperm.xlu2 %7068, %v1577_v32   ;;  %1782 = vperm.xlu1 %7067, %v1576_v45   ;;  %v790_v63 = vmul.f32 %v7872_v26, %v11604_v40  ;;  %v6807_v21 = vld [vmem:[%s11404_s3 + $0x24] sm:$0xf]  ;;  %v5876_v26 = vld [vmem:[%s11404_s3 + $0xc0] sm:$0xf]  ;;  %v6829_v45 = vld [vmem:[%s11404_s3 + $0xcc] sm:$0xf0] }
 0x266   :  { %2740 = vmatpush.bf16.msra.mxu1 %v1390_v44  ;;  %2909 = vmatpush.bf16.msra.mxu2 %v1398_v50  ;;  %v1176_v41 = vpop.permute.xlu0 %1175  ;;  %v5801_v51 = vor.u32 %v6807_v21, %v5798_v9  ;;  %v1586_v50 = vld [vmem:[%s11403_s4 + $0x168] sm:$0xff]  ;;  %v5877_v59 = vor.u32 %v6829_v45, %v5876_v26  ;;  %v5908_v2 = vld [vmem:[%s11404_s3 + $0x100] sm:$0xf]  ;;  %v5846_v21 = vld [vmem:[%s11404_s3 + $0x90] sm:$0xf0] }
 0x267   :  { %v1191_v57 = vpop.permute.xlu1 %1190  ;;  %v1301_v56 = vadd.f32 %v1176_v41, %v853_v8  ;;  %v854_v16 = vadd.f32 %v790_v63, %v469_v25  ;;  %v5820_v34 = vld [vmem:[%s11404_s3 + $0x48] sm:$0xf]  ;;  %v1601_v40 = vld [vmem:[%s11403_s4 + $0x1e0] sm:$0xff]  ;;  %v6818_v8 = vld [vmem:[%s11404_s3 + $0x74] sm:$0xf0] }
 0x268   :  { %v1304_v58 = vadd.f32 %v1191_v57, %v856_v60  ;;  %v6804_v60 = vld [vmem:[%s11404_s3 + $0xc] sm:$0xf]  ;;  %v5836_v63 = vld [vmem:[%s11404_s3 + $0x68] sm:$0xf]  ;;  %v5924_v9 = vld [vmem:[%s11404_s3 + $0x120] sm:$0xf] }
 0x269   :  { %v1365_v38 = vmax.f32 %v1301_v56, 0.0  ;;  %v5793_v57 = vor.u32 %v6804_v60, %v5790_v48  ;;  %v1594_v17 = vld [vmem:[%s11403_s4 + $0x1a8] sm:$0xff]  ;;  %v5837_v56 = vor.u32 %v6818_v8, %v5836_v63  ;;  %v3468_v26 = vld [vmem:[%s11405_s6 + $0x18] sm:$0xff]  ;;  %v3467_v60 = vld [vmem:[%s11405_s6 + $0x10] sm:$0xff] }
 0x26a   :  { %v1368_v6 = vmax.f32 %v1304_v58, 0.0  ;;  %2741 = vmatpush.bf16.msra.mxu1 %v1389_v39  ;;  %v1588_v58 = vld [vmem:[%s11403_s4 + $0x178] sm:$0xff]  ;;  %v5805_v39 = vor.u32 %v6810_v15, %v5804_v55  ;;  %v1598_v47 = vld [vmem:[%s11403_s4 + $0x1c8] sm:$0xff]  ;;  %v6823_v55 = vld [vmem:[%s11404_s3 + $0xa4] sm:$0xf] }
 0x26b   :  { %v5852_v48 = vld [vmem:[%s11404_s3 + $0x88] sm:$0xf]  ;;  %v5862_v15 = vld [vmem:[%s11404_s3 + $0xb0] sm:$0xf0] }
 0x26c   :  { %1822 = vperm.xlu0 %7066, %v1584_v35   ;;  %v1406_v36 = vpack.c.bf16 %v1368_v6, %v1367_v30  ;;  %v5892_v35 = vld [vmem:[%s11404_s3 + $0xe0] sm:$0xf]  ;;  %v1592_v30 = vld [vmem:[%s11403_s4 + $0x198] sm:$0xff]  ;;  %v3474_v0 = vld [vmem:[%s11405_s6 + $0x48] sm:$0xff]  ;;  %v5865_v27 = vor.u32 %v6823_v55, %v5862_v15 }
 0x26d   :  { %2742 = vmatmul.bf16.vlgmr.msra.gmra.mxu1 %v5785_v7  ;;  %1802 = vperm.xlu2 %7068, %v1580_v1   ;;  %v6833_v7 = vld [vmem:[%s11404_s3 + $0xec] sm:$0xf0]  ;;  %v3478_v63 = vld [vmem:[%s11405_s6 + $0x68] sm:$0xff]  ;;  %v6835_v55 = vld [vmem:[%s11404_s3 + $0x104] sm:$0xf] }
 0x26e   :  { %1797 = vperm.xlu1 %7067, %v1579_v10   ;;  %2598 = vmatmul.bf16.gmra.mxu0 %v5861_v37  ;;  %v5893_v6 = vor.u32 %v6833_v7, %v5892_v35  ;;  %v1591_v1 = vld [vmem:[%s11403_s4 + $0x190] sm:$0xff]  ;;  %v6808_v37 = vld [vmem:[%s11404_s3 + $0x2c] sm:$0xf] }
 0x26f   :  { %3078 = vmatpush.bf16.msra.mxu3 %v1406_v36  ;;  %v1096_v11 = vpop.permute.xlu1 %1095  ;;  %v5809_v10 = vor.u32 %v6808_v37, %v5806_v12  ;;  %v6814_v36 = vld [vmem:[%s11404_s3 + $0x54] sm:$0xf0]  ;;  %v3470_v35 = vld [vmem:[%s11405_s6 + $0x28] sm:$0xff]  ;;  %v3477_v37 = vld [vmem:[%s11405_s6 + $0x60] sm:$0xff] }
 0x270   :  { %v1285_v61 = vadd.f32 %v1096_v11, %v837_v29  ;;  %v5821_v29 = vor.u32 %v6814_v36, %v5820_v34  ;;  %v6815_v11 = vld [vmem:[%s11404_s3 + $0x64] sm:$0xf]  ;;  %v3472_v34 = vld [vmem:[%s11405_s6 + $0x38] sm:$0xff]  ;;  %v5910_v15 = vld [vmem:[%s11404_s3 + $0x110] sm:$0xf0] }
 0x271   :  { %v3473_v12 = vld [vmem:[%s11405_s6 + $0x40] sm:$0xff] }
 0x272   :  { %v1349_v19 = vmax.f32 %v1285_v61, 0.0  ;;  %v6837_v61 = vld [vmem:[%s11404_s3 + $0x10c] sm:$0xf0] }
 0x273   :  { %v5909_v25 = vor.u32 %v6837_v61, %v5908_v2  ;;  %v3480_v2 = vld [vmem:[%s11405_s6 + $0x78] sm:$0xff] }
 0x274   :  { %1837 = vperm.xlu0 %7066, %v1587_v53   ;;  %v1397_v46 = vpack.c.bf16 %v1350_v18, %v1349_v19  ;;  %v1602_v53 = vld [vmem:[%s11403_s4 + $0x1e8] sm:$0xff]  ;;  %v1597_v18 = vld [vmem:[%s11403_s4 + $0x1c0] sm:$0xff] }
 0x275   :  { %1817 = vperm.xlu2 %7068, %v1583_v13   ;;  %v5833_v13 = vor.u32 %v6815_v11, %v5830_v5  ;;  %v6812_v19 = vld [vmem:[%s11404_s3 + $0x4c] sm:$0xf]  ;;  %v5956_v11 = vld [vmem:[%s11404_s3 + $0x160] sm:$0xf]  ;;  %v6849_v5 = vld [vmem:[%s11404_s3 + $0x16c] sm:$0xf0] }
 0x276   :  { %1812 = vperm.xlu1 %7067, %v1582_v22   ;;  %2910 = vmatpush.bf16.msra.mxu2 %v1397_v46  ;;  %v5825_v41 = vor.u32 %v6812_v19, %v5822_v54  ;;  %v3465_v22 = vld [vmem:[%s11405_s6] sm:$0xff]  ;;  %v3483_v19 = vld [vmem:[%s11405_s6 + $0x90] sm:$0xff] }
 0x277   :  { %v1181_v32 = vpop.permute.xlu1 %1180  ;;  %v3479_v54 = vld [vmem:[%s11405_s6 + $0x70] sm:$0xff] }
 0x278   :  { %v1302_v44 = vadd.f32 %v1181_v32, %v854_v16  ;;  %v6819_v16 = vld [vmem:[%s11404_s3 + $0x84] sm:$0xf]  ;;  %v6841_v32 = vld [vmem:[%s11404_s3 + $0x12c] sm:$0xf0] }
 0x279   :  { %2911 = vmatmul.bf16.vlgmr.msra.gmra.mxu2 %v5789_v23  ;;  %v1600_v23 = vld [vmem:[%s11403_s4 + $0x1d8] sm:$0xff]  ;;  %v5849_v45 = vor.u32 %v6819_v16, %v5846_v21  ;;  %v5972_v16 = vld [vmem:[%s11404_s3 + $0x180] sm:$0xf]  ;;  %v6853_v21 = vld [vmem:[%s11404_s3 + $0x18c] sm:$0xf0] }
 0x27a   :  { %v1366_v62 = vmax.f32 %v1302_v44, 0.0  ;;  %v1604_v44 = vld [vmem:[%s11403_s4 + $0x1f8] sm:$0xff] }
 0x27c   :  { %1852 = vperm.xlu0 %7066, %v1590_v28   ;;  %v1405_v3 = vpack.c.bf16 %v1366_v62, %v1365_v38  ;;  %v5925_v28 = vor.u32 %v6841_v32, %v5924_v9  ;;  %v1603_v38 = vld [vmem:[%s11403_s4 + $0x1f0] sm:$0xff]  ;;  %v6816_v62 = vld [vmem:[%s11404_s3 + $0x6c] sm:$0xf] }
 0x27d   :  { %2747 = vmatmul.bf16.gmra.mxu1 %v5801_v51  ;;  %1832 = vperm.xlu2 %7068, %v1586_v50   ;;  %v5838_v50 = vld [vmem:[%s11404_s3 + $0x78] sm:$0xf0]  ;;  %v3486_v9 = vld [vmem:[%s11405_s6 + $0xa8] sm:$0xff] }
 0x27e   :  { %1827 = vperm.xlu1 %7067, %v1585_v33   ;;  %2603 = vmatmul.bf16.gmra.mxu0 %v5877_v59  ;;  %v5841_v59 = vor.u32 %v6816_v62, %v5838_v50  ;;  %v3471_v33 = vld [vmem:[%s11405_s6 + $0x30] sm:$0xff]  ;;  %v5886_v62 = vld [vmem:[%s11404_s3 + $0xd8] sm:$0xf0] }
 0x27f   :  { %3079 = vmatpush.bf16.msra.mxu3 %v1405_v3  ;;  %v6822_v3 = vld [vmem:[%s11404_s3 + $0x94] sm:$0xf0] }
 0x282   :  { %3080 = vmatmul.bf16.vlgmr.msra.gmra.mxu3 %v5793_v57 }
 0x284   :  { %1867 = vperm.xlu0 %7066, %v1593_v42   ;;  %v3466_v42 = vld [vmem:[%s11405_s6 + $0x8] sm:$0xff] }
 0x285   :  { %1847 = vperm.xlu2 %7068, %v1589_v43   ;;  %v5853_v43 = vor.u32 %v6822_v3, %v5852_v48  ;;  %v6834_v48 = vld [vmem:[%s11404_s3 + $0xf4] sm:$0xf0] }
 0x286   :  { %1842 = vperm.xlu1 %7067, %v1588_v58   ;;  %v5940_v58 = vld [vmem:[%s11404_s3 + $0x140] sm:$0xf] }
 0x289   :  { %2916 = vmatmul.bf16.gmra.mxu2 %v5805_v39  ;;  %v6845_v39 = vld [vmem:[%s11404_s3 + $0x14c] sm:$0xf0] }
 0x28a   :  { %v5941_v7 = vor.u32 %v6845_v39, %v5940_v58  ;;  %v5988_v58 = vld [vmem:[%s11404_s3 + $0x1a0] sm:$0xf]  ;;  %v6857_v39 = vld [vmem:[%s11404_s3 + $0x1ac] sm:$0xf0] }
 0x28c   :  { %1882 = vperm.xlu0 %7066, %v1596_v24  }
 0x28d   :  { %2752 = vmatmul.bf16.gmra.mxu1 %v5817_v49  ;;  %1862 = vperm.xlu2 %7068, %v1592_v30   ;;  %v3469_v49 = vld [vmem:[%s11405_s6 + $0x20] sm:$0xff]  ;;  %v6820_v30 = vld [vmem:[%s11404_s3 + $0x8c] sm:$0xf] }
 0x28e   :  { %1857 = vperm.xlu1 %7067, %v1591_v1   ;;  %2608 = vmatmul.bf16.gmra.mxu0 %v5893_v6  ;;  %v5854_v6 = vld [vmem:[%s11404_s3 + $0x98] sm:$0xf0] }
 0x28f   :  { %v5857_v1 = vor.u32 %v6820_v30, %v5854_v6 }
 0x292   :  { %3085 = vmatmul.bf16.gmra.mxu3 %v5809_v10  ;;  %v5868_v10 = vld [vmem:[%s11404_s3 + $0xa8] sm:$0xf] }
 0x294   :  { %1897 = vperm.xlu0 %7066, %v1599_v4   ;;  %v6826_v4 = vld [vmem:[%s11404_s3 + $0xb4] sm:$0xf0] }
 0x295   :  { %1877 = vperm.xlu2 %7068, %v1595_v14   ;;  %v5869_v36 = vor.u32 %v6826_v4, %v5868_v10  ;;  %v1613_v10 = vpop.permute.xlu0 %1612 }
 0x296   :  { %1872 = vperm.xlu1 %7067, %v1594_v17   ;;  %v6827_v17 = vld [vmem:[%s11404_s3 + $0xc4] sm:$0xf] }
 0x299   :  { %2921 = vmatmul.bf16.gmra.mxu2 %v5821_v29  ;;  %v5878_v29 = vld [vmem:[%s11404_s3 + $0xd0] sm:$0xf0] }
 0x29a   :  { %v5881_v61 = vor.u32 %v6827_v17, %v5878_v29  ;;  %v3491_v17 = vld [vmem:[%s11405_s6 + $0xd0] sm:$0xff]  ;;  %v5916_v29 = vld [vmem:[%s11404_s3 + $0x108] sm:$0xf] }
 0x29b   :  { %v2574_v52 = vpop.f32.mrf.mxu0 }
 0x29c   :  { %v8523_v31 = vadd.f32 %v2574_v52, %v1608_v20  ;;  %1912 = vperm.xlu0 %7066, %v1602_v53   ;;  %v3476_v53 = vld [vmem:[%s11405_s6 + $0x58] sm:$0xff]  ;;  %v6824_v20 = vld [vmem:[%s11404_s3 + $0xac] sm:$0xf] }
 0x29d   :  { %2757 = vmatmul.bf16.gmra.mxu1 %v5833_v13  ;;  %1892 = vperm.xlu2 %7068, %v1598_v47   ;;  %v5957_v13 = vor.u32 %v6849_v5, %v5956_v11  ;;  %v5870_v52 = vld [vmem:[%s11404_s3 + $0xb8] sm:$0xf0]  ;;  %v6838_v11 = vld [vmem:[%s11404_s3 + $0x114] sm:$0xf0] }
 0x29e   :  { %1887 = vperm.xlu1 %7067, %v1597_v18   ;;  %2613 = vmatmul.bf16.gmra.mxu0 %v5909_v25  ;;  %v3475_v25 = vld [vmem:[%s11405_s6 + $0x50] sm:$0xff]  ;;  %v5873_v18 = vor.u32 %v6824_v20, %v5870_v52  ;;  %v1618_v52 = vpop.permute.xlu1 %1617 }
 0x29f   :  { %v6861_v20 = vld [vmem:[%s11404_s3 + $0x1cc] sm:$0xf0] }
 0x2a2   :  { %3090 = vmatmul.bf16.gmra.mxu3 %v5825_v41  ;;  %v5884_v41 = vld [vmem:[%s11404_s3 + $0xc8] sm:$0xf] }
 0x2a3   :  { %v8537_v46 = vpop.f32.mrf.mxu0 }
 0x2a4   :  { %3531 = vperm.xlu0 %7066, %v3465_v22   ;;  %v6830_v22 = vld [vmem:[%s11404_s3 + $0xd4] sm:$0xf0]  ;;  %v2577_v4 = vadd.f32 %v8537_v46, %v1613_v10 }
 0x2a5   :  { %1907 = vperm.xlu2 %7068, %v1601_v40   ;;  %v5885_v8 = vor.u32 %v6830_v22, %v5884_v41  ;;  %v3494_v22 = vld [vmem:[%s11405_s6 + $0xe8] sm:$0xff] }
 0x2a6   :  { %1902 = vperm.xlu1 %7067, %v1600_v23   ;;  %v6831_v23 = vld [vmem:[%s11404_s3 + $0xe4] sm:$0xf] }
 0x2a9   :  { %2926 = vmatmul.bf16.gmra.mxu2 %v5837_v56  ;;  %v5894_v56 = vld [vmem:[%s11404_s3 + $0xf0] sm:$0xf0] }
 0x2aa   :  { %v5897_v32 = vor.u32 %v6831_v23, %v5894_v56  ;;  %v3493_v56 = vld [vmem:[%s11405_s6 + $0xe0] sm:$0xff] }
 0x2ab   :  { %v8560_v51 = vpop.f32.mrf.mxu0 }
 0x2ac   :  { %3546 = vperm.xlu0 %7066, %v3468_v26   ;;  %v3482_v26 = vld [vmem:[%s11405_s6 + $0x88] sm:$0xff] }
 0x2ad   :  { %2762 = vmatmul.bf16.gmra.mxu1 %v5849_v45  ;;  %1922 = vperm.xlu2 %7068, %v1604_v44   ;;  %v5973_v45 = vor.u32 %v6853_v21, %v5972_v16  ;;  %v5918_v16 = vld [vmem:[%s11404_s3 + $0x118] sm:$0xf0] }
 0x2ae   :  { %1917 = vperm.xlu1 %7067, %v1603_v38   ;;  %2618 = vmatmul.bf16.gmra.mxu0 %v5925_v28  ;;  %v3481_v28 = vld [vmem:[%s11405_s6 + $0x80] sm:$0xff]  ;;  %v6828_v38 = vld [vmem:[%s11404_s3 + $0xcc] sm:$0xf] }
 0x2af   :  { %v5889_v50 = vor.u32 %v6828_v38, %v5886_v62  ;;  %v3497_v62 = vld [vmem:[%s11405_s6 + $0x100] sm:$0xff] }
 0x2b2   :  { %3095 = vmatmul.bf16.gmra.mxu3 %v5841_v59  ;;  %v3489_v59 = vld [vmem:[%s11405_s6 + $0xc0] sm:$0xff] }
 0x2b3   :  { %v8583_v57 = vpop.f32.mrf.mxu0 }
 0x2b4   :  { %3561 = vperm.xlu0 %7066, %v3471_v33   ;;  %v3485_v33 = vld [vmem:[%s11405_s6 + $0xa0] sm:$0xff] }
 0x2b5   :  { %3541 = vperm.xlu2 %7068, %v3467_v60   ;;  %v5900_v60 = vld [vmem:[%s11404_s3 + $0xe8] sm:$0xf] }
 0x2b6   :  { %3536 = vperm.xlu1 %7067, %v3466_v42   ;;  %v3484_v42 = vld [vmem:[%s11405_s6 + $0x98] sm:$0xff] }
 0x2b9   :  { %2931 = vmatmul.bf16.gmra.mxu2 %v5853_v43  ;;  %v5901_v43 = vor.u32 %v6834_v48, %v5900_v60  ;;  %v3496_v60 = vld [vmem:[%s11405_s6 + $0xf8] sm:$0xff] }
 0x2bb   :  { %v8606_v24 = vpop.f32.mrf.mxu0 }
 0x2bc   :  { %3576 = vperm.xlu0 %7066, %v3474_v0   ;;  %v3492_v0 = vld [vmem:[%s11405_s6 + $0xd8] sm:$0xff] }
 0x2bd   :  { %2767 = vmatmul.bf16.gmra.mxu1 %v5865_v27  ;;  %3556 = vperm.xlu2 %7068, %v3470_v35   ;;  %v5913_v27 = vor.u32 %v6835_v55, %v5910_v15 }
 0x2be   :  { %3551 = vperm.xlu1 %7067, %v3469_v49   ;;  %2623 = vmatmul.bf16.gmra.mxu0 %v5941_v7  ;;  %v3488_v7 = vld [vmem:[%s11405_s6 + $0xb8] sm:$0xff]  ;;  %v5989_v49 = vor.u32 %v6857_v39, %v5988_v58  ;;  %v6843_v58 = vld [vmem:[%s11404_s3 + $0x144] sm:$0xf]  ;;  %v5942_v39 = vld [vmem:[%s11404_s3 + $0x150] sm:$0xf0] }
 0x2c2   :  { %3100 = vmatmul.bf16.gmra.mxu3 %v5857_v1  ;;  %v3487_v1 = vld [vmem:[%s11405_s6 + $0xb0] sm:$0xff] }
 0x2c3   :  { %v8629_v14 = vpop.f32.mrf.mxu0 }
 0x2c4   :  { %3591 = vperm.xlu0 %7066, %v3477_v37   ;;  %v6832_v37 = vld [vmem:[%s11404_s3 + $0xec] sm:$0xf] }
 0x2c5   :  { %3571 = vperm.xlu2 %7068, %v3473_v12   ;;  %v5902_v12 = vld [vmem:[%s11404_s3 + $0xf8] sm:$0xf0] }
 0x2c6   :  { %3566 = vperm.xlu1 %7067, %v3472_v34   ;;  %v3495_v34 = vld [vmem:[%s11405_s6 + $0xf0] sm:$0xff] }
 0x2c9   :  { %2936 = vmatmul.bf16.gmra.mxu2 %v5869_v36 }
 0x2cb   :  { %v8652_v47 = vpop.f32.mrf.mxu0 }
 0x2cc   :  { %3606 = vperm.xlu0 %7066, %v3480_v2   ;;  %v3490_v2 = vld [vmem:[%s11405_s6 + $0xc8] sm:$0xff] }
 0x2cd   :  { %2772 = vmatmul.bf16.gmra.mxu1 %v5881_v61  ;;  %3586 = vperm.xlu2 %7068, %v3476_v53   ;;  %v5917_v61 = vor.u32 %v6838_v11, %v5916_v29  ;;  %v6839_v53 = vld [vmem:[%s11404_s3 + $0x124] sm:$0xf] }
 0x2ce   :  { %3581 = vperm.xlu1 %7067, %v3475_v25   ;;  %2628 = vmatmul.bf16.gmra.mxu0 %v5957_v13  ;;  %v5926_v13 = vld [vmem:[%s11404_s3 + $0x130] sm:$0xf0]  ;;  %v6004_v25 = vld [vmem:[%s11404_s3 + $0x1c0] sm:$0xf] }
 0x2d2   :  { %3105 = vmatmul.bf16.gmra.mxu3 %v5873_v18  ;;  %v2580_v18 = vadd.f32 %v8560_v51, %v1618_v52  ;;  %v6836_v51 = vld [vmem:[%s11404_s3 + $0x10c] sm:$0xf]  ;;  %v3503_v52 = vld [vmem:[%s11405_s6 + $0x130] sm:$0xff] }
 0x2d3   :  { %v8675_v40 = vpop.f32.mrf.mxu0 }
 0x2d4   :  { %3621 = vperm.xlu0 %7066, %v3483_v19   ;;  %v3498_v19 = vld [vmem:[%s11405_s6 + $0x108] sm:$0xff] }
 0x2d5   :  { %3601 = vperm.xlu2 %7068, %v3479_v54   ;;  %v5929_v54 = vor.u32 %v6839_v53, %v5926_v13 }
 0x2d6   :  { %3596 = vperm.xlu1 %7067, %v3478_v63   ;;  %v6005_v63 = vor.u32 %v6861_v20, %v6004_v25  ;;  %v3507_v25 = vld [vmem:[%s11405_s6 + $0x150] sm:$0xff] }
 0x2d9   :  { %2941 = vmatmul.bf16.gmra.mxu2 %v5885_v8 }
 0x2db   :  { %v8698_v44 = vpop.f32.mrf.mxu0 }
 0x2dc   :  { %3636 = vperm.xlu0 %7066, %v3486_v9  }
 0x2dd   :  { %2777 = vmatmul.bf16.gmra.mxu1 %v5897_v32  ;;  %3616 = vperm.xlu2 %7068, %v3482_v26   ;;  %v5921_v32 = vor.u32 %v6836_v51, %v5918_v16  ;;  %v1623_v26 = vpop.permute.xlu2 %1622 }
 0x2de   :  { %3611 = vperm.xlu1 %7067, %v3481_v28   ;;  %2633 = vmatmul.bf16.gmra.mxu0 %v5973_v45  ;;  %v2582_v45 = vadd.f32 %v8583_v57, %v1623_v26  ;;  %v3501_v28 = vld [vmem:[%s11405_s6 + $0x120] sm:$0xff]  ;;  %v6869_v26 = vld [vmem:[%s11404_s3 + $0x20c] sm:$0xf0] }
 0x2e2   :  { %3110 = vmatmul.bf16.gmra.mxu3 %v5889_v50  ;;  %v5932_v50 = vld [vmem:[%s11404_s3 + $0x128] sm:$0xf] }
 0x2e3   :  { %v8721_v3 = vpop.f32.mrf.mxu0 }
 0x2e4   :  { %3651 = vperm.xlu0 %7066, %v3489_v59   ;;  %v6842_v59 = vld [vmem:[%s11404_s3 + $0x134] sm:$0xf0] }
 0x2e5   :  { %3631 = vperm.xlu2 %7068, %v3485_v33   ;;  %v5933_v55 = vor.u32 %v6842_v59, %v5932_v50  ;;  %v3506_v59 = vld [vmem:[%s11405_s6 + $0x148] sm:$0xff] }
 0x2e6   :  { %3626 = vperm.xlu1 %7067, %v3484_v42  }
 0x2e9   :  { %2946 = vmatmul.bf16.gmra.mxu2 %v5901_v43 }
 0x2ea   :  { %v2743_v35 = vpop.f32.mrf.mxu1 }
 0x2eb   :  { %v2744_v30 = vadd.f32 %v2743_v35, %v8523_v31  ;;  %v8745_v6 = vpop.f32.mrf.mxu0  ;;  %v5905_v31 = vor.u32 %v6832_v37, %v5902_v12  ;;  %v1628_v35 = vpop.permute.xlu0 %1627  ;;  %v3500_v37 = vld [vmem:[%s11405_s6 + $0x118] sm:$0xff] }
 0x2ec   :  { %3666 = vperm.xlu0 %7066, %v3492_v0   ;;  %v6020_v0 = vld [vmem:[%s11404_s3 + $0x1e0] sm:$0xf] }
 0x2ed   :  { %2782 = vmatmul.bf16.gmra.mxu1 %v5913_v27  ;;  %3646 = vperm.xlu2 %7068, %v3488_v7   ;;  %v6865_v27 = vld [vmem:[%s11404_s3 + $0x1ec] sm:$0xf0]  ;;  %v2585_v7 = vadd.f32 %v8606_v24, %v1628_v35  ;;  %v6840_v24 = vld [vmem:[%s11404_s3 + $0x12c] sm:$0xf] }
 0x2ee   :  { %3641 = vperm.xlu1 %7067, %v3487_v1   ;;  %2638 = vmatmul.bf16.gmra.mxu0 %v5989_v49  ;;  %v3504_v49 = vld [vmem:[%s11405_s6 + $0x138] sm:$0xff]  ;;  %v6021_v12 = vor.u32 %v6865_v27, %v6020_v0 }
 0x2f2   :  { %v2745_v36 = vpop.f32.mrf.mxu1  ;;  %3115 = vmatmul.bf16.gmra.mxu3 %v5905_v31 }
 0x2f3   :  { %v2746_v5 = vadd.f32 %v2745_v36, %v2577_v4  ;;  %v8769_v46 = vpop.f32.mrf.mxu0  ;;  %v3499_v4 = vld [vmem:[%s11405_s6 + $0x110] sm:$0xff]  ;;  %v1643_v27 = vpop.permute.xlu0 %1642 }
 0x2f4   :  { %3681 = vperm.xlu0 %7066, %v3495_v34   ;;  %v5934_v34 = vld [vmem:[%s11404_s3 + $0x138] sm:$0xf0] }
 0x2f5   :  { %3661 = vperm.xlu2 %7068, %v3491_v17  }
 0x2f6   :  { %3656 = vperm.xlu1 %7067, %v3490_v2   ;;  %v1633_v2 = vpop.permute.xlu1 %1632 }
 0x2f7   :  { %v2587_v13 = vadd.f32 %v8629_v14, %v1633_v2  ;;  %v6851_v2 = vld [vmem:[%s11404_s3 + $0x184] sm:$0xf] }
 0x2f9   :  { %2951 = vmatmul.bf16.gmra.mxu2 %v5917_v61 }
 0x2fa   :  { %v2748_v41 = vpop.f32.mrf.mxu1 }
 0x2fb   :  { %v2749_v8 = vadd.f32 %v2748_v41, %v2580_v18  ;;  %v8793_v23 = vpop.f32.mrf.mxu0  ;;  %v5948_v18 = vld [vmem:[%s11404_s3 + $0x148] sm:$0xf] }
 0x2fc   :  { %3696 = vperm.xlu0 %7066, %v3498_v19   ;;  %v2912_v21 = vpop.f32.mrf.mxu2  ;;  %v6846_v19 = vld [vmem:[%s11404_s3 + $0x154] sm:$0xf0] }
 0x2fd   :  { %2787 = vmatmul.bf16.gmra.mxu1 %v5929_v54  ;;  %v2913_v9 = vadd.f32 %v2912_v21, %v2744_v30  ;;  %3676 = vperm.xlu2 %7068, %v3494_v22   ;;  %v5945_v30 = vor.u32 %v6843_v58, %v5942_v39  ;;  %v3502_v22 = vld [vmem:[%s11405_s6 + $0x128] sm:$0xff]  ;;  %v5949_v51 = vor.u32 %v6846_v19, %v5948_v18  ;;  %v6847_v21 = vld [vmem:[%s11404_s3 + $0x164] sm:$0xf] }
 0x2fe   :  { %3671 = vperm.xlu1 %7067, %v3493_v56   ;;  %2643 = vmatmul.bf16.gmra.mxu0 %v6005_v63 }
 0x302   :  { %v2750_v38 = vpop.f32.mrf.mxu1  ;;  %3120 = vmatmul.bf16.gmra.mxu3 %v5921_v32  ;;  %v6036_v32 = vld [vmem:[%s11404_s3 + $0x200] sm:$0xf] }
 0x303   :  { %v2751_v33 = vadd.f32 %v2750_v38, %v2582_v45  ;;  %v8817_v57 = vpop.f32.mrf.mxu0  ;;  %v1638_v45 = vpop.permute.xlu2 %1637  ;;  %v3510_v38 = vld [vmem:[%s11405_s6 + $0x168] sm:$0xff] }
 0x304   :  { %3711 = vperm.xlu0 %7066, %v3501_v28   ;;  %v2914_v48 = vpop.f32.mrf.mxu2  ;;  %v2590_v28 = vadd.f32 %v8652_v47, %v1638_v45  ;;  %v6844_v47 = vld [vmem:[%s11404_s3 + $0x14c] sm:$0xf] }
 0x305   :  { %v2915_v42 = vadd.f32 %v2914_v48, %v2746_v5  ;;  %v3081_v43 = vpop.f32.mrf.mxu3  ;;  %3691 = vperm.xlu2 %7068, %v3497_v62   ;;  %v5937_v5 = vor.u32 %v6840_v24, %v5934_v34  ;;  %v3508_v34 = vld [vmem:[%s11405_s6 + $0x158] sm:$0xff] }
 0x306   :  { %v3082_v15 = vadd.f32 %v3081_v43, %v2913_v9  ;;  %3686 = vperm.xlu1 %7067, %v3496_v60   ;;  %v5958_v9 = vld [vmem:[%s11404_s3 + $0x170] sm:$0xf0]  ;;  %v5950_v43 = vld [vmem:[%s11404_s3 + $0x158] sm:$0xf0] }
 0x307   :  { %v5961_v62 = vor.u32 %v6847_v21, %v5958_v9  ;;  %v5953_v0 = vor.u32 %v6844_v47, %v5950_v43  ;;  %v3514_v47 = vld [vmem:[%s11405_s6 + $0x188] sm:$0xff] }
 0x308   :  { %v3241_v61 = vmax.f32 %v3082_v15, 0.0 }
 0x309   :  { %2956 = vmatmul.bf16.gmra.mxu2 %v5933_v55 }
 0x30a   :  { %v2753_v1 = vpop.f32.mrf.mxu1 }
 0x30b   :  { %v2754_v31 = vadd.f32 %v2753_v1, %v2585_v7  ;;  %v8841_v10 = vpop.f32.mrf.mxu0 }
 0x30c   :  { %3726 = vperm.xlu0 %7066, %v3504_v49   ;;  %v2917_v36 = vpop.f32.mrf.mxu2  ;;  %v2592_v49 = vadd.f32 %v8675_v40, %v1643_v27  ;;  %v5990_v27 = vld [vmem:[%s11404_s3 + $0x1b0] sm:$0xf0] }
 0x30d   :  { %2792 = vmatmul.bf16.gmra.mxu1 %v5945_v30  ;;  %v2918_v17 = vadd.f32 %v2917_v36, %v2749_v8  ;;  %v3083_v29 = vpop.f32.mrf.mxu3  ;;  %3706 = vperm.xlu2 %7068, %v3500_v37   ;;  %v3513_v30 = vld [vmem:[%s11405_s6 + $0x180] sm:$0xff] }
 0x30e   :  { %v3084_v11 = vadd.f32 %v3083_v29, %v2915_v42  ;;  %3701 = vperm.xlu1 %7067, %v3499_v4   ;;  %2648 = vmatmul.bf16.gmra.mxu0 %v6021_v12  ;;  %v3505_v42 = vld [vmem:[%s11405_s6 + $0x140] sm:$0xff]  ;;  %v5964_v12 = vld [vmem:[%s11404_s3 + $0x168] sm:$0xf] }
 0x30f   :  { %v3509_v37 = vld [vmem:[%s11405_s6 + $0x160] sm:$0xff] }
 0x310   :  { %v3242_v53 = vmax.f32 %v3084_v11, 0.0 }
 0x312   :  { %v2755_v20 = vpop.f32.mrf.mxu1  ;;  %3125 = vmatmul.bf16.gmra.mxu3 %v5937_v5  ;;  %v8865_v54 = vpack.c.bf16 %v3242_v53, %v3241_v61  ;;  %v5974_v61 = vld [vmem:[%s11404_s3 + $0x190] sm:$0xf0]  ;;  %v6052_v53 = vld [vmem:[%s11404_s3 + $0x220] sm:$0xf] }
 0x313   :  { %v2756_v14 = vadd.f32 %v2755_v20, %v2587_v13  ;;  %v8867_v41 = vpop.f32.mrf.mxu0  ;;  %v6873_v13 = vld [vmem:[%s11404_s3 + $0x22c] sm:$0xf0]  ;;  %v5977_v18 = vor.u32 %v6851_v2, %v5974_v61 }
 0x314   :  { %3741 = vperm.xlu0 %7066, %v3507_v25   ;;  %v2919_v63 = vpop.f32.mrf.mxu2  ;;  %v1648_v25 = vpop.permute.xlu1 %1647 }
 0x315   :  { %v2920_v8 = vadd.f32 %v2919_v63, %v2751_v33  ;;  %v3086_v56 = vpop.f32.mrf.mxu3  ;;  %3721 = vperm.xlu2 %7068, %v3503_v52   ;;  %v6037_v33 = vor.u32 %v6869_v26, %v6036_v32  ;;  %v2595_v20 = vadd.f32 %v8698_v44, %v1648_v25  ;;  %v3516_v52 = vld [vmem:[%s11405_s6 + $0x198] sm:$0xff]  ;;  %v6848_v44 = vld [vmem:[%s11404_s3 + $0x16c] sm:$0xf] }
 0x316   :  { %v3087_v16 = vadd.f32 %v3086_v56, %v2918_v17  ;;  %3716 = vperm.xlu1 %7067, %v3502_v22   ;;  %v6053_v22 = vor.u32 %v6873_v13, %v6052_v53  ;;  %v3511_v56 = vld [vmem:[%s11405_s6 + $0x170] sm:$0xff]  ;;  %v3525_v13 = vld [vmem:[%s11405_s6 + $0x1e0] sm:$0xff] }
 0x318   :  { %v3243_v35 = vmax.f32 %v3087_v16, 0.0 }
 0x319   :  { %2961 = vmatmul.bf16.gmra.mxu2 %v5949_v51  ;;  %v5966_v51 = vld [vmem:[%s11404_s3 + $0x178] sm:$0xf0] }
 0x31a   :  { %v2758_v50 = vpop.f32.mrf.mxu1  ;;  %v5969_v26 = vor.u32 %v6848_v44, %v5966_v51 }
 0x31b   :  { %v2759_v60 = vadd.f32 %v2758_v50, %v2590_v28  ;;  %v8891_v48 = vpop.f32.mrf.mxu0  ;;  %v3515_v50 = vld [vmem:[%s11405_s6 + $0x190] sm:$0xff] }
 0x31c   :  { %3756 = vperm.xlu0 %7066, %v3510_v38   ;;  %v2922_v55 = vpop.f32.mrf.mxu2  ;;  %v3519_v38 = vld [vmem:[%s11405_s6 + $0x1b0] sm:$0xff] }
 0x31d   :  { %2797 = vmatmul.bf16.gmra.mxu1 %v5961_v62  ;;  %v2923_v15 = vadd.f32 %v2922_v55, %v2754_v31  ;;  %v3088_v58 = vpop.f32.mrf.mxu3  ;;  %3736 = vperm.xlu2 %7068, %v3506_v59   ;;  %v6850_v31 = vld [vmem:[%s11404_s3 + $0x174] sm:$0xf0]  ;;  %v5980_v59 = vld [vmem:[%s11404_s3 + $0x188] sm:$0xf] }
 0x31e   :  { %v3089_v39 = vadd.f32 %v3088_v58, %v2920_v8  ;;  %3731 = vperm.xlu1 %7067, %v3505_v42   ;;  %2653 = vmatmul.bf16.gmra.mxu0 %v6037_v33  ;;  %v5965_v11 = vor.u32 %v6850_v31, %v5964_v12  ;;  %v6854_v33 = vld [vmem:[%s11404_s3 + $0x194] sm:$0xf0] }
 0x31f   :  { %v5981_v58 = vor.u32 %v6854_v33, %v5980_v59  ;;  %v3524_v33 = vld [vmem:[%s11405_s6 + $0x1d8] sm:$0xff] }
 0x320   :  { %v3244_v7 = vmax.f32 %v3089_v39, 0.0 }
 0x322   :  { %v2760_v1 = vpop.f32.mrf.mxu1  ;;  %3130 = vmatmul.bf16.gmra.mxu3 %v5953_v0  ;;  %v8915_v4 = vpack.c.bf16 %v3244_v7, %v3243_v35  ;;  %v6855_v0 = vld [vmem:[%s11404_s3 + $0x1a4] sm:$0xf]  ;;  %v6068_v35 = vld [vmem:[%s11404_s3 + $0x240] sm:$0xf]  ;;  %v6877_v7 = vld [vmem:[%s11404_s3 + $0x24c] sm:$0xf0] }
 0x323   :  { %v2761_v40 = vadd.f32 %v2760_v1, %v2592_v49  ;;  %v8917_v24 = vpop.f32.mrf.mxu0  ;;  %v3522_v49 = vld [vmem:[%s11405_s6 + $0x1c8] sm:$0xff]  ;;  %v6069_v12 = vor.u32 %v6877_v7, %v6068_v35 }
 0x324   :  { %3771 = vperm.xlu0 %7066, %v3513_v30   ;;  %v2924_v36 = vpop.f32.mrf.mxu2  ;;  %v5993_v30 = vor.u32 %v6855_v0, %v5990_v27 }
 0x325   :  { %v2925_v17 = vadd.f32 %v2924_v36, %v2756_v14  ;;  %v3091_v29 = vpop.f32.mrf.mxu3  ;;  %3751 = vperm.xlu2 %7068, %v3509_v37   ;;  %v3512_v14 = vld [vmem:[%s11405_s6 + $0x178] sm:$0xff]  ;;  %v3518_v37 = vld [vmem:[%s11405_s6 + $0x1a8] sm:$0xff] }
 0x326   :  { %v3092_v5 = vadd.f32 %v3091_v29, %v2923_v15  ;;  %3746 = vperm.xlu1 %7067, %v3508_v34   ;;  %v6852_v34 = vld [vmem:[%s11404_s3 + $0x18c] sm:$0xf]  ;;  %v5982_v36 = vld [vmem:[%s11404_s3 + $0x198] sm:$0xf0] }
 0x327   :  { %v5985_v2 = vor.u32 %v6852_v34, %v5982_v36 }
 0x328   :  { %v3245_v45 = vmax.f32 %v3092_v5, 0.0 }
 0x329   :  { %2966 = vmatmul.bf16.gmra.mxu2 %v5965_v11 }
 0x32a   :  { %v2763_v19 = vpop.f32.mrf.mxu1 }
 0x32b   :  { %v2764_v63 = vadd.f32 %v2763_v19, %v2595_v20  ;;  %v8941_v8 = vpop.f32.mrf.mxu0  ;;  %v3521_v20 = vld [vmem:[%s11405_s6 + $0x1c0] sm:$0xff] }
 0x32c   :  { %3786 = vperm.xlu0 %7066, %v3516_v52   ;;  %v2927_v16 = vpop.f32.mrf.mxu2  ;;  %v5996_v52 = vld [vmem:[%s11404_s3 + $0x1a8] sm:$0xf] }
 0x32d   :  { %2802 = vmatmul.bf16.gmra.mxu1 %v5977_v18  ;;  %v2928_v21 = vadd.f32 %v2927_v16, %v2759_v60  ;;  %v3093_v9 = vpop.f32.mrf.mxu3  ;;  %3766 = vperm.xlu2 %7068, %v3512_v14   ;;  %v6858_v18 = vld [vmem:[%s11404_s3 + $0x1b4] sm:$0xf0]  ;;  %v6859_v16 = vld [vmem:[%s11404_s3 + $0x1c4] sm:$0xf] }
 0x32e   :  { %v3094_v32 = vadd.f32 %v3093_v9, %v2925_v17  ;;  %3761 = vperm.xlu1 %7067, %v3511_v56   ;;  %2658 = vmatmul.bf16.gmra.mxu0 %v6053_v22  ;;  %v3520_v22 = vld [vmem:[%s11405_s6 + $0x1b8] sm:$0xff]  ;;  %v5997_v44 = vor.u32 %v6858_v18, %v5996_v52  ;;  %v1653_v9 = vpop.permute.xlu2 %1652  ;;  %v6100_v52 = vld [vmem:[%s11404_s3 + $0x280] sm:$0xf]  ;;  %v6885_v18 = vld [vmem:[%s11404_s3 + $0x28c] sm:$0xf0] }
 0x330   :  { %v3246_v28 = vmax.f32 %v3094_v32, 0.0  ;;  %v6084_v32 = vld [vmem:[%s11404_s3 + $0x260] sm:$0xf] }
 0x332   :  { %v8955_v62 = vpop.f32.mrf.mxu1  ;;  %3135 = vmatmul.bf16.gmra.mxu3 %v5969_v26  ;;  %v8966_v60 = vpack.c.bf16 %v3246_v28, %v3245_v45  ;;  %v6881_v26 = vld [vmem:[%s11404_s3 + $0x26c] sm:$0xf0]  ;;  %v2597_v45 = vadd.f32 %v8721_v3, %v1653_v9  ;;  %v3528_v28 = vld [vmem:[%s11405_s6 + $0x1f8] sm:$0xff]  ;;  %v6101_v9 = vor.u32 %v6885_v18, %v6100_v52 }
 0x333   :  { %v8968_v42 = vpop.f32.mrf.mxu0  ;;  %v3523_v3 = vld [vmem:[%s11405_s6 + $0x1d0] sm:$0xff]  ;;  %v5236_v18 = vld [vmem:[%s11406_s7 + $0x38] sm:$0xff] }
 0x334   :  { %3801 = vperm.xlu0 %7066, %v3519_v38   ;;  %v2929_v43 = vpop.f32.mrf.mxu2 }
 0x335   :  { %v2930_v55 = vadd.f32 %v2929_v43, %v2761_v40  ;;  %v3096_v15 = vpop.f32.mrf.mxu3  ;;  %3781 = vperm.xlu2 %7068, %v3515_v50   ;;  %v3517_v40 = vld [vmem:[%s11405_s6 + $0x1a0] sm:$0xff]  ;;  %v2766_v50 = vadd.f32 %v8955_v62, %v2597_v45  ;;  %v5998_v62 = vld [vmem:[%s11404_s3 + $0x1b8] sm:$0xf0] }
 0x336   :  { %v3097_v39 = vadd.f32 %v3096_v15, %v2928_v21  ;;  %3776 = vperm.xlu1 %7067, %v3514_v47   ;;  %v6006_v21 = vld [vmem:[%s11404_s3 + $0x1d0] sm:$0xf0]  ;;  %v6085_v47 = vor.u32 %v6881_v26, %v6084_v32 }
 0x337   :  { %v6009_v38 = vor.u32 %v6859_v16, %v6006_v21  ;;  %v5230_v21 = vld [vmem:[%s11406_s7 + $0x8] sm:$0xff] }
 0x338   :  { %v3247_v61 = vmax.f32 %v3097_v39, 0.0 }
 0x339   :  { %2971 = vmatmul.bf16.gmra.mxu2 %v5981_v58 }
 0x33a   :  { %v8988_v1 = vpop.f32.mrf.mxu1 }
 0x33b   :  { %v8993_v31 = vpop.f32.mrf.mxu0 }
 0x33c   :  { %3816 = vperm.xlu0 %7066, %v3522_v49   ;;  %v2932_v17 = vpop.f32.mrf.mxu2  ;;  %v5231_v49 = vld [vmem:[%s11406_s7 + $0x10] sm:$0xff] }
 0x33d   :  { %2807 = vmatmul.bf16.gmra.mxu1 %v5993_v30  ;;  %v2933_v29 = vadd.f32 %v2932_v17, %v2764_v63  ;;  %v3098_v11 = vpop.f32.mrf.mxu3  ;;  %3796 = vperm.xlu2 %7068, %v3518_v37   ;;  %v3527_v37 = vld [vmem:[%s11405_s6 + $0x1f0] sm:$0xff]  ;;  %v3526_v17 = vld [vmem:[%s11405_s6 + $0x1e8] sm:$0xff] }
 0x33e   :  { %v3099_v5 = vadd.f32 %v3098_v11, %v2930_v55  ;;  %3791 = vperm.xlu1 %7067, %v3517_v40   ;;  %2663 = vmatmul.bf16.gmra.mxu0 %v6069_v12  ;;  %v6856_v55 = vld [vmem:[%s11404_s3 + $0x1ac] sm:$0xf]  ;;  %v6012_v12 = vld [vmem:[%s11404_s3 + $0x1c8] sm:$0xf]  ;;  %v6862_v40 = vld [vmem:[%s11404_s3 + $0x1d4] sm:$0xf0] }
 0x33f   :  { %v6001_v27 = vor.u32 %v6856_v55, %v5998_v62  ;;  %v5237_v62 = vld [vmem:[%s11406_s7 + $0x40] sm:$0xff] }
 0x340   :  { %v3248_v53 = vmax.f32 %v3099_v5, 0.0 }
 0x342   :  { %v9007_v25 = vpop.f32.mrf.mxu1  ;;  %3140 = vmatmul.bf16.gmra.mxu3 %v5985_v2  ;;  %v9018_v19 = vpack.c.bf16 %v3248_v53, %v3247_v61  ;;  %v6013_v2 = vor.u32 %v6862_v40, %v6012_v12  ;;  %v6863_v53 = vld [vmem:[%s11404_s3 + $0x1e4] sm:$0xf] }
 0x343   :  { %v9020_v14 = vpop.f32.mrf.mxu0 }
 0x344   :  { %3831 = vperm.xlu0 %7066, %v3525_v13   ;;  %v2934_v63 = vpop.f32.mrf.mxu2  ;;  %v6022_v13 = vld [vmem:[%s11404_s3 + $0x1f0] sm:$0xf0] }
 0x345   :  { %v3101_v56 = vpop.f32.mrf.mxu3  ;;  %3811 = vperm.xlu2 %7068, %v3521_v20   ;;  %v2935_v15 = vadd.f32 %v2934_v63, %v2766_v50  ;;  %v1663_v20 = vpop.permute.xlu1 %1662  ;;  %v5234_v63 = vld [vmem:[%s11406_s7 + $0x28] sm:$0xff] }
 0x346   :  { %v3102_v51 = vadd.f32 %v3101_v56, %v2933_v29  ;;  %3806 = vperm.xlu1 %7067, %v3520_v22   ;;  %v1658_v29 = vpop.permute.xlu0 %1657  ;;  %v6025_v56 = vor.u32 %v6863_v53, %v6022_v13  ;;  %v5240_v13 = vld [vmem:[%s11406_s7 + $0x58] sm:$0xff] }
 0x347   :  { %v2600_v61 = vadd.f32 %v8745_v6, %v1658_v29  ;;  %v2602_v6 = vadd.f32 %v8769_v46, %v1663_v20  ;;  %v5229_v46 = vld [vmem:[%s11406_s7] sm:$0xff] }
 0x348   :  { %v3249_v35 = vmax.f32 %v3102_v51, 0.0  ;;  %v6867_v29 = vld [vmem:[%s11404_s3 + $0x204] sm:$0xf] }
 0x349   :  { %2976 = vmatmul.bf16.gmra.mxu2 %v5997_v44  ;;  %v2769_v22 = vadd.f32 %v8988_v1, %v2600_v61  ;;  %v2771_v44 = vadd.f32 %v9007_v25, %v2602_v6  ;;  %v6860_v1 = vld [vmem:[%s11404_s3 + $0x1cc] sm:$0xf]  ;;  %v6014_v25 = vld [vmem:[%s11404_s3 + $0x1d8] sm:$0xf0] }
 0x34a   :  { %v9042_v59 = vpop.f32.mrf.mxu1 }
 0x34b   :  { %v9047_v43 = vpop.f32.mrf.mxu0 }
 0x34c   :  { %3846 = vperm.xlu0 %7066, %v3528_v28   ;;  %v2937_v58 = vpop.f32.mrf.mxu2 }
 0x34d   :  { %2812 = vmatmul.bf16.gmra.mxu1 %v6009_v38  ;;  %v3103_v39 = vpop.f32.mrf.mxu3  ;;  %3826 = vperm.xlu2 %7068, %v3524_v33   ;;  %v2938_v51 = vadd.f32 %v2937_v58, %v2769_v22  ;;  %v5233_v58 = vld [vmem:[%s11406_s7 + $0x20] sm:$0xff] }
 0x34e   :  { %v3104_v0 = vadd.f32 %v3103_v39, %v2935_v15  ;;  %3821 = vperm.xlu1 %7067, %v3523_v3   ;;  %2668 = vmatmul.bf16.gmra.mxu0 %v6085_v47  ;;  %v9116_v50 = vpop.permute.xlu0 %1672  ;;  %v6017_v47 = vor.u32 %v6860_v1, %v6014_v25  ;;  %v6028_v39 = vld [vmem:[%s11404_s3 + $0x1e8] sm:$0xf] }
 0x350   :  { %v3250_v7 = vmax.f32 %v3104_v0, 0.0  ;;  %v6866_v0 = vld [vmem:[%s11404_s3 + $0x1f4] sm:$0xf0] }
 0x351   :  { %v6029_v40 = vor.u32 %v6866_v0, %v6028_v39 }
 0x352   :  { %v9061_v30 = vpop.f32.mrf.mxu1  ;;  %3145 = vmatmul.bf16.gmra.mxu3 %v6001_v27  ;;  %v9072_v34 = vpack.c.bf16 %v3250_v7, %v3249_v35  ;;  %v5232_v7 = vld [vmem:[%s11406_s7 + $0x18] sm:$0xff] }
 0x353   :  { %v9074_v36 = vpop.f32.mrf.mxu0 }
 0x354   :  { %5305 = vperm.xlu0 %7066, %v5231_v49   ;;  %v2939_v11 = vpop.f32.mrf.mxu2  ;;  %v1668_v49 = vpop.permute.xlu2 %1667 }
 0x355   :  { %v3106_v5 = vpop.f32.mrf.mxu3  ;;  %3841 = vperm.xlu2 %7068, %v3527_v37   ;;  %v2940_v26 = vadd.f32 %v2939_v11, %v2771_v44  ;;  %v6038_v11 = vld [vmem:[%s11404_s3 + $0x210] sm:$0xf0]  ;;  %v6030_v44 = vld [vmem:[%s11404_s3 + $0x1f8] sm:$0xf0] }
 0x356   :  { %3836 = vperm.xlu1 %7067, %v3526_v17   ;;  %v3107_v45 = vadd.f32 %v3106_v5, %v2938_v51  ;;  %v1678_v17 = vpop.permute.xlu1 %1677  ;;  %v6116_v5 = vld [vmem:[%s11404_s3 + $0x2a0] sm:$0xf]  ;;  %v1688_v61 = vpop.permute.xlu0 %1687  ;;  %v6041_v20 = vor.u32 %v6867_v29, %v6038_v11  ;;  %v6893_v11 = vld [vmem:[%s11404_s3 + $0x2cc] sm:$0xf0] }
 0x357   :  { %v2615_v53 = vadd.f32 %v8891_v48, %v1688_v61  ;;  %v5235_v48 = vld [vmem:[%s11406_s7 + $0x30] sm:$0xff]  ;;  %v2610_v0 = vadd.f32 %v8841_v10, %v1678_v17  ;;  %v6132_v29 = vld [vmem:[%s11404_s3 + $0x2c0] sm:$0xf]  ;;  %v2607_v10 = vadd.f32 %v8817_v57, %v9116_v50  ;;  %v2605_v61 = vadd.f32 %v8793_v23, %v1668_v49 }
 0x358   :  { %v3251_v3 = vmax.f32 %v3107_v45, 0.0  ;;  %v5241_v49 = vld [vmem:[%s11406_s7 + $0x60] sm:$0xff] }
 0x359   :  { %2981 = vmatmul.bf16.gmra.mxu2 %v6013_v2  ;;  %v6889_v2 = vld [vmem:[%s11404_s3 + $0x2ac] sm:$0xf0]  ;;  %v2774_v23 = vadd.f32 %v9042_v59, %v2605_v61  ;;  %v6070_v61 = vld [vmem:[%s11404_s3 + $0x250] sm:$0xf0] }
 0x35a   :  { %v9098_v16 = vpop.f32.mrf.mxu1  ;;  %v6117_v6 = vor.u32 %v6889_v2, %v6116_v5 }
 0x35b   :  { %v9103_v32 = vpop.f32.mrf.mxu0  ;;  %v2779_v2 = vadd.f32 %v9098_v16, %v2610_v0  ;;  %v6133_v16 = vor.u32 %v6893_v11, %v6132_v29  ;;  %v5244_v0 = vld [vmem:[%s11406_s7 + $0x78] sm:$0xff] }
 0x35c   :  { %5320 = vperm.xlu0 %7066, %v5234_v63   ;;  %v9114_v28 = vpop.f32.mrf.mxu2 }
 0x35d   :  { %2817 = vmatmul.bf16.gmra.mxu1 %v6025_v56  ;;  %v3108_v38 = vpop.f32.mrf.mxu3  ;;  %5300 = vperm.xlu2 %7068, %v5230_v21   ;;  %v6864_v56 = vld [vmem:[%s11404_s3 + $0x1ec] sm:$0xf] }
 0x35e   :  { %v3109_v33 = vadd.f32 %v3108_v38, %v2940_v26  ;;  %5295 = vperm.xlu1 %7067, %v5229_v46   ;;  %2673 = vmatmul.bf16.gmra.mxu0 %v6101_v9  ;;  %v1683_v9 = vpop.permute.xlu2 %1682  ;;  %v6033_v46 = vor.u32 %v6864_v56, %v6030_v44  ;;  %v1693_v1 = vpop.permute.xlu1 %1692  ;;  %v5243_v26 = vld [vmem:[%s11406_s7 + $0x70] sm:$0xff] }
 0x35f   :  { %v2617_v25 = vadd.f32 %v8917_v24, %v1693_v1  ;;  %v5239_v38 = vld [vmem:[%s11406_s7 + $0x50] sm:$0xff]  ;;  %v2612_v17 = vadd.f32 %v8867_v41, %v1683_v9  ;;  %v5242_v41 = vld [vmem:[%s11406_s7 + $0x68] sm:$0xff] }
 0x360   :  { %v3252_v55 = vmax.f32 %v3109_v33, 0.0  ;;  %v6044_v33 = vld [vmem:[%s11404_s3 + $0x208] sm:$0xf] }
 0x362   :  { %v9121_v15 = vpop.f32.mrf.mxu1  ;;  %3150 = vmatmul.bf16.gmra.mxu3 %v6017_v47  ;;  %v9132_v27 = vpack.c.bf16 %v3252_v55, %v3251_v3  ;;  %v6870_v47 = vld [vmem:[%s11404_s3 + $0x214] sm:$0xf0]  ;;  %v5238_v55 = vld [vmem:[%s11406_s7 + $0x48] sm:$0xff] }
 0x363   :  { %v9134_v35 = vpop.f32.mrf.mxu0  ;;  %v6045_v39 = vor.u32 %v6870_v47, %v6044_v33 }
 0x364   :  { %5335 = vperm.xlu0 %7066, %v5237_v62   ;;  %v9139_v37 = vpop.f32.mrf.mxu2 }
 0x365   :  { %v9141_v12 = vpop.f32.mrf.mxu3  ;;  %5315 = vperm.xlu2 %7068, %v5233_v58  }
 0x366   :  { %5310 = vperm.xlu1 %7067, %v5232_v7   ;;  %v6871_v7 = vld [vmem:[%s11404_s3 + $0x224] sm:$0xf]  ;;  %v1698_v5 = vpop.permute.xlu2 %1697 }
 0x369   :  { %2986 = vmatmul.bf16.gmra.mxu2 %v6029_v40  ;;  %v6054_v40 = vld [vmem:[%s11404_s3 + $0x230] sm:$0xf0] }
 0x36a   :  { %v2783_v52 = vpop.f32.mrf.mxu1 }
 0x36b   :  { %v9162_v22 = vadd.f32 %v2783_v52, %v2615_v53  ;;  %v9164_v63 = vpop.f32.mrf.mxu0  ;;  %v2620_v53 = vadd.f32 %v8941_v8, %v1698_v5  ;;  %v2776_v52 = vadd.f32 %v9061_v30, %v2607_v10  ;;  %v6868_v30 = vld [vmem:[%s11404_s3 + $0x20c] sm:$0xf] }
 0x36c   :  { %5350 = vperm.xlu0 %7066, %v5240_v13   ;;  %v2947_v51 = vpop.f32.mrf.mxu2  ;;  %v5246_v13 = vld [vmem:[%s11406_s7 + $0x88] sm:$0xff] }
 0x36d   :  { %2822 = vmatmul.bf16.gmra.mxu1 %v6041_v20  ;;  %v3113_v21 = vpop.f32.mrf.mxu3  ;;  %5330 = vperm.xlu2 %7068, %v5236_v18   ;;  %v6057_v20 = vor.u32 %v6871_v7, %v6054_v40  ;;  %v2781_v18 = vadd.f32 %v9121_v15, %v2612_v17  ;;  %v6046_v15 = vld [vmem:[%s11404_s3 + $0x218] sm:$0xf0] }
 0x36e   :  { %5325 = vperm.xlu1 %7067, %v5235_v48   ;;  %2678 = vmatmul.bf16.gmra.mxu0 %v6117_v6  ;;  %v2948_v6 = vadd.f32 %v2947_v51, %v2779_v2  ;;  %v2945_v48 = vadd.f32 %v9139_v37, %v2776_v52  ;;  %v2943_v51 = vadd.f32 %v9114_v28, %v2774_v23  ;;  %v5249_v28 = vld [vmem:[%s11406_s7 + $0xa0] sm:$0xff]  ;;  %v5252_v52 = vld [vmem:[%s11406_s7 + $0xb8] sm:$0xff] }
 0x36f   :  { %v6875_v2 = vld [vmem:[%s11404_s3 + $0x244] sm:$0xf] }
 0x370   :  { %v3114_v1 = vadd.f32 %v3113_v21, %v2945_v48  ;;  %v5245_v21 = vld [vmem:[%s11406_s7 + $0x80] sm:$0xff] }
 0x372   :  { %v2785_v45 = vpop.f32.mrf.mxu1  ;;  %3155 = vmatmul.bf16.gmra.mxu3 %v6033_v46 }
 0x373   :  { %v9188_v3 = vadd.f32 %v2785_v45, %v2617_v25  ;;  %v9190_v24 = vpop.f32.mrf.mxu0  ;;  %v1703_v45 = vpop.permute.xlu0 %1702 }
 0x374   :  { %5365 = vperm.xlu0 %7066, %v5243_v26   ;;  %v2949_v62 = vpop.f32.mrf.mxu2  ;;  %v6049_v26 = vor.u32 %v6868_v30, %v6046_v15  ;;  %v2622_v47 = vadd.f32 %v8968_v42, %v1703_v45  ;;  %v6874_v42 = vld [vmem:[%s11404_s3 + $0x234] sm:$0xf0]  ;;  %v6062_v30 = vld [vmem:[%s11404_s3 + $0x238] sm:$0xf0] }
 0x375   :  { %v3116_v58 = vpop.f32.mrf.mxu3  ;;  %5345 = vperm.xlu2 %7068, %v5239_v38   ;;  %v2950_v56 = vadd.f32 %v2949_v62, %v2781_v18  ;;  %v3112_v38 = vadd.f32 %v9141_v12, %v2943_v51  ;;  %v6060_v12 = vld [vmem:[%s11404_s3 + $0x228] sm:$0xf]  ;;  %v6073_v18 = vor.u32 %v6875_v2, %v6070_v61  ;;  %v1713_v51 = vpop.permute.xlu2 %1712 }
 0x376   :  { %5340 = vperm.xlu1 %7067, %v5238_v55   ;;  %v3117_v59 = vadd.f32 %v3116_v58, %v2948_v6  ;;  %v3254_v55 = vmax.f32 %v3114_v1, 0.0  ;;  %v6061_v5 = vor.u32 %v6874_v42, %v6060_v12  ;;  %v2627_v1 = vadd.f32 %v9020_v14, %v1713_v51  ;;  %v6901_v12 = vld [vmem:[%s11404_s3 + $0x30c] sm:$0xf0]  ;;  %v6883_v51 = vld [vmem:[%s11404_s3 + $0x284] sm:$0xf] }
 0x377   :  { %v3253_v7 = vmax.f32 %v3112_v38, 0.0 }
 0x378   :  { %v3255_v37 = vmax.f32 %v3117_v59, 0.0 }
 0x379   :  { %2991 = vmatmul.bf16.gmra.mxu2 %v6045_v39  ;;  %v3311_v17 = vpack.c.bf16 %v3254_v55, %v3253_v7 }
 0x37a   :  { %v2788_v57 = vpop.f32.mrf.mxu1 }
 0x37b   :  { %v9223_v8 = vadd.f32 %v2788_v57, %v2620_v53  ;;  %v9225_v50 = vpop.f32.mrf.mxu0  ;;  %v6148_v53 = vld [vmem:[%s11404_s3 + $0x2e0] sm:$0xf]  ;;  %v5248_v57 = vld [vmem:[%s11406_s7 + $0x98] sm:$0xff]  ;;  %v1718_v42 = vpop.permute.xlu0 %1717 }
 0x37c   :  { %5380 = vperm.xlu0 %7066, %v5246_v13   ;;  %v2952_v44 = vpop.f32.mrf.mxu2  ;;  %v1708_v13 = vpop.permute.xlu1 %1707 }
 0x37d   :  { %2827 = vmatmul.bf16.gmra.mxu1 %v6057_v20  ;;  %v2953_v9 = vadd.f32 %v2952_v44, %v9162_v22  ;;  %v3118_v46 = vpop.f32.mrf.mxu3  ;;  %5360 = vperm.xlu2 %7068, %v5242_v41   ;;  %v2625_v20 = vadd.f32 %v8993_v31, %v1708_v13  ;;  %v6872_v31 = vld [vmem:[%s11404_s3 + $0x22c] sm:$0xf] }
 0x37e   :  { %v3119_v25 = vadd.f32 %v3118_v46, %v2950_v56  ;;  %5355 = vperm.xlu1 %7067, %v5241_v49   ;;  %2683 = vmatmul.bf16.gmra.mxu0 %v6133_v16  ;;  %v5247_v49 = vld [vmem:[%s11406_s7 + $0x90] sm:$0xff]  ;;  %v6065_v44 = vor.u32 %v6872_v31, %v6062_v30  ;;  %v5256_v30 = vld [vmem:[%s11406_s7 + $0xd8] sm:$0xff] }
 0x380   :  { %v3256_v33 = vmax.f32 %v3119_v25, 0.0 }
 0x382   :  { %v2790_v22 = vpop.f32.mrf.mxu1  ;;  %3160 = vmatmul.bf16.gmra.mxu3 %v6049_v26  ;;  %v3312_v62 = vpack.c.bf16 %v3256_v33, %v3255_v37  ;;  %v6076_v26 = vld [vmem:[%s11404_s3 + $0x248] sm:$0xf] }
 0x383   :  { %v2791_v58 = vadd.f32 %v2790_v22, %v2622_v47  ;;  %v9253_v39 = vpop.f32.mrf.mxu0  ;;  %v5250_v37 = vld [vmem:[%s11406_s7 + $0xa8] sm:$0xff] }
 0x384   :  { %4489 = vmatpush.bf16.msrb.mxu0 %v3312_v62  ;;  %5395 = vperm.xlu0 %7066, %v5249_v28   ;;  %v2954_v40 = vpop.f32.mrf.mxu2  ;;  %v6879_v62 = vld [vmem:[%s11404_s3 + $0x264] sm:$0xf] }
 0x385   :  { %v2955_v29 = vadd.f32 %v2954_v40, %v9188_v3  ;;  %v3121_v11 = vpop.f32.mrf.mxu3  ;;  %5375 = vperm.xlu2 %7068, %v5245_v21   ;;  %v6897_v3 = vld [vmem:[%s11404_s3 + $0x2ec] sm:$0xf0]  ;;  %v6086_v21 = vld [vmem:[%s11404_s3 + $0x270] sm:$0xf0] }
 0x386   :  { %v3122_v10 = vadd.f32 %v3121_v11, %v2953_v9  ;;  %5370 = vperm.xlu1 %7067, %v5244_v0   ;;  %v6149_v41 = vor.u32 %v6897_v3, %v6148_v53  ;;  %v5258_v0 = vld [vmem:[%s11406_s7 + $0xe8] sm:$0xff]  ;;  %v6089_v7 = vor.u32 %v6879_v62, %v6086_v21 }
 0x388   :  { %4490 = vmatpush.bf16.msrb.mxu0 %v3311_v17  ;;  %v3257_v9 = vmax.f32 %v3122_v10, 0.0  ;;  %v6078_v17 = vld [vmem:[%s11404_s3 + $0x258] sm:$0xf0] }
 0x389   :  { %2996 = vmatmul.bf16.gmra.mxu2 %v6061_v5 }
 0x38a   :  { %v2793_v6 = vpop.f32.mrf.mxu1 }
 0x38b   :  { %v2794_v16 = vadd.f32 %v2793_v6, %v2625_v20  ;;  %v9278_v23 = vpop.f32.mrf.mxu0  ;;  %v1723_v20 = vpop.permute.xlu1 %1722 }
 0x38c   :  { %4491 = vmatpush.bf16.msrb.mxu0 %v9132_v27  ;;  %5410 = vperm.xlu0 %7066, %v5252_v52   ;;  %v2957_v15 = vpop.f32.mrf.mxu2  ;;  %v5255_v27 = vld [vmem:[%s11406_s7 + $0xd0] sm:$0xff]  ;;  %v2632_v6 = vadd.f32 %v9074_v36, %v1723_v20 }
 0x38d   :  { %2832 = vmatmul.bf16.gmra.mxu1 %v6073_v18  ;;  %v2958_v48 = vadd.f32 %v2957_v15, %v9223_v8  ;;  %v3123_v56 = vpop.f32.mrf.mxu3  ;;  %5390 = vperm.xlu2 %7068, %v5248_v57   ;;  %v5251_v8 = vld [vmem:[%s11406_s7 + $0xb0] sm:$0xff] }
 0x38e   :  { %v3124_v59 = vadd.f32 %v3123_v56, %v2955_v29  ;;  %5385 = vperm.xlu1 %7067, %v5247_v49   ;;  %2688 = vmatmul.bf16.gmra.mxu0 %v6149_v41  ;;  %v5254_v29 = vld [vmem:[%s11406_s7 + $0xc8] sm:$0xff]  ;;  %v5257_v41 = vld [vmem:[%s11406_s7 + $0xe0] sm:$0xff]  ;;  %v6118_v20 = vld [vmem:[%s11404_s3 + $0x2b0] sm:$0xf0] }
 0x390   :  { %v3258_v46 = vmax.f32 %v3124_v59, 0.0  ;;  %4492 = vmatpush.bf16.msrb.mxu0 %v9072_v34  ;;  %v6878_v34 = vld [vmem:[%s11404_s3 + $0x254] sm:$0xf0] }
 0x391   :  { %v6077_v55 = vor.u32 %v6878_v34, %v6076_v26 }
 0x392   :  { %v2795_v25 = vpop.f32.mrf.mxu1  ;;  %3165 = vmatmul.bf16.gmra.mxu3 %v6065_v44  ;;  %v9305_v45 = vpack.c.bf16 %v3258_v46, %v3257_v9  ;;  %v6102_v9 = vld [vmem:[%s11404_s3 + $0x290] sm:$0xf0]  ;;  %v6180_v46 = vld [vmem:[%s11404_s3 + $0x320] sm:$0xf] }
 0x393   :  { %v2796_v14 = vadd.f32 %v2795_v25, %v2627_v1  ;;  %v9307_v38 = vpop.f32.mrf.mxu0  ;;  %v6905_v1 = vld [vmem:[%s11404_s3 + $0x32c] sm:$0xf0]  ;;  %v6105_v26 = vor.u32 %v6883_v51, %v6102_v9 }
 0x394   :  { %4493 = vmatpush.bf16.msrb.mxu0 %v9018_v19  ;;  %5425 = vperm.xlu0 %7066, %v5255_v27   ;;  %v2959_v33 = vpop.f32.mrf.mxu2  ;;  %v6164_v19 = vld [vmem:[%s11404_s3 + $0x300] sm:$0xf]  ;;  %v1728_v27 = vpop.permute.xlu2 %1727 }
 0x395   :  { %v2960_v47 = vadd.f32 %v2959_v33, %v2791_v58  ;;  %v3126_v28 = vpop.f32.mrf.mxu3  ;;  %5405 = vperm.xlu2 %7068, %v5251_v8   ;;  %v2630_v58 = vadd.f32 %v9047_v43, %v1718_v42  ;;  %v6165_v11 = vor.u32 %v6901_v12, %v6164_v19  ;;  %v6876_v43 = vld [vmem:[%s11404_s3 + $0x24c] sm:$0xf]  ;;  %v2635_v25 = vadd.f32 %v9103_v32, %v1728_v27  ;;  %v5264_v8 = vld [vmem:[%s11406_s7 + $0x118] sm:$0xff]  ;;  %v5273_v27 = vld [vmem:[%s11406_s7 + $0x160] sm:$0xff] }
 0x396   :  { %v3127_v22 = vadd.f32 %v3126_v28, %v2958_v48  ;;  %5400 = vperm.xlu1 %7067, %v5250_v37   ;;  %v6081_v13 = vor.u32 %v6876_v43, %v6078_v17  ;;  %v6181_v37 = vor.u32 %v6905_v1, %v6180_v46  ;;  %v5259_v28 = vld [vmem:[%s11406_s7 + $0xf0] sm:$0xff]  ;;  %v6880_v32 = vld [vmem:[%s11404_s3 + $0x26c] sm:$0xf] }
 0x397   :  { %v5262_v43 = vld [vmem:[%s11406_s7 + $0x108] sm:$0xff] }
 0x398   :  { %4494 = vmatpush.bf16.msrb.mxu0 %v8966_v60  ;;  %v5253_v60 = vld [vmem:[%s11406_s7 + $0xc0] sm:$0xff]  ;;  %v3259_v52 = vmax.f32 %v3127_v22, 0.0 }
 0x399   :  { %3001 = vmatmul.bf16.gmra.mxu2 %v6077_v55  ;;  %v6094_v55 = vld [vmem:[%s11404_s3 + $0x278] sm:$0xf0] }
 0x39a   :  { %v2798_v40 = vpop.f32.mrf.mxu1  ;;  %v6097_v12 = vor.u32 %v6880_v32, %v6094_v55 }
 0x39b   :  { %v2799_v5 = vadd.f32 %v2798_v40, %v2630_v58  ;;  %v9333_v10 = vpop.f32.mrf.mxu0  ;;  %v5263_v40 = vld [vmem:[%s11406_s7 + $0x110] sm:$0xff] }
 0x39c   :  { %4495 = vmatpush.bf16.msrb.mxu0 %v8915_v4  ;;  %5440 = vperm.xlu0 %7066, %v5258_v0   ;;  %v2962_v2 = vpop.f32.mrf.mxu2  ;;  %v5261_v4 = vld [vmem:[%s11406_s7 + $0x100] sm:$0xff]  ;;  %v5267_v0 = vld [vmem:[%s11406_s7 + $0x130] sm:$0xff] }
 0x39d   :  { %2837 = vmatmul.bf16.gmra.mxu1 %v6089_v7  ;;  %v2963_v61 = vadd.f32 %v2962_v2, %v2794_v16  ;;  %v3128_v53 = vpop.f32.mrf.mxu3  ;;  %5420 = vperm.xlu2 %7068, %v5254_v29   ;;  %v6092_v16 = vld [vmem:[%s11404_s3 + $0x268] sm:$0xf] }
 0x39e   :  { %v3129_v3 = vadd.f32 %v3128_v53, %v2960_v47  ;;  %5415 = vperm.xlu1 %7067, %v5253_v60   ;;  %2693 = vmatmul.bf16.gmra.mxu0 %v6165_v11  ;;  %v6108_v29 = vld [vmem:[%s11404_s3 + $0x288] sm:$0xf]  ;;  %v6886_v11 = vld [vmem:[%s11404_s3 + $0x294] sm:$0xf0] }
 0x39f   :  { %v6109_v53 = vor.u32 %v6886_v11, %v6108_v29  ;;  %v1738_v11 = vpop.permute.xlu1 %1737 }
 0x3a0   :  { %v3260_v18 = vmax.f32 %v3129_v3, 0.0  ;;  %4496 = vmatpush.bf16.msrb.mxu0 %v8865_v54  ;;  %v6882_v54 = vld [vmem:[%s11404_s3 + $0x274] sm:$0xf0] }
 0x3a1   :  { %v6093_v59 = vor.u32 %v6882_v54, %v6092_v16  ;;  %v5266_v16 = vld [vmem:[%s11406_s7 + $0x128] sm:$0xff] }
 0x3a2   :  { %v2800_v57 = vpop.f32.mrf.mxu1  ;;  %3170 = vmatmul.bf16.gmra.mxu3 %v6081_v13  ;;  %v9359_v49 = vpack.c.bf16 %v3260_v18, %v3259_v52  ;;  %v6887_v13 = vld [vmem:[%s11404_s3 + $0x2a4] sm:$0xf]  ;;  %v6196_v52 = vld [vmem:[%s11404_s3 + $0x340] sm:$0xf]  ;;  %v6909_v18 = vld [vmem:[%s11404_s3 + $0x34c] sm:$0xf0] }
 0x3a3   :  { %v2801_v36 = vadd.f32 %v2800_v57, %v2632_v6  ;;  %v9361_v31 = vpop.f32.mrf.mxu0  ;;  %v1733_v6 = vpop.permute.xlu0 %1732  ;;  %v6121_v57 = vor.u32 %v6887_v13, %v6118_v20  ;;  %v6197_v54 = vor.u32 %v6909_v18, %v6196_v52 }
 0x3a4   :  { %5455 = vperm.xlu0 %7066, %v5261_v4   ;;  %v2964_v15 = vpop.f32.mrf.mxu2  ;;  %v5270_v4 = vld [vmem:[%s11406_s7 + $0x148] sm:$0xff] }
 0x3a5   :  { %v2965_v48 = vadd.f32 %v2964_v15, %v2796_v14  ;;  %v3131_v56 = vpop.f32.mrf.mxu3  ;;  %5435 = vperm.xlu2 %7068, %v5257_v41   ;;  %v5260_v14 = vld [vmem:[%s11406_s7 + $0xf8] sm:$0xff]  ;;  %v6884_v15 = vld [vmem:[%s11404_s3 + $0x28c] sm:$0xf] }
 0x3a6   :  { %v3132_v44 = vadd.f32 %v3131_v56, %v2963_v61  ;;  %5430 = vperm.xlu1 %7067, %v5256_v30   ;;  %v5265_v30 = vld [vmem:[%s11406_s7 + $0x120] sm:$0xff] }
 0x3a8   :  { %v3261_v42 = vmax.f32 %v3132_v44, 0.0 }
 0x3a9   :  { %3006 = vmatmul.bf16.gmra.mxu2 %v6093_v59 }
 0x3aa   :  { %v2803_v34 = vpop.f32.mrf.mxu1 }
 0x3ab   :  { %v2804_v33 = vadd.f32 %v2803_v34, %v2635_v25  ;;  %v9385_v47 = vpop.f32.mrf.mxu0  ;;  %v9451_v25 = vpop.permute.xlu0 %1747  ;;  %v6124_v34 = vld [vmem:[%s11404_s3 + $0x2a8] sm:$0xf] }
 0x3ac   :  { %5470 = vperm.xlu0 %7066, %v5264_v8   ;;  %v2967_v22 = vpop.f32.mrf.mxu2 }
 0x3ad   :  { %2842 = vmatmul.bf16.gmra.mxu1 %v6105_v26  ;;  %v2968_v62 = vadd.f32 %v2967_v22, %v2799_v5  ;;  %v3133_v21 = vpop.f32.mrf.mxu3  ;;  %5450 = vperm.xlu2 %7068, %v5260_v14   ;;  %v5269_v26 = vld [vmem:[%s11406_s7 + $0x140] sm:$0xff]  ;;  %v6890_v14 = vld [vmem:[%s11404_s3 + $0x2b4] sm:$0xf0] }
 0x3ae   :  { %v3134_v19 = vadd.f32 %v3133_v21, %v2965_v48  ;;  %5445 = vperm.xlu1 %7067, %v5259_v28   ;;  %2698 = vmatmul.bf16.gmra.mxu0 %v6181_v37  ;;  %v6110_v48 = vld [vmem:[%s11404_s3 + $0x298] sm:$0xf0]  ;;  %v6125_v22 = vor.u32 %v6890_v14, %v6124_v34  ;;  %v6891_v21 = vld [vmem:[%s11404_s3 + $0x2c4] sm:$0xf]  ;;  %v2640_v14 = vadd.f32 %v9164_v63, %v1738_v11 }
 0x3af   :  { %v6113_v9 = vor.u32 %v6884_v15, %v6110_v48  ;;  %v5268_v28 = vld [vmem:[%s11406_s7 + $0x138] sm:$0xff]  ;;  %v5275_v15 = vld [vmem:[%s11406_s7 + $0x170] sm:$0xff]  ;;  %v6140_v48 = vld [vmem:[%s11404_s3 + $0x2c8] sm:$0xf] }
 0x3b0   :  { %v3262_v58 = vmax.f32 %v3134_v19, 0.0  ;;  %v6134_v19 = vld [vmem:[%s11404_s3 + $0x2d0] sm:$0xf0] }
 0x3b1   :  { %v6137_v29 = vor.u32 %v6891_v21, %v6134_v19  ;;  %v5282_v21 = vld [vmem:[%s11406_s7 + $0x1a8] sm:$0xff] }
 0x3b2   :  { %v9399_v7 = vpop.f32.mrf.mxu1  ;;  %3175 = vmatmul.bf16.gmra.mxu3 %v6097_v12  ;;  %v9410_v5 = vpack.c.bf16 %v3262_v58, %v3261_v42  ;;  %v6212_v12 = vld [vmem:[%s11404_s3 + $0x360] sm:$0xf]  ;;  %v6913_v42 = vld [vmem:[%s11404_s3 + $0x36c] sm:$0xf0]  ;;  %v2637_v58 = vadd.f32 %v9134_v35, %v1733_v6 }
 0x3b3   :  { %v9412_v60 = vpop.f32.mrf.mxu0  ;;  %v5271_v35 = vld [vmem:[%s11406_s7 + $0x150] sm:$0xff]  ;;  %v9504_v13 = vpop.permute.xlu0 %1762 }
 0x3b4   :  { %5485 = vperm.xlu0 %7066, %v5267_v0   ;;  %v2969_v17 = vpop.f32.mrf.mxu2  ;;  %v1743_v0 = vpop.permute.xlu2 %1742 }
 0x3b5   :  { %v2970_v2 = vadd.f32 %v2969_v17, %v2801_v36  ;;  %v3136_v61 = vpop.f32.mrf.mxu3  ;;  %5465 = vperm.xlu2 %7068, %v5263_v40   ;;  %v5276_v40 = vld [vmem:[%s11406_s7 + $0x178] sm:$0xff] }
 0x3b6   :  { %v3137_v3 = vadd.f32 %v3136_v61, %v2968_v62  ;;  %5460 = vperm.xlu1 %7067, %v5262_v43   ;;  %v2806_v43 = vadd.f32 %v9399_v7, %v2637_v58  ;;  %v6213_v61 = vor.u32 %v6913_v42, %v6212_v12  ;;  %v6126_v7 = vld [vmem:[%s11404_s3 + $0x2b8] sm:$0xf0] }
 0x3b8   :  { %v3263_v46 = vmax.f32 %v3137_v3, 0.0  ;;  %v6888_v3 = vld [vmem:[%s11404_s3 + $0x2ac] sm:$0xf] }
 0x3b9   :  { %3011 = vmatmul.bf16.gmra.mxu2 %v6109_v53 }
 0x3ba   :  { %v9432_v41 = vpop.f32.mrf.mxu1 }
 0x3bb   :  { %v9437_v36 = vpop.f32.mrf.mxu0  ;;  %v9531_v34 = vpop.permute.xlu0 %1777  ;;  %v2809_v63 = vadd.f32 %v9432_v41, %v2640_v14  ;;  %v6892_v41 = vld [vmem:[%s11404_s3 + $0x2cc] sm:$0xf] }
 0x3bc   :  { %5500 = vperm.xlu0 %7066, %v5270_v4   ;;  %v2972_v56 = vpop.f32.mrf.mxu2  ;;  %v6129_v4 = vor.u32 %v6888_v3, %v6126_v7  ;;  %v14_v3 = vstv %s11407_s8 }
 0x3bd   :  { %2847 = vmatmul.bf16.gmra.mxu1 %v6121_v57  ;;  %v2973_v59 = vadd.f32 %v2972_v56, %v2804_v33  ;;  %v3138_v44 = vpop.f32.mrf.mxu3  ;;  %5480 = vperm.xlu2 %7068, %v5266_v16   ;;  %v6894_v56 = vld [vmem:[%s11404_s3 + $0x2d4] sm:$0xf0]  ;;  %15 = vst [vmem:[#allocation2] sm:$0x1] %v14_v3 }
 0x3be   :  { %v3139_v51 = vadd.f32 %v3138_v44, %v2970_v2  ;;  %5475 = vperm.xlu1 %7067, %v5265_v30   ;;  %2703 = vmatmul.bf16.gmra.mxu0 %v6197_v54  ;;  %v5272_v2 = vld [vmem:[%s11406_s7 + $0x158] sm:$0xff]  ;;  %v5279_v54 = vld [vmem:[%s11406_s7 + $0x190] sm:$0xff]  ;;  %v9522_v44 = vpop.permute.xlu2 %1757 }
 0x3c0   :  { %v3264_v1 = vmax.f32 %v3139_v51, 0.0 }
 0x3c2   :  { %v9453_v8 = vpop.f32.mrf.mxu1  ;;  %3180 = vmatmul.bf16.gmra.mxu3 %v6113_v9  ;;  %v9464_v37 = vpack.c.bf16 %v3264_v1, %v3263_v46  ;;  %v5274_v9 = vld [vmem:[%s11406_s7 + $0x168] sm:$0xff]  ;;  %v9529_v46 = vpop.permute.xlu1 %1752 }
 0x3c3   :  { %v9466_v33 = vpop.f32.mrf.mxu0 }
 0x3c4   :  { %5515 = vperm.xlu0 %7066, %v5273_v27   ;;  %v2974_v32 = vpop.f32.mrf.mxu2 }
 0x3c5   :  { %v3141_v55 = vpop.f32.mrf.mxu3  ;;  %5495 = vperm.xlu2 %7068, %v5269_v26   ;;  %v2975_v20 = vadd.f32 %v2974_v32, %v2806_v43  ;;  %v6141_v26 = vor.u32 %v6894_v56, %v6140_v48  ;;  %v6150_v32 = vld [vmem:[%s11404_s3 + $0x2f0] sm:$0xf0]  ;;  %v6898_v48 = vld [vmem:[%s11404_s3 + $0x2f4] sm:$0xf0] }
 0x3c6   :  { %v3142_v62 = vadd.f32 %v3141_v55, %v2973_v59  ;;  %5490 = vperm.xlu1 %7067, %v5268_v28   ;;  %v6895_v28 = vld [vmem:[%s11404_s3 + $0x2e4] sm:$0xf]  ;;  %v6228_v55 = vld [vmem:[%s11404_s3 + $0x380] sm:$0xf] }
 0x3c7   :  { %v6153_v19 = vor.u32 %v6895_v28, %v6150_v32  ;;  %v6899_v28 = vld [vmem:[%s11404_s3 + $0x304] sm:$0xf]  ;;  %v6166_v32 = vld [vmem:[%s11404_s3 + $0x310] sm:$0xf0] }
 0x3c8   :  { %v3265_v57 = vmax.f32 %v3142_v62, 0.0  ;;  %v2642_v62 = vadd.f32 %v9190_v24, %v1743_v0  ;;  %v5277_v24 = vld [vmem:[%s11406_s7 + $0x180] sm:$0xff] }
 0x3c9   :  { %3016 = vmatmul.bf16.gmra.mxu2 %v6125_v22  ;;  %v6917_v22 = vld [vmem:[%s11404_s3 + $0x38c] sm:$0xf0] }
 0x3ca   :  { %v9488_v17 = vpop.f32.mrf.mxu1  ;;  %v2811_v12 = vadd.f32 %v9453_v8, %v2642_v62  ;;  %v6142_v8 = vld [vmem:[%s11404_s3 + $0x2d8] sm:$0xf0]  ;;  %v1768_v7 = vpop.permute.xlu1 %1767  ;;  %v6921_v62 = vld [vmem:[%s11404_s3 + $0x3ac] sm:$0xf0] }
 0x3cb   :  { %v9493_v53 = vpop.f32.mrf.mxu0 }
 0x3cc   :  { %5530 = vperm.xlu0 %7066, %v5276_v40   ;;  %v2977_v52 = vpop.f32.mrf.mxu2  ;;  %v5278_v40 = vld [vmem:[%s11406_s7 + $0x188] sm:$0xff] }
 0x3cd   :  { %2852 = vmatmul.bf16.gmra.mxu1 %v6137_v29  ;;  %v3143_v18 = vpop.f32.mrf.mxu3  ;;  %5510 = vperm.xlu2 %7068, %v5272_v2   ;;  %v2978_v42 = vadd.f32 %v2977_v52, %v2809_v63  ;;  %v6229_v29 = vor.u32 %v6917_v22, %v6228_v55  ;;  %v6145_v52 = vor.u32 %v6892_v41, %v6142_v8  ;;  %v6244_v22 = vld [vmem:[%s11404_s3 + $0x3a0] sm:$0xf] }
 0x3ce   :  { %v3144_v6 = vadd.f32 %v3143_v18, %v2975_v20  ;;  %5505 = vperm.xlu1 %7067, %v5271_v35   ;;  %2708 = vmatmul.bf16.gmra.mxu0 %v6213_v61  ;;  %v1773_v61 = vpop.permute.xlu2 %1772  ;;  %v9573_v18 = vpop.permute.xlu0 %1792 }
 0x3d0   :  { %v3266_v16 = vmax.f32 %v3144_v6, 0.0 }
 0x3d2   :  { %v9509_v30 = vpop.f32.mrf.mxu1  ;;  %3185 = vmatmul.bf16.gmra.mxu3 %v6129_v4  ;;  %v9520_v59 = vpack.c.bf16 %v3266_v16, %v3265_v57  ;;  %v5285_v57 = vld [vmem:[%s11406_s7 + $0x1c0] sm:$0xff]  ;;  %v9614_v63 = vpop.permute.xlu1 %1782 }
 0x3d3   :  { %v9524_v51 = vpop.f32.mrf.mxu0 }
 0x3d4   :  { %5545 = vperm.xlu0 %7066, %v5279_v54   ;;  %v2979_v1 = vpop.f32.mrf.mxu2  ;;  %v5281_v54 = vld [vmem:[%s11406_s7 + $0x1a0] sm:$0xff] }
 0x3d5   :  { %v3146_v27 = vpop.f32.mrf.mxu3  ;;  %5525 = vperm.xlu2 %7068, %v5275_v15   ;;  %v2980_v0 = vadd.f32 %v2979_v1, %v2811_v12  ;;  %v6156_v15 = vld [vmem:[%s11404_s3 + $0x2e8] sm:$0xf]  ;;  %v5280_v1 = vld [vmem:[%s11406_s7 + $0x198] sm:$0xff]  ;;  %v6169_v12 = vor.u32 %v6899_v28, %v6166_v32 }
 0x3d6   :  { %5520 = vperm.xlu1 %7067, %v5274_v9   ;;  %v3147_v43 = vadd.f32 %v3146_v27, %v2978_v42  ;;  %v6157_v14 = vor.u32 %v6898_v48, %v6156_v15  ;;  %v9606_v55 = vpop.permute.xlu2 %1787  ;;  %v9620_v42 = vpop.permute.xlu0 %1807  ;;  %v6172_v15 = vld [vmem:[%s11404_s3 + $0x308] sm:$0xf] }
 0x3d8   :  { %v3267_v6 = vmax.f32 %v3147_v43, 0.0  ;;  %v6158_v43 = vld [vmem:[%s11404_s3 + $0x2f8] sm:$0xf0] }
 0x3d9   :  { %3021 = vmatmul.bf16.gmra.mxu2 %v6141_v26 }
 0x3da   :  { %v9552_v58 = vpop.f32.mrf.mxu1 }
 0x3db   :  { %v9557_v11 = vpop.f32.mrf.mxu0 }
 0x3dc   :  { %5560 = vperm.xlu0 %7066, %v5282_v21   ;;  %v9568_v2 = vpop.f32.mrf.mxu2  ;;  %v2655_v21 = vadd.f32 %v9333_v10, %v1768_v7  ;;  %v5283_v10 = vld [vmem:[%s11406_s7 + $0x1b0] sm:$0xff] }
 0x3dd   :  { %2857 = vmatmul.bf16.gmra.mxu1 %v6153_v19  ;;  %v3148_v35 = vpop.f32.mrf.mxu3  ;;  %5540 = vperm.xlu2 %7068, %v5278_v40   ;;  %v5288_v19 = vld [vmem:[%s11406_s7 + $0x1d8] sm:$0xff] }
 0x3de   :  { %v3149_v20 = vadd.f32 %v3148_v35, %v2980_v0  ;;  %5535 = vperm.xlu1 %7067, %v5277_v24   ;;  %2713 = vmatmul.bf16.gmra.mxu0 %v6229_v29  ;;  %v5284_v29 = vld [vmem:[%s11406_s7 + $0x1b8] sm:$0xff]  ;;  %v6245_v24 = vor.u32 %v6921_v62, %v6244_v22  ;;  %v6896_v0 = vld [vmem:[%s11404_s3 + $0x2ec] sm:$0xf]  ;;  %v2650_v62 = vadd.f32 %v9278_v23, %v9522_v44 }
 0x3df   :  { %v6161_v7 = vor.u32 %v6896_v0, %v6158_v43  ;;  %v2647_v23 = vadd.f32 %v9253_v39, %v9529_v46  ;;  %v2652_v44 = vadd.f32 %v9307_v38, %v9504_v13  ;;  %v5290_v39 = vld [vmem:[%s11406_s7 + $0x1e8] sm:$0xff] }
 0x3e0   :  { %v3268_v4 = vmax.f32 %v3149_v20, 0.0  ;;  %v9638_v20 = vpop.permute.xlu2 %1802  ;;  %v6900_v46 = vld [vmem:[%s11404_s3 + $0x30c] sm:$0xf] }
 0x3e1   :  { %v2816_v43 = vadd.f32 %v9509_v30, %v2647_v23  ;;  %v5289_v30 = vld [vmem:[%s11406_s7 + $0x1e0] sm:$0xff] }
 0x3e2   :  { %v9578_v16 = vpop.f32.mrf.mxu1  ;;  %3190 = vmatmul.bf16.gmra.mxu3 %v6145_v52  ;;  %v9589_v56 = vpack.c.bf16 %v3268_v4, %v3267_v6  ;;  %v2657_v52 = vadd.f32 %v9361_v31, %v1773_v61  ;;  %v5291_v6 = vld [vmem:[%s11406_s7 + $0x1f0] sm:$0xff]  ;;  %v9644_v4 = vpop.permute.xlu1 %1797  ;;  %v6902_v31 = vld [vmem:[%s11404_s3 + $0x314] sm:$0xf0] }
 0x3e3   :  { %v9591_v9 = vpop.f32.mrf.mxu0  ;;  %v6173_v22 = vor.u32 %v6902_v31, %v6172_v15 }
 0x3e4   :  { %5575 = vperm.xlu0 %7066, %v5285_v57   ;;  %v9596_v27 = vpop.f32.mrf.mxu2 }
 0x3e5   :  { %v9598_v26 = vpop.f32.mrf.mxu3  ;;  %5555 = vperm.xlu2 %7068, %v5281_v54   ;;  %v5287_v54 = vld [vmem:[%s11406_s7 + $0x1d0] sm:$0xff] }
 0x3e6   :  { %5550 = vperm.xlu1 %7067, %v5280_v1   ;;  %v5286_v1 = vld [vmem:[%s11406_s7 + $0x1c8] sm:$0xff] }
 0x3e8   :  { %v9692_v13 = vpop.permute.xlu2 %1817 }
 0x3e9   :  { %3026 = vmatmul.bf16.gmra.mxu2 %v6157_v14  ;;  %v9662_v14 = vpop.permute.xlu0 %1822 }
 0x3ea   :  { %v2823_v40 = vpop.f32.mrf.mxu1 }
 0x3eb   :  { %v9625_v41 = vadd.f32 %v2823_v40, %v2655_v21  ;;  %v9627_v8 = vpop.f32.mrf.mxu0  ;;  %v6903_v21 = vld [vmem:[%s11404_s3 + $0x324] sm:$0xf]  ;;  %v6925_v40 = vld [vmem:[%s11404_s3 + $0x3cc] sm:$0xf0] }
 0x3ec   :  { %5590 = vperm.xlu0 %7066, %v5288_v19   ;;  %v2987_v35 = vpop.f32.mrf.mxu2  ;;  %v6182_v19 = vld [vmem:[%s11404_s3 + $0x330] sm:$0xf0] }
 0x3ed   :  { %2862 = vmatmul.bf16.gmra.mxu1 %v6169_v12  ;;  %v3153_v3 = vpop.f32.mrf.mxu3  ;;  %5570 = vperm.xlu2 %7068, %v5284_v29   ;;  %v6260_v12 = vld [vmem:[%s11404_s3 + $0x3c0] sm:$0xf]  ;;  %v2819_v29 = vadd.f32 %v9552_v58, %v2650_v62  ;;  %v6185_v0 = vor.u32 %v6903_v21, %v6182_v19  ;;  %v9708_v58 = vpop.permute.xlu1 %1812 }
 0x3ee   :  { %5565 = vperm.xlu1 %7067, %v5283_v10   ;;  %2718 = vmatmul.bf16.gmra.mxu0 %v6245_v24  ;;  %v2645_v24 = vadd.f32 %v9225_v50, %v9451_v25  ;;  %v2660_v10 = vadd.f32 %v9385_v47, %v9531_v34  ;;  %v6261_v38 = vor.u32 %v6925_v40, %v6260_v12  ;;  %v6174_v34 = vld [vmem:[%s11404_s3 + $0x318] sm:$0xf0] }
 0x3ef   :  { %v6177_v62 = vor.u32 %v6900_v46, %v6174_v34 }
 0x3f0   :  { %v2814_v50 = vadd.f32 %v9488_v17, %v2645_v24  ;;  %v2985_v17 = vadd.f32 %v9596_v27, %v2816_v43  ;;  %v2662_v27 = vadd.f32 %v9412_v60, %v9614_v63  ;;  %v5292_v60 = vld [vmem:[%s11406_s7 + $0x1f8] sm:$0xff] }
 0x3f2   :  { %v2825_v57 = vpop.f32.mrf.mxu1  ;;  %3195 = vmatmul.bf16.gmra.mxu3 %v6161_v7  ;;  %v2821_v7 = vadd.f32 %v9578_v16, %v2652_v44 }
 0x3f3   :  { %v9655_v61 = vadd.f32 %v2825_v57, %v2657_v52  ;;  %v9657_v48 = vpop.f32.mrf.mxu0  ;;  %v2988_v52 = vadd.f32 %v2987_v35, %v2819_v29  ;;  %v9727_v29 = vpop.permute.xlu2 %1832 }
 0x3f4   :  { %5605 = vperm.xlu0 %7066, %v5291_v6   ;;  %v2989_v28 = vpop.f32.mrf.mxu2 }
 0x3f5   :  { %v3156_v32 = vpop.f32.mrf.mxu3  ;;  %5585 = vperm.xlu2 %7068, %v5287_v54   ;;  %v2990_v16 = vadd.f32 %v2989_v28, %v2821_v7  ;;  %v2983_v54 = vadd.f32 %v9568_v2, %v2814_v50  ;;  %v5746_v28 = vld [vmem:[#allocation2] sm:$0x1]  ;;  %v9730_v43 = vpop.permute.xlu1 %1827  ;;  %v2665_v50 = vadd.f32 %v9437_v36, %v9606_v55 }
 0x3f6   :  { %5580 = vperm.xlu1 %7067, %v5286_v1   ;;  %v3157_v35 = vadd.f32 %v3156_v32, %v2988_v52  ;;  %v3154_v1 = vadd.f32 %v3153_v3, %v2985_v17  ;;  %v6906_v3 = vld [vmem:[%s11404_s3 + $0x334] sm:$0xf0] }
 0x3f7   :  { %v3152_v21 = vadd.f32 %v9598_v26, %v2983_v54 }
 0x3f8   :  { %v3271_v19 = vmax.f32 %v3157_v35, 0.0  ;;  %v3270_v32 = vmax.f32 %v3154_v1, 0.0  ;;  %v6904_v35 = vld [vmem:[%s11404_s3 + $0x32c] sm:$0xf] }
 0x3f9   :  { %3031 = vmatmul.bf16.gmra.mxu2 %v6173_v22  ;;  %v3269_v63 = vmax.f32 %v3152_v21, 0.0 }
 0x3fa   :  { %v2828_v6 = vpop.f32.mrf.mxu1 }
 0x3fb   :  { %v9695_v25 = vadd.f32 %v2828_v6, %v2660_v10  ;;  %v9697_v47 = vpop.f32.mrf.mxu0  ;;  %v3319_v52 = vpack.c.bf16 %v3270_v32, %v3269_v63  ;;  %v6907_v6 = vld [vmem:[%s11404_s3 + $0x344] sm:$0xf] }
 0x3fc   :  { %v2992_v57 = vpop.f32.mrf.mxu2 }
 0x3fd   :  { %2867 = vmatmul.bf16.gmra.mxu1 %v6185_v0  ;;  %v2993_v15 = vadd.f32 %v2992_v57, %v9625_v41  ;;  %v3158_v31 = vpop.f32.mrf.mxu3  ;;  %5600 = vperm.xlu2 %7068, %v5290_v39   ;;  %v6188_v41 = vld [vmem:[%s11404_s3 + $0x328] sm:$0xf]  ;;  %v6198_v39 = vld [vmem:[%s11404_s3 + $0x350] sm:$0xf0]  ;;  %v6190_v57 = vld [vmem:[%s11404_s3 + $0x338] sm:$0xf0] }
 0x3fe   :  { %v3159_v22 = vadd.f32 %v3158_v31, %v2990_v16  ;;  %5595 = vperm.xlu1 %7067, %v5289_v30   ;;  %2723 = vmatmul.bf16.gmra.mxu0 %v6261_v38  ;;  %v6189_v0 = vor.u32 %v6906_v3, %v6188_v41  ;;  %v6929_v38 = vld [vmem:[%s11404_s3 + $0x3ec] sm:$0xf0]  ;;  %v6201_v30 = vor.u32 %v6907_v6, %v6198_v39  ;;  %v6292_v41 = vld [vmem:[%s11408_s5] sm:$0xf] }
 0x3ff   :  { %v6193_v31 = vor.u32 %v6904_v35, %v6190_v57  ;;  %v2670_v3 = vadd.f32 %v9493_v53, %v9644_v4 }
 0x400   :  { %v3272_v12 = vmax.f32 %v3159_v22, 0.0 }
 0x402   :  { %v2830_v2 = vpop.f32.mrf.mxu1  ;;  %3200 = vmatmul.bf16.gmra.mxu3 %v6177_v62  ;;  %v3320_v40 = vpack.c.bf16 %v3272_v12, %v3271_v19  ;;  %v2667_v62 = vadd.f32 %v9466_v33, %v9573_v18 }
 0x403   :  { %v2831_v23 = vadd.f32 %v2830_v2, %v2662_v27  ;;  %v9722_v26 = vpop.f32.mrf.mxu0  ;;  %v6911_v2 = vld [vmem:[%s11404_s3 + $0x364] sm:$0xf] }
 0x404   :  { %4658 = vmatpush.bf16.msrb.mxu1 %v3320_v40  ;;  %v2994_v44 = vpop.f32.mrf.mxu2  ;;  %v6214_v40 = vld [vmem:[%s11404_s3 + $0x370] sm:$0xf0] }
 0x405   :  { %v2995_v24 = vadd.f32 %v2994_v44, %v9655_v61  ;;  %v3161_v10 = vpop.f32.mrf.mxu3  ;;  %5749 = vperm.xlu2 %7068, %v5746_v28   ;;  %v6276_v61 = vld [vmem:[%s11404_s3 + $0x3e0] sm:$0xf]  ;;  %v1848_v44 = vpop.permute.xlu2 %1847 }
 0x406   :  { %v3162_v7 = vadd.f32 %v3161_v10, %v2993_v15  ;;  %5610 = vperm.xlu1 %7067, %v5292_v60   ;;  %v6277_v34 = vor.u32 %v6929_v38, %v6276_v61 }
 0x408   :  { %4659 = vmatpush.bf16.msrb.mxu1 %v3319_v52  ;;  %v3273_v1 = vmax.f32 %v3162_v7, 0.0  ;;  %v6206_v7 = vld [vmem:[%s11404_s3 + $0x358] sm:$0xf0] }
 0x409   :  { %3036 = vmatmul.bf16.gmra.mxu2 %v6189_v0  ;;  %v6908_v0 = vld [vmem:[%s11404_s3 + $0x34c] sm:$0xf] }
 0x40a   :  { %v2833_v46 = vpop.f32.mrf.mxu1  ;;  %v6209_v39 = vor.u32 %v6908_v0, %v6206_v7  ;;  %v6919_v0 = vld [vmem:[%s11404_s3 + $0x3a4] sm:$0xf]  ;;  %v6246_v7 = vld [vmem:[%s11404_s3 + $0x3b0] sm:$0xf0] }
 0x40b   :  { %v2834_v17 = vadd.f32 %v2833_v46, %v2665_v50  ;;  %v9746_v16 = vpop.f32.mrf.mxu0  ;;  %v2672_v50 = vadd.f32 %v9524_v51, %v9638_v20  ;;  %v6914_v46 = vld [vmem:[%s11404_s3 + $0x374] sm:$0xf0]  ;;  %v6915_v20 = vld [vmem:[%s11404_s3 + $0x384] sm:$0xf] }
 0x40c   :  { %4660 = vmatpush.bf16.msrb.mxu1 %v9589_v56  ;;  %v2997_v54 = vpop.f32.mrf.mxu2  ;;  %v6204_v56 = vld [vmem:[%s11404_s3 + $0x348] sm:$0xf] }
 0x40d   :  { %2872 = vmatmul.bf16.gmra.mxu1 %v6201_v30  ;;  %v2998_v36 = vadd.f32 %v2997_v54, %v9695_v25  ;;  %v3163_v55 = vpop.f32.mrf.mxu3  ;;  %v6910_v25 = vld [vmem:[%s11404_s3 + $0x354] sm:$0xf0] }
 0x40e   :  { %v3164_v15 = vadd.f32 %v3163_v55, %v2995_v24  ;;  %2728 = vmatmul.bf16.gmra.mxu0 %v6277_v34  ;;  %v6205_v18 = vor.u32 %v6910_v25, %v6204_v56  ;;  %v6230_v55 = vld [vmem:[%s11404_s3 + $0x390] sm:$0xf0] }
 0x410   :  { %v3274_v22 = vmax.f32 %v3164_v15, 0.0  ;;  %4661 = vmatpush.bf16.msrb.mxu1 %v9520_v59  ;;  %v6308_v15 = vld [vmem:[%s11408_s5 + $0x20] sm:$0xf] }
 0x412   :  { %v2835_v21 = vpop.f32.mrf.mxu1  ;;  %3205 = vmatmul.bf16.gmra.mxu3 %v6193_v31  ;;  %v9765_v19 = vpack.c.bf16 %v3274_v22, %v3273_v1  ;;  %v6937_v31 = vld [vmem:[%s11408_s5 + $0x2c] sm:$0xf0]  ;;  %v2675_v1 = vadd.f32 %v9557_v11, %v9620_v42  ;;  %v6233_v22 = vor.u32 %v6915_v20, %v6230_v55  ;;  %v6922_v20 = vld [vmem:[%s11404_s3 + $0x3b4] sm:$0xf0] }
 0x413   :  { %v2836_v12 = vadd.f32 %v2835_v21, %v2667_v62  ;;  %v9767_v27 = vpop.f32.mrf.mxu0  ;;  %v6309_v21 = vor.u32 %v6937_v31, %v6308_v15 }
 0x414   :  { %4662 = vmatpush.bf16.msrb.mxu1 %v9464_v37  ;;  %v2999_v59 = vpop.f32.mrf.mxu2  ;;  %v6933_v37 = vld [vmem:[%s11408_s5 + $0xc] sm:$0xf0] }
 0x415   :  { %v3000_v28 = vadd.f32 %v2999_v59, %v2831_v23  ;;  %v3166_v33 = vpop.f32.mrf.mxu3  ;;  %v6217_v23 = vor.u32 %v6911_v2, %v6214_v40  ;;  %v6293_v63 = vor.u32 %v6933_v37, %v6292_v41  ;;  %v6222_v59 = vld [vmem:[%s11404_s3 + $0x378] sm:$0xf0]  ;;  %v6236_v41 = vld [vmem:[%s11404_s3 + $0x388] sm:$0xf]  ;;  %v6918_v37 = vld [vmem:[%s11404_s3 + $0x394] sm:$0xf0] }
 0x416   :  { %v3167_v32 = vadd.f32 %v3166_v33, %v2998_v36 }
 0x418   :  { %4663 = vmatpush.bf16.msrb.mxu1 %v9410_v5  ;;  %v3275_v61 = vmax.f32 %v3167_v32, 0.0 }
 0x419   :  { %3041 = vmatmul.bf16.gmra.mxu2 %v6205_v18 }
 0x41a   :  { %v2838_v60 = vpop.f32.mrf.mxu1 }
 0x41b   :  { %v2839_v24 = vadd.f32 %v2838_v60, %v2670_v3  ;;  %v2694_v10 = vpop.f32.mrf.mxu0 }
 0x41c   :  { %v9791_v52 = vadd.f32 %v2694_v10, %v1848_v44  ;;  %4664 = vmatpush.bf16.msrb.mxu1 %v9359_v49  ;;  %v3002_v5 = vpop.f32.mrf.mxu2  ;;  %v6220_v49 = vld [vmem:[%s11404_s3 + $0x368] sm:$0xf] }
 0x41d   :  { %2877 = vmatmul.bf16.gmra.mxu1 %v6217_v23  ;;  %v3003_v53 = vadd.f32 %v3002_v5, %v2834_v17  ;;  %v3168_v4 = vpop.f32.mrf.mxu3  ;;  %v6221_v36 = vor.u32 %v6914_v46, %v6220_v49  ;;  %v6324_v5 = vld [vmem:[%s11408_s5 + $0x40] sm:$0xf] }
 0x41e   :  { %v3169_v6 = vadd.f32 %v3168_v4, %v3000_v28  ;;  %4497 = vmatmul.bf16.vlgmr.msrb.gmra.mxu0 %v6293_v63  ;;  %v6249_v4 = vor.u32 %v6919_v0, %v6246_v7  ;;  %v6926_v0 = vld [vmem:[%s11404_s3 + $0x3d4] sm:$0xf0] }
 0x420   :  { %v3276_v38 = vmax.f32 %v3169_v6, 0.0  ;;  %4665 = vmatpush.bf16.msrb.mxu1 %v9305_v45 }
 0x422   :  { %v2840_v30 = vpop.f32.mrf.mxu1  ;;  %3210 = vmatmul.bf16.gmra.mxu3 %v6209_v39  ;;  %v9803_v34 = vpack.c.bf16 %v3276_v38, %v3275_v61  ;;  %v6916_v38 = vld [vmem:[%s11404_s3 + $0x38c] sm:$0xf] }
 0x423   :  { %v2841_v17 = vadd.f32 %v2840_v30, %v2672_v50  ;;  %v9805_v35 = vpop.f32.mrf.mxu0  ;;  %v6238_v50 = vld [vmem:[%s11404_s3 + $0x398] sm:$0xf0] }
 0x424   :  { %v3004_v57 = vpop.f32.mrf.mxu2 }
 0x425   :  { %v3005_v45 = vadd.f32 %v3004_v57, %v2836_v12  ;;  %v3171_v54 = vpop.f32.mrf.mxu3  ;;  %v6912_v12 = vld [vmem:[%s11404_s3 + $0x36c] sm:$0xf]  ;;  %v6241_v57 = vor.u32 %v6916_v38, %v6238_v50  ;;  %v2680_v38 = vadd.f32 %v9627_v8, %v9692_v13  ;;  %v6927_v50 = vld [vmem:[%s11404_s3 + $0x3e4] sm:$0xf] }
 0x426   :  { %v3172_v51 = vadd.f32 %v3171_v54, %v3003_v53  ;;  %v6225_v42 = vor.u32 %v6912_v12, %v6222_v59  ;;  %v6941_v53 = vld [vmem:[%s11408_s5 + $0x4c] sm:$0xf0]  ;;  %v6340_v12 = vld [vmem:[%s11408_s5 + $0x60] sm:$0xf] }
 0x427   :  { %v6325_v39 = vor.u32 %v6941_v53, %v6324_v5  ;;  %v6945_v59 = vld [vmem:[%s11408_s5 + $0x6c] sm:$0xf0] }
 0x428   :  { %v3277_v32 = vmax.f32 %v3172_v51, 0.0  ;;  %v6252_v51 = vld [vmem:[%s11404_s3 + $0x3a8] sm:$0xf] }
 0x429   :  { %3046 = vmatmul.bf16.gmra.mxu2 %v6221_v36 }
 0x42a   :  { %v2843_v62 = vpop.f32.mrf.mxu1 }
 0x42b   :  { %v2844_v56 = vadd.f32 %v2843_v62, %v2675_v1  ;;  %v9821_v25 = vpop.f32.mrf.mxu0 }
 0x42c   :  { %v3007_v28 = vpop.f32.mrf.mxu2 }
 0x42d   :  { %2882 = vmatmul.bf16.gmra.mxu1 %v6233_v22  ;;  %v3008_v33 = vadd.f32 %v3007_v28, %v2839_v24  ;;  %v3173_v18 = vpop.f32.mrf.mxu3  ;;  %v6237_v24 = vor.u32 %v6918_v37, %v6236_v41  ;;  %v6253_v22 = vor.u32 %v6922_v20, %v6252_v51  ;;  %v2677_v28 = vadd.f32 %v9591_v9, %v9708_v58  ;;  %v6254_v41 = vld [vmem:[%s11404_s3 + $0x3b8] sm:$0xf0] }
 0x42e   :  { %v3174_v11 = vadd.f32 %v3173_v18, %v3005_v45  ;;  %4502 = vmatmul.bf16.gmra.mxu0 %v6309_v21  ;;  %v6923_v21 = vld [vmem:[%s11404_s3 + $0x3c4] sm:$0xf] }
 0x430   :  { %v3278_v2 = vmax.f32 %v3174_v11, 0.0 }
 0x432   :  { %v2845_v40 = vpop.f32.mrf.mxu1  ;;  %3215 = vmatmul.bf16.gmra.mxu3 %v6225_v42  ;;  %v9835_v3 = vpack.c.bf16 %v3278_v2, %v3277_v32  ;;  %v6341_v42 = vor.u32 %v6945_v59, %v6340_v12  ;;  %v6920_v2 = vld [vmem:[%s11404_s3 + $0x3ac] sm:$0xf]  ;;  %v6284_v59 = vld [vmem:[%s11404_s3 + $0x3e8] sm:$0xf] }
 0x433   :  { %v9837_v23 = vpop.f32.mrf.mxu0  ;;  %v2846_v18 = vadd.f32 %v2845_v40, %v2677_v28  ;;  %v6257_v40 = vor.u32 %v6920_v2, %v6254_v41  ;;  %v6930_v28 = vld [vmem:[%s11404_s3 + $0x3f4] sm:$0xf0] }
 0x434   :  { %v3009_v60 = vpop.f32.mrf.mxu2  ;;  %v6285_v41 = vor.u32 %v6930_v28, %v6284_v59 }
 0x435   :  { %v3010_v63 = vadd.f32 %v3009_v60, %v2841_v17  ;;  %v3176_v44 = vpop.f32.mrf.mxu3 }
 0x436   :  { %v3177_v10 = vadd.f32 %v3176_v44, %v3008_v33 }
 0x438   :  { %v3279_v45 = vmax.f32 %v3177_v10, 0.0  ;;  %v6268_v10 = vld [vmem:[%s11404_s3 + $0x3c8] sm:$0xf] }
 0x439   :  { %3051 = vmatmul.bf16.gmra.mxu2 %v6237_v24 }
 0x43a   :  { %v2848_v6 = vpop.f32.mrf.mxu1 }
 0x43b   :  { %v9851_v61 = vpop.f32.mrf.mxu0  ;;  %v2849_v8 = vadd.f32 %v2848_v6, %v2680_v38 }
 0x43c   :  { %v3012_v30 = vpop.f32.mrf.mxu2 }
 0x43d   :  { %2887 = vmatmul.bf16.gmra.mxu1 %v6249_v4  ;;  %v3013_v49 = vadd.f32 %v3012_v30, %v2844_v56  ;;  %v3178_v46 = vpop.f32.mrf.mxu3  ;;  %v6262_v56 = vld [vmem:[%s11404_s3 + $0x3d0] sm:$0xf0] }
 0x43e   :  { %v3179_v17 = vadd.f32 %v3178_v46, %v3010_v63  ;;  %4507 = vmatmul.bf16.gmra.mxu0 %v6325_v39  ;;  %v6265_v33 = vor.u32 %v6923_v21, %v6262_v56  ;;  %v6269_v39 = vor.u32 %v6926_v0, %v6268_v10  ;;  %v6278_v30 = vld [vmem:[%s11404_s3 + $0x3f0] sm:$0xf0]  ;;  %v6949_v46 = vld [vmem:[%s11408_s5 + $0x8c] sm:$0xf0] }
 0x43f   :  { %v6281_v13 = vor.u32 %v6927_v50, %v6278_v30  ;;  %v1843_v30 = vpop.permute.xlu1 %1842 }
 0x440   :  { %v3280_v54 = vmax.f32 %v3179_v17, 0.0  ;;  %v2682_v17 = vadd.f32 %v9657_v48, %v9662_v14 }
 0x442   :  { %v2850_v36 = vpop.f32.mrf.mxu1  ;;  %3220 = vmatmul.bf16.gmra.mxu3 %v6241_v57  ;;  %v9865_v55 = vpack.c.bf16 %v3280_v54, %v3279_v45 }
 0x443   :  { %v9867_v15 = vpop.f32.mrf.mxu0  ;;  %v2851_v57 = vadd.f32 %v2850_v36, %v2682_v17 }
 0x444   :  { %v3014_v31 = vpop.f32.mrf.mxu2 }
 0x445   :  { %v3181_v1 = vpop.f32.mrf.mxu3  ;;  %v3015_v37 = vadd.f32 %v3014_v31, %v2846_v18  ;;  %v6924_v31 = vld [vmem:[%s11404_s3 + $0x3cc] sm:$0xf] }
 0x446   :  { %v3182_v62 = vadd.f32 %v3181_v1, %v3013_v49  ;;  %v6356_v49 = vld [vmem:[%s11408_s5 + $0x80] sm:$0xf]  ;;  %v6270_v1 = vld [vmem:[%s11404_s3 + $0x3d8] sm:$0xf0] }
 0x447   :  { %v6357_v51 = vor.u32 %v6949_v46, %v6356_v49  ;;  %v6273_v36 = vor.u32 %v6924_v31, %v6270_v1  ;;  %v6935_v31 = vld [vmem:[%s11408_s5 + $0x24] sm:$0xf]  ;;  %v6310_v1 = vld [vmem:[%s11408_s5 + $0x30] sm:$0xf0] }
 0x448   :  { %v3281_v63 = vmax.f32 %v3182_v62, 0.0 }
 0x449   :  { %3056 = vmatmul.bf16.gmra.mxu2 %v6253_v22 }
 0x44a   :  { %v9883_v11 = vpop.f32.mrf.mxu1 }
 0x44b   :  { %v9885_v32 = vpop.f32.mrf.mxu0 }
 0x44c   :  { %v3017_v60 = vpop.f32.mrf.mxu2 }
 0x44d   :  { %2892 = vmatmul.bf16.gmra.mxu1 %v6265_v33  ;;  %v3183_v9 = vpop.f32.mrf.mxu3  ;;  %v3018_v45 = vadd.f32 %v3017_v60, %v2849_v8  ;;  %v6931_v60 = vld [vmem:[%s11408_s5 + $0x4] sm:$0xf] }
 0x44e   :  { %v3184_v58 = vadd.f32 %v3183_v9, %v3015_v37  ;;  %4512 = vmatmul.bf16.gmra.mxu0 %v6341_v42  ;;  %v1838_v37 = vpop.permute.xlu0 %1837  ;;  %v6294_v9 = vld [vmem:[%s11408_s5 + $0x10] sm:$0xf0] }
 0x450   :  { %v3282_v44 = vmax.f32 %v3184_v58, 0.0  ;;  %v6372_v58 = vld [vmem:[%s11408_s5 + $0xa0] sm:$0xf] }
 0x452   :  { %v9893_v24 = vpop.f32.mrf.mxu1  ;;  %3225 = vmatmul.bf16.gmra.mxu3 %v6257_v40  ;;  %v9901_v7 = vpack.c.bf16 %v3282_v44, %v3281_v63  ;;  %v6953_v40 = vld [vmem:[%s11408_s5 + $0xac] sm:$0xf0]  ;;  %v6297_v63 = vor.u32 %v6931_v60, %v6294_v9 }
 0x453   :  { %v9903_v5 = vpop.f32.mrf.mxu0  ;;  %v6373_v10 = vor.u32 %v6953_v40, %v6372_v58 }
 0x454   :  { %v3019_v53 = vpop.f32.mrf.mxu2 }
 0x455   :  { %v3186_v4 = vpop.f32.mrf.mxu3  ;;  %v3020_v22 = vadd.f32 %v3019_v53, %v2851_v57 }
 0x456   :  { %v3187_v62 = vadd.f32 %v3186_v4, %v3018_v45  ;;  %v6928_v4 = vld [vmem:[%s11404_s3 + $0x3ec] sm:$0xf]  ;;  %v1853_v46 = vpop.permute.xlu0 %1852 }
 0x457   :  { %v2697_v17 = vadd.f32 %v9805_v35, %v1853_v46  ;;  %v6388_v35 = vld [vmem:[%s11408_s5 + $0xc0] sm:$0xf] }
 0x458   :  { %v3283_v21 = vmax.f32 %v3187_v62, 0.0  ;;  %v1858_v62 = vpop.permute.xlu1 %1857 }
 0x459   :  { %3061 = vmatmul.bf16.gmra.mxu2 %v6269_v39  ;;  %v6286_v39 = vld [vmem:[%s11404_s3 + $0x3f8] sm:$0xf0] }
 0x45a   :  { %v2858_v54 = vpop.f32.mrf.mxu1  ;;  %v6289_v49 = vor.u32 %v6928_v4, %v6286_v39 }
 0x45b   :  { %v9921_v20 = vpop.f32.mrf.mxu0 }
 0x45c   :  { %v9929_v48 = vpop.f32.mrf.mxu2 }
 0x45d   :  { %2897 = vmatmul.bf16.gmra.mxu1 %v6281_v13  ;;  %v3188_v14 = vpop.f32.mrf.mxu3 }
 0x45e   :  { %v3189_v6 = vadd.f32 %v3188_v14, %v3020_v22  ;;  %4517 = vmatmul.bf16.gmra.mxu0 %v6357_v51  ;;  %v2690_v51 = vadd.f32 %v9746_v16, %v1838_v37  ;;  %v6957_v22 = vld [vmem:[%s11408_s5 + $0xcc] sm:$0xf0]  ;;  %v2687_v16 = vadd.f32 %v9722_v26, %v9727_v29  ;;  %v2692_v14 = vadd.f32 %v9767_v27, %v1843_v30 }
 0x45f   :  { %v6389_v60 = vor.u32 %v6957_v22, %v6388_v35 }
 0x460   :  { %v3284_v56 = vmax.f32 %v3189_v6, 0.0  ;;  %v2859_v6 = vadd.f32 %v2858_v54, %v2690_v51  ;;  %v2856_v59 = vadd.f32 %v9893_v24, %v2687_v16 }
 0x462   :  { %v2860_v12 = vpop.f32.mrf.mxu1  ;;  %3230 = vmatmul.bf16.gmra.mxu3 %v6273_v36  ;;  %v9937_v33 = vpack.c.bf16 %v3284_v56, %v3283_v21  ;;  %v2685_v36 = vadd.f32 %v9697_v47, %v9730_v43  ;;  %v2700_v21 = vadd.f32 %v9821_v25, %v1858_v62  ;;  %v6313_v56 = vor.u32 %v6935_v31, %v6310_v1 }
 0x463   :  { %v9939_v18 = vpop.f32.mrf.mxu0  ;;  %v2861_v28 = vadd.f32 %v2860_v12, %v2692_v14  ;;  %v1863_v12 = vpop.permute.xlu2 %1862 }
 0x464   :  { %v3024_v42 = vpop.f32.mrf.mxu2  ;;  %v2854_v26 = vadd.f32 %v9883_v11, %v2685_v36  ;;  %v2702_v39 = vadd.f32 %v9837_v23, %v1863_v12  ;;  %v6326_v23 = vld [vmem:[%s11408_s5 + $0x50] sm:$0xf0] }
 0x465   :  { %v3191_v2 = vpop.f32.mrf.mxu3  ;;  %v3025_v29 = vadd.f32 %v3024_v42, %v2856_v59 }
 0x466   :  { %v3023_v43 = vadd.f32 %v9929_v48, %v2854_v26 }
 0x469   :  { %3066 = vmatmul.bf16.gmra.mxu2 %v6285_v41 }
 0x46a   :  { %v2863_v44 = vpop.f32.mrf.mxu1 }
 0x46b   :  { %v2864_v0 = vadd.f32 %v2863_v44, %v9791_v52  ;;  %v9954_v53 = vpop.f32.mrf.mxu0  ;;  %v3192_v44 = vadd.f32 %v3191_v2, %v3023_v43  ;;  %v6939_v2 = vld [vmem:[%s11408_s5 + $0x44] sm:$0xf] }
 0x46c   :  { %v3027_v38 = vpop.f32.mrf.mxu2  ;;  %v6329_v31 = vor.u32 %v6939_v2, %v6326_v23  ;;  %v6947_v23 = vld [vmem:[%s11408_s5 + $0x84] sm:$0xf] }
 0x46d   :  { %v3193_v50 = vpop.f32.mrf.mxu3  ;;  %4666 = vmatmul.bf16.vlgmr.msrb.gmra.mxu1 %v6297_v63  ;;  %v3028_v41 = vadd.f32 %v3027_v38, %v2859_v6 }
 0x46e   :  { %4522 = vmatmul.bf16.gmra.mxu0 %v6373_v10  ;;  %v3194_v25 = vadd.f32 %v3193_v50, %v3025_v29  ;;  %v6943_v29 = vld [vmem:[%s11408_s5 + $0x64] sm:$0xf] }
 0x470   :  { %v3286_v38 = vmax.f32 %v3194_v25, 0.0 }
 0x472   :  { %v2865_v52 = vpop.f32.mrf.mxu1  ;;  %3235 = vmatmul.bf16.gmra.mxu3 %v6289_v49 }
 0x473   :  { %v9963_v8 = vadd.f32 %v2865_v52, %v2697_v17  ;;  %v9965_v13 = vpop.f32.mrf.mxu0  ;;  %v6404_v52 = vld [vmem:[%s11408_s5 + $0xe0] sm:$0xf] }
 0x474   :  { %v3029_v57 = vpop.f32.mrf.mxu2 }
 0x475   :  { %v3196_v45 = vpop.f32.mrf.mxu3  ;;  %v3030_v27 = vadd.f32 %v3029_v57, %v2861_v28  ;;  %v6961_v57 = vld [vmem:[%s11408_s5 + $0xec] sm:$0xf0] }
 0x476   :  { %v3197_v54 = vadd.f32 %v3196_v45, %v3028_v41  ;;  %v1868_v45 = vpop.permute.xlu0 %1867  ;;  %v6405_v35 = vor.u32 %v6961_v57, %v6404_v52  ;;  %v6969_v52 = vld [vmem:[%s11408_s5 + $0x12c] sm:$0xf0] }
 0x477   :  { %v2705_v51 = vadd.f32 %v9851_v61, %v1868_v45 }
 0x478   :  { %v3287_v10 = vmax.f32 %v3197_v54, 0.0 }
 0x47a   :  { %v2868_v37 = vpop.f32.mrf.mxu1 }
 0x47b   :  { %v2869_v9 = vadd.f32 %v2868_v37, %v2700_v21  ;;  %v9987_v58 = vpop.f32.mrf.mxu0 }
 0x47c   :  { %v3032_v40 = vpop.f32.mrf.mxu2 }
 0x47d   :  { %v3033_v63 = vadd.f32 %v3032_v40, %v2864_v0  ;;  %v3198_v47 = vpop.f32.mrf.mxu3  ;;  %4671 = vmatmul.bf16.gmra.mxu1 %v6313_v56  ;;  %v3285_v0 = vmax.f32 %v3192_v44, 0.0  ;;  %v1873_v56 = vpop.permute.xlu1 %1872  ;;  %v6300_v44 = vld [vmem:[%s11408_s5 + $0x8] sm:$0xf] }
 0x47e   :  { %v3199_v24 = vadd.f32 %v3198_v47, %v3030_v27  ;;  %4527 = vmatmul.bf16.gmra.mxu0 %v6389_v60  ;;  %v2707_v61 = vadd.f32 %v9867_v15, %v1873_v56  ;;  %v6420_v15 = vld [vmem:[%s11408_s5 + $0x100] sm:$0xf]  ;;  %v6965_v27 = vld [vmem:[%s11408_s5 + $0x10c] sm:$0xf0] }
 0x47f   :  { %v3327_v50 = vpack.c.bf16 %v3286_v38, %v3285_v0  ;;  %v6421_v47 = vor.u32 %v6965_v27, %v6420_v15  ;;  %v1883_v38 = vpop.permute.xlu0 %1882  ;;  %v6374_v15 = vld [vmem:[%s11408_s5 + $0xb0] sm:$0xf0]  ;;  %v6452_v27 = vld [vmem:[%s11408_s5 + $0x140] sm:$0xf] }
 0x480   :  { %v3288_v4 = vmax.f32 %v3199_v24, 0.0 }
 0x482   :  { %v2870_v11 = vpop.f32.mrf.mxu1  ;;  %v3328_v42 = vpack.c.bf16 %v3288_v4, %v3287_v10 }
 0x483   :  { %v2871_v30 = vadd.f32 %v2870_v11, %v2702_v39  ;;  %v9992_v49 = vpop.f32.mrf.mxu0 }
 0x484   :  { %4827 = vmatpush.bf16.msrb.mxu2 %v3328_v42  ;;  %v3034_v46 = vpop.f32.mrf.mxu2 }
 0x485   :  { %v3201_v17 = vpop.f32.mrf.mxu3  ;;  %v3035_v16 = vadd.f32 %v3034_v46, %v9963_v8  ;;  %v1888_v57 = vpop.permute.xlu1 %1887 }
 0x486   :  { %v3202_v48 = vadd.f32 %v3201_v17, %v3033_v63  ;;  %v2715_v45 = vadd.f32 %v9921_v20, %v1888_v57 }
 0x487   :  { %v1898_v57 = vpop.permute.xlu0 %1897 }
 0x488   :  { %4828 = vmatpush.bf16.msrb.mxu2 %v3327_v50  ;;  %v3289_v59 = vmax.f32 %v3202_v48, 0.0 }
 0x48a   :  { %v2873_v1 = vpop.f32.mrf.mxu1 }
 0x48b   :  { %v2874_v22 = vadd.f32 %v2873_v1, %v2705_v51  ;;  %v10007_v62 = vpop.f32.mrf.mxu0 }
 0x48c   :  { %4829 = vmatpush.bf16.msrb.mxu2 %v9937_v33  ;;  %v3037_v14 = vpop.f32.mrf.mxu2 }
 0x48d   :  { %v3038_v6 = vadd.f32 %v3037_v14, %v2869_v9  ;;  %v3203_v36 = vpop.f32.mrf.mxu3  ;;  %4676 = vmatmul.bf16.gmra.mxu1 %v6329_v31 }
 0x48e   :  { %v3204_v21 = vadd.f32 %v3203_v36, %v3035_v16  ;;  %4532 = vmatmul.bf16.gmra.mxu0 %v6405_v35  ;;  %v6938_v36 = vld [vmem:[%s11408_s5 + $0x34] sm:$0xf0] }
 0x490   :  { %v3290_v28 = vmax.f32 %v3204_v21, 0.0  ;;  %4830 = vmatpush.bf16.msrb.mxu2 %v9901_v7  ;;  %v6342_v7 = vld [vmem:[%s11408_s5 + $0x70] sm:$0xf0] }
 0x491   :  { %v6345_v40 = vor.u32 %v6943_v29, %v6342_v7  ;;  %v6951_v7 = vld [vmem:[%s11408_s5 + $0xa4] sm:$0xf] }
 0x492   :  { %v2875_v41 = vpop.f32.mrf.mxu1  ;;  %v10013_v37 = vpack.c.bf16 %v3290_v28, %v3289_v59 }
 0x493   :  { %v2876_v60 = vadd.f32 %v2875_v41, %v2707_v61  ;;  %v10015_v8 = vpop.f32.mrf.mxu0 }
 0x494   :  { %4831 = vmatpush.bf16.msrb.mxu2 %v9865_v55  ;;  %v3039_v33 = vpop.f32.mrf.mxu2  ;;  %v1878_v55 = vpop.permute.xlu2 %1877 }
 0x495   :  { %v3206_v9 = vpop.f32.mrf.mxu3  ;;  %v2710_v54 = vadd.f32 %v9885_v32, %v1878_v55  ;;  %v3040_v24 = vadd.f32 %v3039_v33, %v2871_v30  ;;  %v6973_v55 = vld [vmem:[%s11408_s5 + $0x14c] sm:$0xf0] }
 0x496   :  { %v3207_v26 = vadd.f32 %v3206_v9, %v3038_v6  ;;  %v6316_v6 = vld [vmem:[%s11408_s5 + $0x28] sm:$0xf] }
 0x497   :  { %v6317_v59 = vor.u32 %v6938_v36, %v6316_v6 }
 0x498   :  { %4832 = vmatpush.bf16.msrb.mxu2 %v9835_v3  ;;  %v6934_v3 = vld [vmem:[%s11408_s5 + $0x14] sm:$0xf0]  ;;  %v3291_v11 = vmax.f32 %v3207_v26, 0.0 }
 0x499   :  { %v6301_v39 = vor.u32 %v6934_v3, %v6300_v44  ;;  %v6942_v44 = vld [vmem:[%s11408_s5 + $0x54] sm:$0xf0] }
 0x49a   :  { %v2878_v63 = vpop.f32.mrf.mxu1 }
 0x49b   :  { %v2879_v43 = vadd.f32 %v2878_v63, %v2710_v54  ;;  %v10032_v25 = vpop.f32.mrf.mxu0  ;;  %v6377_v54 = vor.u32 %v6951_v7, %v6374_v15  ;;  %v6453_v63 = vor.u32 %v6973_v55, %v6452_v27 }
 0x49c   :  { %4833 = vmatpush.bf16.msrb.mxu2 %v9803_v34  ;;  %v3042_v12 = vpop.f32.mrf.mxu2  ;;  %v2712_v34 = vadd.f32 %v9903_v5, %v1883_v38  ;;  %v6436_v5 = vld [vmem:[%s11408_s5 + $0x120] sm:$0xf] }
 0x49d   :  { %v3043_v10 = vadd.f32 %v3042_v12, %v2874_v22  ;;  %v3208_v32 = vpop.f32.mrf.mxu3  ;;  %4681 = vmatmul.bf16.gmra.mxu1 %v6345_v40  ;;  %v6437_v1 = vor.u32 %v6969_v52, %v6436_v5  ;;  %v6332_v12 = vld [vmem:[%s11408_s5 + $0x48] sm:$0xf]  ;;  %v6977_v5 = vld [vmem:[%s11408_s5 + $0x16c] sm:$0xf0] }
 0x49e   :  { %v3209_v4 = vadd.f32 %v3208_v32, %v3040_v24  ;;  %4537 = vmatmul.bf16.gmra.mxu0 %v6421_v47 }
 0x4a0   :  { %v3292_v42 = vmax.f32 %v3209_v4, 0.0  ;;  %4834 = vmatpush.bf16.msrb.mxu2 %v9765_v19  ;;  %v6358_v19 = vld [vmem:[%s11408_s5 + $0x90] sm:$0xf0]  ;;  %v6333_v4 = vor.u32 %v6942_v44, %v6332_v12  ;;  %v6981_v12 = vld [vmem:[%s11408_s5 + $0x18c] sm:$0xf0] }
 0x4a1   :  { %v6361_v51 = vor.u32 %v6947_v23, %v6358_v19  ;;  %v6390_v23 = vld [vmem:[%s11408_s5 + $0xd0] sm:$0xf0]  ;;  %v6468_v19 = vld [vmem:[%s11408_s5 + $0x160] sm:$0xf] }
 0x4a2   :  { %v2880_v30 = vpop.f32.mrf.mxu1  ;;  %v10043_v0 = vpack.c.bf16 %v3292_v42, %v3291_v11  ;;  %v1893_v11 = vpop.permute.xlu2 %1892 }
 0x4a3   :  { %v2881_v46 = vadd.f32 %v2880_v30, %v2712_v34  ;;  %v10045_v17 = vpop.f32.mrf.mxu0  ;;  %4835 = vmatmul.bf16.vlgmr.msrb.gmra.mxu2 %v6301_v39  ;;  %v2717_v52 = vadd.f32 %v9939_v18, %v1893_v11  ;;  %v6946_v18 = vld [vmem:[%s11408_s5 + $0x74] sm:$0xf0] }
 0x4a4   :  { %v3044_v48 = vpop.f32.mrf.mxu2 }
 0x4a5   :  { %v3211_v50 = vpop.f32.mrf.mxu3  ;;  %v3045_v16 = vadd.f32 %v3044_v48, %v2876_v60 }
 0x4a6   :  { %v3212_v2 = vadd.f32 %v3211_v50, %v3043_v10 }
 0x4a8   :  { %v3293_v28 = vmax.f32 %v3212_v2, 0.0  ;;  %v6955_v2 = vld [vmem:[%s11408_s5 + $0xc4] sm:$0xf] }
 0x4aa   :  { %v2883_v31 = vpop.f32.mrf.mxu1 }
 0x4ab   :  { %v2884_v35 = vadd.f32 %v2883_v31, %v2715_v45  ;;  %v10060_v22 = vpop.f32.mrf.mxu0  ;;  %v6393_v45 = vor.u32 %v6955_v2, %v6390_v23 }
 0x4ac   :  { %v3047_v14 = vpop.f32.mrf.mxu2 }
 0x4ad   :  { %v3048_v21 = vadd.f32 %v3047_v14, %v2879_v43  ;;  %v3213_v56 = vpop.f32.mrf.mxu3  ;;  %4686 = vmatmul.bf16.gmra.mxu1 %v6361_v51  ;;  %v1903_v14 = vpop.permute.xlu1 %1902 }
 0x4ae   :  { %v3214_v20 = vadd.f32 %v3213_v56, %v3045_v16  ;;  %4542 = vmatmul.bf16.gmra.mxu0 %v6437_v1  ;;  %v6469_v1 = vor.u32 %v6977_v5, %v6468_v19  ;;  %v2722_v44 = vadd.f32 %v9965_v13, %v1903_v14  ;;  %v6950_v13 = vld [vmem:[%s11408_s5 + $0x94] sm:$0xf0] }
 0x4b0   :  { %v3294_v61 = vmax.f32 %v3214_v20, 0.0 }
 0x4b2   :  { %v2885_v41 = vpop.f32.mrf.mxu1  ;;  %v10068_v33 = vpack.c.bf16 %v3294_v61, %v3293_v28 }
 0x4b3   :  { %v10070_v60 = vpop.f32.mrf.mxu0  ;;  %4840 = vmatmul.bf16.gmra.mxu2 %v6317_v59  ;;  %v2886_v51 = vadd.f32 %v2885_v41, %v2717_v52 }
 0x4b4   :  { %v3049_v9 = vpop.f32.mrf.mxu2 }
 0x4b5   :  { %v3216_v26 = vpop.f32.mrf.mxu3  ;;  %v3050_v43 = vadd.f32 %v3049_v9, %v2881_v46  ;;  %v10131_v55 = vpop.permute.xlu1 %1917 }
 0x4b6   :  { %v3217_v29 = vadd.f32 %v3216_v26, %v3048_v21  ;;  %v6348_v21 = vld [vmem:[%s11408_s5 + $0x68] sm:$0xf]  ;;  %v10125_v26 = vpop.permute.xlu0 %1912 }
 0x4b7   :  { %v6349_v59 = vor.u32 %v6946_v18, %v6348_v21  ;;  %v6422_v21 = vld [vmem:[%s11408_s5 + $0x110] sm:$0xf0] }
 0x4b8   :  { %v3295_v39 = vmax.f32 %v3217_v29, 0.0 }
 0x4ba   :  { %v2888_v40 = vpop.f32.mrf.mxu1 }
 0x4bb   :  { %v10084_v47 = vpop.f32.mrf.mxu0 }
 0x4bc   :  { %v3052_v24 = vpop.f32.mrf.mxu2 }
 0x4bd   :  { %v3053_v3 = vadd.f32 %v3052_v24, %v2884_v35  ;;  %v3218_v10 = vpop.f32.mrf.mxu3  ;;  %4691 = vmatmul.bf16.gmra.mxu1 %v6377_v54  ;;  %v10111_v35 = vpop.permute.xlu2 %1907  ;;  %v2720_v54 = vadd.f32 %v9954_v53, %v1898_v57  ;;  %v6484_v24 = vld [vmem:[%s11408_s5 + $0x180] sm:$0xf] }
 0x4be   :  { %v3219_v32 = vadd.f32 %v3218_v10, %v3050_v43  ;;  %4547 = vmatmul.bf16.gmra.mxu0 %v6453_v63  ;;  %v6959_v63 = vld [vmem:[%s11408_s5 + $0xe4] sm:$0xf]  ;;  %v6406_v43 = vld [vmem:[%s11408_s5 + $0xf0] sm:$0xf0]  ;;  %v3537_v5 = vpop.permute.xlu1 %3536 }
 0x4bf   :  { %v6409_v53 = vor.u32 %v6959_v63, %v6406_v43 }
 0x4c0   :  { %v3296_v38 = vmax.f32 %v3219_v32, 0.0 }
 0x4c2   :  { %v2890_v42 = vpop.f32.mrf.mxu1  ;;  %v10092_v34 = vpack.c.bf16 %v3296_v38, %v3295_v39  ;;  %v6485_v39 = vor.u32 %v6981_v12, %v6484_v24  ;;  %v6380_v24 = vld [vmem:[%s11408_s5 + $0xa8] sm:$0xf]  ;;  %v6954_v12 = vld [vmem:[%s11408_s5 + $0xb4] sm:$0xf0] }
 0x4c3   :  { %v10094_v30 = vpop.f32.mrf.mxu0  ;;  %4845 = vmatmul.bf16.gmra.mxu2 %v6333_v4  ;;  %v2891_v10 = vadd.f32 %v2890_v42, %v2722_v44 }
 0x4c4   :  { %v3054_v46 = vpop.f32.mrf.mxu2 }
 0x4c5   :  { %v3221_v48 = vpop.f32.mrf.mxu3  ;;  %v3055_v6 = vadd.f32 %v3054_v46, %v2886_v51  ;;  %v10129_v15 = vpop.permute.xlu2 %1922 }
 0x4c6   :  { %v3222_v50 = vadd.f32 %v3221_v48, %v3053_v3  ;;  %v2889_v3 = vadd.f32 %v2888_v40, %v2720_v54  ;;  %v3532_v40 = vpop.permute.xlu0 %3531 }
 0x4c8   :  { %v3297_v28 = vmax.f32 %v3222_v50, 0.0  ;;  %v6364_v50 = vld [vmem:[%s11408_s5 + $0x88] sm:$0xf] }
 0x4c9   :  { %v6365_v19 = vor.u32 %v6950_v13, %v6364_v50 }
 0x4ca   :  { %v10109_v31 = vpop.f32.mrf.mxu1 }
 0x4cb   :  { %v10113_v16 = vpop.f32.mrf.mxu0 }
 0x4cc   :  { %v3057_v36 = vpop.f32.mrf.mxu2 }
 0x4cd   :  { %v3223_v56 = vpop.f32.mrf.mxu3  ;;  %4696 = vmatmul.bf16.gmra.mxu1 %v6393_v45  ;;  %v3058_v32 = vadd.f32 %v3057_v36, %v2889_v3  ;;  %v3542_v23 = vpop.permute.xlu2 %3541  ;;  %v6963_v36 = vld [vmem:[%s11408_s5 + $0x104] sm:$0xf]  ;;  %v6381_v3 = vor.u32 %v6954_v12, %v6380_v24 }
 0x4ce   :  { %v3224_v20 = vadd.f32 %v3223_v56, %v3055_v6  ;;  %4552 = vmatmul.bf16.gmra.mxu0 %v6469_v1  ;;  %v10169_v18 = vpop.permute.xlu0 %3546  ;;  %v6500_v56 = vld [vmem:[%s11408_s5 + $0x1a0] sm:$0xf] }
 0x4d0   :  { %v3298_v61 = vmax.f32 %v3224_v20, 0.0  ;;  %v6985_v20 = vld [vmem:[%s11408_s5 + $0x1ac] sm:$0xf0] }
 0x4d1   :  { %v6501_v54 = vor.u32 %v6985_v20, %v6500_v56 }
 0x4d2   :  { %v10121_v41 = vpop.f32.mrf.mxu1  ;;  %v10123_v9 = vpack.c.bf16 %v3298_v61, %v3297_v28  ;;  %v4499_v28 = vadd.f32 %v10032_v25, %v3532_v40  ;;  %v6425_v61 = vor.u32 %v6963_v36, %v6422_v21  ;;  %v2730_v40 = vadd.f32 %v10007_v62, %v10131_v55 }
 0x4d3   :  { %v10127_v29 = vpop.f32.mrf.mxu0  ;;  %4850 = vmatmul.bf16.gmra.mxu2 %v6349_v59  ;;  %v2732_v62 = vadd.f32 %v10015_v8, %v10129_v15 }
 0x4d4   :  { %v3059_v7 = vpop.f32.mrf.mxu2 }
 0x4d5   :  { %v3226_v27 = vpop.f32.mrf.mxu3  ;;  %v3060_v11 = vadd.f32 %v3059_v7, %v2891_v10  ;;  %v10177_v59 = vpop.permute.xlu2 %3556  ;;  %v4501_v10 = vadd.f32 %v10045_v17, %v3537_v5  ;;  %v6438_v17 = vld [vmem:[%s11408_s5 + $0x130] sm:$0xf0]  ;;  %v2727_v5 = vadd.f32 %v9992_v49, %v10125_v26 }
 0x4d6   :  { %v3227_v46 = vadd.f32 %v3226_v27, %v3058_v32  ;;  %v10180_v7 = vpop.permute.xlu1 %3551 }
 0x4d7   :  { %v2896_v56 = vadd.f32 %v10121_v41, %v2727_v5  ;;  %v6958_v41 = vld [vmem:[%s11408_s5 + $0xd4] sm:$0xf0]  ;;  %v6532_v5 = vld [vmem:[%s11408_s5 + $0x1e0] sm:$0xf] }
 0x4d8   :  { %v3299_v52 = vmax.f32 %v3227_v46, 0.0 }
 0x4da   :  { %v2898_v4 = vpop.f32.mrf.mxu1 }
 0x4db   :  { %v10147_v38 = vpop.f32.mrf.mxu0  ;;  %v2899_v55 = vadd.f32 %v2898_v4, %v2730_v40 }
 0x4dc   :  { %v10149_v48 = vpop.f32.mrf.mxu2 }
 0x4dd   :  { %v3228_v2 = vpop.f32.mrf.mxu3  ;;  %4701 = vmatmul.bf16.gmra.mxu1 %v6409_v53  ;;  %v10192_v53 = vpop.permute.xlu0 %3561 }
 0x4de   :  { %v3229_v42 = vadd.f32 %v3228_v2, %v3060_v11  ;;  %4557 = vmatmul.bf16.gmra.mxu0 %v6485_v39  ;;  %v10195_v39 = vpop.permute.xlu2 %3571  ;;  %v10201_v50 = vpop.permute.xlu1 %3566  ;;  %v6967_v2 = vld [vmem:[%s11408_s5 + $0x124] sm:$0xf] }
 0x4df   :  { %v6441_v21 = vor.u32 %v6967_v2, %v6438_v17 }
 0x4e0   :  { %v3300_v57 = vmax.f32 %v3229_v42, 0.0  ;;  %v6516_v42 = vld [vmem:[%s11408_s5 + $0x1c0] sm:$0xf] }
 0x4e2   :  { %v2900_v45 = vpop.f32.mrf.mxu1  ;;  %v10157_v51 = vpack.c.bf16 %v3300_v57, %v3299_v52  ;;  %v2725_v52 = vadd.f32 %v9987_v58, %v10111_v35  ;;  %v4504_v57 = vadd.f32 %v10060_v22, %v3542_v23  ;;  %v6396_v22 = vld [vmem:[%s11408_s5 + $0xc8] sm:$0xf] }
 0x4e3   :  { %v10159_v1 = vpop.f32.mrf.mxu0  ;;  %4855 = vmatmul.bf16.gmra.mxu2 %v6365_v19  ;;  %v6989_v19 = vld [vmem:[%s11408_s5 + $0x1cc] sm:$0xf0]  ;;  %v2901_v20 = vadd.f32 %v2900_v45, %v2732_v62  ;;  %v6397_v12 = vor.u32 %v6958_v41, %v6396_v22  ;;  %v6975_v22 = vld [vmem:[%s11408_s5 + $0x164] sm:$0xf] }
 0x4e4   :  { %v3064_v14 = vpop.f32.mrf.mxu2  ;;  %v2894_v8 = vadd.f32 %v10109_v31, %v2725_v52  ;;  %v6993_v62 = vld [vmem:[%s11408_s5 + $0x1ec] sm:$0xf0]  ;;  %v4509_v52 = vadd.f32 %v10084_v47, %v10180_v7 }
 0x4e5   :  { %v10161_v6 = vpop.f32.mrf.mxu3  ;;  %v3065_v15 = vadd.f32 %v3064_v14, %v2896_v56 }
 0x4e6   :  { %v10238_v4 = vpop.permute.xlu2 %3586  ;;  %v10240_v45 = vpop.permute.xlu1 %3581  ;;  %v3063_v24 = vadd.f32 %v10149_v48, %v2894_v8 }
 0x4ea   :  { %v4667_v27 = vpop.f32.mrf.mxu1 }
 0x4eb   :  { %v10182_v63 = vadd.f32 %v4667_v27, %v4499_v28  ;;  %v10184_v43 = vpop.f32.mrf.mxu0  ;;  %v6517_v27 = vor.u32 %v6989_v19, %v6516_v42 }
 0x4ec   :  { %v3067_v25 = vpop.f32.mrf.mxu2 }
 0x4ed   :  { %v3233_v44 = vpop.f32.mrf.mxu3  ;;  %4706 = vmatmul.bf16.gmra.mxu1 %v6425_v61  ;;  %v3068_v28 = vadd.f32 %v3067_v25, %v2899_v55  ;;  %v3232_v25 = vadd.f32 %v10161_v6, %v3063_v24  ;;  %v6971_v6 = vld [vmem:[%s11408_s5 + $0x144] sm:$0xf] }
 0x4ee   :  { %4562 = vmatmul.bf16.gmra.mxu0 %v6501_v54  ;;  %v10225_v54 = vpop.permute.xlu0 %3576  ;;  %v3234_v31 = vadd.f32 %v3233_v44, %v3065_v15  ;;  %v10266_v55 = vpop.permute.xlu1 %3596 }
 0x4ef   :  { %v3301_v48 = vmax.f32 %v3232_v25, 0.0  ;;  %v6428_v25 = vld [vmem:[%s11408_s5 + $0x108] sm:$0xf] }
 0x4f2   :  { %v4669_v32 = vpop.f32.mrf.mxu1 }
 0x4f3   :  { %v10197_v11 = vadd.f32 %v4669_v32, %v4501_v10  ;;  %v10199_v46 = vpop.f32.mrf.mxu0  ;;  %4860 = vmatmul.bf16.gmra.mxu2 %v6381_v3  ;;  %v4506_v32 = vadd.f32 %v10070_v60, %v10169_v18  ;;  %v6454_v60 = vld [vmem:[%s11408_s5 + $0x150] sm:$0xf0]  ;;  %v10258_v18 = vpop.permute.xlu2 %3601 }
 0x4f4   :  { %v3069_v36 = vpop.f32.mrf.mxu2 }
 0x4f5   :  { %v3236_v13 = vpop.f32.mrf.mxu3  ;;  %v3070_v58 = vadd.f32 %v3069_v36, %v2901_v20 }
 0x4f6   :  { %v3237_v35 = vadd.f32 %v3236_v13, %v3068_v28  ;;  %v3302_v13 = vmax.f32 %v3234_v31, 0.0  ;;  %v10250_v44 = vpop.permute.xlu0 %3591  ;;  %v6412_v28 = vld [vmem:[%s11408_s5 + $0xe8] sm:$0xf]  ;;  %v10288_v8 = vpop.permute.xlu1 %3611 }
 0x4f8   :  { %v3303_v3 = vmax.f32 %v3237_v35, 0.0  ;;  %v3335_v19 = vpack.c.bf16 %v3302_v13, %v3301_v48 }
 0x4fa   :  { %v4672_v61 = vpop.f32.mrf.mxu1 }
 0x4fb   :  { %v10227_v49 = vadd.f32 %v4672_v61, %v4504_v57  ;;  %v10229_v26 = vpop.f32.mrf.mxu0  ;;  %v6457_v57 = vor.u32 %v6971_v6, %v6454_v60  ;;  %v6962_v61 = vld [vmem:[%s11408_s5 + $0xf4] sm:$0xf0] }
 0x4fc   :  { %v6413_v7 = vor.u32 %v6962_v61, %v6412_v28 }
 0x4fd   :  { %v3238_v23 = vpop.f32.mrf.mxu3  ;;  %4711 = vmatmul.bf16.gmra.mxu1 %v6441_v21  ;;  %v6533_v21 = vor.u32 %v6993_v62, %v6532_v5  ;;  %v6979_v5 = vld [vmem:[%s11408_s5 + $0x184] sm:$0xf]  ;;  %v6564_v62 = vld [vmem:[%s11408_s5 + $0x220] sm:$0xf] }
 0x4fe   :  { %v3239_v14 = vadd.f32 %v3238_v23, %v3070_v58  ;;  %4567 = vmatmul.bf16.gmra.mxu0 %v6517_v27  ;;  %v10281_v47 = vpop.permute.xlu0 %3606  ;;  %v10284_v27 = vpop.permute.xlu2 %3616 }
 0x500   :  { %v3304_v10 = vmax.f32 %v3239_v14, 0.0 }
 0x502   :  { %v4674_v40 = vpop.f32.mrf.mxu1  ;;  %v3336_v2 = vpack.c.bf16 %v3304_v10, %v3303_v3  ;;  %v10319_v3 = vpop.permute.xlu1 %3626 }
 0x503   :  { %v10246_v17 = vadd.f32 %v4674_v40, %v4506_v32  ;;  %v10248_v42 = vpop.f32.mrf.mxu0  ;;  %4865 = vmatmul.bf16.gmra.mxu2 %v6397_v12 }
 0x504   :  { %4996 = vmatpush.bf16.msrb.mxu3 %v3336_v2 }
 0x506   :  { %v10308_v41 = vpop.permute.xlu0 %3621  ;;  %v10312_v14 = vpop.permute.xlu2 %3631 }
 0x508   :  { %4997 = vmatpush.bf16.msrb.mxu3 %v3335_v19 }
 0x50a   :  { %v4677_v36 = vpop.f32.mrf.mxu1  ;;  %v10342_v6 = vpop.permute.xlu1 %3641 }
 0x50b   :  { %v10270_v56 = vadd.f32 %v4677_v36, %v4509_v52  ;;  %v10272_v20 = vpop.f32.mrf.mxu0  ;;  %v7001_v52 = vld [vmem:[%s11408_s5 + $0x22c] sm:$0xf0] }
 0x50c   :  { %4998 = vmatpush.bf16.msrb.mxu3 %v10157_v51  ;;  %v4511_v51 = vadd.f32 %v10094_v30, %v10177_v59  ;;  %v6548_v30 = vld [vmem:[%s11408_s5 + $0x200] sm:$0xf]  ;;  %v6997_v59 = vld [vmem:[%s11408_s5 + $0x20c] sm:$0xf0]  ;;  %v6565_v28 = vor.u32 %v7001_v52, %v6564_v62  ;;  %v6460_v52 = vld [vmem:[%s11408_s5 + $0x148] sm:$0xf] }
 0x50d   :  { %4716 = vmatmul.bf16.gmra.mxu1 %v6457_v57  ;;  %v6549_v31 = vor.u32 %v6997_v59, %v6548_v30  ;;  %v4519_v57 = vadd.f32 %v10147_v38, %v10195_v39  ;;  %v6318_v38 = vld [vmem:[%s11408_s5 + $0x38] sm:$0xf0] }
 0x50e   :  { %4572 = vmatmul.bf16.gmra.mxu0 %v6533_v21  ;;  %v10336_v2 = vpop.permute.xlu0 %3636  ;;  %v10340_v19 = vpop.permute.xlu2 %3646 }
 0x510   :  { %4999 = vmatpush.bf16.msrb.mxu3 %v10123_v9  ;;  %v6470_v9 = vld [vmem:[%s11408_s5 + $0x170] sm:$0xf0] }
 0x511   :  { %v6473_v23 = vor.u32 %v6975_v22, %v6470_v9 }
 0x512   :  { %v4679_v15 = vpop.f32.mrf.mxu1 }
 0x513   :  { %v10290_v58 = vadd.f32 %v4679_v15, %v4511_v51  ;;  %v10292_v35 = vpop.f32.mrf.mxu0  ;;  %4870 = vmatmul.bf16.gmra.mxu2 %v6413_v7  ;;  %v6970_v7 = vld [vmem:[%s11408_s5 + $0x134] sm:$0xf0]  ;;  %v6936_v51 = vld [vmem:[%s11408_s5 + $0x2c] sm:$0xf] }
 0x514   :  { %5000 = vmatpush.bf16.msrb.mxu3 %v10092_v34  ;;  %v4514_v34 = vadd.f32 %v10113_v16, %v10192_v53  ;;  %v6932_v16 = vld [vmem:[%s11408_s5 + $0xc] sm:$0xf]  ;;  %v6302_v53 = vld [vmem:[%s11408_s5 + $0x18] sm:$0xf0]  ;;  %v6321_v59 = vor.u32 %v6936_v51, %v6318_v38  ;;  %v4526_v51 = vadd.f32 %v10199_v46, %v10238_v4  ;;  %v6518_v46 = vld [vmem:[%s11408_s5 + $0x1d0] sm:$0xf0] }
 0x515   :  { %v6305_v13 = vor.u32 %v6932_v16, %v6302_v53  ;;  %v6502_v16 = vld [vmem:[%s11408_s5 + $0x1b0] sm:$0xf0] }
 0x516   :  { %v10377_v39 = vpop.permute.xlu0 %3651  ;;  %v10379_v22 = vpop.permute.xlu2 %3661 }
 0x518   :  { %5001 = vmatpush.bf16.msrb.mxu3 %v10068_v33  ;;  %v6966_v33 = vld [vmem:[%s11408_s5 + $0x114] sm:$0xf0] }
 0x519   :  { %v6429_v32 = vor.u32 %v6966_v33, %v6428_v25 }
 0x51a   :  { %v4682_v24 = vpop.f32.mrf.mxu1 }
 0x51b   :  { %v10314_v12 = vadd.f32 %v4682_v24, %v4514_v34  ;;  %v10331_v10 = vpop.f32.mrf.mxu0  ;;  %v10384_v34 = vpop.permute.xlu1 %3656 }
 0x51c   :  { %5002 = vmatpush.bf16.msrb.mxu3 %v10043_v0  ;;  %v4516_v0 = vadd.f32 %v10127_v29, %v10201_v50 }
 0x51d   :  { %4721 = vmatmul.bf16.gmra.mxu1 %v6473_v23  ;;  %v4521_v23 = vadd.f32 %v10159_v1, %v10225_v54  ;;  %v6580_v54 = vld [vmem:[%s11408_s5 + $0x240] sm:$0xf] }
 0x51e   :  { %4577 = vmatmul.bf16.gmra.mxu0 %v6549_v31  ;;  %v10398_v53 = vpop.permute.xlu0 %3666 }
 0x520   :  { %5003 = vmatpush.bf16.msrb.mxu3 %v10013_v37  ;;  %v6486_v37 = vld [vmem:[%s11408_s5 + $0x190] sm:$0xf0] }
 0x521   :  { %v6489_v36 = vor.u32 %v6979_v5, %v6486_v37 }
 0x522   :  { %v4684_v40 = vpop.f32.mrf.mxu1 }
 0x523   :  { %v10338_v48 = vadd.f32 %v4684_v40, %v4516_v0  ;;  %4875 = vmatmul.bf16.gmra.mxu2 %v6429_v32  ;;  %5004 = vmatmul.bf16.vlgmr.msrb.gmra.mxu3 %v6305_v13  ;;  %v10350_v29 = vpop.f32.mrf.mxu0  ;;  %v7005_v32 = vld [vmem:[%s11408_s5 + $0x24c] sm:$0xf0]  ;;  %v10409_v13 = vpop.permute.xlu2 %3676  ;;  %v4524_v0 = vadd.f32 %v10184_v43, %v10240_v45  ;;  %v6940_v43 = vld [vmem:[%s11408_s5 + $0x4c] sm:$0xf]  ;;  %v6334_v45 = vld [vmem:[%s11408_s5 + $0x58] sm:$0xf0] }
 0x524   :  { %v6581_v37 = vor.u32 %v7005_v32, %v6580_v54 }
 0x526   :  { %v4836_v60 = vpop.f32.mrf.mxu2 }
 0x527   :  { %v10353_v50 = vadd.f32 %v4836_v60, %v10182_v63  ;;  %v6444_v63 = vld [vmem:[%s11408_s5 + $0x128] sm:$0xf]  ;;  %v10413_v60 = vpop.permute.xlu1 %3671 }
 0x528   :  { %v6445_v30 = vor.u32 %v6970_v7, %v6444_v63  ;;  %v6337_v63 = vor.u32 %v6940_v43, %v6334_v45  ;;  %v10434_v7 = vpop.permute.xlu0 %3681 }
 0x52a   :  { %v4687_v21 = vpop.f32.mrf.mxu1 }
 0x52b   :  { %v10363_v61 = vadd.f32 %v4687_v21, %v4519_v57  ;;  %v10388_v24 = vpop.f32.mrf.mxu0  ;;  %v6974_v57 = vld [vmem:[%s11408_s5 + $0x154] sm:$0xf0] }
 0x52d   :  { %4726 = vmatmul.bf16.gmra.mxu1 %v6489_v36 }
 0x52e   :  { %4582 = vmatmul.bf16.gmra.mxu0 %v6565_v28  ;;  %v4838_v15 = vpop.f32.mrf.mxu2  ;;  %v6461_v28 = vor.u32 %v6974_v57, %v6460_v52  ;;  %v6944_v52 = vld [vmem:[%s11408_s5 + $0x6c] sm:$0xf] }
 0x52f   :  { %v10382_v9 = vadd.f32 %v4838_v15, %v10197_v11  ;;  %v6983_v11 = vld [vmem:[%s11408_s5 + $0x1a4] sm:$0xf]  ;;  %v10438_v15 = vpop.permute.xlu2 %3691 }
 0x530   :  { %v6505_v40 = vor.u32 %v6983_v11, %v6502_v16  ;;  %v7009_v11 = vld [vmem:[%s11408_s5 + $0x26c] sm:$0xf0]  ;;  %v4529_v16 = vadd.f32 %v10229_v26, %v10250_v44  ;;  %v6350_v26 = vld [vmem:[%s11408_s5 + $0x78] sm:$0xf0] }
 0x532   :  { %v4689_v31 = vpop.f32.mrf.mxu1 }
 0x533   :  { %v10390_v25 = vadd.f32 %v4689_v31, %v4521_v23  ;;  %4880 = vmatmul.bf16.gmra.mxu2 %v6445_v30  ;;  %5009 = vmatmul.bf16.gmra.mxu3 %v6321_v59  ;;  %v10442_v59 = vpop.permute.xlu1 %3686  ;;  %v6987_v31 = vld [vmem:[%s11408_s5 + $0x1c4] sm:$0xf] }
 0x534   :  { %v6521_v54 = vor.u32 %v6987_v31, %v6518_v46 }
 0x536   :  { %v4841_v33 = vpop.f32.mrf.mxu2 }
 0x537   :  { %v10401_v1 = vadd.f32 %v4841_v33, %v10227_v49  ;;  %v10415_v49 = vpop.f32.mrf.mxu0  ;;  %v6596_v33 = vld [vmem:[%s11408_s5 + $0x260] sm:$0xf]  ;;  %v10479_v44 = vpop.permute.xlu2 %3706 }
 0x53a   :  { %v4692_v5 = vpop.f32.mrf.mxu1 }
 0x53b   :  { %v10417_v62 = vadd.f32 %v4692_v5, %v4524_v0  ;;  %v6597_v0 = vor.u32 %v7009_v11, %v6596_v33  ;;  %v10481_v57 = vpop.permute.xlu1 %3701  ;;  %v6991_v33 = vld [vmem:[%s11408_s5 + $0x1e4] sm:$0xf] }
 0x53d   :  { %4731 = vmatmul.bf16.gmra.mxu1 %v6505_v40  ;;  %v10463_v40 = vpop.permute.xlu0 %3696 }
 0x53e   :  { %4587 = vmatmul.bf16.gmra.mxu0 %v6581_v37  ;;  %v4843_v36 = vpop.f32.mrf.mxu2  ;;  %v6978_v37 = vld [vmem:[%s11408_s5 + $0x174] sm:$0xf0] }
 0x53f   :  { %v10432_v21 = vadd.f32 %v4843_v36, %v10246_v17  ;;  %v10444_v23 = vpop.f32.mrf.mxu0  ;;  %v10500_v11 = vpop.permute.xlu2 %3721 }
 0x542   :  { %v4694_v38 = vpop.f32.mrf.mxu1 }
 0x543   :  { %v10440_v30 = vadd.f32 %v4694_v38, %v4526_v51  ;;  %4885 = vmatmul.bf16.gmra.mxu2 %v6461_v28  ;;  %5014 = vmatmul.bf16.gmra.mxu3 %v6337_v63  ;;  %v6353_v63 = vor.u32 %v6944_v52, %v6350_v26  ;;  %v4531_v51 = vadd.f32 %v10248_v42, %v10266_v55  ;;  %v6612_v55 = vld [vmem:[%s11408_s5 + $0x280] sm:$0xf]  ;;  %v6492_v26 = vld [vmem:[%s11408_s5 + $0x188] sm:$0xf] }
 0x545   :  { %v10492_v31 = vpop.permute.xlu0 %3711 }
 0x546   :  { %v4846_v17 = vpop.f32.mrf.mxu2 }
 0x547   :  { %v10453_v4 = vadd.f32 %v4846_v17, %v10270_v56  ;;  %v6476_v56 = vld [vmem:[%s11408_s5 + $0x168] sm:$0xf]  ;;  %v10483_v45 = vpop.f32.mrf.mxu0 }
 0x548   :  { %v6477_v28 = vor.u32 %v6978_v37, %v6476_v56 }
 0x54a   :  { %v4697_v32 = vpop.f32.mrf.mxu1 }
 0x54b   :  { %v10465_v5 = vadd.f32 %v4697_v32, %v4529_v16  ;;  %v7013_v16 = vld [vmem:[%s11408_s5 + $0x28c] sm:$0xf0]  ;;  %v4534_v32 = vadd.f32 %v10272_v20, %v10258_v18  ;;  %v6366_v18 = vld [vmem:[%s11408_s5 + $0x98] sm:$0xf0] }
 0x54c   :  { %v6613_v52 = vor.u32 %v7013_v16, %v6612_v55 }
 0x54d   :  { %4736 = vmatmul.bf16.gmra.mxu1 %v6521_v54  ;;  %v10511_v54 = vpop.permute.xlu1 %3716 }
 0x54e   :  { %4592 = vmatmul.bf16.gmra.mxu0 %v6597_v0  ;;  %v4848_v43 = vpop.f32.mrf.mxu2 }
 0x54f   :  { %v10486_v36 = vadd.f32 %v4848_v43, %v10290_v58  ;;  %v6534_v58 = vld [vmem:[%s11408_s5 + $0x1f0] sm:$0xf0]  ;;  %v10515_v0 = vpop.f32.mrf.mxu0  ;;  %v6982_v43 = vld [vmem:[%s11408_s5 + $0x194] sm:$0xf0] }
 0x550   :  { %v6537_v56 = vor.u32 %v6991_v33, %v6534_v58  ;;  %v10536_v33 = vpop.permute.xlu2 %3736  ;;  %v4536_v58 = vadd.f32 %v10292_v35, %v10281_v47  ;;  %v6628_v35 = vld [vmem:[%s11408_s5 + $0x2a0] sm:$0xf] }
 0x551   :  { %11605 = vst [vmem:[#allocation91_spill] sm:$0xff] %v10536_v33 }
 0x552   :  { %v4699_v38 = vpop.f32.mrf.mxu1 }
 0x553   :  { %v10490_v17 = vadd.f32 %v4699_v38, %v4531_v51  ;;  %4890 = vmatmul.bf16.gmra.mxu2 %v6477_v28  ;;  %5019 = vmatmul.bf16.gmra.mxu3 %v6353_v63  ;;  %v6948_v28 = vld [vmem:[%s11408_s5 + $0x8c] sm:$0xf]  ;;  %v10531_v63 = vpop.permute.xlu0 %3726  ;;  %v6493_v38 = vor.u32 %v6982_v43, %v6492_v26  ;;  %v7017_v26 = vld [vmem:[%s11408_s5 + $0x2ac] sm:$0xf0] }
 0x555   :  { %v10540_v55 = vpop.permute.xlu1 %3731 }
 0x556   :  { %v4851_v46 = vpop.f32.mrf.mxu2  ;;  %11606 = vst [vmem:[#allocation39_spill] sm:$0xff] %v10540_v55 }
 0x557   :  { %v10503_v42 = vadd.f32 %v4851_v46, %v10314_v12  ;;  %v6369_v46 = vor.u32 %v6948_v28, %v6366_v18  ;;  %v4539_v28 = vadd.f32 %v10331_v10, %v10288_v8  ;;  %v6952_v8 = vld [vmem:[%s11408_s5 + $0xac] sm:$0xf]  ;;  %v6382_v10 = vld [vmem:[%s11408_s5 + $0xb8] sm:$0xf0] }
 0x55a   :  { %v4702_v37 = vpop.f32.mrf.mxu1 }
 0x55b   :  { %v10517_v12 = vadd.f32 %v4702_v37, %v4534_v32  ;;  %v10542_v32 = vpop.f32.mrf.mxu0  ;;  %v10561_v43 = vpop.permute.xlu0 %3741 }
 0x55c   :  { %11607 = vst [vmem:[#allocation44_spill] sm:$0xff] %v10561_v43 }
 0x55d   :  { %4741 = vmatmul.bf16.gmra.mxu1 %v6537_v56 }
 0x55e   :  { %4597 = vmatmul.bf16.gmra.mxu0 %v6613_v52  ;;  %v4853_v20 = vpop.f32.mrf.mxu2  ;;  %v6550_v52 = vld [vmem:[%s11408_s5 + $0x210] sm:$0xf0] }
 0x55f   :  { %v10534_v51 = vadd.f32 %v4853_v20, %v10338_v48  ;;  %v6995_v48 = vld [vmem:[%s11408_s5 + $0x204] sm:$0xf] }
 0x560   :  { %v6553_v18 = vor.u32 %v6995_v48, %v6550_v52 }
 0x562   :  { %v4704_v16 = vpop.f32.mrf.mxu1 }
 0x563   :  { %v10544_v56 = vadd.f32 %v4704_v16, %v4536_v58  ;;  %4895 = vmatmul.bf16.gmra.mxu2 %v6493_v38  ;;  %5024 = vmatmul.bf16.gmra.mxu3 %v6369_v46  ;;  %v6629_v38 = vor.u32 %v7017_v26, %v6628_v35  ;;  %v10565_v46 = vpop.permute.xlu2 %3751  ;;  %v6508_v58 = vld [vmem:[%s11408_s5 + $0x1a8] sm:$0xf]  ;;  %v10572_v16 = vpop.permute.xlu1 %3746 }
 0x564   :  { %11608 = vst [vmem:[#allocation73_spill] sm:$0xff] %v10565_v46  ;;  %v10583_v48 = vpop.f32.mrf.mxu0 }
 0x565   :  { %11609 = vst [vmem:[#allocation97_spill] sm:$0xff] %v10572_v16  ;;  %v10590_v16 = vpop.permute.xlu0 %3756 }
 0x566   :  { %v4856_v37 = vpop.f32.mrf.mxu2  ;;  %11610 = vst [vmem:[#allocation92_spill] sm:$0xff] %v10590_v16 }
 0x567   :  { %v10553_v47 = vadd.f32 %v4856_v37, %v10363_v61  ;;  %v6986_v37 = vld [vmem:[%s11408_s5 + $0x1b4] sm:$0xf0] }
 0x568   :  { %v6509_v26 = vor.u32 %v6986_v37, %v6508_v58  ;;  %v6644_v58 = vld [vmem:[%s11408_s5 + $0x2c0] sm:$0xf]  ;;  %v7021_v37 = vld [vmem:[%s11408_s5 + $0x2cc] sm:$0xf0] }
 0x56a   :  { %v4707_v20 = vpop.f32.mrf.mxu1 }
 0x56b   :  { %v10567_v61 = vadd.f32 %v4707_v20, %v4539_v28  ;;  %v6385_v28 = vor.u32 %v6952_v8, %v6382_v10  ;;  %v4541_v20 = vadd.f32 %v10350_v29, %v10284_v27  ;;  %v10594_v33 = vpop.permute.xlu2 %3766  ;;  %v6566_v27 = vld [vmem:[%s11408_s5 + $0x230] sm:$0xf0]  ;;  %v4544_v8 = vadd.f32 %v10388_v24, %v10308_v41  ;;  %v6398_v41 = vld [vmem:[%s11408_s5 + $0xd8] sm:$0xf0] }
 0x56c   :  { %11611 = vst [vmem:[#allocation62_spill] sm:$0xff] %v10594_v33  ;;  %v10604_v29 = vpop.f32.mrf.mxu0  ;;  %v4546_v33 = vadd.f32 %v10415_v49, %v10319_v3  ;;  %v6660_v49 = vld [vmem:[%s11408_s5 + $0x2e0] sm:$0xf] }
 0x56d   :  { %4746 = vmatmul.bf16.gmra.mxu1 %v6553_v18  ;;  %v10596_v18 = vpop.permute.xlu1 %3761  ;;  %v10631_v24 = vpop.permute.xlu0 %3771 }
 0x56e   :  { %4602 = vmatmul.bf16.gmra.mxu0 %v6629_v38  ;;  %v4858_v52 = vpop.f32.mrf.mxu2  ;;  %11612 = vst [vmem:[#allocation66_spill] sm:$0xff] %v10596_v18 }
 0x56f   :  { %v10586_v35 = vadd.f32 %v4858_v52, %v10390_v25  ;;  %v6999_v25 = vld [vmem:[%s11408_s5 + $0x224] sm:$0xf]  ;;  %11613 = vst [vmem:[#allocation77_spill] sm:$0xff] %v10631_v24 }
 0x570   :  { %v6569_v10 = vor.u32 %v6999_v25, %v6566_v27 }
 0x572   :  { %v4709_v46 = vpop.f32.mrf.mxu1 }
 0x573   :  { %v10592_v43 = vadd.f32 %v4709_v46, %v4541_v20  ;;  %4900 = vmatmul.bf16.gmra.mxu2 %v6509_v26  ;;  %5029 = vmatmul.bf16.gmra.mxu3 %v6385_v28  ;;  %v6645_v26 = vor.u32 %v7021_v37, %v6644_v58  ;;  %v6990_v20 = vld [vmem:[%s11408_s5 + $0x1d4] sm:$0xf0]  ;;  %v10633_v27 = vpop.permute.xlu2 %3781 }
 0x574   :  { %11614 = vst [vmem:[#allocation89_spill] sm:$0xff] %v10633_v27  ;;  %v10642_v18 = vpop.f32.mrf.mxu0 }
 0x576   :  { %v4861_v38 = vpop.f32.mrf.mxu2 }
 0x577   :  { %v10607_v46 = vadd.f32 %v4861_v38, %v10417_v62  ;;  %v6524_v62 = vld [vmem:[%s11408_s5 + $0x1c8] sm:$0xf]  ;;  %v6956_v38 = vld [vmem:[%s11408_s5 + $0xcc] sm:$0xf] }
 0x578   :  { %v6525_v37 = vor.u32 %v6990_v20, %v6524_v62  ;;  %v10652_v62 = vpop.permute.xlu0 %3786  ;;  %v4549_v20 = vadd.f32 %v10444_v23, %v10312_v14  ;;  %v6960_v14 = vld [vmem:[%s11408_s5 + $0xec] sm:$0xf]  ;;  %v6414_v23 = vld [vmem:[%s11408_s5 + $0xf8] sm:$0xf0] }
 0x579   :  { %11616 = vst [vmem:[#allocation43_spill] sm:$0xff] %v10652_v62 }
 0x57a   :  { %v4712_v52 = vpop.f32.mrf.mxu1 }
 0x57b   :  { %v10617_v28 = vadd.f32 %v4712_v52, %v4544_v8  ;;  %v6401_v8 = vor.u32 %v6956_v38, %v6398_v41  ;;  %v10638_v52 = vpop.permute.xlu1 %3776 }
 0x57c   :  { %11615 = vst [vmem:[#allocation20_spill] sm:$0xff] %v10638_v52 }
 0x57d   :  { %4751 = vmatmul.bf16.gmra.mxu1 %v6569_v10 }
 0x57e   :  { %4607 = vmatmul.bf16.gmra.mxu0 %v6645_v26  ;;  %v4863_v25 = vpop.f32.mrf.mxu2  ;;  %v6582_v26 = vld [vmem:[%s11408_s5 + $0x250] sm:$0xf0] }
 0x57f   :  { %v10636_v58 = vadd.f32 %v4863_v25, %v10440_v30  ;;  %v7003_v30 = vld [vmem:[%s11408_s5 + $0x244] sm:$0xf] }
 0x580   :  { %v6585_v38 = vor.u32 %v7003_v30, %v6582_v26 }
 0x582   :  { %v4714_v16 = vpop.f32.mrf.mxu1 }
 0x583   :  { %v10644_v55 = vadd.f32 %v4714_v16, %v4546_v33  ;;  %4905 = vmatmul.bf16.gmra.mxu2 %v6525_v37  ;;  %5034 = vmatmul.bf16.gmra.mxu3 %v6401_v8  ;;  %v7025_v33 = vld [vmem:[%s11408_s5 + $0x2ec] sm:$0xf0]  ;;  %v10663_v16 = vpop.permute.xlu2 %3796  ;;  %v10667_v41 = vpop.permute.xlu1 %3791 }
 0x584   :  { %11617 = vst [vmem:[#allocation45_spill] sm:$0xff] %v10663_v16  ;;  %v6661_v37 = vor.u32 %v7025_v33, %v6660_v49  ;;  %v6994_v16 = vld [vmem:[%s11408_s5 + $0x1f4] sm:$0xf0]  ;;  %v6417_v33 = vor.u32 %v6960_v14, %v6414_v23  ;;  %v4554_v14 = vadd.f32 %v10515_v0, %v10342_v6  ;;  %v6430_v6 = vld [vmem:[%s11408_s5 + $0x118] sm:$0xf0] }
 0x585   :  { %11618 = vst [vmem:[#allocation94_spill] sm:$0xff] %v10667_v41 }
 0x586   :  { %v4866_v10 = vpop.f32.mrf.mxu2 }
 0x587   :  { %v10655_v3 = vadd.f32 %v4866_v10, %v10465_v5  ;;  %v10669_v5 = vpop.f32.mrf.mxu0  ;;  %v6540_v10 = vld [vmem:[%s11408_s5 + $0x1e8] sm:$0xf] }
 0x588   :  { %v6541_v49 = vor.u32 %v6994_v16, %v6540_v10  ;;  %v7007_v16 = vld [vmem:[%s11408_s5 + $0x264] sm:$0xf]  ;;  %v7029_v10 = vld [vmem:[%s11408_s5 + $0x30c] sm:$0xf0] }
 0x58a   :  { %v4717_v25 = vpop.f32.mrf.mxu1 }
 0x58b   :  { %v10671_v8 = vadd.f32 %v4717_v25, %v4549_v20  ;;  %v10688_v20 = vpop.permute.xlu0 %3801  ;;  %v4551_v25 = vadd.f32 %v10483_v45, %v10336_v2  ;;  %v10692_v62 = vpop.permute.xlu2 %3811  ;;  %v6598_v2 = vld [vmem:[%s11408_s5 + $0x270] sm:$0xf0] }
 0x58c   :  { %11619 = vst [vmem:[#allocation98_spill] sm:$0xff] %v10688_v20  ;;  %v6601_v23 = vor.u32 %v7007_v16, %v6598_v2 }
 0x58d   :  { %4756 = vmatmul.bf16.gmra.mxu1 %v6585_v38  ;;  %11620 = vst [vmem:[#allocation87_spill] sm:$0xff] %v10692_v62  ;;  %v10696_v38 = vpop.permute.xlu1 %3806  ;;  %v6964_v62 = vld [vmem:[%s11408_s5 + $0x10c] sm:$0xf] }
 0x58e   :  { %4612 = vmatmul.bf16.gmra.mxu0 %v6661_v37  ;;  %v4868_v30 = vpop.f32.mrf.mxu2  ;;  %11621 = vst [vmem:[#allocation85_spill] sm:$0xff] %v10696_v38 }
 0x58f   :  { %v10686_v26 = vadd.f32 %v4868_v30, %v10490_v17  ;;  %v10698_v37 = vpop.f32.mrf.mxu0 }
 0x592   :  { %v4719_v41 = vpop.f32.mrf.mxu1 }
 0x593   :  { %v10694_v27 = vadd.f32 %v4719_v41, %v4551_v25  ;;  %4910 = vmatmul.bf16.gmra.mxu2 %v6541_v49  ;;  %5039 = vmatmul.bf16.gmra.mxu3 %v6417_v33  ;;  %v6676_v41 = vld [vmem:[%s11408_s5 + $0x300] sm:$0xf]  ;;  %v10717_v33 = vpop.permute.xlu0 %3816  ;;  %v10733_v0 = vpop.permute.xlu2 %3826 }
 0x594   :  { %v6677_v49 = vor.u32 %v7029_v10, %v6676_v41  ;;  %11622 = vst [vmem:[#allocation93_spill] sm:$0xff] %v10717_v33  ;;  %v4556_v33 = vadd.f32 %v10542_v32, %v10340_v19 }
 0x595   :  { %11623 = vst [vmem:[#allocation42_spill] sm:$0xff] %v10733_v0  ;;  %v10735_v16 = vpop.permute.xlu1 %3821 }
 0x596   :  { %v4871_v17 = vpop.f32.mrf.mxu2  ;;  %11624 = vst [vmem:[#allocation80_spill] sm:$0xff] %v10735_v16  ;;  %v7011_v16 = vld [vmem:[%s11408_s5 + $0x284] sm:$0xf] }
 0x597   :  { %v10707_v45 = vadd.f32 %v4871_v17, %v10517_v12  ;;  %v6556_v12 = vld [vmem:[%s11408_s5 + $0x208] sm:$0xf]  ;;  %v6998_v17 = vld [vmem:[%s11408_s5 + $0x214] sm:$0xf0]  ;;  %v10737_v41 = vpop.f32.mrf.mxu0 }
 0x59a   :  { %v4722_v30 = vpop.f32.mrf.mxu1 }
 0x59b   :  { %v10719_v25 = vadd.f32 %v4722_v30, %v4554_v14  ;;  %v6557_v14 = vor.u32 %v6998_v17, %v6556_v12  ;;  %v6433_v30 = vor.u32 %v6964_v62, %v6430_v6  ;;  %v10754_v62 = vpop.permute.xlu2 %3841  ;;  %v4559_v17 = vadd.f32 %v10583_v48, %v10377_v39  ;;  %v6446_v39 = vld [vmem:[%s11408_s5 + $0x138] sm:$0xf0] }
 0x59c   :  { %11626 = vst [vmem:[#allocation40_spill] sm:$0xff] %v10754_v62 }
 0x59d   :  { %4761 = vmatmul.bf16.gmra.mxu1 %v6601_v23  ;;  %v10746_v23 = vpop.permute.xlu0 %3831  ;;  %v10766_v12 = vpop.permute.xlu1 %3836 }
 0x59e   :  { %4617 = vmatmul.bf16.gmra.mxu0 %v6677_v49  ;;  %v4873_v2 = vpop.f32.mrf.mxu2  ;;  %11625 = vst [vmem:[#allocation90_spill] sm:$0xff] %v10746_v23  ;;  %v4561_v23 = vadd.f32 %v10604_v29, %v10384_v34  ;;  %v6630_v34 = vld [vmem:[%s11408_s5 + $0x2b0] sm:$0xf0] }
 0x59f   :  { %v10740_v10 = vadd.f32 %v4873_v2, %v10544_v56  ;;  %v6614_v56 = vld [vmem:[%s11408_s5 + $0x290] sm:$0xf0]  ;;  %11628 = vst [vmem:[#allocation29_spill] sm:$0xff] %v10766_v12  ;;  %v10770_v6 = vpop.f32.mrf.mxu0 }
 0x5a0   :  { %v6617_v2 = vor.u32 %v7011_v16, %v6614_v56 }
 0x5a2   :  { %v4724_v38 = vpop.f32.mrf.mxu1 }
 0x5a3   :  { %v10744_v20 = vadd.f32 %v4724_v38, %v4556_v33  ;;  %4915 = vmatmul.bf16.gmra.mxu2 %v6557_v14  ;;  %5044 = vmatmul.bf16.gmra.mxu3 %v6433_v30  ;;  %v6692_v38 = vld [vmem:[%s11408_s5 + $0x320] sm:$0xf]  ;;  %v7033_v33 = vld [vmem:[%s11408_s5 + $0x32c] sm:$0xf0]  ;;  %v7002_v30 = vld [vmem:[%s11408_s5 + $0x234] sm:$0xf0]  ;;  %v5301_v12 = vpop.permute.xlu2 %5300 }
 0x5a5   :  { %v10790_v62 = vpop.permute.xlu0 %3846  ;;  %v5296_v24 = vpop.permute.xlu1 %5295 }
 0x5a6   :  { %v4876_v0 = vpop.f32.mrf.mxu2  ;;  %v5005_v49 = vpop.f32.mrf.mxu3 }
 0x5a7   :  { %v10757_v19 = vadd.f32 %v4876_v0, %v10567_v61  ;;  %v5006_v32 = vadd.f32 %v5005_v49, %v10353_v50  ;;  %v6693_v0 = vor.u32 %v7033_v33, %v6692_v38  ;;  %v6572_v50 = vld [vmem:[%s11408_s5 + $0x228] sm:$0xf]  ;;  %v6968_v49 = vld [vmem:[%s11408_s5 + $0x12c] sm:$0xf] }
 0x5a8   :  { %v6573_v56 = vor.u32 %v7002_v30, %v6572_v50 }
 0x5a9   :  { %11627 = vst [vmem:[#allocation59_spill] sm:$0xff] %v10757_v19  ;;  %v5165_v38 = vmax.f32 %v5006_v32, 0.0 }
 0x5aa   :  { %v4727_v61 = vpop.f32.mrf.mxu1 }
 0x5ab   :  { %v10772_v14 = vadd.f32 %v4727_v61, %v4559_v17  ;;  %v6449_v61 = vor.u32 %v6968_v49, %v6446_v39  ;;  %v5613_v19 = vmul.f32 %v5296_v24, %v5165_v38  ;;  %v7015_v49 = vld [vmem:[%s11408_s5 + $0x2a4] sm:$0xf] }
 0x5ac   :  { %v6633_v39 = vor.u32 %v7015_v49, %v6630_v34 }
 0x5ad   :  { %4766 = vmatmul.bf16.gmra.mxu1 %v6617_v2 }
 0x5ae   :  { %4622 = vmatmul.bf16.gmra.mxu0 %v6693_v0  ;;  %v4878_v48 = vpop.f32.mrf.mxu2  ;;  %v5007_v16 = vpop.f32.mrf.mxu3 }
 0x5af   :  { %v10787_v33 = vadd.f32 %v4878_v48, %v10592_v43  ;;  %v5008_v17 = vadd.f32 %v5007_v16, %v10382_v9  ;;  %v10794_v0 = vpop.f32.mrf.mxu0  ;;  %v5306_v48 = vpop.permute.xlu0 %5305 }
 0x5b1   :  { %v5166_v52 = vmax.f32 %v5008_v17, 0.0  ;;  %v7006_v17 = vld [vmem:[%s11408_s5 + $0x254] sm:$0xf0] }
 0x5b2   :  { %v4729_v2 = vpop.f32.mrf.mxu1 }
 0x5b3   :  { %v5614_v50 = vmul.f32 %v5301_v12, %v5166_v52  ;;  %v10796_v32 = vadd.f32 %v4729_v2, %v4561_v23  ;;  %4920 = vmatmul.bf16.gmra.mxu2 %v6573_v56  ;;  %5049 = vmatmul.bf16.gmra.mxu3 %v6449_v61  ;;  %v6708_v52 = vld [vmem:[%s11408_s5 + $0x340] sm:$0xf]  ;;  %v7037_v23 = vld [vmem:[%s11408_s5 + $0x34c] sm:$0xf0] }
 0x5b4   :  { %v6709_v56 = vor.u32 %v7037_v23, %v6708_v52  ;;  %v4566_v52 = vadd.f32 %v10669_v5, %v10398_v53 }
 0x5b5   :  { %v5677_v43 = vadd.f32 %v5614_v50, %v5613_v19  ;;  %v4564_v19 = vadd.f32 %v10642_v18, %v10379_v22  ;;  %v6972_v22 = vld [vmem:[%s11408_s5 + $0x14c] sm:$0xf]  ;;  %v6462_v18 = vld [vmem:[%s11408_s5 + $0x158] sm:$0xf0] }
 0x5b6   :  { %v4881_v9 = vpop.f32.mrf.mxu2  ;;  %v5010_v30 = vpop.f32.mrf.mxu3 }
 0x5b7   :  { %v10805_v29 = vadd.f32 %v4881_v9, %v10617_v28  ;;  %v5011_v24 = vadd.f32 %v5010_v30, %v10401_v1  ;;  %v6588_v1 = vld [vmem:[%s11408_s5 + $0x248] sm:$0xf]  ;;  %v10830_v61 = vpop.f32.mrf.mxu0 }
 0x5b8   :  { %v6589_v34 = vor.u32 %v7006_v17, %v6588_v1  ;;  %v6724_v1 = vld [vmem:[%s11408_s5 + $0x360] sm:$0xf]  ;;  %v7041_v17 = vld [vmem:[%s11408_s5 + $0x36c] sm:$0xf0] }
 0x5b9   :  { %v5167_v12 = vmax.f32 %v5011_v24, 0.0  ;;  %v6465_v24 = vor.u32 %v6972_v22, %v6462_v18  ;;  %v4569_v22 = vadd.f32 %v10698_v37, %v10413_v60  ;;  %v6976_v60 = vld [vmem:[%s11408_s5 + $0x16c] sm:$0xf]  ;;  %v6478_v37 = vld [vmem:[%s11408_s5 + $0x178] sm:$0xf0] }
 0x5ba   :  { %v4732_v16 = vpop.f32.mrf.mxu1 }
 0x5bb   :  { %v5615_v28 = vmul.f32 %v5306_v48, %v5167_v12  ;;  %v10816_v38 = vadd.f32 %v4732_v16, %v4564_v19  ;;  %v5311_v19 = vpop.permute.xlu1 %5310 }
 0x5bd   :  { %v5678_v2 = vadd.f32 %v5677_v43, %v5615_v28  ;;  %4771 = vmatmul.bf16.gmra.mxu1 %v6633_v39 }
 0x5be   :  { %4627 = vmatmul.bf16.gmra.mxu0 %v6709_v56  ;;  %v4883_v50 = vpop.f32.mrf.mxu2  ;;  %v5012_v9 = vpop.f32.mrf.mxu3 }
 0x5bf   :  { %v10833_v30 = vadd.f32 %v4883_v50, %v10644_v55  ;;  %v5013_v49 = vadd.f32 %v5012_v9, %v10432_v21  ;;  %v7019_v21 = vld [vmem:[%s11408_s5 + $0x2c4] sm:$0xf]  ;;  %v6646_v55 = vld [vmem:[%s11408_s5 + $0x2d0] sm:$0xf0]  ;;  %v10846_v53 = vpop.f32.mrf.mxu0  ;;  %v5316_v50 = vpop.permute.xlu2 %5315 }
 0x5c1   :  { %v5168_v23 = vmax.f32 %v5013_v49, 0.0  ;;  %v6725_v49 = vor.u32 %v7041_v17, %v6724_v1  ;;  %v5321_v1 = vpop.permute.xlu0 %5320 }
 0x5c2   :  { %v4734_v12 = vpop.f32.mrf.mxu1 }
 0x5c3   :  { %v5616_v48 = vmul.f32 %v5311_v19, %v5168_v23  ;;  %v10838_v16 = vadd.f32 %v4734_v12, %v4566_v52  ;;  %4925 = vmatmul.bf16.gmra.mxu2 %v6589_v34  ;;  %5054 = vmatmul.bf16.gmra.mxu3 %v6465_v24  ;;  %v7010_v24 = vld [vmem:[%s11408_s5 + $0x274] sm:$0xf0] }
 0x5c5   :  { %v5679_v43 = vadd.f32 %v5678_v2, %v5616_v48  ;;  %v6649_v2 = vor.u32 %v7019_v21, %v6646_v55  ;;  %v4571_v21 = vadd.f32 %v10737_v41, %v10409_v13  ;;  %v6662_v13 = vld [vmem:[%s11408_s5 + $0x2f0] sm:$0xf0] }
 0x5c6   :  { %v4886_v39 = vpop.f32.mrf.mxu2  ;;  %v5015_v56 = vpop.f32.mrf.mxu3 }
 0x5c7   :  { %v10849_v5 = vadd.f32 %v4886_v39, %v10671_v8  ;;  %v5016_v28 = vadd.f32 %v5015_v56, %v10453_v4  ;;  %v6604_v4 = vld [vmem:[%s11408_s5 + $0x268] sm:$0xf]  ;;  %v6481_v56 = vor.u32 %v6976_v60, %v6478_v37  ;;  %v10880_v55 = vpop.f32.mrf.mxu0  ;;  %v5326_v60 = vpop.permute.xlu1 %5325 }
 0x5c8   :  { %v6605_v39 = vor.u32 %v7010_v24, %v6604_v4 }
 0x5c9   :  { %v5169_v18 = vmax.f32 %v5016_v28, 0.0 }
 0x5ca   :  { %v4737_v9 = vpop.f32.mrf.mxu1 }
 0x5cb   :  { %v5617_v8 = vmul.f32 %v5316_v50, %v5169_v18  ;;  %v10860_v34 = vadd.f32 %v4737_v9, %v4569_v22  ;;  %v6740_v9 = vld [vmem:[%s11408_s5 + $0x380] sm:$0xf] }
 0x5cd   :  { %v5680_v52 = vadd.f32 %v5679_v43, %v5617_v8  ;;  %4776 = vmatmul.bf16.gmra.mxu1 %v6649_v2  ;;  %v4574_v8 = vadd.f32 %v10770_v6, %v10434_v7  ;;  %v6980_v7 = vld [vmem:[%s11408_s5 + $0x18c] sm:$0xf]  ;;  %v6494_v6 = vld [vmem:[%s11408_s5 + $0x198] sm:$0xf0] }
 0x5ce   :  { %4632 = vmatmul.bf16.gmra.mxu0 %v6725_v49  ;;  %v4888_v23 = vpop.f32.mrf.mxu2  ;;  %v5017_v19 = vpop.f32.mrf.mxu3  ;;  %v7045_v49 = vld [vmem:[%s11408_s5 + $0x38c] sm:$0xf0] }
 0x5cf   :  { %v10875_v12 = vadd.f32 %v4888_v23, %v10694_v27  ;;  %v5018_v48 = vadd.f32 %v5017_v19, %v10486_v36  ;;  %v7023_v36 = vld [vmem:[%s11408_s5 + $0x2e4] sm:$0xf]  ;;  %v6620_v19 = vld [vmem:[%s11408_s5 + $0x288] sm:$0xf] }
 0x5d0   :  { %v6665_v24 = vor.u32 %v7023_v36, %v6662_v13  ;;  %v5331_v36 = vpop.permute.xlu2 %5330 }
 0x5d1   :  { %v5170_v28 = vmax.f32 %v5018_v48, 0.0  ;;  %v7014_v48 = vld [vmem:[%s11408_s5 + $0x294] sm:$0xf0] }
 0x5d2   :  { %v4739_v17 = vpop.f32.mrf.mxu1 }
 0x5d3   :  { %v5618_v43 = vmul.f32 %v5321_v1, %v5170_v28  ;;  %v10882_v22 = vadd.f32 %v4739_v17, %v4571_v21  ;;  %4930 = vmatmul.bf16.gmra.mxu2 %v6605_v39  ;;  %5059 = vmatmul.bf16.gmra.mxu3 %v6481_v56  ;;  %v6621_v17 = vor.u32 %v7014_v48, %v6620_v19  ;;  %v5336_v19 = vpop.permute.xlu0 %5335 }
 0x5d5   :  { %v5681_v18 = vadd.f32 %v5680_v52, %v5618_v43  ;;  %v6741_v52 = vor.u32 %v7045_v49, %v6740_v9  ;;  %v6497_v43 = vor.u32 %v6980_v7, %v6494_v6 }
 0x5d6   :  { %v4891_v27 = vpop.f32.mrf.mxu2  ;;  %v5020_v2 = vpop.f32.mrf.mxu3 }
 0x5d7   :  { %v10891_v41 = vadd.f32 %v4891_v27, %v10719_v25  ;;  %v5021_v50 = vadd.f32 %v5020_v2, %v10503_v42  ;;  %v10902_v25 = vpop.f32.mrf.mxu0  ;;  %v4576_v27 = vadd.f32 %v10794_v0, %v10442_v59  ;;  %v6678_v59 = vld [vmem:[%s11408_s5 + $0x310] sm:$0xf0] }
 0x5d9   :  { %v5171_v4 = vmax.f32 %v5021_v50, 0.0 }
 0x5da   :  { %v4742_v37 = vpop.f32.mrf.mxu1 }
 0x5db   :  { %v5619_v23 = vmul.f32 %v5326_v60, %v5171_v4  ;;  %v10904_v42 = vadd.f32 %v4742_v37, %v4574_v8  ;;  %v7049_v60 = vld [vmem:[%s11408_s5 + $0x3ac] sm:$0xf0]  ;;  %v4579_v37 = vadd.f32 %v10830_v61, %v10438_v15  ;;  %v6984_v15 = vld [vmem:[%s11408_s5 + $0x1ac] sm:$0xf]  ;;  %v6510_v61 = vld [vmem:[%s11408_s5 + $0x1b8] sm:$0xf0] }
 0x5dd   :  { %v5682_v39 = vadd.f32 %v5681_v18, %v5619_v23  ;;  %4781 = vmatmul.bf16.gmra.mxu1 %v6665_v24  ;;  %v6756_v24 = vld [vmem:[%s11408_s5 + $0x3a0] sm:$0xf] }
 0x5de   :  { %4637 = vmatmul.bf16.gmra.mxu0 %v6741_v52  ;;  %v4893_v56 = vpop.f32.mrf.mxu2  ;;  %v5022_v21 = vpop.f32.mrf.mxu3  ;;  %v6757_v7 = vor.u32 %v7049_v60, %v6756_v24  ;;  %v6772_v60 = vld [vmem:[%s11408_s5 + $0x3c0] sm:$0xf] }
 0x5df   :  { %v10919_v28 = vadd.f32 %v4893_v56, %v10744_v20  ;;  %v5023_v1 = vadd.f32 %v5022_v21, %v10534_v51  ;;  %v10926_v18 = vpop.f32.mrf.mxu0  ;;  %v7027_v51 = vld [vmem:[%s11408_s5 + $0x304] sm:$0xf] }
 0x5e0   :  { %v6681_v23 = vor.u32 %v7027_v51, %v6678_v59 }
 0x5e1   :  { %v5172_v2 = vmax.f32 %v5023_v1, 0.0 }
 0x5e2   :  { %v4744_v13 = vpop.f32.mrf.mxu1 }
 0x5e3   :  { %v5620_v50 = vmul.f32 %v5331_v36, %v5172_v2  ;;  %v10924_v9 = vadd.f32 %v4744_v13, %v4576_v27  ;;  %4935 = vmatmul.bf16.gmra.mxu2 %v6621_v17  ;;  %5064 = vmatmul.bf16.gmra.mxu3 %v6497_v43  ;;  %v6513_v36 = vor.u32 %v6984_v15, %v6510_v61  ;;  %v7022_v15 = vld [vmem:[%s11408_s5 + $0x2d4] sm:$0xf0] }
 0x5e4   :  { %v4581_v13 = vadd.f32 %v10846_v53, %v10463_v40 }
 0x5e5   :  { %v5683_v49 = vadd.f32 %v5682_v39, %v5620_v50  ;;  %v7018_v39 = vld [vmem:[%s11408_s5 + $0x2b4] sm:$0xf0] }
 0x5e6   :  { %v4896_v20 = vpop.f32.mrf.mxu2  ;;  %v5025_v8 = vpop.f32.mrf.mxu3 }
 0x5e7   :  { %v10935_v0 = vadd.f32 %v4896_v20, %v10772_v14  ;;  %v5026_v4 = vadd.f32 %v5025_v8, %v10553_v47  ;;  %v6636_v47 = vld [vmem:[%s11408_s5 + $0x2a8] sm:$0xf]  ;;  %v10960_v17 = vpop.f32.mrf.mxu0  ;;  %v5341_v20 = vpop.permute.xlu1 %5340 }
 0x5e8   :  { %v6637_v2 = vor.u32 %v7018_v39, %v6636_v47  ;;  %v6652_v39 = vld [vmem:[%s11408_s5 + $0x2c8] sm:$0xf] }
 0x5e9   :  { %v5173_v52 = vmax.f32 %v5026_v4, 0.0 }
 0x5ea   :  { %v4747_v48 = vpop.f32.mrf.mxu1 }
 0x5eb   :  { %v5621_v14 = vmul.f32 %v5336_v19, %v5173_v52  ;;  %v10946_v6 = vadd.f32 %v4747_v48, %v4579_v37  ;;  %v7053_v37 = vld [vmem:[%s11408_s5 + $0x3cc] sm:$0xf0]  ;;  %v4584_v52 = vadd.f32 %v10880_v55, %v10481_v57  ;;  %v6988_v57 = vld [vmem:[%s11408_s5 + $0x1cc] sm:$0xf]  ;;  %v6526_v55 = vld [vmem:[%s11408_s5 + $0x1d8] sm:$0xf0] }
 0x5ed   :  { %v5684_v56 = vadd.f32 %v5683_v49, %v5621_v14  ;;  %4786 = vmatmul.bf16.gmra.mxu1 %v6681_v23  ;;  %v6773_v14 = vor.u32 %v7053_v37, %v6772_v60  ;;  %v7057_v60 = vld [vmem:[%s11408_s5 + $0x3ec] sm:$0xf0]  ;;  %v4589_v37 = vadd.f32 %v10926_v18, %v10492_v31  ;;  %v6992_v31 = vld [vmem:[%s11408_s5 + $0x1ec] sm:$0xf]  ;;  %v6542_v18 = vld [vmem:[%s11408_s5 + $0x1f8] sm:$0xf0] }
 0x5ee   :  { %4642 = vmatmul.bf16.gmra.mxu0 %v6757_v7  ;;  %v4898_v21 = vpop.f32.mrf.mxu2  ;;  %v5027_v1 = vpop.f32.mrf.mxu3 }
 0x5ef   :  { %v10963_v43 = vadd.f32 %v4898_v21, %v10796_v32  ;;  %v5028_v27 = vadd.f32 %v5027_v1, %v10586_v35  ;;  %v7031_v35 = vld [vmem:[%s11408_s5 + $0x324] sm:$0xf]  ;;  %v6694_v32 = vld [vmem:[%s11408_s5 + $0x330] sm:$0xf0]  ;;  %v10988_v23 = vpop.f32.mrf.mxu0  ;;  %v5346_v7 = vpop.permute.xlu2 %5345 }
 0x5f0   :  { %v6697_v48 = vor.u32 %v7031_v35, %v6694_v32 }
 0x5f1   :  { %v5174_v50 = vmax.f32 %v5028_v27, 0.0 }
 0x5f2   :  { %v4749_v8 = vpop.f32.mrf.mxu1 }
 0x5f3   :  { %v5622_v49 = vmul.f32 %v5341_v20, %v5174_v50  ;;  %v10968_v51 = vadd.f32 %v4749_v8, %v4581_v13  ;;  %4940 = vmatmul.bf16.gmra.mxu2 %v6637_v2  ;;  %5069 = vmatmul.bf16.gmra.mxu3 %v6513_v36  ;;  %v6653_v2 = vor.u32 %v7022_v15, %v6652_v39  ;;  %v5351_v20 = vpop.permute.xlu0 %5350 }
 0x5f4   :  { %v6529_v36 = vor.u32 %v6988_v57, %v6526_v55  ;;  %v4586_v13 = vadd.f32 %v10902_v25, %v10479_v44  ;;  %v6710_v44 = vld [vmem:[%s11408_s5 + $0x350] sm:$0xf0] }
 0x5f5   :  { %v5685_v59 = vadd.f32 %v5684_v56, %v5622_v49 }
 0x5f6   :  { %v4901_v4 = vpop.f32.mrf.mxu2  ;;  %v5030_v24 = vpop.f32.mrf.mxu3 }
 0x5f7   :  { %v10977_v40 = vadd.f32 %v4901_v4, %v10816_v38  ;;  %v5031_v53 = vadd.f32 %v5030_v24, %v10607_v46  ;;  %v11010_v49 = vpop.f32.mrf.mxu0 }
 0x5f9   :  { %v5175_v19 = vmax.f32 %v5031_v53, 0.0  ;;  %v6788_v53 = vld [vmem:[%s11408_s5 + $0x3e0] sm:$0xf] }
 0x5fa   :  { %v4752_v38 = vpop.f32.mrf.mxu1 }
 0x5fb   :  { %v5623_v47 = vmul.f32 %v5346_v7, %v5175_v19  ;;  %v10990_v46 = vadd.f32 %v4752_v38, %v4584_v52  ;;  %v6789_v38 = vor.u32 %v7057_v60, %v6788_v53  ;;  %v5366_v53 = vpop.permute.xlu0 %5365 }
 0x5fd   :  { %v5686_v61 = vadd.f32 %v5685_v59, %v5623_v47  ;;  %4791 = vmatmul.bf16.gmra.mxu1 %v6697_v48  ;;  %v5356_v48 = vpop.permute.xlu1 %5355  ;;  %v7026_v47 = vld [vmem:[%s11408_s5 + $0x2f4] sm:$0xf0] }
 0x5fe   :  { %4647 = vmatmul.bf16.gmra.mxu0 %v6773_v14  ;;  %v4903_v56 = vpop.f32.mrf.mxu2  ;;  %v5032_v21 = vpop.f32.mrf.mxu3 }
 0x5ff   :  { %v11005_v1 = vadd.f32 %v4903_v56, %v10838_v16  ;;  %v5033_v27 = vadd.f32 %v5032_v21, %v10636_v58  ;;  %v7035_v58 = vld [vmem:[%s11408_s5 + $0x344] sm:$0xf]  ;;  %v4598_v39 = vpop.f32.mrf.mxu0 }
 0x600   :  { %v6713_v19 = vor.u32 %v7035_v58, %v6710_v44  ;;  %v4594_v58 = vadd.f32 %v10988_v23, %v10500_v11  ;;  %v6558_v11 = vld [vmem:[%s11408_s5 + $0x218] sm:$0xf0] }
 0x601   :  { %v5176_v50 = vmax.f32 %v5033_v27, 0.0  ;;  %v6545_v27 = vor.u32 %v6992_v31, %v6542_v18  ;;  %v4596_v31 = vadd.f32 %v11010_v49, %v10531_v63  ;;  %v6742_v63 = vld [vmem:[%s11408_s5 + $0x390] sm:$0xf0] }
 0x602   :  { %v4754_v8 = vpop.f32.mrf.mxu1 }
 0x603   :  { %v5624_v59 = vmul.f32 %v5351_v20, %v5176_v50  ;;  %v11012_v4 = vadd.f32 %v4754_v8, %v4586_v13  ;;  %4945 = vmatmul.bf16.gmra.mxu2 %v6653_v2  ;;  %5074 = vmatmul.bf16.gmra.mxu3 %v6529_v36  ;;  %v4591_v2 = vadd.f32 %v10960_v17, %v10511_v54  ;;  %v5361_v13 = vpop.permute.xlu2 %5360 }
 0x605   :  { %v5687_v24 = vadd.f32 %v5686_v61, %v5624_v59 }
 0x606   :  { %v4906_v16 = vpop.f32.mrf.mxu2  ;;  %v5035_v35 = vpop.f32.mrf.mxu3 }
 0x607   :  { %v11021_v25 = vadd.f32 %v4906_v16, %v10860_v34  ;;  %v5036_v32 = vadd.f32 %v5035_v35, %v10655_v3  ;;  %v6668_v3 = vld [vmem:[%s11408_s5 + $0x2e8] sm:$0xf]  ;;  %v4600_v54 = vpop.f32.mrf.mxu0 }
 0x608   :  { %v6669_v21 = vor.u32 %v7026_v47, %v6668_v3 }
 0x609   :  { %v5177_v52 = vmax.f32 %v5036_v32, 0.0 }
 0x60a   :  { %v4757_v7 = vpop.f32.mrf.mxu1 }
 0x60b   :  { %v5625_v34 = vmul.f32 %v5356_v48, %v5177_v52  ;;  %v11032_v14 = vadd.f32 %v4757_v7, %v4589_v37 }
 0x60d   :  { %v5688_v15 = vadd.f32 %v5687_v24, %v5625_v34  ;;  %4796 = vmatmul.bf16.gmra.mxu1 %v6713_v19  ;;  %v6684_v19 = vld [vmem:[%s11408_s5 + $0x308] sm:$0xf] }
 0x60e   :  { %4652 = vmatmul.bf16.gmra.mxu0 %v6789_v38  ;;  %v4908_v57 = vpop.f32.mrf.mxu2  ;;  %v5037_v55 = vpop.f32.mrf.mxu3 }
 0x60f   :  { %v11047_v61 = vadd.f32 %v4908_v57, %v10882_v22  ;;  %v5038_v56 = vadd.f32 %v5037_v55, %v10686_v26  ;;  %v7039_v26 = vld [vmem:[%s11408_s5 + $0x364] sm:$0xf]  ;;  %v6726_v22 = vld [vmem:[%s11408_s5 + $0x370] sm:$0xf0]  ;;  %v4603_v18 = vpop.f32.mrf.mxu0  ;;  %v5371_v57 = vpop.permute.xlu1 %5370 }
 0x610   :  { %v6729_v32 = vor.u32 %v7039_v26, %v6726_v22 }
 0x611   :  { %v5178_v36 = vmax.f32 %v5038_v56, 0.0 }
 0x612   :  { %v4759_v50 = vpop.f32.mrf.mxu1 }
 0x613   :  { %v5626_v20 = vmul.f32 %v5361_v13, %v5178_v36  ;;  %v11052_v8 = vadd.f32 %v4759_v50, %v4591_v2  ;;  %4950 = vmatmul.bf16.gmra.mxu2 %v6669_v21  ;;  %5079 = vmatmul.bf16.gmra.mxu3 %v6545_v27  ;;  %v11629_v36 = vld [vmem:[#allocation59_spill] sm:$0xff] }
 0x614   :  { %v11630_v50 = vld [vmem:[#allocation39_spill] sm:$0xff] }
 0x615   :  { %v5689_v59 = vadd.f32 %v5688_v15, %v5626_v20  ;;  %v4599_v20 = vadd.f32 %v4598_v39, %v11630_v50  ;;  %v7000_v39 = vld [vmem:[%s11408_s5 + $0x22c] sm:$0xf] }
 0x616   :  { %v4911_v24 = vpop.f32.mrf.mxu2  ;;  %v5040_v16 = vpop.f32.mrf.mxu3 }
 0x617   :  { %v11061_v17 = vadd.f32 %v4911_v24, %v10904_v42  ;;  %v5041_v35 = vadd.f32 %v5040_v16, %v10707_v45  ;;  %v7030_v42 = vld [vmem:[%s11408_s5 + $0x314] sm:$0xf0]  ;;  %v6996_v45 = vld [vmem:[%s11408_s5 + $0x20c] sm:$0xf]  ;;  %v5376_v16 = vpop.permute.xlu2 %5375  ;;  %v4605_v22 = vpop.f32.mrf.mxu0 }
 0x618   :  { %v6685_v3 = vor.u32 %v7030_v42, %v6684_v19  ;;  %v6561_v47 = vor.u32 %v6996_v45, %v6558_v11 }
 0x619   :  { %v5179_v44 = vmax.f32 %v5041_v35, 0.0 }
 0x61a   :  { %v4762_v60 = vpop.f32.mrf.mxu1 }
 0x61b   :  { %v5627_v37 = vmul.f32 %v5366_v53, %v5179_v44  ;;  %v11066_v52 = vadd.f32 %v4762_v60, %v4594_v58  ;;  %v6700_v44 = vld [vmem:[%s11408_s5 + $0x328] sm:$0xf] }
 0x61d   :  { %v5690_v23 = vadd.f32 %v5689_v59, %v5627_v37  ;;  %4801 = vmatmul.bf16.gmra.mxu1 %v6729_v32  ;;  %v6574_v32 = vld [vmem:[%s11408_s5 + $0x238] sm:$0xf0] }
 0x61e   :  { %v4913_v48 = vpop.f32.mrf.mxu2  ;;  %v5042_v7 = vpop.f32.mrf.mxu3  ;;  %v6577_v11 = vor.u32 %v7000_v39, %v6574_v32 }
 0x61f   :  { %v11081_v38 = vadd.f32 %v4913_v48, %v10924_v9  ;;  %v5043_v34 = vadd.f32 %v5042_v7, %v10740_v10  ;;  %v7043_v10 = vld [vmem:[%s11408_s5 + $0x384] sm:$0xf] }
 0x620   :  { %v6745_v24 = vor.u32 %v7043_v10, %v6742_v63 }
 0x621   :  { %v5180_v15 = vmax.f32 %v5043_v34, 0.0  ;;  %v5381_v34 = vpop.permute.xlu0 %5380 }
 0x622   :  { %v4764_v55 = vpop.f32.mrf.mxu1 }
 0x623   :  { %v5628_v56 = vmul.f32 %v5371_v57, %v5180_v15  ;;  %v11086_v21 = vadd.f32 %v4764_v55, %v4596_v31  ;;  %4955 = vmatmul.bf16.gmra.mxu2 %v6685_v3  ;;  %5084 = vmatmul.bf16.gmra.mxu3 %v6561_v47  ;;  %v4608_v15 = vpop.f32.mrf.mxu0 }
 0x625   :  { %v5691_v27 = vadd.f32 %v5690_v23, %v5628_v56  ;;  %v11631_v23 = vld [vmem:[#allocation91_spill] sm:$0xff] }
 0x626   :  { %v4916_v2 = vpop.f32.mrf.mxu2  ;;  %v5045_v9 = vpop.f32.mrf.mxu3  ;;  %v4601_v48 = vadd.f32 %v4600_v54, %v11631_v23 }
 0x627   :  { %v11095_v49 = vadd.f32 %v4916_v2, %v10946_v6  ;;  %v5046_v13 = vadd.f32 %v5045_v9, %v11629_v36  ;;  %v7034_v6 = vld [vmem:[%s11408_s5 + $0x334] sm:$0xf0]  ;;  %v11632_v2 = vld [vmem:[#allocation44_spill] sm:$0xff]  ;;  %v5386_v36 = vpop.permute.xlu1 %5385 }
 0x628   :  { %v6701_v45 = vor.u32 %v7034_v6, %v6700_v44  ;;  %v4604_v9 = vadd.f32 %v4603_v18, %v11632_v2  ;;  %v6590_v18 = vld [vmem:[%s11408_s5 + $0x258] sm:$0xf0] }
 0x629   :  { %v5181_v59 = vmax.f32 %v5046_v13, 0.0 }
 0x62a   :  { %v4767_v26 = vpop.f32.mrf.mxu1 }
 0x62b   :  { %v5629_v35 = vmul.f32 %v5376_v16, %v5181_v59  ;;  %v11099_v58 = vadd.f32 %v4767_v26, %v4599_v20  ;;  %v6716_v59 = vld [vmem:[%s11408_s5 + $0x348] sm:$0xf] }
 0x62d   :  { %v5692_v53 = vadd.f32 %v5691_v27, %v5629_v35  ;;  %4806 = vmatmul.bf16.gmra.mxu1 %v6745_v24  ;;  %v4610_v35 = vpop.f32.mrf.mxu0 }
 0x62e   :  { %v4918_v60 = vpop.f32.mrf.mxu2  ;;  %v5047_v37 = vpop.f32.mrf.mxu3 }
 0x62f   :  { %v11114_v19 = vadd.f32 %v4918_v60, %v10968_v51  ;;  %v5048_v42 = vadd.f32 %v5047_v37, %v10787_v33  ;;  %v7047_v33 = vld [vmem:[%s11408_s5 + $0x3a4] sm:$0xf]  ;;  %v6758_v51 = vld [vmem:[%s11408_s5 + $0x3b0] sm:$0xf0] }
 0x630   :  { %v6761_v63 = vor.u32 %v7047_v33, %v6758_v51  ;;  %v5396_v51 = vpop.permute.xlu0 %5395 }
 0x631   :  { %v5182_v7 = vmax.f32 %v5048_v42, 0.0  ;;  %v5391_v42 = vpop.permute.xlu2 %5390 }
 0x632   :  { %v4769_v3 = vpop.f32.mrf.mxu1 }
 0x633   :  { %v5630_v47 = vmul.f32 %v5381_v34, %v5182_v7  ;;  %v11118_v31 = vadd.f32 %v4769_v3, %v4601_v48  ;;  %4960 = vmatmul.bf16.gmra.mxu2 %v6701_v45  ;;  %5089 = vmatmul.bf16.gmra.mxu3 %v6577_v11 }
 0x635   :  { %v5693_v57 = vadd.f32 %v5692_v53, %v5630_v47  ;;  %v11633_v53 = vld [vmem:[#allocation97_spill] sm:$0xff] }
 0x636   :  { %v4921_v55 = vpop.f32.mrf.mxu2  ;;  %v5050_v56 = vpop.f32.mrf.mxu3  ;;  %v4606_v60 = vadd.f32 %v4605_v22, %v11633_v53  ;;  %v11634_v47 = vld [vmem:[#allocation73_spill] sm:$0xff] }
 0x637   :  { %v11127_v54 = vadd.f32 %v4921_v55, %v10990_v46  ;;  %v5051_v27 = vadd.f32 %v5050_v56, %v10805_v29  ;;  %v7038_v46 = vld [vmem:[%s11408_s5 + $0x354] sm:$0xf0]  ;;  %v7004_v29 = vld [vmem:[%s11408_s5 + $0x24c] sm:$0xf]  ;;  %v4613_v55 = vpop.f32.mrf.mxu0 }
 0x638   :  { %v6717_v39 = vor.u32 %v7038_v46, %v6716_v59  ;;  %v6593_v32 = vor.u32 %v7004_v29, %v6590_v18  ;;  %v11635_v18 = vld [vmem:[#allocation92_spill] sm:$0xff] }
 0x639   :  { %v5183_v10 = vmax.f32 %v5051_v27, 0.0 }
 0x63a   :  { %v4772_v13 = vpop.f32.mrf.mxu1 }
 0x63b   :  { %v5631_v50 = vmul.f32 %v5386_v36, %v5183_v10  ;;  %v11131_v20 = vadd.f32 %v4772_v13, %v4604_v9  ;;  %v6732_v10 = vld [vmem:[%s11408_s5 + $0x368] sm:$0xf] }
 0x63d   :  { %v5694_v24 = vadd.f32 %v5693_v57, %v5631_v50  ;;  %4811 = vmatmul.bf16.gmra.mxu1 %v6761_v63  ;;  %v4609_v57 = vadd.f32 %v4608_v15, %v11634_v47  ;;  %v6606_v15 = vld [vmem:[%s11408_s5 + $0x278] sm:$0xf0] }
 0x63e   :  { %v4923_v16 = vpop.f32.mrf.mxu2  ;;  %v5052_v26 = vpop.f32.mrf.mxu3 }
 0x63f   :  { %v11146_v44 = vadd.f32 %v4923_v16, %v11012_v4  ;;  %v5053_v6 = vadd.f32 %v5052_v26, %v10833_v30  ;;  %v7051_v4 = vld [vmem:[%s11408_s5 + $0x3c4] sm:$0xf]  ;;  %v6774_v30 = vld [vmem:[%s11408_s5 + $0x3d0] sm:$0xf0]  ;;  %v5401_v26 = vpop.permute.xlu1 %5400 }
 0x640   :  { %v6777_v33 = vor.u32 %v7051_v4, %v6774_v30  ;;  %v5406_v4 = vpop.permute.xlu2 %5405 }
 0x641   :  { %v5184_v37 = vmax.f32 %v5053_v6, 0.0 }
 0x642   :  { %v4774_v45 = vpop.f32.mrf.mxu1 }
 0x643   :  { %v5632_v11 = vmul.f32 %v5391_v42, %v5184_v37  ;;  %v11150_v23 = vadd.f32 %v4774_v45, %v4606_v60  ;;  %4965 = vmatmul.bf16.gmra.mxu2 %v6717_v39  ;;  %5094 = vmatmul.bf16.gmra.mxu3 %v6593_v32  ;;  %v4615_v39 = vpop.f32.mrf.mxu0 }
 0x645   :  { %v5695_v48 = vadd.f32 %v5694_v24, %v5632_v11  ;;  %v4611_v24 = vadd.f32 %v4610_v35, %v11635_v18  ;;  %v11636_v11 = vld [vmem:[#allocation66_spill] sm:$0xff] }
 0x646   :  { %v4926_v7 = vpop.f32.mrf.mxu2  ;;  %v5055_v34 = vpop.f32.mrf.mxu3 }
 0x647   :  { %v11159_v22 = vadd.f32 %v4926_v7, %v11032_v14  ;;  %v5056_v3 = vadd.f32 %v5055_v34, %v10849_v5  ;;  %v7042_v14 = vld [vmem:[%s11408_s5 + $0x374] sm:$0xf0]  ;;  %v7008_v5 = vld [vmem:[%s11408_s5 + $0x26c] sm:$0xf] }
 0x648   :  { %v6733_v46 = vor.u32 %v7042_v14, %v6732_v10  ;;  %v6609_v29 = vor.u32 %v7008_v5, %v6606_v15  ;;  %v11637_v15 = vld [vmem:[#allocation62_spill] sm:$0xff] }
 0x649   :  { %v5185_v56 = vmax.f32 %v5056_v3, 0.0 }
 0x64a   :  { %v4777_v27 = vpop.f32.mrf.mxu1 }
 0x64b   :  { %v5633_v2 = vmul.f32 %v5396_v51, %v5185_v56  ;;  %v11163_v9 = vadd.f32 %v4777_v27, %v4609_v57  ;;  %v6748_v57 = vld [vmem:[%s11408_s5 + $0x388] sm:$0xf]  ;;  %v4618_v56 = vpop.f32.mrf.mxu0 }
 0x64d   :  { %v5696_v63 = vadd.f32 %v5695_v48, %v5633_v2  ;;  %4816 = vmatmul.bf16.gmra.mxu1 %v6777_v33  ;;  %v4614_v48 = vadd.f32 %v4613_v55, %v11636_v11  ;;  %v6622_v55 = vld [vmem:[%s11408_s5 + $0x298] sm:$0xf0] }
 0x64e   :  { %v4928_v36 = vpop.f32.mrf.mxu2  ;;  %v5057_v13 = vpop.f32.mrf.mxu3 }
 0x64f   :  { %v11178_v50 = vadd.f32 %v4928_v36, %v11052_v8  ;;  %v5058_v59 = vadd.f32 %v5057_v13, %v10875_v12  ;;  %v7055_v12 = vld [vmem:[%s11408_s5 + $0x3e4] sm:$0xf]  ;;  %v6790_v8 = vld [vmem:[%s11408_s5 + $0x3f0] sm:$0xf0]  ;;  %v5411_v13 = vpop.permute.xlu0 %5410 }
 0x650   :  { %v6793_v34 = vor.u32 %v7055_v12, %v6790_v8  ;;  %v6764_v8 = vld [vmem:[%s11408_s5 + $0x3a8] sm:$0xf] }
 0x651   :  { %v5186_v16 = vmax.f32 %v5058_v59, 0.0 }
 0x652   :  { %v4779_v6 = vpop.f32.mrf.mxu1 }
 0x653   :  { %v5634_v32 = vmul.f32 %v5401_v26, %v5186_v16  ;;  %v11182_v53 = vadd.f32 %v4779_v6, %v4611_v24  ;;  %4970 = vmatmul.bf16.gmra.mxu2 %v6733_v46  ;;  %5099 = vmatmul.bf16.gmra.mxu3 %v6609_v29  ;;  %v4620_v26 = vpop.f32.mrf.mxu0  ;;  %v11638_v6 = vld [vmem:[#allocation77_spill] sm:$0xff] }
 0x655   :  { %v5697_v60 = vadd.f32 %v5696_v63, %v5634_v32  ;;  %v4616_v63 = vadd.f32 %v4615_v39, %v11637_v15  ;;  %v4619_v32 = vadd.f32 %v4618_v56, %v11638_v6  ;;  %v5421_v56 = vpop.permute.xlu2 %5420  ;;  %v11640_v15 = vld [vmem:[#allocation89_spill] sm:$0xff] }
 0x656   :  { %v4931_v37 = vpop.f32.mrf.mxu2  ;;  %v5060_v42 = vpop.f32.mrf.mxu3 }
 0x657   :  { %v11191_v35 = vadd.f32 %v4931_v37, %v11066_v52  ;;  %v5061_v45 = vadd.f32 %v5060_v42, %v10891_v41  ;;  %v7046_v52 = vld [vmem:[%s11408_s5 + $0x394] sm:$0xf0]  ;;  %v7012_v41 = vld [vmem:[%s11408_s5 + $0x28c] sm:$0xf] }
 0x658   :  { %v6749_v14 = vor.u32 %v7046_v52, %v6748_v57  ;;  %v6625_v5 = vor.u32 %v7012_v41, %v6622_v55  ;;  %v11639_v57 = vld [vmem:[#allocation20_spill] sm:$0xff] }
 0x659   :  { %v5187_v7 = vmax.f32 %v5061_v45, 0.0  ;;  %v7050_v45 = vld [vmem:[%s11408_s5 + $0x3b4] sm:$0xf0]  ;;  %v4621_v52 = vadd.f32 %v4620_v26, %v11639_v57  ;;  %v6654_v26 = vld [vmem:[%s11408_s5 + $0x2d8] sm:$0xf0] }
 0x65a   :  { %v4782_v30 = vpop.f32.mrf.mxu1 }
 0x65b   :  { %v5635_v3 = vmul.f32 %v5406_v4, %v5187_v7  ;;  %v11195_v47 = vadd.f32 %v4782_v30, %v4614_v48  ;;  %v6765_v30 = vor.u32 %v7050_v45, %v6764_v8  ;;  %v4623_v41 = vpop.f32.mrf.mxu0  ;;  %v11641_v8 = vld [vmem:[#allocation43_spill] sm:$0xff] }
 0x65d   :  { %v5698_v33 = vadd.f32 %v5697_v60, %v5635_v3  ;;  %4821 = vmatmul.bf16.gmra.mxu1 %v6793_v34  ;;  %v5416_v60 = vpop.permute.xlu1 %5415 }
 0x65e   :  { %v4933_v51 = vpop.f32.mrf.mxu2  ;;  %v5062_v27 = vpop.f32.mrf.mxu3 }
 0x65f   :  { %v11210_v2 = vadd.f32 %v4933_v51, %v11086_v21  ;;  %v5063_v10 = vadd.f32 %v5062_v27, %v10919_v28 }
 0x661   :  { %v5188_v36 = vmax.f32 %v5063_v10, 0.0 }
 0x662   :  { %v4784_v59 = vpop.f32.mrf.mxu1 }
 0x663   :  { %v5636_v46 = vmul.f32 %v5411_v13, %v5188_v36  ;;  %v11214_v29 = vadd.f32 %v4784_v59, %v4616_v63  ;;  %4975 = vmatmul.bf16.gmra.mxu2 %v6749_v14  ;;  %5104 = vmatmul.bf16.gmra.mxu3 %v6625_v5  ;;  %v4624_v63 = vadd.f32 %v4623_v41, %v11640_v15  ;;  %v5426_v13 = vpop.permute.xlu0 %5425 }
 0x665   :  { %v5699_v18 = vadd.f32 %v5698_v33, %v5636_v46  ;;  %v4625_v46 = vpop.f32.mrf.mxu0 }
 0x666   :  { %v4936_v24 = vpop.f32.mrf.mxu2  ;;  %v5065_v16 = vpop.f32.mrf.mxu3  ;;  %v4626_v45 = vadd.f32 %v4625_v46, %v11641_v8 }
 0x667   :  { %v11217_v21 = vadd.f32 %v4936_v24, %v11099_v58  ;;  %v5066_v28 = vadd.f32 %v5065_v16, %v10935_v0  ;;  %v7016_v0 = vld [vmem:[%s11408_s5 + $0x2ac] sm:$0xf]  ;;  %v6638_v58 = vld [vmem:[%s11408_s5 + $0x2b8] sm:$0xf0]  ;;  %v6780_v16 = vld [vmem:[%s11408_s5 + $0x3c8] sm:$0xf] }
 0x668   :  { %v6641_v3 = vor.u32 %v7016_v0, %v6638_v58  ;;  %v5431_v58 = vpop.permute.xlu1 %5430 }
 0x669   :  { %v5189_v39 = vmax.f32 %v5066_v28, 0.0 }
 0x66a   :  { %v4787_v37 = vpop.f32.mrf.mxu1 }
 0x66b   :  { %v5637_v42 = vmul.f32 %v5416_v60, %v5189_v39  ;;  %v11221_v12 = vadd.f32 %v4787_v37, %v4619_v32 }
 0x66d   :  { %v5700_v11 = vadd.f32 %v5699_v18, %v5637_v42 }
 0x66e   :  { %v4938_v48 = vpop.f32.mrf.mxu2  ;;  %v5067_v7 = vpop.f32.mrf.mxu3 }
 0x66f   :  { %v11236_v34 = vadd.f32 %v4938_v48, %v11118_v31  ;;  %v5068_v4 = vadd.f32 %v5067_v7, %v10963_v43 }
 0x671   :  { %v5190_v55 = vmax.f32 %v5068_v4, 0.0  ;;  %v4628_v4 = vpop.f32.mrf.mxu0 }
 0x672   :  { %v4789_v33 = vpop.f32.mrf.mxu1 }
 0x673   :  { %v5638_v51 = vmul.f32 %v5421_v56, %v5190_v55  ;;  %v11240_v27 = vadd.f32 %v4789_v33, %v4621_v52  ;;  %4980 = vmatmul.bf16.gmra.mxu2 %v6765_v30  ;;  %5109 = vmatmul.bf16.gmra.mxu3 %v6641_v3  ;;  %v11642_v52 = vld [vmem:[#allocation94_spill] sm:$0xff]  ;;  %v5436_v56 = vpop.permute.xlu2 %5435 }
 0x674   :  { %v4629_v41 = vadd.f32 %v4628_v4, %v11642_v52 }
 0x675   :  { %v5701_v10 = vadd.f32 %v5700_v11, %v5638_v51 }
 0x676   :  { %v4941_v14 = vpop.f32.mrf.mxu2  ;;  %v5070_v5 = vpop.f32.mrf.mxu3 }
 0x677   :  { %v11243_v31 = vadd.f32 %v4941_v14, %v11131_v20  ;;  %v5071_v43 = vadd.f32 %v5070_v5, %v10977_v40  ;;  %v7054_v20 = vld [vmem:[%s11408_s5 + $0x3d4] sm:$0xf0]  ;;  %v7020_v40 = vld [vmem:[%s11408_s5 + $0x2cc] sm:$0xf]  ;;  %v6796_v14 = vld [vmem:[%s11408_s5 + $0x3e8] sm:$0xf] }
 0x678   :  { %v6781_v37 = vor.u32 %v7054_v20, %v6780_v16  ;;  %v6657_v42 = vor.u32 %v7020_v40, %v6654_v26  ;;  %v7058_v5 = vld [vmem:[%s11408_s5 + $0x3f4] sm:$0xf0]  ;;  %v5441_v16 = vpop.permute.xlu0 %5440 }
 0x679   :  { %v5191_v36 = vmax.f32 %v5071_v43, 0.0 }
 0x67a   :  { %v4792_v59 = vpop.f32.mrf.mxu1 }
 0x67b   :  { %v5639_v18 = vmul.f32 %v5426_v13, %v5191_v36  ;;  %v11247_v24 = vadd.f32 %v4792_v59, %v4624_v63  ;;  %v6797_v59 = vor.u32 %v7058_v5, %v6796_v14 }
 0x67d   :  { %v5702_v28 = vadd.f32 %v5701_v10, %v5639_v18 }
 0x67e   :  { %v4943_v6 = vpop.f32.mrf.mxu2  ;;  %v5072_v32 = vpop.f32.mrf.mxu3 }
 0x67f   :  { %v11262_v39 = vadd.f32 %v4943_v6, %v11150_v23  ;;  %v5073_v60 = vadd.f32 %v5072_v32, %v11005_v1 }
 0x681   :  { %v5192_v0 = vmax.f32 %v5073_v60, 0.0 }
 0x682   :  { %v4794_v11 = vpop.f32.mrf.mxu1 }
 0x683   :  { %v5640_v48 = vmul.f32 %v5431_v58, %v5192_v0  ;;  %v11266_v7 = vadd.f32 %v4794_v11, %v4626_v45  ;;  %4985 = vmatmul.bf16.gmra.mxu2 %v6781_v37  ;;  %5114 = vmatmul.bf16.gmra.mxu3 %v6657_v42  ;;  %v6686_v42 = vld [vmem:[%s11408_s5 + $0x318] sm:$0xf0] }
 0x685   :  { %v5703_v30 = vadd.f32 %v5702_v28, %v5640_v48  ;;  %v5451_v48 = vpop.permute.xlu2 %5450 }
 0x686   :  { %v4946_v3 = vpop.f32.mrf.mxu2  ;;  %v5075_v57 = vpop.f32.mrf.mxu3 }
 0x687   :  { %v11269_v23 = vadd.f32 %v4946_v3, %v11163_v9  ;;  %v5076_v1 = vadd.f32 %v5075_v57, %v11021_v25  ;;  %v7024_v25 = vld [vmem:[%s11408_s5 + $0x2ec] sm:$0xf]  ;;  %v6670_v9 = vld [vmem:[%s11408_s5 + $0x2f8] sm:$0xf0] }
 0x688   :  { %v6673_v46 = vor.u32 %v7024_v25, %v6670_v9 }
 0x689   :  { %v5193_v55 = vmax.f32 %v5076_v1, 0.0 }
 0x68a   :  { %v4797_v33 = vpop.f32.mrf.mxu1 }
 0x68b   :  { %v5641_v51 = vmul.f32 %v5436_v56, %v5193_v55  ;;  %v11273_v10 = vadd.f32 %v4797_v33, %v4629_v41  ;;  %v5456_v55 = vpop.permute.xlu0 %5455 }
 0x68d   :  { %v5704_v43 = vadd.f32 %v5703_v30, %v5641_v51 }
 0x68e   :  { %v4948_v15 = vpop.f32.mrf.mxu2  ;;  %v5077_v63 = vpop.f32.mrf.mxu3 }
 0x68f   :  { %v11288_v36 = vadd.f32 %v4948_v15, %v11182_v53  ;;  %v5078_v13 = vadd.f32 %v5077_v63, %v11047_v61  ;;  %v5446_v53 = vpop.permute.xlu1 %5445  ;;  %v7028_v61 = vld [vmem:[%s11408_s5 + $0x30c] sm:$0xf] }
 0x691   :  { %v5194_v18 = vmax.f32 %v5078_v13, 0.0 }
 0x693   :  { %v5642_v20 = vmul.f32 %v5441_v16, %v5194_v18  ;;  %4990 = vmatmul.bf16.gmra.mxu2 %v6797_v59  ;;  %5119 = vmatmul.bf16.gmra.mxu3 %v6673_v46  ;;  %v5466_v16 = vpop.permute.xlu2 %5465 }
 0x695   :  { %v5705_v40 = vadd.f32 %v5704_v43, %v5642_v20 }
 0x696   :  { %v4951_v26 = vpop.f32.mrf.mxu2  ;;  %v5080_v28 = vpop.f32.mrf.mxu3 }
 0x697   :  { %v11292_v6 = vadd.f32 %v4951_v26, %v11195_v47  ;;  %v5081_v32 = vadd.f32 %v5080_v28, %v11061_v17  ;;  %v6689_v17 = vor.u32 %v7028_v61, %v6686_v42  ;;  %v5461_v9 = vpop.permute.xlu1 %5460 }
 0x699   :  { %v5195_v60 = vmax.f32 %v5081_v32, 0.0 }
 0x69b   :  { %v5643_v37 = vmul.f32 %v5446_v53, %v5195_v60  ;;  %v5471_v53 = vpop.permute.xlu0 %5470 }
 0x69d   :  { %v5706_v8 = vadd.f32 %v5705_v40, %v5643_v37 }
 0x69e   :  { %v4953_v45 = vpop.f32.mrf.mxu2  ;;  %v5082_v0 = vpop.f32.mrf.mxu3 }
 0x69f   :  { %v11302_v58 = vadd.f32 %v4953_v45, %v11214_v29  ;;  %v5083_v47 = vadd.f32 %v5082_v0, %v11081_v38  ;;  %v7032_v38 = vld [vmem:[%s11408_s5 + $0x32c] sm:$0xf]  ;;  %v6702_v29 = vld [vmem:[%s11408_s5 + $0x338] sm:$0xf0] }
 0x6a1   :  { %v5196_v11 = vmax.f32 %v5083_v47, 0.0 }
 0x6a3   :  { %v5644_v4 = vmul.f32 %v5451_v48, %v5196_v11  ;;  %5124 = vmatmul.bf16.gmra.mxu3 %v6689_v17  ;;  %v5476_v17 = vpop.permute.xlu1 %5475 }
 0x6a5   :  { %v5707_v30 = vadd.f32 %v5706_v8, %v5644_v4 }
 0x6a6   :  { %v4956_v3 = vpop.f32.mrf.mxu2  ;;  %v5085_v57 = vpop.f32.mrf.mxu3 }
 0x6a7   :  { %v11306_v1 = vadd.f32 %v4956_v3, %v11221_v12  ;;  %v5086_v52 = vadd.f32 %v5085_v57, %v11095_v49  ;;  %v6705_v49 = vor.u32 %v7032_v38, %v6702_v29  ;;  %v5481_v57 = vpop.permute.xlu2 %5480  ;;  %v5486_v38 = vpop.permute.xlu0 %5485 }
 0x6a9   :  { %v5197_v41 = vmax.f32 %v5086_v52, 0.0 }
 0x6ab   :  { %v5645_v56 = vmul.f32 %v5456_v55, %v5197_v41 }
 0x6ad   :  { %v5708_v33 = vadd.f32 %v5707_v30, %v5645_v56 }
 0x6ae   :  { %v4958_v51 = vpop.f32.mrf.mxu2  ;;  %v5087_v14 = vpop.f32.mrf.mxu3 }
 0x6af   :  { %v11316_v5 = vadd.f32 %v4958_v51, %v11240_v27  ;;  %v5088_v12 = vadd.f32 %v5087_v14, %v11114_v19  ;;  %v7036_v19 = vld [vmem:[%s11408_s5 + $0x34c] sm:$0xf]  ;;  %v6718_v27 = vld [vmem:[%s11408_s5 + $0x358] sm:$0xf0] }
 0x6b1   :  { %v5198_v25 = vmax.f32 %v5088_v12, 0.0 }
 0x6b3   :  { %v5646_v43 = vmul.f32 %v5461_v9, %v5198_v25  ;;  %5129 = vmatmul.bf16.gmra.mxu3 %v6705_v49  ;;  %v5491_v9 = vpop.permute.xlu1 %5490 }
 0x6b5   :  { %v5709_v15 = vadd.f32 %v5708_v33, %v5646_v43  ;;  %v7044_v33 = vld [vmem:[%s11408_s5 + $0x38c] sm:$0xf] }
 0x6b6   :  { %v4961_v63 = vpop.f32.mrf.mxu2  ;;  %v5090_v13 = vpop.f32.mrf.mxu3 }
 0x6b7   :  { %v11320_v59 = vadd.f32 %v4961_v63, %v11247_v24  ;;  %v5091_v46 = vadd.f32 %v5090_v13, %v11127_v54  ;;  %v6721_v54 = vor.u32 %v7036_v19, %v6718_v27 }
 0x6b9   :  { %v5199_v18 = vmax.f32 %v5091_v46, 0.0  ;;  %v5496_v46 = vpop.permute.xlu2 %5495 }
 0x6bb   :  { %v5647_v20 = vmul.f32 %v5466_v16, %v5199_v18  ;;  %v7048_v16 = vld [vmem:[%s11408_s5 + $0x3ac] sm:$0xf] }
 0x6bd   :  { %v5710_v40 = vadd.f32 %v5709_v15, %v5647_v20 }
 0x6be   :  { %v4963_v26 = vpop.f32.mrf.mxu2  ;;  %v5092_v28 = vpop.f32.mrf.mxu3 }
 0x6bf   :  { %v11330_v32 = vadd.f32 %v4963_v26, %v11266_v7  ;;  %v5093_v24 = vadd.f32 %v5092_v28, %v11146_v44  ;;  %v7040_v44 = vld [vmem:[%s11408_s5 + $0x36c] sm:$0xf]  ;;  %v6734_v7 = vld [vmem:[%s11408_s5 + $0x378] sm:$0xf0]  ;;  %v5501_v28 = vpop.permute.xlu0 %5500 }
 0x6c0   :  { %v6737_v3 = vor.u32 %v7040_v44, %v6734_v7 }
 0x6c1   :  { %v5200_v60 = vmax.f32 %v5093_v24, 0.0  ;;  %v5511_v44 = vpop.permute.xlu2 %5510 }
 0x6c3   :  { %v5648_v37 = vmul.f32 %v5471_v53, %v5200_v60  ;;  %5134 = vmatmul.bf16.gmra.mxu3 %v6721_v54 }
 0x6c5   :  { %v5711_v61 = vadd.f32 %v5710_v40, %v5648_v37  ;;  %v5506_v37 = vpop.permute.xlu1 %5505 }
 0x6c6   :  { %v4966_v42 = vpop.f32.mrf.mxu2  ;;  %v5095_v8 = vpop.f32.mrf.mxu3 }
 0x6c7   :  { %v11334_v45 = vadd.f32 %v4966_v42, %v11273_v10  ;;  %v5096_v0 = vadd.f32 %v5095_v8, %v11159_v22  ;;  %v7052_v42 = vld [vmem:[%s11408_s5 + $0x3cc] sm:$0xf] }
 0x6c9   :  { %v5201_v47 = vmax.f32 %v5096_v0, 0.0 }
 0x6cb   :  { %v5649_v11 = vmul.f32 %v5476_v17, %v5201_v47 }
 0x6cd   :  { %v5712_v48 = vadd.f32 %v5711_v61, %v5649_v11 }
 0x6ce   :  { %v5097_v4 = vpop.f32.mrf.mxu3 }
 0x6cf   :  { %v5098_v30 = vadd.f32 %v5097_v4, %v11178_v50  ;;  %v6750_v50 = vld [vmem:[%s11408_s5 + $0x398] sm:$0xf0] }
 0x6d0   :  { %v6753_v49 = vor.u32 %v7044_v33, %v6750_v50 }
 0x6d1   :  { %v5202_v10 = vmax.f32 %v5098_v30, 0.0 }
 0x6d3   :  { %v5650_v52 = vmul.f32 %v5481_v57, %v5202_v10  ;;  %5139 = vmatmul.bf16.gmra.mxu3 %v6737_v3  ;;  %v5516_v3 = vpop.permute.xlu0 %5515  ;;  %v7056_v57 = vld [vmem:[%s11408_s5 + $0x3ec] sm:$0xf] }
 0x6d5   :  { %v5713_v22 = vadd.f32 %v5712_v48, %v5650_v52 }
 0x6d6   :  { %v5100_v41 = vpop.f32.mrf.mxu3 }
 0x6d7   :  { %v5101_v55 = vadd.f32 %v5100_v41, %v11191_v35 }
 0x6d9   :  { %v5203_v56 = vmax.f32 %v5101_v55, 0.0 }
 0x6db   :  { %v5651_v29 = vmul.f32 %v5486_v38, %v5203_v56  ;;  %v5521_v38 = vpop.permute.xlu1 %5520 }
 0x6dd   :  { %v5714_v51 = vadd.f32 %v5713_v22, %v5651_v29 }
 0x6de   :  { %v5102_v14 = vpop.f32.mrf.mxu3 }
 0x6df   :  { %v5103_v12 = vadd.f32 %v5102_v14, %v11210_v2  ;;  %v6766_v2 = vld [vmem:[%s11408_s5 + $0x3b8] sm:$0xf0]  ;;  %v5526_v14 = vpop.permute.xlu2 %5525 }
 0x6e0   :  { %v6769_v40 = vor.u32 %v7048_v16, %v6766_v2 }
 0x6e1   :  { %v5204_v25 = vmax.f32 %v5103_v12, 0.0 }
 0x6e3   :  { %v5652_v43 = vmul.f32 %v5491_v9, %v5204_v25  ;;  %5144 = vmatmul.bf16.gmra.mxu3 %v6753_v49 }
 0x6e5   :  { %v5715_v35 = vadd.f32 %v5714_v51, %v5652_v43 }
 0x6e6   :  { %v5105_v15 = vpop.f32.mrf.mxu3 }
 0x6e7   :  { %v5106_v63 = vadd.f32 %v5105_v15, %v11217_v21 }
 0x6e9   :  { %v5205_v13 = vmax.f32 %v5106_v63, 0.0 }
 0x6eb   :  { %v5653_v18 = vmul.f32 %v5496_v46, %v5205_v13 }
 0x6ed   :  { %v5716_v20 = vadd.f32 %v5715_v35, %v5653_v18  ;;  %v5531_v35 = vpop.permute.xlu0 %5530  ;;  %v5536_v18 = vpop.permute.xlu1 %5535 }
 0x6ee   :  { %v5107_v19 = vpop.f32.mrf.mxu3 }
 0x6ef   :  { %v5108_v27 = vadd.f32 %v5107_v19, %v11236_v34  ;;  %v6782_v34 = vld [vmem:[%s11408_s5 + $0x3d8] sm:$0xf0] }
 0x6f0   :  { %v6785_v17 = vor.u32 %v7052_v42, %v6782_v34 }
 0x6f1   :  { %v5206_v26 = vmax.f32 %v5108_v27, 0.0  ;;  %v5541_v27 = vpop.permute.xlu2 %5540 }
 0x6f3   :  { %v5654_v24 = vmul.f32 %v5501_v28, %v5206_v26  ;;  %5149 = vmatmul.bf16.gmra.mxu3 %v6769_v40  ;;  %v4630_v40 = vpop.f32.mrf.mxu0  ;;  %v4799_v28 = vpop.f32.mrf.mxu1 }
 0x6f5   :  { %v5717_v21 = vadd.f32 %v5716_v20, %v5654_v24  ;;  %v4968_v24 = vpop.f32.mrf.mxu2 }
 0x6f6   :  { %v5110_v54 = vpop.f32.mrf.mxu3 }
 0x6f7   :  { %v5111_v60 = vadd.f32 %v5110_v54, %v11243_v31 }
 0x6f9   :  { %v5207_v53 = vmax.f32 %v5111_v60, 0.0 }
 0x6fb   :  { %v5655_v61 = vmul.f32 %v5506_v37, %v5207_v53  ;;  %v5546_v53 = vpop.permute.xlu0 %5545  ;;  %v4633_v37 = vpop.f32.mrf.mxu0 }
 0x6fc   :  { %v4802_v42 = vpop.f32.mrf.mxu1 }
 0x6fd   :  { %v5718_v8 = vadd.f32 %v5717_v21, %v5655_v61 }
 0x6fe   :  { %v5112_v0 = vpop.f32.mrf.mxu3 }
 0x6ff   :  { %v5113_v47 = vadd.f32 %v5112_v0, %v11262_v39  ;;  %v6798_v39 = vld [vmem:[%s11408_s5 + $0x3f8] sm:$0xf0] }
 0x700   :  { %v6801_v55 = vor.u32 %v7056_v57, %v6798_v39 }
 0x701   :  { %v5208_v11 = vmax.f32 %v5113_v47, 0.0  ;;  %v5551_v47 = vpop.permute.xlu1 %5550 }
 0x703   :  { %v5656_v7 = vmul.f32 %v5511_v44, %v5208_v11  ;;  %5154 = vmatmul.bf16.gmra.mxu3 %v6785_v17  ;;  %v4635_v44 = vpop.f32.mrf.mxu0 }
 0x705   :  { %v5719_v31 = vadd.f32 %v5718_v8, %v5656_v7 }
 0x706   :  { %v5115_v48 = vpop.f32.mrf.mxu3 }
 0x707   :  { %v5116_v4 = vadd.f32 %v5115_v48, %v11269_v23  ;;  %v4804_v48 = vpop.f32.mrf.mxu1 }
 0x709   :  { %v5209_v30 = vmax.f32 %v5116_v4, 0.0  ;;  %v5556_v4 = vpop.permute.xlu2 %5555 }
 0x70b   :  { %v5657_v10 = vmul.f32 %v5516_v3, %v5209_v30  ;;  %v4638_v39 = vpop.f32.mrf.mxu0 }
 0x70d   :  { %v5720_v52 = vadd.f32 %v5719_v31, %v5657_v10 }
 0x70e   :  { %v5117_v22 = vpop.f32.mrf.mxu3 }
 0x70f   :  { %v5118_v41 = vadd.f32 %v5117_v22, %v11288_v36 }
 0x711   :  { %v5210_v56 = vmax.f32 %v5118_v41, 0.0 }
 0x713   :  { %v5658_v29 = vmul.f32 %v5521_v38, %v5210_v56  ;;  %5159 = vmatmul.bf16.gmra.mxu3 %v6801_v55  ;;  %v4640_v41 = vpop.f32.mrf.mxu0 }
 0x715   :  { %v5721_v23 = vadd.f32 %v5720_v52, %v5658_v29  ;;  %v4807_v52 = vpop.f32.mrf.mxu1 }
 0x716   :  { %v5120_v33 = vpop.f32.mrf.mxu3 }
 0x717   :  { %v5121_v50 = vadd.f32 %v5120_v33, %v11292_v6 }
 0x719   :  { %v5211_v51 = vmax.f32 %v5121_v50, 0.0 }
 0x71b   :  { %v5659_v12 = vmul.f32 %v5526_v14, %v5211_v51  ;;  %v4643_v29 = vpop.f32.mrf.mxu0 }
 0x71d   :  { %v5722_v49 = vadd.f32 %v5721_v23, %v5659_v12  ;;  %v4809_v55 = vpop.f32.mrf.mxu1 }
 0x71e   :  { %v5122_v25 = vpop.f32.mrf.mxu3 }
 0x71f   :  { %v5123_v9 = vadd.f32 %v5122_v25, %v11302_v58 }
 0x721   :  { %v5212_v43 = vmax.f32 %v5123_v9, 0.0 }
 0x723   :  { %v5660_v15 = vmul.f32 %v5531_v35, %v5212_v43  ;;  %v4645_v50 = vpop.f32.mrf.mxu0 }
 0x725   :  { %v5723_v36 = vadd.f32 %v5722_v49, %v5660_v15  ;;  %v4812_v23 = vpop.f32.mrf.mxu1  ;;  %v11643_v15 = vld [vmem:[#allocation45_spill] sm:$0xff] }
 0x726   :  { %v5125_v63 = vpop.f32.mrf.mxu3 }
 0x727   :  { %v5126_v13 = vadd.f32 %v5125_v63, %v11306_v1  ;;  %v5561_v63 = vpop.permute.xlu0 %5560 }
 0x729   :  { %v5213_v46 = vmax.f32 %v5126_v13, 0.0  ;;  %v11644_v13 = vld [vmem:[#allocation98_spill] sm:$0xff] }
 0x72b   :  { %v5661_v16 = vmul.f32 %v5536_v18, %v5213_v46  ;;  %v4648_v25 = vpop.f32.mrf.mxu0  ;;  %v4634_v46 = vadd.f32 %v4633_v37, %v11644_v13 }
 0x72d   :  { %v5724_v2 = vadd.f32 %v5723_v36, %v5661_v16  ;;  %v4814_v14 = vpop.f32.mrf.mxu1  ;;  %v4631_v36 = vadd.f32 %v4630_v40, %v11643_v15 }
 0x72e   :  { %v5127_v20 = vpop.f32.mrf.mxu3 }
 0x72f   :  { %v5128_v6 = vadd.f32 %v5127_v20, %v11316_v5  ;;  %v4971_v5 = vpop.f32.mrf.mxu2  ;;  %v4800_v18 = vadd.f32 %v4799_v28, %v4631_v36  ;;  %v11645_v20 = vld [vmem:[#allocation85_spill] sm:$0xff]  ;;  %v5571_v28 = vpop.permute.xlu2 %5570 }
 0x731   :  { %v5214_v19 = vmax.f32 %v5128_v6, 0.0  ;;  %v4636_v6 = vadd.f32 %v4635_v44, %v11645_v20  ;;  %v11652_v20 = vld [vmem:[#allocation40_spill] sm:$0xff] }
 0x733   :  { %v5662_v26 = vmul.f32 %v5541_v27, %v5214_v19  ;;  %v4650_v16 = vpop.f32.mrf.mxu0  ;;  %v4803_v19 = vadd.f32 %v4802_v42, %v4634_v46  ;;  %v4969_v27 = vadd.f32 %v4968_v24, %v4800_v18 }
 0x735   :  { %v5725_v58 = vadd.f32 %v5724_v2, %v5662_v26  ;;  %v4817_v9 = vpop.f32.mrf.mxu1  ;;  %v5566_v2 = vpop.permute.xlu1 %5565 }
 0x736   :  { %v5130_v21 = vpop.f32.mrf.mxu3 }
 0x737   :  { %v5131_v54 = vadd.f32 %v5130_v21, %v11320_v59  ;;  %v4973_v30 = vpop.f32.mrf.mxu2 }
 0x739   :  { %v5215_v60 = vmax.f32 %v5131_v54, 0.0  ;;  %v4805_v54 = vadd.f32 %v4804_v48, %v4636_v6 }
 0x73b   :  { %v5663_v1 = vmul.f32 %v5546_v53, %v5215_v60  ;;  %v4972_v60 = vadd.f32 %v4971_v5, %v4803_v19 }
 0x73d   :  { %v5726_v61 = vadd.f32 %v5725_v58, %v5663_v1  ;;  %v4819_v26 = vpop.f32.mrf.mxu1  ;;  %v11646_v58 = vld [vmem:[#allocation87_spill] sm:$0xff] }
 0x73e   :  { %v5132_v34 = vpop.f32.mrf.mxu3  ;;  %v4639_v21 = vadd.f32 %v4638_v39, %v11646_v58 }
 0x73f   :  { %v5133_v8 = vadd.f32 %v5132_v34, %v11330_v32  ;;  %v4976_v32 = vpop.f32.mrf.mxu2  ;;  %v11647_v34 = vld [vmem:[#allocation93_spill] sm:$0xff] }
 0x740   :  { %v4641_v40 = vadd.f32 %v4640_v41, %v11647_v34  ;;  %v4653_v41 = vpop.f32.mrf.mxu0 }
 0x741   :  { %v5216_v0 = vmax.f32 %v5133_v8, 0.0  ;;  %v4808_v8 = vadd.f32 %v4807_v52, %v4639_v21 }
 0x743   :  { %v5664_v17 = vmul.f32 %v5551_v47, %v5216_v0  ;;  %v4974_v0 = vadd.f32 %v4973_v30, %v4805_v54  ;;  %v11648_v47 = vld [vmem:[#allocation80_spill] sm:$0xff]  ;;  %v4977_v44 = vadd.f32 %v4976_v32, %v4808_v8  ;;  %v5581_v30 = vpop.permute.xlu1 %5580 }
 0x745   :  { %v5727_v11 = vadd.f32 %v5726_v61, %v5664_v17  ;;  %v4644_v17 = vadd.f32 %v4643_v29, %v11648_v47 }
 0x746   :  { %v5135_v7 = vpop.f32.mrf.mxu3 }
 0x747   :  { %v5136_v31 = vadd.f32 %v5135_v7, %v11334_v45  ;;  %v4978_v56 = vpop.f32.mrf.mxu2  ;;  %v5576_v7 = vpop.permute.xlu0 %5575  ;;  %v4813_v48 = vadd.f32 %v4812_v23, %v4644_v17 }
 0x749   :  { %v5217_v59 = vmax.f32 %v5136_v31, 0.0  ;;  %v11649_v31 = vld [vmem:[#allocation42_spill] sm:$0xff] }
 0x74b   :  { %v5665_v3 = vmul.f32 %v5556_v4, %v5217_v59  ;;  %v4646_v59 = vadd.f32 %v4645_v50, %v11649_v31 }
 0x74d   :  { %v11383_v10 = vadd.f32 %v5727_v11, %v5665_v3  ;;  %v4810_v11 = vadd.f32 %v4809_v55, %v4641_v40  ;;  %v4815_v52 = vadd.f32 %v4814_v14, %v4646_v59  ;;  %v11651_v55 = vld [vmem:[#allocation29_spill] sm:$0xff] }
 0x74e   :  { %v5137_v57 = vpop.f32.mrf.mxu3  ;;  %v4651_v32 = vadd.f32 %v4650_v16, %v11651_v55 }
 0x74f   :  { %v4981_v45 = vpop.f32.mrf.mxu2  ;;  %v5138_v53 = vadd.f32 %v5137_v57, %v4969_v27  ;;  %v4979_v5 = vadd.f32 %v4978_v56, %v4810_v11  ;;  %v11650_v57 = vld [vmem:[#allocation90_spill] sm:$0xff] }
 0x750   :  { %v4649_v39 = vadd.f32 %v4648_v25, %v11650_v57  ;;  %v4820_v6 = vadd.f32 %v4819_v26, %v4651_v32 }
 0x751   :  { %v5218_v42 = vmax.f32 %v5138_v53, 0.0 }
 0x752   :  { %v4818_v13 = vadd.f32 %v4817_v9, %v4649_v39 }
 0x753   :  { %v5666_v15 = vmul.f32 %v5561_v63, %v5218_v42 }
 0x755   :  { %v5729_v14 = vadd.f32 %v11383_v10, %v5666_v15 }
 0x756   :  { %v5140_v22 = vpop.f32.mrf.mxu3 }
 0x757   :  { %v4983_v12 = vpop.f32.mrf.mxu2  ;;  %v5141_v37 = vadd.f32 %v5140_v22, %v4972_v60  ;;  %v4982_v22 = vadd.f32 %v4981_v45, %v4813_v48 }
 0x758   :  { %v4984_v18 = vadd.f32 %v4983_v12, %v4815_v52 }
 0x759   :  { %v5219_v4 = vmax.f32 %v5141_v37, 0.0 }
 0x75b   :  { %v5667_v50 = vmul.f32 %v5566_v2, %v5219_v4  ;;  %v5591_v2 = vpop.permute.xlu0 %5590 }
 0x75d   :  { %v5730_v9 = vadd.f32 %v5729_v14, %v5667_v50 }
 0x75e   :  { %v5142_v38 = vpop.f32.mrf.mxu3 }
 0x75f   :  { %v4986_v43 = vpop.f32.mrf.mxu2  ;;  %v5143_v24 = vadd.f32 %v5142_v38, %v4974_v0  ;;  %v4822_v38 = vpop.f32.mrf.mxu1 }
 0x760   :  { %v4987_v25 = vadd.f32 %v4986_v43, %v4818_v13  ;;  %v4655_v43 = vpop.f32.mrf.mxu0 }
 0x761   :  { %v5220_v36 = vmax.f32 %v5143_v24, 0.0 }
 0x763   :  { %v5668_v45 = vmul.f32 %v5571_v28, %v5220_v36  ;;  %v5606_v4 = vpop.permute.xlu0 %5605 }
 0x766   :  { %v5145_v33 = vpop.f32.mrf.mxu3 }
 0x767   :  { %v4988_v1 = vpop.f32.mrf.mxu2  ;;  %v5146_v3 = vadd.f32 %v5145_v33, %v4977_v44  ;;  %v4654_v33 = vadd.f32 %v4653_v41, %v11652_v20  ;;  %v4824_v28 = vpop.f32.mrf.mxu1 }
 0x768   :  { %v4989_v16 = vadd.f32 %v4988_v1, %v4820_v6  ;;  %v4656_v1 = vadd.f32 %v4655_v43, %v10790_v62 }
 0x769   :  { %v5221_v23 = vmax.f32 %v5146_v3, 0.0  ;;  %v4823_v58 = vadd.f32 %v4822_v38, %v4654_v33 }
 0x76a   :  { %v4825_v44 = vadd.f32 %v4824_v28, %v4656_v1 }
 0x76b   :  { %v5669_v21 = vmul.f32 %v5576_v7, %v5221_v23 }
 0x76e   :  { %v5147_v51 = vpop.f32.mrf.mxu3 }
 0x76f   :  { %v5148_v29 = vadd.f32 %v5147_v51, %v4979_v5  ;;  %v4991_v19 = vpop.f32.mrf.mxu2  ;;  %v5586_v51 = vpop.permute.xlu2 %5585 }
 0x770   :  { %v4992_v60 = vadd.f32 %v4991_v19, %v4823_v58 }
 0x771   :  { %v5222_v63 = vmax.f32 %v5148_v29, 0.0 }
 0x773   :  { %v5670_v53 = vmul.f32 %v5581_v30, %v5222_v63 }
 0x776   :  { %v5150_v49 = vpop.f32.mrf.mxu3 }
 0x777   :  { %v5151_v56 = vadd.f32 %v5150_v49, %v4982_v22  ;;  %v5731_v49 = vadd.f32 %v5730_v9, %v5668_v45  ;;  %v5601_v31 = vpop.permute.xlu2 %5600 }
 0x779   :  { %v5223_v54 = vmax.f32 %v5151_v56, 0.0  ;;  %v5732_v8 = vadd.f32 %v5731_v49, %v5669_v21 }
 0x77b   :  { %v5671_v10 = vmul.f32 %v5586_v51, %v5223_v54  ;;  %v5733_v47 = vadd.f32 %v5732_v8, %v5670_v53 }
 0x77d   :  { %v5734_v42 = vadd.f32 %v5733_v47, %v5671_v10 }
 0x77e   :  { %v5152_v35 = vpop.f32.mrf.mxu3 }
 0x77f   :  { %v5153_v27 = vadd.f32 %v5152_v35, %v4984_v18  ;;  %v5596_v35 = vpop.permute.xlu1 %5595  ;;  %v5750_v38 = vpop.permute.xlu2 %5749 }
 0x780   :  { %v5752_v18 = vperm.slane %v5750_v38, 0 }
 0x781   :  { %v5224_v34 = vmax.f32 %v5153_v27, 0.0 }
 0x783   :  { %v5672_v17 = vmul.f32 %v5591_v2, %v5224_v34 }
 0x785   :  { %v5735_v48 = vadd.f32 %v5734_v42, %v5672_v17 }
 0x786   :  { %v5155_v61 = vpop.f32.mrf.mxu3 }
 0x787   :  { %v5156_v12 = vadd.f32 %v5155_v61, %v4987_v25  ;;  %v4993_v61 = vpop.f32.mrf.mxu2  ;;  %v5611_v62 = vpop.permute.xlu1 %5610 }
 0x788   :  { %v4994_v59 = vadd.f32 %v4993_v61, %v4825_v44 }
 0x789   :  { %v5225_v0 = vmax.f32 %v5156_v12, 0.0 }
 0x78b   :  { %v5673_v24 = vmul.f32 %v5596_v35, %v5225_v0 }
 0x78d   :  { %v5736_v57 = vadd.f32 %v5735_v48, %v5673_v24 }
 0x78e   :  { %v5157_v46 = vpop.f32.mrf.mxu3 }
 0x78f   :  { %v5158_v26 = vadd.f32 %v5157_v46, %v4989_v16 }
 0x791   :  { %v5226_v11 = vmax.f32 %v5158_v26, 0.0 }
 0x793   :  { %v5674_v5 = vmul.f32 %v5601_v31, %v5226_v11 }
 0x795   :  { %v5737_v52 = vadd.f32 %v5736_v57, %v5674_v5 }
 0x796   :  { %v5160_v40 = vpop.f32.mrf.mxu3 }
 0x797   :  { %v5161_v37 = vadd.f32 %v5160_v40, %v4992_v60 }
 0x799   :  { %v5227_v7 = vmax.f32 %v5161_v37, 0.0 }
 0x79b   :  { %v5675_v39 = vmul.f32 %v5606_v4, %v5227_v7 }
 0x79d   :  { %v5738_v22 = vadd.f32 %v5737_v52, %v5675_v39 }
 0x79e   :  { %v5162_v3 = vpop.f32.mrf.mxu3 }
 0x79f   :  { %v5163_v41 = vadd.f32 %v5162_v3, %v4994_v59 }
 0x7a1   :  { %v5228_v30 = vmax.f32 %v5163_v41, 0.0 }
 0x7a3   :  { %v5676_v15 = vmul.f32 %v5611_v62, %v5228_v30 }
 0x7a5   :  { %v5739_v36 = vadd.f32 %v5738_v22, %v5676_v15 }
 0x7a7   :  { %v5740_v29 = vrot.slane %v5739_v36, 4 }
 0x7a9   :  { %v5741_v55 = vadd.f32 %v5740_v29, %v5739_v36 }
 0x7ab   :  { %v5742_v32 = vrot.slane %v5741_v55, 2 }
 0x7ad   :  { %v5743_v13 = vadd.f32 %v5742_v32, %v5741_v55 }
 0x7af   :  { %v5744_v46 = vrot.slane %v5743_v13, 1 }
 0x7b1   :  { %v5745_v50 = vadd.f32 %v5744_v46, %v5743_v13 }
 0x7b3   :  { %v5753_v23 = vadd.f32 %v5752_v18, %v5745_v50 }
 0x7b5   :  { %v6802_v56 = vmul.f32 -1.442695, %v5753_v23 }
 0x7b7   :  { %7069 = vpow2.f32 %v6802_v56 }
 0x7bd   :  { %v7070_v20 = vpop.eup %7069 }
 0x7be   :  { %v5757_v33 = vadd.f32 1.0, %v7070_v20 }
 0x7c0   :  { %7071 = vrcp.f32 %v5757_v33  ;;  %v5769_v14 = vand.u32 2147483648, %v5757_v33  ;;  %v5767_v63 = vand.u32 2147483647, %v5757_v33  ;;  %vm5763_vm1 = vweird.f32 %v5757_v33 }
 0x7c2   :  { %v5770_v51 = vor.u32 1.1754944e-38, %v5769_v14  ;;  %vm5768_vm3 = vcmp.eq.f32.partialorder %v5767_v63, 8.507059e+37 }
 0x7c6   :  { %v7072_v6 = vpop.eup %7071 }
 0x7c7   :  { %v5759_v25 = vmul.f32 %v7072_v6, %v5757_v33  ;;  %vm5764_vm0 = vweird.f32 %v7072_v6 }
 0x7c8   :  { %vm5765_vm2 = vmor %vm5763_vm1, %vm5764_vm0 }
 0x7c9   :  { %v5760_v19 = vsub.f32 1.0, %v5759_v25 }
 0x7cb   :  { %v5761_v45 = vmul.f32 %v7072_v6, %v5760_v19 }
 0x7cd   :  { %v5762_v27 = vadd.f32 %v7072_v6, %v5761_v45 }
 0x7cf   :  { %v5766_v58 = vsel %vm5765_vm2, %v7072_v6, %v5762_v27 }
 0x7d0   :  { %v5771_v16 = vsel %vm5768_vm3, %v5770_v51, %v5766_v58 }
 0x7d1   :  { %5773 = vst [vmem:[%s11409_s9] sm:$0x1] %v5771_v16 }

</bundles_post_ra>
